<compile_context>
chip_gen: v6e
topology: v6e:2x2x1
jax: 0.10.0
libtpu: 0.0.40
codegen_flags: <defaults>
</compile_context>

<pallas_src>
import functools

import jax
import jax.numpy as jnp
from jax import lax
from jax.experimental import pallas as pl
from jax.experimental.pallas import tpu as pltpu

# ---- config (mirrors the PyTorch module) ----
N_EMBD = 64
BLOCK_SIZE = 32
N_HEAD = 4
N_LAYER = 4
VOCAB_SIZE = 65          # len(chars) of the tiny char vocab (synthetic)
HEAD_SIZE = N_EMBD // N_HEAD
LN_EPS = 1e-5
V_PAD = 128              # lm_head columns padded lane-dense; sliced back to 65 in the wrapper
# DROPOUT == 0.0 in the reference -> identity at inference


def _layernorm(x, w, b):
    # PyTorch F.layer_norm: biased variance, eps inside rsqrt, affine. f32 math.
    mu = jnp.mean(x, axis=-1, keepdims=True)
    var = jnp.mean((x - mu) ** 2, axis=-1, keepdims=True)
    return (x - mu) * lax.rsqrt(var + LN_EPS) * w + b


def gpt_kernel(x_ref,        # (B*T, C)    f32   flattened activations
               ln_ref,       # (L*4, C)    f32   [ln1_w, ln1_b, ln2_w, ln2_b] per layer
               wqkv_ref,     # (L, C, 3C)  bf16  fused Q|K|V weights
               bqkv_ref,     # (L, 3C)     f32
               wo_ref,       # (L, C, C)   bf16  attention output projection
               bo_ref,       # (L, C)      f32
               w1_ref,       # (L, C, 4C)  bf16  FFN in
               b1_ref,       # (L, 4C)     f32
               w2_ref,       # (L, 4C, C)  bf16  FFN out
               b2_ref,       # (L, C)      f32
               lnf_ref,      # (2, C)      f32   final LN [w, b]
               wlm_ref,      # (C, V_PAD)  bf16  lm_head (zero-padded columns)
               o_ref,        # (B*T, V_PAD) f32  padded logits (lane-dense store)
               *, batch, seqlen):
    T = seqlen
    C = N_EMBD
    x = x_ref[...]                                        # (B*T, C) f32, stays resident

    # causal mask: hoisted once for all layers / batches / heads
    row = lax.broadcasted_iota(jnp.int32, (T, T), 0)
    col = lax.broadcasted_iota(jnp.int32, (T, T), 1)
    causal = col <= row
    # NOTE: the reference Head scales by C**(-0.5) where C = n_embd (not head_size)
    scale = N_EMBD ** -0.5

    for l in range(N_LAYER):                              # statically unrolled layer loop
        ln1w = ln_ref[4 * l + 0:4 * l + 1, :]
        ln1b = ln_ref[4 * l + 1:4 * l + 2, :]
        ln2w = ln_ref[4 * l + 2:4 * l + 3, :]
        ln2b = ln_ref[4 * l + 3:4 * l + 4, :]

        # ---- self-attention sub-block: x = x + sa(ln1(x)) ----
        h = _layernorm(x, ln1w, ln1b)
        qkv = jnp.dot(h.astype(jnp.bfloat16), wqkv_ref[l],
                      preferred_element_type=jnp.float32) + bqkv_ref[l:l + 1, :]
        q = qkv[:, 0 * C:1 * C]                           # f32 (B*T, C)
        k = qkv[:, 1 * C:2 * C]                           # f32
        v = qkv[:, 2 * C:3 * C].astype(jnp.bfloat16)      # bf16 for the PV matmul
        wo_l = wo_ref[l]                                  # (C, C) bf16

        batch_outs = []
        for b in range(batch):                            # tiny static loop over batch
            r0 = b * T
            out_b = jnp.zeros((T, C), jnp.float32)
            for hh in range(N_HEAD):                      # static loop over 4 heads
                s = hh * HEAD_SIZE
                qh = q[r0:r0 + T, s:s + HEAD_SIZE]        # (T, hs)
                kh = k[r0:r0 + T, s:s + HEAD_SIZE]
                vh = v[r0:r0 + T, s:s + HEAD_SIZE]
                wei = jnp.dot(qh, kh.T, preferred_element_type=jnp.float32) * scale
                wei = jnp.where(causal, wei, -1e30)
                wei = jax.nn.softmax(wei, axis=-1)        # dropout(p=0) is identity
                hout = jnp.dot(wei.astype(jnp.bfloat16), vh,
                               preferred_element_type=jnp.float32)     # (T, hs)
                # per-head accumulation through a static wo slice (no lane concat)
                out_b = out_b + jnp.dot(hout.astype(jnp.bfloat16),
                                        wo_l[s:s + HEAD_SIZE, :],
                                        preferred_element_type=jnp.float32)
            batch_outs.append(out_b)
        att = jnp.concatenate(batch_outs, axis=0)         # (B*T, C)
        x = x + att + bo_ref[l:l + 1, :]

        # ---- feed-forward sub-block: x = x + ffwd(ln2(x)) ----
        h2 = _layernorm(x, ln2w, ln2b)
        f = jnp.dot(h2.astype(jnp.bfloat16), w1_ref[l],
                    preferred_element_type=jnp.float32) + b1_ref[l:l + 1, :]
        f = jnp.maximum(f, 0.0)                           # ReLU
        f = jnp.dot(f.astype(jnp.bfloat16), w2_ref[l],
                    preferred_element_type=jnp.float32) + b2_ref[l:l + 1, :]
        x = x + f

    # ---- final LayerNorm + lm_head (no bias), lane-dense padded output ----
    hf = _layernorm(x, lnf_ref[0:1, :], lnf_ref[1:2, :])
    o_ref[...] = jnp.dot(hf.astype(jnp.bfloat16), wlm_ref[...],
                         preferred_element_type=jnp.float32)


def run_gpt(x_flat, params, batch, seqlen):
    bt = batch * seqlen
    vmem = pl.BlockSpec(memory_space=pltpu.MemorySpace.VMEM)   # whole array, VMEM-resident
    kernel = functools.partial(gpt_kernel, batch=batch, seqlen=seqlen)
    return pl.pallas_call(
        kernel,
        out_shape=jax.ShapeDtypeStruct((bt, V_PAD), jnp.float32),
        in_specs=[vmem] * 12,
        out_specs=vmem,
    )(x_flat, params["ln"], params["wqkv"], params["bqkv"],
      params["wo"], params["bo"], params["w1"], params["b1"],
      params["w2"], params["b2"], params["lnf"], params["wlm"])


def init_params(key):
    """Deterministic synthetic init mirroring _init_weights:
    Linear/Embedding weights ~ N(0, 0.02); Linear biases = 0; LayerNorm w=1, b=0.
    Matmul weights stored bf16 (MXU fast path); LN params / biases kept f32."""
    std = 0.02
    keys = iter(jax.random.split(key, 16))
    nrm = lambda shape: std * jax.random.normal(next(keys), shape, jnp.float32)
    L, C, F = N_LAYER, N_EMBD, 4 * N_EMBD

    ln_row = jnp.stack([jnp.ones((C,), jnp.float32), jnp.zeros((C,), jnp.float32),
                        jnp.ones((C,), jnp.float32), jnp.zeros((C,), jnp.float32)])  # (4, C)
    wlm = jnp.pad(nrm((C, VOCAB_SIZE)), ((0, 0), (0, V_PAD - VOCAB_SIZE)))

    return {
        "tok_emb": nrm((VOCAB_SIZE, C)),
        "pos_emb": nrm((BLOCK_SIZE, C)),
        "ln": jnp.tile(ln_row, (L, 1)),                       # (L*4, C) f32
        "wqkv": nrm((L, C, 3 * C)).astype(jnp.bfloat16),      # fused Q|K|V
        "bqkv": jnp.zeros((L, 3 * C), jnp.float32),
        "wo": nrm((L, C, C)).astype(jnp.bfloat16),
        "bo": jnp.zeros((L, C), jnp.float32),
        "w1": nrm((L, C, F)).astype(jnp.bfloat16),
        "b1": jnp.zeros((L, F), jnp.float32),
        "w2": nrm((L, F, C)).astype(jnp.bfloat16),
        "b2": jnp.zeros((L, C), jnp.float32),
        "lnf": jnp.stack([jnp.ones((C,), jnp.float32), jnp.zeros((C,), jnp.float32)]),
        "wlm": wlm.astype(jnp.bfloat16),                      # (C, V_PAD)
    }


def gpt_forward(idx, params):
    """Equivalent of GPTLanguageModel.forward(idx, targets=None) -> logits (loss=None)."""
    B, T = idx.shape
    tok = jnp.take(params["tok_emb"], idx, axis=0)            # (B, T, C) embedding gather (glue)
    pos = params["pos_emb"][:T]                               # (T, C)
    x = (tok + pos[None, :, :]).astype(jnp.float32).reshape(B * T, N_EMBD)
    logits_pad = run_gpt(x, params, B, T)                     # (B*T, V_PAD), one fused kernel
    return logits_pad.reshape(B, T, V_PAD)[:, :, :VOCAB_SIZE]  # (B, T, vocab_size)


if __name__ == "__main__":
    key = jax.random.PRNGKey(0)
    pkey, ikey = jax.random.split(key)
    params = init_params(pkey)

    B, T = 2, 8                                               # T <= block_size (32)
    idx = jax.random.randint(ikey, (B, T), 0, VOCAB_SIZE, dtype=jnp.int32)

    logits = gpt_forward(idx, params)
    logits = jax.block_until_ready(logits)
    assert logits.shape == (B, T, VOCAB_SIZE)
    assert bool(jnp.all(jnp.isfinite(logits)))
    print("KERNEL_OK")
</pallas_src>

<mosaic_0001>
module attributes {stable_mosaic.version = 11 : i64} {
  func.func @gpt_kernel(%arg0: memref<16x64xf32, #tpu.memory_space<vmem>>, %arg1: memref<16x64xf32, #tpu.memory_space<vmem>>, %arg2: memref<4x64x192xbf16, #tpu.memory_space<vmem>>, %arg3: memref<4x192xf32, #tpu.memory_space<vmem>>, %arg4: memref<4x64x64xbf16, #tpu.memory_space<vmem>>, %arg5: memref<4x64xf32, #tpu.memory_space<vmem>>, %arg6: memref<4x64x256xbf16, #tpu.memory_space<vmem>>, %arg7: memref<4x256xf32, #tpu.memory_space<vmem>>, %arg8: memref<4x256x64xbf16, #tpu.memory_space<vmem>>, %arg9: memref<4x64xf32, #tpu.memory_space<vmem>>, %arg10: memref<2x64xf32, #tpu.memory_space<vmem>>, %arg11: memref<64x128xbf16, #tpu.memory_space<vmem>>, %arg12: memref<16x128xf32, #tpu.memory_space<vmem>>) attributes {dimension_semantics = [], scalar_prefetch = 0 : i64, scratch_operands = 0 : i64, tpu.core_type = #tpu.core_type<tc>} {
    %c0 = arith.constant 0 : index
    %c0_0 = arith.constant 0 : index
    %0 = vector.load %arg0[%c0, %c0_0] : memref<16x64xf32, #tpu.memory_space<vmem>>, vector<16x64xf32>
    %1 = tpu.iota {dimensions = array<i32: 0>} : vector<8x8xi32>
    %2 = tpu.iota {dimensions = array<i32: 1>} : vector<8x8xi32>
    %3 = arith.cmpi sle, %2, %1 : vector<8x8xi32>
    %c0_1 = arith.constant 0 : index
    %c0_2 = arith.constant 0 : index
    %4 = vector.load %arg1[%c0_1, %c0_2] : memref<16x64xf32, #tpu.memory_space<vmem>>, vector<1x64xf32>
    %c1 = arith.constant 1 : index
    %c0_3 = arith.constant 0 : index
    %5 = vector.load %arg1[%c1, %c0_3] : memref<16x64xf32, #tpu.memory_space<vmem>>, vector<1x64xf32>
    %c2 = arith.constant 2 : index
    %c0_4 = arith.constant 0 : index
    %6 = vector.load %arg1[%c2, %c0_4] : memref<16x64xf32, #tpu.memory_space<vmem>>, vector<1x64xf32>
    %c3 = arith.constant 3 : index
    %c0_5 = arith.constant 0 : index
    %7 = vector.load %arg1[%c3, %c0_5] : memref<16x64xf32, #tpu.memory_space<vmem>>, vector<1x64xf32>
    %cst = arith.constant dense<0.000000e+00> : vector<16xf32>
    %8 = vector.multi_reduction <add>, %0, %cst [1] : vector<16x64xf32> to vector<16xf32>
    %9 = vector.shape_cast %8 : vector<16xf32> to vector<16x1xf32>
    %cst_6 = arith.constant 6.400000e+01 : f32
    %10 = vector.broadcast %cst_6 : f32 to vector<16x1xf32>
    %11 = arith.divf %9, %10 : vector<16x1xf32>
    %12 = vector.broadcast %11 : vector<16x1xf32> to vector<16x64xf32>
    %13 = arith.subf %0, %12 : vector<16x64xf32>
    %14 = arith.mulf %13, %13 : vector<16x64xf32>
    %cst_7 = arith.constant dense<0.000000e+00> : vector<16xf32>
    %15 = vector.multi_reduction <add>, %14, %cst_7 [1] : vector<16x64xf32> to vector<16xf32>
    %16 = vector.shape_cast %15 : vector<16xf32> to vector<16x1xf32>
    %cst_8 = arith.constant 6.400000e+01 : f32
    %17 = vector.broadcast %cst_8 : f32 to vector<16x1xf32>
    %18 = arith.divf %16, %17 : vector<16x1xf32>
    %19 = vector.broadcast %11 : vector<16x1xf32> to vector<16x64xf32>
    %20 = arith.subf %0, %19 : vector<16x64xf32>
    %cst_9 = arith.constant 9.99999974E-6 : f32
    %21 = vector.broadcast %cst_9 : f32 to vector<16x1xf32>
    %22 = arith.addf %18, %21 : vector<16x1xf32>
    %23 = math.rsqrt %22 : vector<16x1xf32>
    %24 = vector.broadcast %23 : vector<16x1xf32> to vector<16x64xf32>
    %25 = arith.mulf %20, %24 : vector<16x64xf32>
    %26 = vector.broadcast %4 : vector<1x64xf32> to vector<16x64xf32>
    %27 = arith.mulf %25, %26 : vector<16x64xf32>
    %28 = vector.broadcast %5 : vector<1x64xf32> to vector<16x64xf32>
    %29 = arith.addf %27, %28 : vector<16x64xf32>
    %30 = arith.truncf %29 : vector<16x64xf32> to vector<16x64xbf16>
    %c0_10 = arith.constant 0 : index
    %c0_11 = arith.constant 0 : index
    %c0_12 = arith.constant 0 : index
    %31 = vector.load %arg2[%c0_10, %c0_11, %c0_12] : memref<4x64x192xbf16, #tpu.memory_space<vmem>>, vector<1x64x192xbf16>
    %32 = vector.shape_cast %31 : vector<1x64x192xbf16> to vector<64x192xbf16>
    %cst_13 = arith.constant dense<0.000000e+00> : vector<16x192xf32>
    %33 = tpu.matmul %30, %32, %cst_13 {dimension_numbers = #tpu.dot_dimension_numbers<[1], [0], [0], [1], [0, 0, 1, 1], [], []>} : vector<16x64xbf16>, vector<64x192xbf16>, vector<16x192xf32> -> vector<16x192xf32>
    %c0_14 = arith.constant 0 : index
    %c0_15 = arith.constant 0 : index
    %34 = vector.load %arg3[%c0_14, %c0_15] : memref<4x192xf32, #tpu.memory_space<vmem>>, vector<1x192xf32>
    %35 = vector.broadcast %34 : vector<1x192xf32> to vector<16x192xf32>
    %36 = arith.addf %33, %35 : vector<16x192xf32>
    %37 = vector.extract_strided_slice %36 {offsets = [0, 0], sizes = [16, 64], strides = [1, 1]} : vector<16x192xf32> to vector<16x64xf32>
    %38 = vector.extract_strided_slice %36 {offsets = [0, 64], sizes = [16, 64], strides = [1, 1]} : vector<16x192xf32> to vector<16x64xf32>
    %39 = vector.extract_strided_slice %36 {offsets = [0, 128], sizes = [16, 64], strides = [1, 1]} : vector<16x192xf32> to vector<16x64xf32>
    %40 = arith.truncf %39 : vector<16x64xf32> to vector<16x64xbf16>
    %c0_16 = arith.constant 0 : index
    %c0_17 = arith.constant 0 : index
    %c0_18 = arith.constant 0 : index
    %41 = vector.load %arg4[%c0_16, %c0_17, %c0_18] : memref<4x64x64xbf16, #tpu.memory_space<vmem>>, vector<1x64x64xbf16>
    %42 = vector.shape_cast %41 : vector<1x64x64xbf16> to vector<64x64xbf16>
    %cst_19 = arith.constant 0.000000e+00 : f32
    %43 = vector.broadcast %cst_19 : f32 to vector<8x64xf32>
    %44 = vector.extract_strided_slice %37 {offsets = [0, 0], sizes = [8, 16], strides = [1, 1]} : vector<16x64xf32> to vector<8x16xf32>
    %45 = vector.extract_strided_slice %38 {offsets = [0, 0], sizes = [8, 16], strides = [1, 1]} : vector<16x64xf32> to vector<8x16xf32>
    %46 = vector.extract_strided_slice %40 {offsets = [0, 0], sizes = [8, 16], strides = [1, 1]} : vector<16x64xbf16> to vector<8x16xbf16>
    %47 = tpu.transpose %45, [1, 0] : vector<8x16xf32> -> vector<16x8xf32>
    %cst_20 = arith.constant dense<0.000000e+00> : vector<8x8xf32>
    %48 = tpu.matmul %44, %47, %cst_20 {dimension_numbers = #tpu.dot_dimension_numbers<[1], [0], [0], [1], [0, 0, 1, 1], [], []>} : vector<8x16xf32>, vector<16x8xf32>, vector<8x8xf32> -> vector<8x8xf32>
    %cst_21 = arith.constant 1.250000e-01 : f32
    %49 = vector.broadcast %cst_21 : f32 to vector<8x8xf32>
    %50 = arith.mulf %48, %49 : vector<8x8xf32>
    %cst_22 = arith.constant -1.000000e+30 : f32
    %51 = vector.broadcast %cst_22 : f32 to vector<8x8xf32>
    %52 = arith.select %3, %50, %51 : vector<8x8xi1>, vector<8x8xf32>
    %cst_23 = arith.constant dense<0xFF800000> : vector<8xf32>
    %53 = vector.multi_reduction <maximumf>, %52, %cst_23 [1] : vector<8x8xf32> to vector<8xf32>
    %cst_24 = arith.constant 0xFF800000 : f32
    %54 = vector.broadcast %cst_24 : f32 to vector<8xf32>
    %55 = arith.maximumf %54, %53 : vector<8xf32>
    %56 = vector.shape_cast %55 : vector<8xf32> to vector<8x1xf32>
    %57 = vector.broadcast %56 : vector<8x1xf32> to vector<8x8xf32>
    %58 = arith.subf %52, %57 : vector<8x8xf32>
    %59 = math.exp %58 : vector<8x8xf32>
    %cst_25 = arith.constant dense<0.000000e+00> : vector<8xf32>
    %60 = vector.multi_reduction <add>, %59, %cst_25 [1] : vector<8x8xf32> to vector<8xf32>
    %61 = vector.shape_cast %60 : vector<8xf32> to vector<8x1xf32>
    %62 = vector.broadcast %61 : vector<8x1xf32> to vector<8x8xf32>
    %63 = arith.divf %59, %62 : vector<8x8xf32>
    %64 = arith.truncf %63 : vector<8x8xf32> to vector<8x8xbf16>
    %cst_26 = arith.constant dense<0.000000e+00> : vector<8x16xf32>
    %65 = tpu.matmul %64, %46, %cst_26 {dimension_numbers = #tpu.dot_dimension_numbers<[1], [0], [0], [1], [0, 0, 1, 1], [], []>} : vector<8x8xbf16>, vector<8x16xbf16>, vector<8x16xf32> -> vector<8x16xf32>
    %66 = arith.truncf %65 : vector<8x16xf32> to vector<8x16xbf16>
    %67 = vector.extract_strided_slice %42 {offsets = [0, 0], sizes = [16, 64], strides = [1, 1]} : vector<64x64xbf16> to vector<16x64xbf16>
    %cst_27 = arith.constant dense<0.000000e+00> : vector<8x64xf32>
    %68 = tpu.matmul %66, %67, %cst_27 {dimension_numbers = #tpu.dot_dimension_numbers<[1], [0], [0], [1], [0, 0, 1, 1], [], []>} : vector<8x16xbf16>, vector<16x64xbf16>, vector<8x64xf32> -> vector<8x64xf32>
    %69 = arith.addf %43, %68 : vector<8x64xf32>
    %70 = vector.extract_strided_slice %37 {offsets = [0, 16], sizes = [8, 16], strides = [1, 1]} : vector<16x64xf32> to vector<8x16xf32>
    %71 = vector.extract_strided_slice %38 {offsets = [0, 16], sizes = [8, 16], strides = [1, 1]} : vector<16x64xf32> to vector<8x16xf32>
    %72 = vector.extract_strided_slice %40 {offsets = [0, 16], sizes = [8, 16], strides = [1, 1]} : vector<16x64xbf16> to vector<8x16xbf16>
    %73 = tpu.transpose %71, [1, 0] : vector<8x16xf32> -> vector<16x8xf32>
    %cst_28 = arith.constant dense<0.000000e+00> : vector<8x8xf32>
    %74 = tpu.matmul %70, %73, %cst_28 {dimension_numbers = #tpu.dot_dimension_numbers<[1], [0], [0], [1], [0, 0, 1, 1], [], []>} : vector<8x16xf32>, vector<16x8xf32>, vector<8x8xf32> -> vector<8x8xf32>
    %cst_29 = arith.constant 1.250000e-01 : f32
    %75 = vector.broadcast %cst_29 : f32 to vector<8x8xf32>
    %76 = arith.mulf %74, %75 : vector<8x8xf32>
    %cst_30 = arith.constant -1.000000e+30 : f32
    %77 = vector.broadcast %cst_30 : f32 to vector<8x8xf32>
    %78 = arith.select %3, %76, %77 : vector<8x8xi1>, vector<8x8xf32>
    %cst_31 = arith.constant dense<0xFF800000> : vector<8xf32>
    %79 = vector.multi_reduction <maximumf>, %78, %cst_31 [1] : vector<8x8xf32> to vector<8xf32>
    %cst_32 = arith.constant 0xFF800000 : f32
    %80 = vector.broadcast %cst_32 : f32 to vector<8xf32>
    %81 = arith.maximumf %80, %79 : vector<8xf32>
    %82 = vector.shape_cast %81 : vector<8xf32> to vector<8x1xf32>
    %83 = vector.broadcast %82 : vector<8x1xf32> to vector<8x8xf32>
    %84 = arith.subf %78, %83 : vector<8x8xf32>
    %85 = math.exp %84 : vector<8x8xf32>
    %cst_33 = arith.constant dense<0.000000e+00> : vector<8xf32>
    %86 = vector.multi_reduction <add>, %85, %cst_33 [1] : vector<8x8xf32> to vector<8xf32>
    %87 = vector.shape_cast %86 : vector<8xf32> to vector<8x1xf32>
    %88 = vector.broadcast %87 : vector<8x1xf32> to vector<8x8xf32>
    %89 = arith.divf %85, %88 : vector<8x8xf32>
    %90 = arith.truncf %89 : vector<8x8xf32> to vector<8x8xbf16>
    %cst_34 = arith.constant dense<0.000000e+00> : vector<8x16xf32>
    %91 = tpu.matmul %90, %72, %cst_34 {dimension_numbers = #tpu.dot_dimension_numbers<[1], [0], [0], [1], [0, 0, 1, 1], [], []>} : vector<8x8xbf16>, vector<8x16xbf16>, vector<8x16xf32> -> vector<8x16xf32>
    %92 = arith.truncf %91 : vector<8x16xf32> to vector<8x16xbf16>
    %93 = vector.extract_strided_slice %42 {offsets = [16, 0], sizes = [16, 64], strides = [1, 1]} : vector<64x64xbf16> to vector<16x64xbf16>
    %cst_35 = arith.constant dense<0.000000e+00> : vector<8x64xf32>
    %94 = tpu.matmul %92, %93, %cst_35 {dimension_numbers = #tpu.dot_dimension_numbers<[1], [0], [0], [1], [0, 0, 1, 1], [], []>} : vector<8x16xbf16>, vector<16x64xbf16>, vector<8x64xf32> -> vector<8x64xf32>
    %95 = arith.addf %69, %94 : vector<8x64xf32>
    %96 = vector.extract_strided_slice %37 {offsets = [0, 32], sizes = [8, 16], strides = [1, 1]} : vector<16x64xf32> to vector<8x16xf32>
    %97 = vector.extract_strided_slice %38 {offsets = [0, 32], sizes = [8, 16], strides = [1, 1]} : vector<16x64xf32> to vector<8x16xf32>
    %98 = vector.extract_strided_slice %40 {offsets = [0, 32], sizes = [8, 16], strides = [1, 1]} : vector<16x64xbf16> to vector<8x16xbf16>
    %99 = tpu.transpose %97, [1, 0] : vector<8x16xf32> -> vector<16x8xf32>
    %cst_36 = arith.constant dense<0.000000e+00> : vector<8x8xf32>
    %100 = tpu.matmul %96, %99, %cst_36 {dimension_numbers = #tpu.dot_dimension_numbers<[1], [0], [0], [1], [0, 0, 1, 1], [], []>} : vector<8x16xf32>, vector<16x8xf32>, vector<8x8xf32> -> vector<8x8xf32>
    %cst_37 = arith.constant 1.250000e-01 : f32
    %101 = vector.broadcast %cst_37 : f32 to vector<8x8xf32>
    %102 = arith.mulf %100, %101 : vector<8x8xf32>
    %cst_38 = arith.constant -1.000000e+30 : f32
    %103 = vector.broadcast %cst_38 : f32 to vector<8x8xf32>
    %104 = arith.select %3, %102, %103 : vector<8x8xi1>, vector<8x8xf32>
    %cst_39 = arith.constant dense<0xFF800000> : vector<8xf32>
    %105 = vector.multi_reduction <maximumf>, %104, %cst_39 [1] : vector<8x8xf32> to vector<8xf32>
    %cst_40 = arith.constant 0xFF800000 : f32
    %106 = vector.broadcast %cst_40 : f32 to vector<8xf32>
    %107 = arith.maximumf %106, %105 : vector<8xf32>
    %108 = vector.shape_cast %107 : vector<8xf32> to vector<8x1xf32>
    %109 = vector.broadcast %108 : vector<8x1xf32> to vector<8x8xf32>
    %110 = arith.subf %104, %109 : vector<8x8xf32>
    %111 = math.exp %110 : vector<8x8xf32>
    %cst_41 = arith.constant dense<0.000000e+00> : vector<8xf32>
    %112 = vector.multi_reduction <add>, %111, %cst_41 [1] : vector<8x8xf32> to vector<8xf32>
    %113 = vector.shape_cast %112 : vector<8xf32> to vector<8x1xf32>
    %114 = vector.broadcast %113 : vector<8x1xf32> to vector<8x8xf32>
    %115 = arith.divf %111, %114 : vector<8x8xf32>
    %116 = arith.truncf %115 : vector<8x8xf32> to vector<8x8xbf16>
    %cst_42 = arith.constant dense<0.000000e+00> : vector<8x16xf32>
    %117 = tpu.matmul %116, %98, %cst_42 {dimension_numbers = #tpu.dot_dimension_numbers<[1], [0], [0], [1], [0, 0, 1, 1], [], []>} : vector<8x8xbf16>, vector<8x16xbf16>, vector<8x16xf32> -> vector<8x16xf32>
    %118 = arith.truncf %117 : vector<8x16xf32> to vector<8x16xbf16>
    %119 = vector.extract_strided_slice %42 {offsets = [32, 0], sizes = [16, 64], strides = [1, 1]} : vector<64x64xbf16> to vector<16x64xbf16>
    %cst_43 = arith.constant dense<0.000000e+00> : vector<8x64xf32>
    %120 = tpu.matmul %118, %119, %cst_43 {dimension_numbers = #tpu.dot_dimension_numbers<[1], [0], [0], [1], [0, 0, 1, 1], [], []>} : vector<8x16xbf16>, vector<16x64xbf16>, vector<8x64xf32> -> vector<8x64xf32>
    %121 = arith.addf %95, %120 : vector<8x64xf32>
    %122 = vector.extract_strided_slice %37 {offsets = [0, 48], sizes = [8, 16], strides = [1, 1]} : vector<16x64xf32> to vector<8x16xf32>
    %123 = vector.extract_strided_slice %38 {offsets = [0, 48], sizes = [8, 16], strides = [1, 1]} : vector<16x64xf32> to vector<8x16xf32>
    %124 = vector.extract_strided_slice %40 {offsets = [0, 48], sizes = [8, 16], strides = [1, 1]} : vector<16x64xbf16> to vector<8x16xbf16>
    %125 = tpu.transpose %123, [1, 0] : vector<8x16xf32> -> vector<16x8xf32>
    %cst_44 = arith.constant dense<0.000000e+00> : vector<8x8xf32>
    %126 = tpu.matmul %122, %125, %cst_44 {dimension_numbers = #tpu.dot_dimension_numbers<[1], [0], [0], [1], [0, 0, 1, 1], [], []>} : vector<8x16xf32>, vector<16x8xf32>, vector<8x8xf32> -> vector<8x8xf32>
    %cst_45 = arith.constant 1.250000e-01 : f32
    %127 = vector.broadcast %cst_45 : f32 to vector<8x8xf32>
    %128 = arith.mulf %126, %127 : vector<8x8xf32>
    %cst_46 = arith.constant -1.000000e+30 : f32
    %129 = vector.broadcast %cst_46 : f32 to vector<8x8xf32>
    %130 = arith.select %3, %128, %129 : vector<8x8xi1>, vector<8x8xf32>
    %cst_47 = arith.constant dense<0xFF800000> : vector<8xf32>
    %131 = vector.multi_reduction <maximumf>, %130, %cst_47 [1] : vector<8x8xf32> to vector<8xf32>
    %cst_48 = arith.constant 0xFF800000 : f32
    %132 = vector.broadcast %cst_48 : f32 to vector<8xf32>
    %133 = arith.maximumf %132, %131 : vector<8xf32>
    %134 = vector.shape_cast %133 : vector<8xf32> to vector<8x1xf32>
    %135 = vector.broadcast %134 : vector<8x1xf32> to vector<8x8xf32>
    %136 = arith.subf %130, %135 : vector<8x8xf32>
    %137 = math.exp %136 : vector<8x8xf32>
    %cst_49 = arith.constant dense<0.000000e+00> : vector<8xf32>
    %138 = vector.multi_reduction <add>, %137, %cst_49 [1] : vector<8x8xf32> to vector<8xf32>
    %139 = vector.shape_cast %138 : vector<8xf32> to vector<8x1xf32>
    %140 = vector.broadcast %139 : vector<8x1xf32> to vector<8x8xf32>
    %141 = arith.divf %137, %140 : vector<8x8xf32>
    %142 = arith.truncf %141 : vector<8x8xf32> to vector<8x8xbf16>
    %cst_50 = arith.constant dense<0.000000e+00> : vector<8x16xf32>
    %143 = tpu.matmul %142, %124, %cst_50 {dimension_numbers = #tpu.dot_dimension_numbers<[1], [0], [0], [1], [0, 0, 1, 1], [], []>} : vector<8x8xbf16>, vector<8x16xbf16>, vector<8x16xf32> -> vector<8x16xf32>
    %144 = arith.truncf %143 : vector<8x16xf32> to vector<8x16xbf16>
    %145 = vector.extract_strided_slice %42 {offsets = [48, 0], sizes = [16, 64], strides = [1, 1]} : vector<64x64xbf16> to vector<16x64xbf16>
    %cst_51 = arith.constant dense<0.000000e+00> : vector<8x64xf32>
    %146 = tpu.matmul %144, %145, %cst_51 {dimension_numbers = #tpu.dot_dimension_numbers<[1], [0], [0], [1], [0, 0, 1, 1], [], []>} : vector<8x16xbf16>, vector<16x64xbf16>, vector<8x64xf32> -> vector<8x64xf32>
    %147 = arith.addf %121, %146 : vector<8x64xf32>
    %cst_52 = arith.constant 0.000000e+00 : f32
    %148 = vector.broadcast %cst_52 : f32 to vector<8x64xf32>
    %149 = vector.extract_strided_slice %37 {offsets = [8, 0], sizes = [8, 16], strides = [1, 1]} : vector<16x64xf32> to vector<8x16xf32>
    %150 = vector.extract_strided_slice %38 {offsets = [8, 0], sizes = [8, 16], strides = [1, 1]} : vector<16x64xf32> to vector<8x16xf32>
    %151 = vector.extract_strided_slice %40 {offsets = [8, 0], sizes = [8, 16], strides = [1, 1]} : vector<16x64xbf16> to vector<8x16xbf16>
    %152 = tpu.transpose %150, [1, 0] : vector<8x16xf32> -> vector<16x8xf32>
    %cst_53 = arith.constant dense<0.000000e+00> : vector<8x8xf32>
    %153 = tpu.matmul %149, %152, %cst_53 {dimension_numbers = #tpu.dot_dimension_numbers<[1], [0], [0], [1], [0, 0, 1, 1], [], []>} : vector<8x16xf32>, vector<16x8xf32>, vector<8x8xf32> -> vector<8x8xf32>
    %cst_54 = arith.constant 1.250000e-01 : f32
    %154 = vector.broadcast %cst_54 : f32 to vector<8x8xf32>
    %155 = arith.mulf %153, %154 : vector<8x8xf32>
    %cst_55 = arith.constant -1.000000e+30 : f32
    %156 = vector.broadcast %cst_55 : f32 to vector<8x8xf32>
    %157 = arith.select %3, %155, %156 : vector<8x8xi1>, vector<8x8xf32>
    %cst_56 = arith.constant dense<0xFF800000> : vector<8xf32>
    %158 = vector.multi_reduction <maximumf>, %157, %cst_56 [1] : vector<8x8xf32> to vector<8xf32>
    %cst_57 = arith.constant 0xFF800000 : f32
    %159 = vector.broadcast %cst_57 : f32 to vector<8xf32>
    %160 = arith.maximumf %159, %158 : vector<8xf32>
    %161 = vector.shape_cast %160 : vector<8xf32> to vector<8x1xf32>
    %162 = vector.broadcast %161 : vector<8x1xf32> to vector<8x8xf32>
    %163 = arith.subf %157, %162 : vector<8x8xf32>
    %164 = math.exp %163 : vector<8x8xf32>
    %cst_58 = arith.constant dense<0.000000e+00> : vector<8xf32>
    %165 = vector.multi_reduction <add>, %164, %cst_58 [1] : vector<8x8xf32> to vector<8xf32>
    %166 = vector.shape_cast %165 : vector<8xf32> to vector<8x1xf32>
    %167 = vector.broadcast %166 : vector<8x1xf32> to vector<8x8xf32>
    %168 = arith.divf %164, %167 : vector<8x8xf32>
    %169 = arith.truncf %168 : vector<8x8xf32> to vector<8x8xbf16>
    %cst_59 = arith.constant dense<0.000000e+00> : vector<8x16xf32>
    %170 = tpu.matmul %169, %151, %cst_59 {dimension_numbers = #tpu.dot_dimension_numbers<[1], [0], [0], [1], [0, 0, 1, 1], [], []>} : vector<8x8xbf16>, vector<8x16xbf16>, vector<8x16xf32> -> vector<8x16xf32>
    %171 = arith.truncf %170 : vector<8x16xf32> to vector<8x16xbf16>
    %172 = vector.extract_strided_slice %42 {offsets = [0, 0], sizes = [16, 64], strides = [1, 1]} : vector<64x64xbf16> to vector<16x64xbf16>
    %cst_60 = arith.constant dense<0.000000e+00> : vector<8x64xf32>
    %173 = tpu.matmul %171, %172, %cst_60 {dimension_numbers = #tpu.dot_dimension_numbers<[1], [0], [0], [1], [0, 0, 1, 1], [], []>} : vector<8x16xbf16>, vector<16x64xbf16>, vector<8x64xf32> -> vector<8x64xf32>
    %174 = arith.addf %148, %173 : vector<8x64xf32>
    %175 = vector.extract_strided_slice %37 {offsets = [8, 16], sizes = [8, 16], strides = [1, 1]} : vector<16x64xf32> to vector<8x16xf32>
    %176 = vector.extract_strided_slice %38 {offsets = [8, 16], sizes = [8, 16], strides = [1, 1]} : vector<16x64xf32> to vector<8x16xf32>
    %177 = vector.extract_strided_slice %40 {offsets = [8, 16], sizes = [8, 16], strides = [1, 1]} : vector<16x64xbf16> to vector<8x16xbf16>
    %178 = tpu.transpose %176, [1, 0] : vector<8x16xf32> -> vector<16x8xf32>
    %cst_61 = arith.constant dense<0.000000e+00> : vector<8x8xf32>
    %179 = tpu.matmul %175, %178, %cst_61 {dimension_numbers = #tpu.dot_dimension_numbers<[1], [0], [0], [1], [0, 0, 1, 1], [], []>} : vector<8x16xf32>, vector<16x8xf32>, vector<8x8xf32> -> vector<8x8xf32>
    %cst_62 = arith.constant 1.250000e-01 : f32
    %180 = vector.broadcast %cst_62 : f32 to vector<8x8xf32>
    %181 = arith.mulf %179, %180 : vector<8x8xf32>
    %cst_63 = arith.constant -1.000000e+30 : f32
    %182 = vector.broadcast %cst_63 : f32 to vector<8x8xf32>
    %183 = arith.select %3, %181, %182 : vector<8x8xi1>, vector<8x8xf32>
    %cst_64 = arith.constant dense<0xFF800000> : vector<8xf32>
    %184 = vector.multi_reduction <maximumf>, %183, %cst_64 [1] : vector<8x8xf32> to vector<8xf32>
    %cst_65 = arith.constant 0xFF800000 : f32
    %185 = vector.broadcast %cst_65 : f32 to vector<8xf32>
    %186 = arith.maximumf %185, %184 : vector<8xf32>
    %187 = vector.shape_cast %186 : vector<8xf32> to vector<8x1xf32>
    %188 = vector.broadcast %187 : vector<8x1xf32> to vector<8x8xf32>
    %189 = arith.subf %183, %188 : vector<8x8xf32>
    %190 = math.exp %189 : vector<8x8xf32>
    %cst_66 = arith.constant dense<0.000000e+00> : vector<8xf32>
    %191 = vector.multi_reduction <add>, %190, %cst_66 [1] : vector<8x8xf32> to vector<8xf32>
    %192 = vector.shape_cast %191 : vector<8xf32> to vector<8x1xf32>
    %193 = vector.broadcast %192 : vector<8x1xf32> to vector<8x8xf32>
    %194 = arith.divf %190, %193 : vector<8x8xf32>
    %195 = arith.truncf %194 : vector<8x8xf32> to vector<8x8xbf16>
    %cst_67 = arith.constant dense<0.000000e+00> : vector<8x16xf32>
    %196 = tpu.matmul %195, %177, %cst_67 {dimension_numbers = #tpu.dot_dimension_numbers<[1], [0], [0], [1], [0, 0, 1, 1], [], []>} : vector<8x8xbf16>, vector<8x16xbf16>, vector<8x16xf32> -> vector<8x16xf32>
    %197 = arith.truncf %196 : vector<8x16xf32> to vector<8x16xbf16>
    %198 = vector.extract_strided_slice %42 {offsets = [16, 0], sizes = [16, 64], strides = [1, 1]} : vector<64x64xbf16> to vector<16x64xbf16>
    %cst_68 = arith.constant dense<0.000000e+00> : vector<8x64xf32>
    %199 = tpu.matmul %197, %198, %cst_68 {dimension_numbers = #tpu.dot_dimension_numbers<[1], [0], [0], [1], [0, 0, 1, 1], [], []>} : vector<8x16xbf16>, vector<16x64xbf16>, vector<8x64xf32> -> vector<8x64xf32>
    %200 = arith.addf %174, %199 : vector<8x64xf32>
    %201 = vector.extract_strided_slice %37 {offsets = [8, 32], sizes = [8, 16], strides = [1, 1]} : vector<16x64xf32> to vector<8x16xf32>
    %202 = vector.extract_strided_slice %38 {offsets = [8, 32], sizes = [8, 16], strides = [1, 1]} : vector<16x64xf32> to vector<8x16xf32>
    %203 = vector.extract_strided_slice %40 {offsets = [8, 32], sizes = [8, 16], strides = [1, 1]} : vector<16x64xbf16> to vector<8x16xbf16>
    %204 = tpu.transpose %202, [1, 0] : vector<8x16xf32> -> vector<16x8xf32>
    %cst_69 = arith.constant dense<0.000000e+00> : vector<8x8xf32>
    %205 = tpu.matmul %201, %204, %cst_69 {dimension_numbers = #tpu.dot_dimension_numbers<[1], [0], [0], [1], [0, 0, 1, 1], [], []>} : vector<8x16xf32>, vector<16x8xf32>, vector<8x8xf32> -> vector<8x8xf32>
    %cst_70 = arith.constant 1.250000e-01 : f32
    %206 = vector.broadcast %cst_70 : f32 to vector<8x8xf32>
    %207 = arith.mulf %205, %206 : vector<8x8xf32>
    %cst_71 = arith.constant -1.000000e+30 : f32
    %208 = vector.broadcast %cst_71 : f32 to vector<8x8xf32>
    %209 = arith.select %3, %207, %208 : vector<8x8xi1>, vector<8x8xf32>
    %cst_72 = arith.constant dense<0xFF800000> : vector<8xf32>
    %210 = vector.multi_reduction <maximumf>, %209, %cst_72 [1] : vector<8x8xf32> to vector<8xf32>
    %cst_73 = arith.constant 0xFF800000 : f32
    %211 = vector.broadcast %cst_73 : f32 to vector<8xf32>
    %212 = arith.maximumf %211, %210 : vector<8xf32>
    %213 = vector.shape_cast %212 : vector<8xf32> to vector<8x1xf32>
    %214 = vector.broadcast %213 : vector<8x1xf32> to vector<8x8xf32>
    %215 = arith.subf %209, %214 : vector<8x8xf32>
    %216 = math.exp %215 : vector<8x8xf32>
    %cst_74 = arith.constant dense<0.000000e+00> : vector<8xf32>
    %217 = vector.multi_reduction <add>, %216, %cst_74 [1] : vector<8x8xf32> to vector<8xf32>
    %218 = vector.shape_cast %217 : vector<8xf32> to vector<8x1xf32>
    %219 = vector.broadcast %218 : vector<8x1xf32> to vector<8x8xf32>
    %220 = arith.divf %216, %219 : vector<8x8xf32>
    %221 = arith.truncf %220 : vector<8x8xf32> to vector<8x8xbf16>
    %cst_75 = arith.constant dense<0.000000e+00> : vector<8x16xf32>
    %222 = tpu.matmul %221, %203, %cst_75 {dimension_numbers = #tpu.dot_dimension_numbers<[1], [0], [0], [1], [0, 0, 1, 1], [], []>} : vector<8x8xbf16>, vector<8x16xbf16>, vector<8x16xf32> -> vector<8x16xf32>
    %223 = arith.truncf %222 : vector<8x16xf32> to vector<8x16xbf16>
    %224 = vector.extract_strided_slice %42 {offsets = [32, 0], sizes = [16, 64], strides = [1, 1]} : vector<64x64xbf16> to vector<16x64xbf16>
    %cst_76 = arith.constant dense<0.000000e+00> : vector<8x64xf32>
    %225 = tpu.matmul %223, %224, %cst_76 {dimension_numbers = #tpu.dot_dimension_numbers<[1], [0], [0], [1], [0, 0, 1, 1], [], []>} : vector<8x16xbf16>, vector<16x64xbf16>, vector<8x64xf32> -> vector<8x64xf32>
    %226 = arith.addf %200, %225 : vector<8x64xf32>
    %227 = vector.extract_strided_slice %37 {offsets = [8, 48], sizes = [8, 16], strides = [1, 1]} : vector<16x64xf32> to vector<8x16xf32>
    %228 = vector.extract_strided_slice %38 {offsets = [8, 48], sizes = [8, 16], strides = [1, 1]} : vector<16x64xf32> to vector<8x16xf32>
    %229 = vector.extract_strided_slice %40 {offsets = [8, 48], sizes = [8, 16], strides = [1, 1]} : vector<16x64xbf16> to vector<8x16xbf16>
    %230 = tpu.transpose %228, [1, 0] : vector<8x16xf32> -> vector<16x8xf32>
    %cst_77 = arith.constant dense<0.000000e+00> : vector<8x8xf32>
    %231 = tpu.matmul %227, %230, %cst_77 {dimension_numbers = #tpu.dot_dimension_numbers<[1], [0], [0], [1], [0, 0, 1, 1], [], []>} : vector<8x16xf32>, vector<16x8xf32>, vector<8x8xf32> -> vector<8x8xf32>
    %cst_78 = arith.constant 1.250000e-01 : f32
    %232 = vector.broadcast %cst_78 : f32 to vector<8x8xf32>
    %233 = arith.mulf %231, %232 : vector<8x8xf32>
    %cst_79 = arith.constant -1.000000e+30 : f32
    %234 = vector.broadcast %cst_79 : f32 to vector<8x8xf32>
    %235 = arith.select %3, %233, %234 : vector<8x8xi1>, vector<8x8xf32>
    %cst_80 = arith.constant dense<0xFF800000> : vector<8xf32>
    %236 = vector.multi_reduction <maximumf>, %235, %cst_80 [1] : vector<8x8xf32> to vector<8xf32>
    %cst_81 = arith.constant 0xFF800000 : f32
    %237 = vector.broadcast %cst_81 : f32 to vector<8xf32>
    %238 = arith.maximumf %237, %236 : vector<8xf32>
    %239 = vector.shape_cast %238 : vector<8xf32> to vector<8x1xf32>
    %240 = vector.broadcast %239 : vector<8x1xf32> to vector<8x8xf32>
    %241 = arith.subf %235, %240 : vector<8x8xf32>
    %242 = math.exp %241 : vector<8x8xf32>
    %cst_82 = arith.constant dense<0.000000e+00> : vector<8xf32>
    %243 = vector.multi_reduction <add>, %242, %cst_82 [1] : vector<8x8xf32> to vector<8xf32>
    %244 = vector.shape_cast %243 : vector<8xf32> to vector<8x1xf32>
    %245 = vector.broadcast %244 : vector<8x1xf32> to vector<8x8xf32>
    %246 = arith.divf %242, %245 : vector<8x8xf32>
    %247 = arith.truncf %246 : vector<8x8xf32> to vector<8x8xbf16>
    %cst_83 = arith.constant dense<0.000000e+00> : vector<8x16xf32>
    %248 = tpu.matmul %247, %229, %cst_83 {dimension_numbers = #tpu.dot_dimension_numbers<[1], [0], [0], [1], [0, 0, 1, 1], [], []>} : vector<8x8xbf16>, vector<8x16xbf16>, vector<8x16xf32> -> vector<8x16xf32>
    %249 = arith.truncf %248 : vector<8x16xf32> to vector<8x16xbf16>
    %250 = vector.extract_strided_slice %42 {offsets = [48, 0], sizes = [16, 64], strides = [1, 1]} : vector<64x64xbf16> to vector<16x64xbf16>
    %cst_84 = arith.constant dense<0.000000e+00> : vector<8x64xf32>
    %251 = tpu.matmul %249, %250, %cst_84 {dimension_numbers = #tpu.dot_dimension_numbers<[1], [0], [0], [1], [0, 0, 1, 1], [], []>} : vector<8x16xbf16>, vector<16x64xbf16>, vector<8x64xf32> -> vector<8x64xf32>
    %252 = arith.addf %226, %251 : vector<8x64xf32>
    %253 = tpu.concatenate %147, %252 in 0 : vector<8x64xf32>, vector<8x64xf32> -> vector<16x64xf32>
    %254 = arith.addf %0, %253 : vector<16x64xf32>
    %c0_85 = arith.constant 0 : index
    %c0_86 = arith.constant 0 : index
    %255 = vector.load %arg5[%c0_85, %c0_86] : memref<4x64xf32, #tpu.memory_space<vmem>>, vector<1x64xf32>
    %256 = vector.broadcast %255 : vector<1x64xf32> to vector<16x64xf32>
    %257 = arith.addf %254, %256 : vector<16x64xf32>
    %cst_87 = arith.constant dense<0.000000e+00> : vector<16xf32>
    %258 = vector.multi_reduction <add>, %257, %cst_87 [1] : vector<16x64xf32> to vector<16xf32>
    %259 = vector.shape_cast %258 : vector<16xf32> to vector<16x1xf32>
    %cst_88 = arith.constant 6.400000e+01 : f32
    %260 = vector.broadcast %cst_88 : f32 to vector<16x1xf32>
    %261 = arith.divf %259, %260 : vector<16x1xf32>
    %262 = vector.broadcast %261 : vector<16x1xf32> to vector<16x64xf32>
    %263 = arith.subf %257, %262 : vector<16x64xf32>
    %264 = arith.mulf %263, %263 : vector<16x64xf32>
    %cst_89 = arith.constant dense<0.000000e+00> : vector<16xf32>
    %265 = vector.multi_reduction <add>, %264, %cst_89 [1] : vector<16x64xf32> to vector<16xf32>
    %266 = vector.shape_cast %265 : vector<16xf32> to vector<16x1xf32>
    %cst_90 = arith.constant 6.400000e+01 : f32
    %267 = vector.broadcast %cst_90 : f32 to vector<16x1xf32>
    %268 = arith.divf %266, %267 : vector<16x1xf32>
    %269 = vector.broadcast %261 : vector<16x1xf32> to vector<16x64xf32>
    %270 = arith.subf %257, %269 : vector<16x64xf32>
    %cst_91 = arith.constant 9.99999974E-6 : f32
    %271 = vector.broadcast %cst_91 : f32 to vector<16x1xf32>
    %272 = arith.addf %268, %271 : vector<16x1xf32>
    %273 = math.rsqrt %272 : vector<16x1xf32>
    %274 = vector.broadcast %273 : vector<16x1xf32> to vector<16x64xf32>
    %275 = arith.mulf %270, %274 : vector<16x64xf32>
    %276 = vector.broadcast %6 : vector<1x64xf32> to vector<16x64xf32>
    %277 = arith.mulf %275, %276 : vector<16x64xf32>
    %278 = vector.broadcast %7 : vector<1x64xf32> to vector<16x64xf32>
    %279 = arith.addf %277, %278 : vector<16x64xf32>
    %280 = arith.truncf %279 : vector<16x64xf32> to vector<16x64xbf16>
    %c0_92 = arith.constant 0 : index
    %c0_93 = arith.constant 0 : index
    %c0_94 = arith.constant 0 : index
    %281 = vector.load %arg6[%c0_92, %c0_93, %c0_94] : memref<4x64x256xbf16, #tpu.memory_space<vmem>>, vector<1x64x256xbf16>
    %282 = vector.shape_cast %281 : vector<1x64x256xbf16> to vector<64x256xbf16>
    %cst_95 = arith.constant dense<0.000000e+00> : vector<16x256xf32>
    %283 = tpu.matmul %280, %282, %cst_95 {dimension_numbers = #tpu.dot_dimension_numbers<[1], [0], [0], [1], [0, 0, 1, 1], [], []>} : vector<16x64xbf16>, vector<64x256xbf16>, vector<16x256xf32> -> vector<16x256xf32>
    %c0_96 = arith.constant 0 : index
    %c0_97 = arith.constant 0 : index
    %284 = vector.load %arg7[%c0_96, %c0_97] : memref<4x256xf32, #tpu.memory_space<vmem>>, vector<1x256xf32>
    %285 = vector.broadcast %284 : vector<1x256xf32> to vector<16x256xf32>
    %286 = arith.addf %283, %285 : vector<16x256xf32>
    %cst_98 = arith.constant 0.000000e+00 : f32
    %287 = vector.broadcast %cst_98 : f32 to vector<16x256xf32>
    %288 = arith.maximumf %286, %287 : vector<16x256xf32>
    %289 = arith.truncf %288 : vector<16x256xf32> to vector<16x256xbf16>
    %c0_99 = arith.constant 0 : index
    %c0_100 = arith.constant 0 : index
    %c0_101 = arith.constant 0 : index
    %290 = vector.load %arg8[%c0_99, %c0_100, %c0_101] : memref<4x256x64xbf16, #tpu.memory_space<vmem>>, vector<1x256x64xbf16>
    %291 = vector.shape_cast %290 : vector<1x256x64xbf16> to vector<256x64xbf16>
    %cst_102 = arith.constant dense<0.000000e+00> : vector<16x64xf32>
    %292 = tpu.matmul %289, %291, %cst_102 {dimension_numbers = #tpu.dot_dimension_numbers<[1], [0], [0], [1], [0, 0, 1, 1], [], []>} : vector<16x256xbf16>, vector<256x64xbf16>, vector<16x64xf32> -> vector<16x64xf32>
    %c0_103 = arith.constant 0 : index
    %c0_104 = arith.constant 0 : index
    %293 = vector.load %arg9[%c0_103, %c0_104] : memref<4x64xf32, #tpu.memory_space<vmem>>, vector<1x64xf32>
    %294 = vector.broadcast %293 : vector<1x64xf32> to vector<16x64xf32>
    %295 = arith.addf %292, %294 : vector<16x64xf32>
    %296 = arith.addf %257, %295 : vector<16x64xf32>
    %c4 = arith.constant 4 : index
    %c0_105 = arith.constant 0 : index
    %297 = vector.load %arg1[%c4, %c0_105] : memref<16x64xf32, #tpu.memory_space<vmem>>, vector<1x64xf32>
    %c5 = arith.constant 5 : index
    %c0_106 = arith.constant 0 : index
    %298 = vector.load %arg1[%c5, %c0_106] : memref<16x64xf32, #tpu.memory_space<vmem>>, vector<1x64xf32>
    %c6 = arith.constant 6 : index
    %c0_107 = arith.constant 0 : index
    %299 = vector.load %arg1[%c6, %c0_107] : memref<16x64xf32, #tpu.memory_space<vmem>>, vector<1x64xf32>
    %c7 = arith.constant 7 : index
    %c0_108 = arith.constant 0 : index
    %300 = vector.load %arg1[%c7, %c0_108] : memref<16x64xf32, #tpu.memory_space<vmem>>, vector<1x64xf32>
    %cst_109 = arith.constant dense<0.000000e+00> : vector<16xf32>
    %301 = vector.multi_reduction <add>, %296, %cst_109 [1] : vector<16x64xf32> to vector<16xf32>
    %302 = vector.shape_cast %301 : vector<16xf32> to vector<16x1xf32>
    %cst_110 = arith.constant 6.400000e+01 : f32
    %303 = vector.broadcast %cst_110 : f32 to vector<16x1xf32>
    %304 = arith.divf %302, %303 : vector<16x1xf32>
    %305 = vector.broadcast %304 : vector<16x1xf32> to vector<16x64xf32>
    %306 = arith.subf %296, %305 : vector<16x64xf32>
    %307 = arith.mulf %306, %306 : vector<16x64xf32>
    %cst_111 = arith.constant dense<0.000000e+00> : vector<16xf32>
    %308 = vector.multi_reduction <add>, %307, %cst_111 [1] : vector<16x64xf32> to vector<16xf32>
    %309 = vector.shape_cast %308 : vector<16xf32> to vector<16x1xf32>
    %cst_112 = arith.constant 6.400000e+01 : f32
    %310 = vector.broadcast %cst_112 : f32 to vector<16x1xf32>
    %311 = arith.divf %309, %310 : vector<16x1xf32>
    %312 = vector.broadcast %304 : vector<16x1xf32> to vector<16x64xf32>
    %313 = arith.subf %296, %312 : vector<16x64xf32>
    %cst_113 = arith.constant 9.99999974E-6 : f32
    %314 = vector.broadcast %cst_113 : f32 to vector<16x1xf32>
    %315 = arith.addf %311, %314 : vector<16x1xf32>
    %316 = math.rsqrt %315 : vector<16x1xf32>
    %317 = vector.broadcast %316 : vector<16x1xf32> to vector<16x64xf32>
    %318 = arith.mulf %313, %317 : vector<16x64xf32>
    %319 = vector.broadcast %297 : vector<1x64xf32> to vector<16x64xf32>
    %320 = arith.mulf %318, %319 : vector<16x64xf32>
    %321 = vector.broadcast %298 : vector<1x64xf32> to vector<16x64xf32>
    %322 = arith.addf %320, %321 : vector<16x64xf32>
    %323 = arith.truncf %322 : vector<16x64xf32> to vector<16x64xbf16>
    %c1_114 = arith.constant 1 : index
    %c0_115 = arith.constant 0 : index
    %c0_116 = arith.constant 0 : index
    %324 = vector.load %arg2[%c1_114, %c0_115, %c0_116] : memref<4x64x192xbf16, #tpu.memory_space<vmem>>, vector<1x64x192xbf16>
    %325 = vector.shape_cast %324 : vector<1x64x192xbf16> to vector<64x192xbf16>
    %cst_117 = arith.constant dense<0.000000e+00> : vector<16x192xf32>
    %326 = tpu.matmul %323, %325, %cst_117 {dimension_numbers = #tpu.dot_dimension_numbers<[1], [0], [0], [1], [0, 0, 1, 1], [], []>} : vector<16x64xbf16>, vector<64x192xbf16>, vector<16x192xf32> -> vector<16x192xf32>
    %c1_118 = arith.constant 1 : index
    %c0_119 = arith.constant 0 : index
    %327 = vector.load %arg3[%c1_118, %c0_119] : memref<4x192xf32, #tpu.memory_space<vmem>>, vector<1x192xf32>
    %328 = vector.broadcast %327 : vector<1x192xf32> to vector<16x192xf32>
    %329 = arith.addf %326, %328 : vector<16x192xf32>
    %330 = vector.extract_strided_slice %329 {offsets = [0, 0], sizes = [16, 64], strides = [1, 1]} : vector<16x192xf32> to vector<16x64xf32>
    %331 = vector.extract_strided_slice %329 {offsets = [0, 64], sizes = [16, 64], strides = [1, 1]} : vector<16x192xf32> to vector<16x64xf32>
    %332 = vector.extract_strided_slice %329 {offsets = [0, 128], sizes = [16, 64], strides = [1, 1]} : vector<16x192xf32> to vector<16x64xf32>
    %333 = arith.truncf %332 : vector<16x64xf32> to vector<16x64xbf16>
    %c1_120 = arith.constant 1 : index
    %c0_121 = arith.constant 0 : index
    %c0_122 = arith.constant 0 : index
    %334 = vector.load %arg4[%c1_120, %c0_121, %c0_122] : memref<4x64x64xbf16, #tpu.memory_space<vmem>>, vector<1x64x64xbf16>
    %335 = vector.shape_cast %334 : vector<1x64x64xbf16> to vector<64x64xbf16>
    %cst_123 = arith.constant 0.000000e+00 : f32
    %336 = vector.broadcast %cst_123 : f32 to vector<8x64xf32>
    %337 = vector.extract_strided_slice %330 {offsets = [0, 0], sizes = [8, 16], strides = [1, 1]} : vector<16x64xf32> to vector<8x16xf32>
    %338 = vector.extract_strided_slice %331 {offsets = [0, 0], sizes = [8, 16], strides = [1, 1]} : vector<16x64xf32> to vector<8x16xf32>
    %339 = vector.extract_strided_slice %333 {offsets = [0, 0], sizes = [8, 16], strides = [1, 1]} : vector<16x64xbf16> to vector<8x16xbf16>
    %340 = tpu.transpose %338, [1, 0] : vector<8x16xf32> -> vector<16x8xf32>
    %cst_124 = arith.constant dense<0.000000e+00> : vector<8x8xf32>
    %341 = tpu.matmul %337, %340, %cst_124 {dimension_numbers = #tpu.dot_dimension_numbers<[1], [0], [0], [1], [0, 0, 1, 1], [], []>} : vector<8x16xf32>, vector<16x8xf32>, vector<8x8xf32> -> vector<8x8xf32>
    %cst_125 = arith.constant 1.250000e-01 : f32
    %342 = vector.broadcast %cst_125 : f32 to vector<8x8xf32>
    %343 = arith.mulf %341, %342 : vector<8x8xf32>
    %cst_126 = arith.constant -1.000000e+30 : f32
    %344 = vector.broadcast %cst_126 : f32 to vector<8x8xf32>
    %345 = arith.select %3, %343, %344 : vector<8x8xi1>, vector<8x8xf32>
    %cst_127 = arith.constant dense<0xFF800000> : vector<8xf32>
    %346 = vector.multi_reduction <maximumf>, %345, %cst_127 [1] : vector<8x8xf32> to vector<8xf32>
    %cst_128 = arith.constant 0xFF800000 : f32
    %347 = vector.broadcast %cst_128 : f32 to vector<8xf32>
    %348 = arith.maximumf %347, %346 : vector<8xf32>
    %349 = vector.shape_cast %348 : vector<8xf32> to vector<8x1xf32>
    %350 = vector.broadcast %349 : vector<8x1xf32> to vector<8x8xf32>
    %351 = arith.subf %345, %350 : vector<8x8xf32>
    %352 = math.exp %351 : vector<8x8xf32>
    %cst_129 = arith.constant dense<0.000000e+00> : vector<8xf32>
    %353 = vector.multi_reduction <add>, %352, %cst_129 [1] : vector<8x8xf32> to vector<8xf32>
    %354 = vector.shape_cast %353 : vector<8xf32> to vector<8x1xf32>
    %355 = vector.broadcast %354 : vector<8x1xf32> to vector<8x8xf32>
    %356 = arith.divf %352, %355 : vector<8x8xf32>
    %357 = arith.truncf %356 : vector<8x8xf32> to vector<8x8xbf16>
    %cst_130 = arith.constant dense<0.000000e+00> : vector<8x16xf32>
    %358 = tpu.matmul %357, %339, %cst_130 {dimension_numbers = #tpu.dot_dimension_numbers<[1], [0], [0], [1], [0, 0, 1, 1], [], []>} : vector<8x8xbf16>, vector<8x16xbf16>, vector<8x16xf32> -> vector<8x16xf32>
    %359 = arith.truncf %358 : vector<8x16xf32> to vector<8x16xbf16>
    %360 = vector.extract_strided_slice %335 {offsets = [0, 0], sizes = [16, 64], strides = [1, 1]} : vector<64x64xbf16> to vector<16x64xbf16>
    %cst_131 = arith.constant dense<0.000000e+00> : vector<8x64xf32>
    %361 = tpu.matmul %359, %360, %cst_131 {dimension_numbers = #tpu.dot_dimension_numbers<[1], [0], [0], [1], [0, 0, 1, 1], [], []>} : vector<8x16xbf16>, vector<16x64xbf16>, vector<8x64xf32> -> vector<8x64xf32>
    %362 = arith.addf %336, %361 : vector<8x64xf32>
    %363 = vector.extract_strided_slice %330 {offsets = [0, 16], sizes = [8, 16], strides = [1, 1]} : vector<16x64xf32> to vector<8x16xf32>
    %364 = vector.extract_strided_slice %331 {offsets = [0, 16], sizes = [8, 16], strides = [1, 1]} : vector<16x64xf32> to vector<8x16xf32>
    %365 = vector.extract_strided_slice %333 {offsets = [0, 16], sizes = [8, 16], strides = [1, 1]} : vector<16x64xbf16> to vector<8x16xbf16>
    %366 = tpu.transpose %364, [1, 0] : vector<8x16xf32> -> vector<16x8xf32>
    %cst_132 = arith.constant dense<0.000000e+00> : vector<8x8xf32>
    %367 = tpu.matmul %363, %366, %cst_132 {dimension_numbers = #tpu.dot_dimension_numbers<[1], [0], [0], [1], [0, 0, 1, 1], [], []>} : vector<8x16xf32>, vector<16x8xf32>, vector<8x8xf32> -> vector<8x8xf32>
    %cst_133 = arith.constant 1.250000e-01 : f32
    %368 = vector.broadcast %cst_133 : f32 to vector<8x8xf32>
    %369 = arith.mulf %367, %368 : vector<8x8xf32>
    %cst_134 = arith.constant -1.000000e+30 : f32
    %370 = vector.broadcast %cst_134 : f32 to vector<8x8xf32>
    %371 = arith.select %3, %369, %370 : vector<8x8xi1>, vector<8x8xf32>
    %cst_135 = arith.constant dense<0xFF800000> : vector<8xf32>
    %372 = vector.multi_reduction <maximumf>, %371, %cst_135 [1] : vector<8x8xf32> to vector<8xf32>
    %cst_136 = arith.constant 0xFF800000 : f32
    %373 = vector.broadcast %cst_136 : f32 to vector<8xf32>
    %374 = arith.maximumf %373, %372 : vector<8xf32>
    %375 = vector.shape_cast %374 : vector<8xf32> to vector<8x1xf32>
    %376 = vector.broadcast %375 : vector<8x1xf32> to vector<8x8xf32>
    %377 = arith.subf %371, %376 : vector<8x8xf32>
    %378 = math.exp %377 : vector<8x8xf32>
    %cst_137 = arith.constant dense<0.000000e+00> : vector<8xf32>
    %379 = vector.multi_reduction <add>, %378, %cst_137 [1] : vector<8x8xf32> to vector<8xf32>
    %380 = vector.shape_cast %379 : vector<8xf32> to vector<8x1xf32>
    %381 = vector.broadcast %380 : vector<8x1xf32> to vector<8x8xf32>
    %382 = arith.divf %378, %381 : vector<8x8xf32>
    %383 = arith.truncf %382 : vector<8x8xf32> to vector<8x8xbf16>
    %cst_138 = arith.constant dense<0.000000e+00> : vector<8x16xf32>
    %384 = tpu.matmul %383, %365, %cst_138 {dimension_numbers = #tpu.dot_dimension_numbers<[1], [0], [0], [1], [0, 0, 1, 1], [], []>} : vector<8x8xbf16>, vector<8x16xbf16>, vector<8x16xf32> -> vector<8x16xf32>
    %385 = arith.truncf %384 : vector<8x16xf32> to vector<8x16xbf16>
    %386 = vector.extract_strided_slice %335 {offsets = [16, 0], sizes = [16, 64], strides = [1, 1]} : vector<64x64xbf16> to vector<16x64xbf16>
    %cst_139 = arith.constant dense<0.000000e+00> : vector<8x64xf32>
    %387 = tpu.matmul %385, %386, %cst_139 {dimension_numbers = #tpu.dot_dimension_numbers<[1], [0], [0], [1], [0, 0, 1, 1], [], []>} : vector<8x16xbf16>, vector<16x64xbf16>, vector<8x64xf32> -> vector<8x64xf32>
    %388 = arith.addf %362, %387 : vector<8x64xf32>
    %389 = vector.extract_strided_slice %330 {offsets = [0, 32], sizes = [8, 16], strides = [1, 1]} : vector<16x64xf32> to vector<8x16xf32>
    %390 = vector.extract_strided_slice %331 {offsets = [0, 32], sizes = [8, 16], strides = [1, 1]} : vector<16x64xf32> to vector<8x16xf32>
    %391 = vector.extract_strided_slice %333 {offsets = [0, 32], sizes = [8, 16], strides = [1, 1]} : vector<16x64xbf16> to vector<8x16xbf16>
    %392 = tpu.transpose %390, [1, 0] : vector<8x16xf32> -> vector<16x8xf32>
    %cst_140 = arith.constant dense<0.000000e+00> : vector<8x8xf32>
    %393 = tpu.matmul %389, %392, %cst_140 {dimension_numbers = #tpu.dot_dimension_numbers<[1], [0], [0], [1], [0, 0, 1, 1], [], []>} : vector<8x16xf32>, vector<16x8xf32>, vector<8x8xf32> -> vector<8x8xf32>
    %cst_141 = arith.constant 1.250000e-01 : f32
    %394 = vector.broadcast %cst_141 : f32 to vector<8x8xf32>
    %395 = arith.mulf %393, %394 : vector<8x8xf32>
    %cst_142 = arith.constant -1.000000e+30 : f32
    %396 = vector.broadcast %cst_142 : f32 to vector<8x8xf32>
    %397 = arith.select %3, %395, %396 : vector<8x8xi1>, vector<8x8xf32>
    %cst_143 = arith.constant dense<0xFF800000> : vector<8xf32>
    %398 = vector.multi_reduction <maximumf>, %397, %cst_143 [1] : vector<8x8xf32> to vector<8xf32>
    %cst_144 = arith.constant 0xFF800000 : f32
    %399 = vector.broadcast %cst_144 : f32 to vector<8xf32>
    %400 = arith.maximumf %399, %398 : vector<8xf32>
    %401 = vector.shape_cast %400 : vector<8xf32> to vector<8x1xf32>
    %402 = vector.broadcast %401 : vector<8x1xf32> to vector<8x8xf32>
    %403 = arith.subf %397, %402 : vector<8x8xf32>
    %404 = math.exp %403 : vector<8x8xf32>
    %cst_145 = arith.constant dense<0.000000e+00> : vector<8xf32>
    %405 = vector.multi_reduction <add>, %404, %cst_145 [1] : vector<8x8xf32> to vector<8xf32>
    %406 = vector.shape_cast %405 : vector<8xf32> to vector<8x1xf32>
    %407 = vector.broadcast %406 : vector<8x1xf32> to vector<8x8xf32>
    %408 = arith.divf %404, %407 : vector<8x8xf32>
    %409 = arith.truncf %408 : vector<8x8xf32> to vector<8x8xbf16>
    %cst_146 = arith.constant dense<0.000000e+00> : vector<8x16xf32>
    %410 = tpu.matmul %409, %391, %cst_146 {dimension_numbers = #tpu.dot_dimension_numbers<[1], [0], [0], [1], [0, 0, 1, 1], [], []>} : vector<8x8xbf16>, vector<8x16xbf16>, vector<8x16xf32> -> vector<8x16xf32>
    %411 = arith.truncf %410 : vector<8x16xf32> to vector<8x16xbf16>
    %412 = vector.extract_strided_slice %335 {offsets = [32, 0], sizes = [16, 64], strides = [1, 1]} : vector<64x64xbf16> to vector<16x64xbf16>
    %cst_147 = arith.constant dense<0.000000e+00> : vector<8x64xf32>
    %413 = tpu.matmul %411, %412, %cst_147 {dimension_numbers = #tpu.dot_dimension_numbers<[1], [0], [0], [1], [0, 0, 1, 1], [], []>} : vector<8x16xbf16>, vector<16x64xbf16>, vector<8x64xf32> -> vector<8x64xf32>
    %414 = arith.addf %388, %413 : vector<8x64xf32>
    %415 = vector.extract_strided_slice %330 {offsets = [0, 48], sizes = [8, 16], strides = [1, 1]} : vector<16x64xf32> to vector<8x16xf32>
    %416 = vector.extract_strided_slice %331 {offsets = [0, 48], sizes = [8, 16], strides = [1, 1]} : vector<16x64xf32> to vector<8x16xf32>
    %417 = vector.extract_strided_slice %333 {offsets = [0, 48], sizes = [8, 16], strides = [1, 1]} : vector<16x64xbf16> to vector<8x16xbf16>
    %418 = tpu.transpose %416, [1, 0] : vector<8x16xf32> -> vector<16x8xf32>
    %cst_148 = arith.constant dense<0.000000e+00> : vector<8x8xf32>
    %419 = tpu.matmul %415, %418, %cst_148 {dimension_numbers = #tpu.dot_dimension_numbers<[1], [0], [0], [1], [0, 0, 1, 1], [], []>} : vector<8x16xf32>, vector<16x8xf32>, vector<8x8xf32> -> vector<8x8xf32>
    %cst_149 = arith.constant 1.250000e-01 : f32
    %420 = vector.broadcast %cst_149 : f32 to vector<8x8xf32>
    %421 = arith.mulf %419, %420 : vector<8x8xf32>
    %cst_150 = arith.constant -1.000000e+30 : f32
    %422 = vector.broadcast %cst_150 : f32 to vector<8x8xf32>
    %423 = arith.select %3, %421, %422 : vector<8x8xi1>, vector<8x8xf32>
    %cst_151 = arith.constant dense<0xFF800000> : vector<8xf32>
    %424 = vector.multi_reduction <maximumf>, %423, %cst_151 [1] : vector<8x8xf32> to vector<8xf32>
    %cst_152 = arith.constant 0xFF800000 : f32
    %425 = vector.broadcast %cst_152 : f32 to vector<8xf32>
    %426 = arith.maximumf %425, %424 : vector<8xf32>
    %427 = vector.shape_cast %426 : vector<8xf32> to vector<8x1xf32>
    %428 = vector.broadcast %427 : vector<8x1xf32> to vector<8x8xf32>
    %429 = arith.subf %423, %428 : vector<8x8xf32>
    %430 = math.exp %429 : vector<8x8xf32>
    %cst_153 = arith.constant dense<0.000000e+00> : vector<8xf32>
    %431 = vector.multi_reduction <add>, %430, %cst_153 [1] : vector<8x8xf32> to vector<8xf32>
    %432 = vector.shape_cast %431 : vector<8xf32> to vector<8x1xf32>
    %433 = vector.broadcast %432 : vector<8x1xf32> to vector<8x8xf32>
    %434 = arith.divf %430, %433 : vector<8x8xf32>
    %435 = arith.truncf %434 : vector<8x8xf32> to vector<8x8xbf16>
    %cst_154 = arith.constant dense<0.000000e+00> : vector<8x16xf32>
    %436 = tpu.matmul %435, %417, %cst_154 {dimension_numbers = #tpu.dot_dimension_numbers<[1], [0], [0], [1], [0, 0, 1, 1], [], []>} : vector<8x8xbf16>, vector<8x16xbf16>, vector<8x16xf32> -> vector<8x16xf32>
    %437 = arith.truncf %436 : vector<8x16xf32> to vector<8x16xbf16>
    %438 = vector.extract_strided_slice %335 {offsets = [48, 0], sizes = [16, 64], strides = [1, 1]} : vector<64x64xbf16> to vector<16x64xbf16>
    %cst_155 = arith.constant dense<0.000000e+00> : vector<8x64xf32>
    %439 = tpu.matmul %437, %438, %cst_155 {dimension_numbers = #tpu.dot_dimension_numbers<[1], [0], [0], [1], [0, 0, 1, 1], [], []>} : vector<8x16xbf16>, vector<16x64xbf16>, vector<8x64xf32> -> vector<8x64xf32>
    %440 = arith.addf %414, %439 : vector<8x64xf32>
    %cst_156 = arith.constant 0.000000e+00 : f32
    %441 = vector.broadcast %cst_156 : f32 to vector<8x64xf32>
    %442 = vector.extract_strided_slice %330 {offsets = [8, 0], sizes = [8, 16], strides = [1, 1]} : vector<16x64xf32> to vector<8x16xf32>
    %443 = vector.extract_strided_slice %331 {offsets = [8, 0], sizes = [8, 16], strides = [1, 1]} : vector<16x64xf32> to vector<8x16xf32>
    %444 = vector.extract_strided_slice %333 {offsets = [8, 0], sizes = [8, 16], strides = [1, 1]} : vector<16x64xbf16> to vector<8x16xbf16>
    %445 = tpu.transpose %443, [1, 0] : vector<8x16xf32> -> vector<16x8xf32>
    %cst_157 = arith.constant dense<0.000000e+00> : vector<8x8xf32>
    %446 = tpu.matmul %442, %445, %cst_157 {dimension_numbers = #tpu.dot_dimension_numbers<[1], [0], [0], [1], [0, 0, 1, 1], [], []>} : vector<8x16xf32>, vector<16x8xf32>, vector<8x8xf32> -> vector<8x8xf32>
    %cst_158 = arith.constant 1.250000e-01 : f32
    %447 = vector.broadcast %cst_158 : f32 to vector<8x8xf32>
    %448 = arith.mulf %446, %447 : vector<8x8xf32>
    %cst_159 = arith.constant -1.000000e+30 : f32
    %449 = vector.broadcast %cst_159 : f32 to vector<8x8xf32>
    %450 = arith.select %3, %448, %449 : vector<8x8xi1>, vector<8x8xf32>
    %cst_160 = arith.constant dense<0xFF800000> : vector<8xf32>
    %451 = vector.multi_reduction <maximumf>, %450, %cst_160 [1] : vector<8x8xf32> to vector<8xf32>
    %cst_161 = arith.constant 0xFF800000 : f32
    %452 = vector.broadcast %cst_161 : f32 to vector<8xf32>
    %453 = arith.maximumf %452, %451 : vector<8xf32>
    %454 = vector.shape_cast %453 : vector<8xf32> to vector<8x1xf32>
    %455 = vector.broadcast %454 : vector<8x1xf32> to vector<8x8xf32>
    %456 = arith.subf %450, %455 : vector<8x8xf32>
    %457 = math.exp %456 : vector<8x8xf32>
    %cst_162 = arith.constant dense<0.000000e+00> : vector<8xf32>
    %458 = vector.multi_reduction <add>, %457, %cst_162 [1] : vector<8x8xf32> to vector<8xf32>
    %459 = vector.shape_cast %458 : vector<8xf32> to vector<8x1xf32>
    %460 = vector.broadcast %459 : vector<8x1xf32> to vector<8x8xf32>
    %461 = arith.divf %457, %460 : vector<8x8xf32>
    %462 = arith.truncf %461 : vector<8x8xf32> to vector<8x8xbf16>
    %cst_163 = arith.constant dense<0.000000e+00> : vector<8x16xf32>
    %463 = tpu.matmul %462, %444, %cst_163 {dimension_numbers = #tpu.dot_dimension_numbers<[1], [0], [0], [1], [0, 0, 1, 1], [], []>} : vector<8x8xbf16>, vector<8x16xbf16>, vector<8x16xf32> -> vector<8x16xf32>
    %464 = arith.truncf %463 : vector<8x16xf32> to vector<8x16xbf16>
    %465 = vector.extract_strided_slice %335 {offsets = [0, 0], sizes = [16, 64], strides = [1, 1]} : vector<64x64xbf16> to vector<16x64xbf16>
    %cst_164 = arith.constant dense<0.000000e+00> : vector<8x64xf32>
    %466 = tpu.matmul %464, %465, %cst_164 {dimension_numbers = #tpu.dot_dimension_numbers<[1], [0], [0], [1], [0, 0, 1, 1], [], []>} : vector<8x16xbf16>, vector<16x64xbf16>, vector<8x64xf32> -> vector<8x64xf32>
    %467 = arith.addf %441, %466 : vector<8x64xf32>
    %468 = vector.extract_strided_slice %330 {offsets = [8, 16], sizes = [8, 16], strides = [1, 1]} : vector<16x64xf32> to vector<8x16xf32>
    %469 = vector.extract_strided_slice %331 {offsets = [8, 16], sizes = [8, 16], strides = [1, 1]} : vector<16x64xf32> to vector<8x16xf32>
    %470 = vector.extract_strided_slice %333 {offsets = [8, 16], sizes = [8, 16], strides = [1, 1]} : vector<16x64xbf16> to vector<8x16xbf16>
    %471 = tpu.transpose %469, [1, 0] : vector<8x16xf32> -> vector<16x8xf32>
    %cst_165 = arith.constant dense<0.000000e+00> : vector<8x8xf32>
    %472 = tpu.matmul %468, %471, %cst_165 {dimension_numbers = #tpu.dot_dimension_numbers<[1], [0], [0], [1], [0, 0, 1, 1], [], []>} : vector<8x16xf32>, vector<16x8xf32>, vector<8x8xf32> -> vector<8x8xf32>
    %cst_166 = arith.constant 1.250000e-01 : f32
    %473 = vector.broadcast %cst_166 : f32 to vector<8x8xf32>
    %474 = arith.mulf %472, %473 : vector<8x8xf32>
    %cst_167 = arith.constant -1.000000e+30 : f32
    %475 = vector.broadcast %cst_167 : f32 to vector<8x8xf32>
    %476 = arith.select %3, %474, %475 : vector<8x8xi1>, vector<8x8xf32>
    %cst_168 = arith.constant dense<0xFF800000> : vector<8xf32>
    %477 = vector.multi_reduction <maximumf>, %476, %cst_168 [1] : vector<8x8xf32> to vector<8xf32>
    %cst_169 = arith.constant 0xFF800000 : f32
    %478 = vector.broadcast %cst_169 : f32 to vector<8xf32>
    %479 = arith.maximumf %478, %477 : vector<8xf32>
    %480 = vector.shape_cast %479 : vector<8xf32> to vector<8x1xf32>
    %481 = vector.broadcast %480 : vector<8x1xf32> to vector<8x8xf32>
    %482 = arith.subf %476, %481 : vector<8x8xf32>
    %483 = math.exp %482 : vector<8x8xf32>
    %cst_170 = arith.constant dense<0.000000e+00> : vector<8xf32>
    %484 = vector.multi_reduction <add>, %483, %cst_170 [1] : vector<8x8xf32> to vector<8xf32>
    %485 = vector.shape_cast %484 : vector<8xf32> to vector<8x1xf32>
    %486 = vector.broadcast %485 : vector<8x1xf32> to vector<8x8xf32>
    %487 = arith.divf %483, %486 : vector<8x8xf32>
    %488 = arith.truncf %487 : vector<8x8xf32> to vector<8x8xbf16>
    %cst_171 = arith.constant dense<0.000000e+00> : vector<8x16xf32>
    %489 = tpu.matmul %488, %470, %cst_171 {dimension_numbers = #tpu.dot_dimension_numbers<[1], [0], [0], [1], [0, 0, 1, 1], [], []>} : vector<8x8xbf16>, vector<8x16xbf16>, vector<8x16xf32> -> vector<8x16xf32>
    %490 = arith.truncf %489 : vector<8x16xf32> to vector<8x16xbf16>
    %491 = vector.extract_strided_slice %335 {offsets = [16, 0], sizes = [16, 64], strides = [1, 1]} : vector<64x64xbf16> to vector<16x64xbf16>
    %cst_172 = arith.constant dense<0.000000e+00> : vector<8x64xf32>
    %492 = tpu.matmul %490, %491, %cst_172 {dimension_numbers = #tpu.dot_dimension_numbers<[1], [0], [0], [1], [0, 0, 1, 1], [], []>} : vector<8x16xbf16>, vector<16x64xbf16>, vector<8x64xf32> -> vector<8x64xf32>
    %493 = arith.addf %467, %492 : vector<8x64xf32>
    %494 = vector.extract_strided_slice %330 {offsets = [8, 32], sizes = [8, 16], strides = [1, 1]} : vector<16x64xf32> to vector<8x16xf32>
    %495 = vector.extract_strided_slice %331 {offsets = [8, 32], sizes = [8, 16], strides = [1, 1]} : vector<16x64xf32> to vector<8x16xf32>
    %496 = vector.extract_strided_slice %333 {offsets = [8, 32], sizes = [8, 16], strides = [1, 1]} : vector<16x64xbf16> to vector<8x16xbf16>
    %497 = tpu.transpose %495, [1, 0] : vector<8x16xf32> -> vector<16x8xf32>
    %cst_173 = arith.constant dense<0.000000e+00> : vector<8x8xf32>
    %498 = tpu.matmul %494, %497, %cst_173 {dimension_numbers = #tpu.dot_dimension_numbers<[1], [0], [0], [1], [0, 0, 1, 1], [], []>} : vector<8x16xf32>, vector<16x8xf32>, vector<8x8xf32> -> vector<8x8xf32>
    %cst_174 = arith.constant 1.250000e-01 : f32
    %499 = vector.broadcast %cst_174 : f32 to vector<8x8xf32>
    %500 = arith.mulf %498, %499 : vector<8x8xf32>
    %cst_175 = arith.constant -1.000000e+30 : f32
    %501 = vector.broadcast %cst_175 : f32 to vector<8x8xf32>
    %502 = arith.select %3, %500, %501 : vector<8x8xi1>, vector<8x8xf32>
    %cst_176 = arith.constant dense<0xFF800000> : vector<8xf32>
    %503 = vector.multi_reduction <maximumf>, %502, %cst_176 [1] : vector<8x8xf32> to vector<8xf32>
    %cst_177 = arith.constant 0xFF800000 : f32
    %504 = vector.broadcast %cst_177 : f32 to vector<8xf32>
    %505 = arith.maximumf %504, %503 : vector<8xf32>
    %506 = vector.shape_cast %505 : vector<8xf32> to vector<8x1xf32>
    %507 = vector.broadcast %506 : vector<8x1xf32> to vector<8x8xf32>
    %508 = arith.subf %502, %507 : vector<8x8xf32>
    %509 = math.exp %508 : vector<8x8xf32>
    %cst_178 = arith.constant dense<0.000000e+00> : vector<8xf32>
    %510 = vector.multi_reduction <add>, %509, %cst_178 [1] : vector<8x8xf32> to vector<8xf32>
    %511 = vector.shape_cast %510 : vector<8xf32> to vector<8x1xf32>
    %512 = vector.broadcast %511 : vector<8x1xf32> to vector<8x8xf32>
    %513 = arith.divf %509, %512 : vector<8x8xf32>
    %514 = arith.truncf %513 : vector<8x8xf32> to vector<8x8xbf16>
    %cst_179 = arith.constant dense<0.000000e+00> : vector<8x16xf32>
    %515 = tpu.matmul %514, %496, %cst_179 {dimension_numbers = #tpu.dot_dimension_numbers<[1], [0], [0], [1], [0, 0, 1, 1], [], []>} : vector<8x8xbf16>, vector<8x16xbf16>, vector<8x16xf32> -> vector<8x16xf32>
    %516 = arith.truncf %515 : vector<8x16xf32> to vector<8x16xbf16>
    %517 = vector.extract_strided_slice %335 {offsets = [32, 0], sizes = [16, 64], strides = [1, 1]} : vector<64x64xbf16> to vector<16x64xbf16>
    %cst_180 = arith.constant dense<0.000000e+00> : vector<8x64xf32>
    %518 = tpu.matmul %516, %517, %cst_180 {dimension_numbers = #tpu.dot_dimension_numbers<[1], [0], [0], [1], [0, 0, 1, 1], [], []>} : vector<8x16xbf16>, vector<16x64xbf16>, vector<8x64xf32> -> vector<8x64xf32>
    %519 = arith.addf %493, %518 : vector<8x64xf32>
    %520 = vector.extract_strided_slice %330 {offsets = [8, 48], sizes = [8, 16], strides = [1, 1]} : vector<16x64xf32> to vector<8x16xf32>
    %521 = vector.extract_strided_slice %331 {offsets = [8, 48], sizes = [8, 16], strides = [1, 1]} : vector<16x64xf32> to vector<8x16xf32>
    %522 = vector.extract_strided_slice %333 {offsets = [8, 48], sizes = [8, 16], strides = [1, 1]} : vector<16x64xbf16> to vector<8x16xbf16>
    %523 = tpu.transpose %521, [1, 0] : vector<8x16xf32> -> vector<16x8xf32>
    %cst_181 = arith.constant dense<0.000000e+00> : vector<8x8xf32>
    %524 = tpu.matmul %520, %523, %cst_181 {dimension_numbers = #tpu.dot_dimension_numbers<[1], [0], [0], [1], [0, 0, 1, 1], [], []>} : vector<8x16xf32>, vector<16x8xf32>, vector<8x8xf32> -> vector<8x8xf32>
    %cst_182 = arith.constant 1.250000e-01 : f32
    %525 = vector.broadcast %cst_182 : f32 to vector<8x8xf32>
    %526 = arith.mulf %524, %525 : vector<8x8xf32>
    %cst_183 = arith.constant -1.000000e+30 : f32
    %527 = vector.broadcast %cst_183 : f32 to vector<8x8xf32>
    %528 = arith.select %3, %526, %527 : vector<8x8xi1>, vector<8x8xf32>
    %cst_184 = arith.constant dense<0xFF800000> : vector<8xf32>
    %529 = vector.multi_reduction <maximumf>, %528, %cst_184 [1] : vector<8x8xf32> to vector<8xf32>
    %cst_185 = arith.constant 0xFF800000 : f32
    %530 = vector.broadcast %cst_185 : f32 to vector<8xf32>
    %531 = arith.maximumf %530, %529 : vector<8xf32>
    %532 = vector.shape_cast %531 : vector<8xf32> to vector<8x1xf32>
    %533 = vector.broadcast %532 : vector<8x1xf32> to vector<8x8xf32>
    %534 = arith.subf %528, %533 : vector<8x8xf32>
    %535 = math.exp %534 : vector<8x8xf32>
    %cst_186 = arith.constant dense<0.000000e+00> : vector<8xf32>
    %536 = vector.multi_reduction <add>, %535, %cst_186 [1] : vector<8x8xf32> to vector<8xf32>
    %537 = vector.shape_cast %536 : vector<8xf32> to vector<8x1xf32>
    %538 = vector.broadcast %537 : vector<8x1xf32> to vector<8x8xf32>
    %539 = arith.divf %535, %538 : vector<8x8xf32>
    %540 = arith.truncf %539 : vector<8x8xf32> to vector<8x8xbf16>
    %cst_187 = arith.constant dense<0.000000e+00> : vector<8x16xf32>
    %541 = tpu.matmul %540, %522, %cst_187 {dimension_numbers = #tpu.dot_dimension_numbers<[1], [0], [0], [1], [0, 0, 1, 1], [], []>} : vector<8x8xbf16>, vector<8x16xbf16>, vector<8x16xf32> -> vector<8x16xf32>
    %542 = arith.truncf %541 : vector<8x16xf32> to vector<8x16xbf16>
    %543 = vector.extract_strided_slice %335 {offsets = [48, 0], sizes = [16, 64], strides = [1, 1]} : vector<64x64xbf16> to vector<16x64xbf16>
    %cst_188 = arith.constant dense<0.000000e+00> : vector<8x64xf32>
    %544 = tpu.matmul %542, %543, %cst_188 {dimension_numbers = #tpu.dot_dimension_numbers<[1], [0], [0], [1], [0, 0, 1, 1], [], []>} : vector<8x16xbf16>, vector<16x64xbf16>, vector<8x64xf32> -> vector<8x64xf32>
    %545 = arith.addf %519, %544 : vector<8x64xf32>
    %546 = tpu.concatenate %440, %545 in 0 : vector<8x64xf32>, vector<8x64xf32> -> vector<16x64xf32>
    %547 = arith.addf %296, %546 : vector<16x64xf32>
    %c1_189 = arith.constant 1 : index
    %c0_190 = arith.constant 0 : index
    %548 = vector.load %arg5[%c1_189, %c0_190] : memref<4x64xf32, #tpu.memory_space<vmem>>, vector<1x64xf32>
    %549 = vector.broadcast %548 : vector<1x64xf32> to vector<16x64xf32>
    %550 = arith.addf %547, %549 : vector<16x64xf32>
    %cst_191 = arith.constant dense<0.000000e+00> : vector<16xf32>
    %551 = vector.multi_reduction <add>, %550, %cst_191 [1] : vector<16x64xf32> to vector<16xf32>
    %552 = vector.shape_cast %551 : vector<16xf32> to vector<16x1xf32>
    %cst_192 = arith.constant 6.400000e+01 : f32
    %553 = vector.broadcast %cst_192 : f32 to vector<16x1xf32>
    %554 = arith.divf %552, %553 : vector<16x1xf32>
    %555 = vector.broadcast %554 : vector<16x1xf32> to vector<16x64xf32>
    %556 = arith.subf %550, %555 : vector<16x64xf32>
    %557 = arith.mulf %556, %556 : vector<16x64xf32>
    %cst_193 = arith.constant dense<0.000000e+00> : vector<16xf32>
    %558 = vector.multi_reduction <add>, %557, %cst_193 [1] : vector<16x64xf32> to vector<16xf32>
    %559 = vector.shape_cast %558 : vector<16xf32> to vector<16x1xf32>
    %cst_194 = arith.constant 6.400000e+01 : f32
    %560 = vector.broadcast %cst_194 : f32 to vector<16x1xf32>
    %561 = arith.divf %559, %560 : vector<16x1xf32>
    %562 = vector.broadcast %554 : vector<16x1xf32> to vector<16x64xf32>
    %563 = arith.subf %550, %562 : vector<16x64xf32>
    %cst_195 = arith.constant 9.99999974E-6 : f32
    %564 = vector.broadcast %cst_195 : f32 to vector<16x1xf32>
    %565 = arith.addf %561, %564 : vector<16x1xf32>
    %566 = math.rsqrt %565 : vector<16x1xf32>
    %567 = vector.broadcast %566 : vector<16x1xf32> to vector<16x64xf32>
    %568 = arith.mulf %563, %567 : vector<16x64xf32>
    %569 = vector.broadcast %299 : vector<1x64xf32> to vector<16x64xf32>
    %570 = arith.mulf %568, %569 : vector<16x64xf32>
    %571 = vector.broadcast %300 : vector<1x64xf32> to vector<16x64xf32>
    %572 = arith.addf %570, %571 : vector<16x64xf32>
    %573 = arith.truncf %572 : vector<16x64xf32> to vector<16x64xbf16>
    %c1_196 = arith.constant 1 : index
    %c0_197 = arith.constant 0 : index
    %c0_198 = arith.constant 0 : index
    %574 = vector.load %arg6[%c1_196, %c0_197, %c0_198] : memref<4x64x256xbf16, #tpu.memory_space<vmem>>, vector<1x64x256xbf16>
    %575 = vector.shape_cast %574 : vector<1x64x256xbf16> to vector<64x256xbf16>
    %cst_199 = arith.constant dense<0.000000e+00> : vector<16x256xf32>
    %576 = tpu.matmul %573, %575, %cst_199 {dimension_numbers = #tpu.dot_dimension_numbers<[1], [0], [0], [1], [0, 0, 1, 1], [], []>} : vector<16x64xbf16>, vector<64x256xbf16>, vector<16x256xf32> -> vector<16x256xf32>
    %c1_200 = arith.constant 1 : index
    %c0_201 = arith.constant 0 : index
    %577 = vector.load %arg7[%c1_200, %c0_201] : memref<4x256xf32, #tpu.memory_space<vmem>>, vector<1x256xf32>
    %578 = vector.broadcast %577 : vector<1x256xf32> to vector<16x256xf32>
    %579 = arith.addf %576, %578 : vector<16x256xf32>
    %cst_202 = arith.constant 0.000000e+00 : f32
    %580 = vector.broadcast %cst_202 : f32 to vector<16x256xf32>
    %581 = arith.maximumf %579, %580 : vector<16x256xf32>
    %582 = arith.truncf %581 : vector<16x256xf32> to vector<16x256xbf16>
    %c1_203 = arith.constant 1 : index
    %c0_204 = arith.constant 0 : index
    %c0_205 = arith.constant 0 : index
    %583 = vector.load %arg8[%c1_203, %c0_204, %c0_205] : memref<4x256x64xbf16, #tpu.memory_space<vmem>>, vector<1x256x64xbf16>
    %584 = vector.shape_cast %583 : vector<1x256x64xbf16> to vector<256x64xbf16>
    %cst_206 = arith.constant dense<0.000000e+00> : vector<16x64xf32>
    %585 = tpu.matmul %582, %584, %cst_206 {dimension_numbers = #tpu.dot_dimension_numbers<[1], [0], [0], [1], [0, 0, 1, 1], [], []>} : vector<16x256xbf16>, vector<256x64xbf16>, vector<16x64xf32> -> vector<16x64xf32>
    %c1_207 = arith.constant 1 : index
    %c0_208 = arith.constant 0 : index
    %586 = vector.load %arg9[%c1_207, %c0_208] : memref<4x64xf32, #tpu.memory_space<vmem>>, vector<1x64xf32>
    %587 = vector.broadcast %586 : vector<1x64xf32> to vector<16x64xf32>
    %588 = arith.addf %585, %587 : vector<16x64xf32>
    %589 = arith.addf %550, %588 : vector<16x64xf32>
    %c8 = arith.constant 8 : index
    %c0_209 = arith.constant 0 : index
    %590 = vector.load %arg1[%c8, %c0_209] : memref<16x64xf32, #tpu.memory_space<vmem>>, vector<1x64xf32>
    %c9 = arith.constant 9 : index
    %c0_210 = arith.constant 0 : index
    %591 = vector.load %arg1[%c9, %c0_210] : memref<16x64xf32, #tpu.memory_space<vmem>>, vector<1x64xf32>
    %c10 = arith.constant 10 : index
    %c0_211 = arith.constant 0 : index
    %592 = vector.load %arg1[%c10, %c0_211] : memref<16x64xf32, #tpu.memory_space<vmem>>, vector<1x64xf32>
    %c11 = arith.constant 11 : index
    %c0_212 = arith.constant 0 : index
    %593 = vector.load %arg1[%c11, %c0_212] : memref<16x64xf32, #tpu.memory_space<vmem>>, vector<1x64xf32>
    %cst_213 = arith.constant dense<0.000000e+00> : vector<16xf32>
    %594 = vector.multi_reduction <add>, %589, %cst_213 [1] : vector<16x64xf32> to vector<16xf32>
    %595 = vector.shape_cast %594 : vector<16xf32> to vector<16x1xf32>
    %cst_214 = arith.constant 6.400000e+01 : f32
    %596 = vector.broadcast %cst_214 : f32 to vector<16x1xf32>
    %597 = arith.divf %595, %596 : vector<16x1xf32>
    %598 = vector.broadcast %597 : vector<16x1xf32> to vector<16x64xf32>
    %599 = arith.subf %589, %598 : vector<16x64xf32>
    %600 = arith.mulf %599, %599 : vector<16x64xf32>
    %cst_215 = arith.constant dense<0.000000e+00> : vector<16xf32>
    %601 = vector.multi_reduction <add>, %600, %cst_215 [1] : vector<16x64xf32> to vector<16xf32>
    %602 = vector.shape_cast %601 : vector<16xf32> to vector<16x1xf32>
    %cst_216 = arith.constant 6.400000e+01 : f32
    %603 = vector.broadcast %cst_216 : f32 to vector<16x1xf32>
    %604 = arith.divf %602, %603 : vector<16x1xf32>
    %605 = vector.broadcast %597 : vector<16x1xf32> to vector<16x64xf32>
    %606 = arith.subf %589, %605 : vector<16x64xf32>
    %cst_217 = arith.constant 9.99999974E-6 : f32
    %607 = vector.broadcast %cst_217 : f32 to vector<16x1xf32>
    %608 = arith.addf %604, %607 : vector<16x1xf32>
    %609 = math.rsqrt %608 : vector<16x1xf32>
    %610 = vector.broadcast %609 : vector<16x1xf32> to vector<16x64xf32>
    %611 = arith.mulf %606, %610 : vector<16x64xf32>
    %612 = vector.broadcast %590 : vector<1x64xf32> to vector<16x64xf32>
    %613 = arith.mulf %611, %612 : vector<16x64xf32>
    %614 = vector.broadcast %591 : vector<1x64xf32> to vector<16x64xf32>
    %615 = arith.addf %613, %614 : vector<16x64xf32>
    %616 = arith.truncf %615 : vector<16x64xf32> to vector<16x64xbf16>
    %c2_218 = arith.constant 2 : index
    %c0_219 = arith.constant 0 : index
    %c0_220 = arith.constant 0 : index
    %617 = vector.load %arg2[%c2_218, %c0_219, %c0_220] : memref<4x64x192xbf16, #tpu.memory_space<vmem>>, vector<1x64x192xbf16>
    %618 = vector.shape_cast %617 : vector<1x64x192xbf16> to vector<64x192xbf16>
    %cst_221 = arith.constant dense<0.000000e+00> : vector<16x192xf32>
    %619 = tpu.matmul %616, %618, %cst_221 {dimension_numbers = #tpu.dot_dimension_numbers<[1], [0], [0], [1], [0, 0, 1, 1], [], []>} : vector<16x64xbf16>, vector<64x192xbf16>, vector<16x192xf32> -> vector<16x192xf32>
    %c2_222 = arith.constant 2 : index
    %c0_223 = arith.constant 0 : index
    %620 = vector.load %arg3[%c2_222, %c0_223] : memref<4x192xf32, #tpu.memory_space<vmem>>, vector<1x192xf32>
    %621 = vector.broadcast %620 : vector<1x192xf32> to vector<16x192xf32>
    %622 = arith.addf %619, %621 : vector<16x192xf32>
    %623 = vector.extract_strided_slice %622 {offsets = [0, 0], sizes = [16, 64], strides = [1, 1]} : vector<16x192xf32> to vector<16x64xf32>
    %624 = vector.extract_strided_slice %622 {offsets = [0, 64], sizes = [16, 64], strides = [1, 1]} : vector<16x192xf32> to vector<16x64xf32>
    %625 = vector.extract_strided_slice %622 {offsets = [0, 128], sizes = [16, 64], strides = [1, 1]} : vector<16x192xf32> to vector<16x64xf32>
    %626 = arith.truncf %625 : vector<16x64xf32> to vector<16x64xbf16>
    %c2_224 = arith.constant 2 : index
    %c0_225 = arith.constant 0 : index
    %c0_226 = arith.constant 0 : index
    %627 = vector.load %arg4[%c2_224, %c0_225, %c0_226] : memref<4x64x64xbf16, #tpu.memory_space<vmem>>, vector<1x64x64xbf16>
    %628 = vector.shape_cast %627 : vector<1x64x64xbf16> to vector<64x64xbf16>
    %cst_227 = arith.constant 0.000000e+00 : f32
    %629 = vector.broadcast %cst_227 : f32 to vector<8x64xf32>
    %630 = vector.extract_strided_slice %623 {offsets = [0, 0], sizes = [8, 16], strides = [1, 1]} : vector<16x64xf32> to vector<8x16xf32>
    %631 = vector.extract_strided_slice %624 {offsets = [0, 0], sizes = [8, 16], strides = [1, 1]} : vector<16x64xf32> to vector<8x16xf32>
    %632 = vector.extract_strided_slice %626 {offsets = [0, 0], sizes = [8, 16], strides = [1, 1]} : vector<16x64xbf16> to vector<8x16xbf16>
    %633 = tpu.transpose %631, [1, 0] : vector<8x16xf32> -> vector<16x8xf32>
    %cst_228 = arith.constant dense<0.000000e+00> : vector<8x8xf32>
    %634 = tpu.matmul %630, %633, %cst_228 {dimension_numbers = #tpu.dot_dimension_numbers<[1], [0], [0], [1], [0, 0, 1, 1], [], []>} : vector<8x16xf32>, vector<16x8xf32>, vector<8x8xf32> -> vector<8x8xf32>
    %cst_229 = arith.constant 1.250000e-01 : f32
    %635 = vector.broadcast %cst_229 : f32 to vector<8x8xf32>
    %636 = arith.mulf %634, %635 : vector<8x8xf32>
    %cst_230 = arith.constant -1.000000e+30 : f32
    %637 = vector.broadcast %cst_230 : f32 to vector<8x8xf32>
    %638 = arith.select %3, %636, %637 : vector<8x8xi1>, vector<8x8xf32>
    %cst_231 = arith.constant dense<0xFF800000> : vector<8xf32>
    %639 = vector.multi_reduction <maximumf>, %638, %cst_231 [1] : vector<8x8xf32> to vector<8xf32>
    %cst_232 = arith.constant 0xFF800000 : f32
    %640 = vector.broadcast %cst_232 : f32 to vector<8xf32>
    %641 = arith.maximumf %640, %639 : vector<8xf32>
    %642 = vector.shape_cast %641 : vector<8xf32> to vector<8x1xf32>
    %643 = vector.broadcast %642 : vector<8x1xf32> to vector<8x8xf32>
    %644 = arith.subf %638, %643 : vector<8x8xf32>
    %645 = math.exp %644 : vector<8x8xf32>
    %cst_233 = arith.constant dense<0.000000e+00> : vector<8xf32>
    %646 = vector.multi_reduction <add>, %645, %cst_233 [1] : vector<8x8xf32> to vector<8xf32>
    %647 = vector.shape_cast %646 : vector<8xf32> to vector<8x1xf32>
    %648 = vector.broadcast %647 : vector<8x1xf32> to vector<8x8xf32>
    %649 = arith.divf %645, %648 : vector<8x8xf32>
    %650 = arith.truncf %649 : vector<8x8xf32> to vector<8x8xbf16>
    %cst_234 = arith.constant dense<0.000000e+00> : vector<8x16xf32>
    %651 = tpu.matmul %650, %632, %cst_234 {dimension_numbers = #tpu.dot_dimension_numbers<[1], [0], [0], [1], [0, 0, 1, 1], [], []>} : vector<8x8xbf16>, vector<8x16xbf16>, vector<8x16xf32> -> vector<8x16xf32>
    %652 = arith.truncf %651 : vector<8x16xf32> to vector<8x16xbf16>
    %653 = vector.extract_strided_slice %628 {offsets = [0, 0], sizes = [16, 64], strides = [1, 1]} : vector<64x64xbf16> to vector<16x64xbf16>
    %cst_235 = arith.constant dense<0.000000e+00> : vector<8x64xf32>
    %654 = tpu.matmul %652, %653, %cst_235 {dimension_numbers = #tpu.dot_dimension_numbers<[1], [0], [0], [1], [0, 0, 1, 1], [], []>} : vector<8x16xbf16>, vector<16x64xbf16>, vector<8x64xf32> -> vector<8x64xf32>
    %655 = arith.addf %629, %654 : vector<8x64xf32>
    %656 = vector.extract_strided_slice %623 {offsets = [0, 16], sizes = [8, 16], strides = [1, 1]} : vector<16x64xf32> to vector<8x16xf32>
    %657 = vector.extract_strided_slice %624 {offsets = [0, 16], sizes = [8, 16], strides = [1, 1]} : vector<16x64xf32> to vector<8x16xf32>
    %658 = vector.extract_strided_slice %626 {offsets = [0, 16], sizes = [8, 16], strides = [1, 1]} : vector<16x64xbf16> to vector<8x16xbf16>
    %659 = tpu.transpose %657, [1, 0] : vector<8x16xf32> -> vector<16x8xf32>
    %cst_236 = arith.constant dense<0.000000e+00> : vector<8x8xf32>
    %660 = tpu.matmul %656, %659, %cst_236 {dimension_numbers = #tpu.dot_dimension_numbers<[1], [0], [0], [1], [0, 0, 1, 1], [], []>} : vector<8x16xf32>, vector<16x8xf32>, vector<8x8xf32> -> vector<8x8xf32>
    %cst_237 = arith.constant 1.250000e-01 : f32
    %661 = vector.broadcast %cst_237 : f32 to vector<8x8xf32>
    %662 = arith.mulf %660, %661 : vector<8x8xf32>
    %cst_238 = arith.constant -1.000000e+30 : f32
    %663 = vector.broadcast %cst_238 : f32 to vector<8x8xf32>
    %664 = arith.select %3, %662, %663 : vector<8x8xi1>, vector<8x8xf32>
    %cst_239 = arith.constant dense<0xFF800000> : vector<8xf32>
    %665 = vector.multi_reduction <maximumf>, %664, %cst_239 [1] : vector<8x8xf32> to vector<8xf32>
    %cst_240 = arith.constant 0xFF800000 : f32
    %666 = vector.broadcast %cst_240 : f32 to vector<8xf32>
    %667 = arith.maximumf %666, %665 : vector<8xf32>
    %668 = vector.shape_cast %667 : vector<8xf32> to vector<8x1xf32>
    %669 = vector.broadcast %668 : vector<8x1xf32> to vector<8x8xf32>
    %670 = arith.subf %664, %669 : vector<8x8xf32>
    %671 = math.exp %670 : vector<8x8xf32>
    %cst_241 = arith.constant dense<0.000000e+00> : vector<8xf32>
    %672 = vector.multi_reduction <add>, %671, %cst_241 [1] : vector<8x8xf32> to vector<8xf32>
    %673 = vector.shape_cast %672 : vector<8xf32> to vector<8x1xf32>
    %674 = vector.broadcast %673 : vector<8x1xf32> to vector<8x8xf32>
    %675 = arith.divf %671, %674 : vector<8x8xf32>
    %676 = arith.truncf %675 : vector<8x8xf32> to vector<8x8xbf16>
    %cst_242 = arith.constant dense<0.000000e+00> : vector<8x16xf32>
    %677 = tpu.matmul %676, %658, %cst_242 {dimension_numbers = #tpu.dot_dimension_numbers<[1], [0], [0], [1], [0, 0, 1, 1], [], []>} : vector<8x8xbf16>, vector<8x16xbf16>, vector<8x16xf32> -> vector<8x16xf32>
    %678 = arith.truncf %677 : vector<8x16xf32> to vector<8x16xbf16>
    %679 = vector.extract_strided_slice %628 {offsets = [16, 0], sizes = [16, 64], strides = [1, 1]} : vector<64x64xbf16> to vector<16x64xbf16>
    %cst_243 = arith.constant dense<0.000000e+00> : vector<8x64xf32>
    %680 = tpu.matmul %678, %679, %cst_243 {dimension_numbers = #tpu.dot_dimension_numbers<[1], [0], [0], [1], [0, 0, 1, 1], [], []>} : vector<8x16xbf16>, vector<16x64xbf16>, vector<8x64xf32> -> vector<8x64xf32>
    %681 = arith.addf %655, %680 : vector<8x64xf32>
    %682 = vector.extract_strided_slice %623 {offsets = [0, 32], sizes = [8, 16], strides = [1, 1]} : vector<16x64xf32> to vector<8x16xf32>
    %683 = vector.extract_strided_slice %624 {offsets = [0, 32], sizes = [8, 16], strides = [1, 1]} : vector<16x64xf32> to vector<8x16xf32>
    %684 = vector.extract_strided_slice %626 {offsets = [0, 32], sizes = [8, 16], strides = [1, 1]} : vector<16x64xbf16> to vector<8x16xbf16>
    %685 = tpu.transpose %683, [1, 0] : vector<8x16xf32> -> vector<16x8xf32>
    %cst_244 = arith.constant dense<0.000000e+00> : vector<8x8xf32>
    %686 = tpu.matmul %682, %685, %cst_244 {dimension_numbers = #tpu.dot_dimension_numbers<[1], [0], [0], [1], [0, 0, 1, 1], [], []>} : vector<8x16xf32>, vector<16x8xf32>, vector<8x8xf32> -> vector<8x8xf32>
    %cst_245 = arith.constant 1.250000e-01 : f32
    %687 = vector.broadcast %cst_245 : f32 to vector<8x8xf32>
    %688 = arith.mulf %686, %687 : vector<8x8xf32>
    %cst_246 = arith.constant -1.000000e+30 : f32
    %689 = vector.broadcast %cst_246 : f32 to vector<8x8xf32>
    %690 = arith.select %3, %688, %689 : vector<8x8xi1>, vector<8x8xf32>
    %cst_247 = arith.constant dense<0xFF800000> : vector<8xf32>
    %691 = vector.multi_reduction <maximumf>, %690, %cst_247 [1] : vector<8x8xf32> to vector<8xf32>
    %cst_248 = arith.constant 0xFF800000 : f32
    %692 = vector.broadcast %cst_248 : f32 to vector<8xf32>
    %693 = arith.maximumf %692, %691 : vector<8xf32>
    %694 = vector.shape_cast %693 : vector<8xf32> to vector<8x1xf32>
    %695 = vector.broadcast %694 : vector<8x1xf32> to vector<8x8xf32>
    %696 = arith.subf %690, %695 : vector<8x8xf32>
    %697 = math.exp %696 : vector<8x8xf32>
    %cst_249 = arith.constant dense<0.000000e+00> : vector<8xf32>
    %698 = vector.multi_reduction <add>, %697, %cst_249 [1] : vector<8x8xf32> to vector<8xf32>
    %699 = vector.shape_cast %698 : vector<8xf32> to vector<8x1xf32>
    %700 = vector.broadcast %699 : vector<8x1xf32> to vector<8x8xf32>
    %701 = arith.divf %697, %700 : vector<8x8xf32>
    %702 = arith.truncf %701 : vector<8x8xf32> to vector<8x8xbf16>
    %cst_250 = arith.constant dense<0.000000e+00> : vector<8x16xf32>
    %703 = tpu.matmul %702, %684, %cst_250 {dimension_numbers = #tpu.dot_dimension_numbers<[1], [0], [0], [1], [0, 0, 1, 1], [], []>} : vector<8x8xbf16>, vector<8x16xbf16>, vector<8x16xf32> -> vector<8x16xf32>
    %704 = arith.truncf %703 : vector<8x16xf32> to vector<8x16xbf16>
    %705 = vector.extract_strided_slice %628 {offsets = [32, 0], sizes = [16, 64], strides = [1, 1]} : vector<64x64xbf16> to vector<16x64xbf16>
    %cst_251 = arith.constant dense<0.000000e+00> : vector<8x64xf32>
    %706 = tpu.matmul %704, %705, %cst_251 {dimension_numbers = #tpu.dot_dimension_numbers<[1], [0], [0], [1], [0, 0, 1, 1], [], []>} : vector<8x16xbf16>, vector<16x64xbf16>, vector<8x64xf32> -> vector<8x64xf32>
    %707 = arith.addf %681, %706 : vector<8x64xf32>
    %708 = vector.extract_strided_slice %623 {offsets = [0, 48], sizes = [8, 16], strides = [1, 1]} : vector<16x64xf32> to vector<8x16xf32>
    %709 = vector.extract_strided_slice %624 {offsets = [0, 48], sizes = [8, 16], strides = [1, 1]} : vector<16x64xf32> to vector<8x16xf32>
    %710 = vector.extract_strided_slice %626 {offsets = [0, 48], sizes = [8, 16], strides = [1, 1]} : vector<16x64xbf16> to vector<8x16xbf16>
    %711 = tpu.transpose %709, [1, 0] : vector<8x16xf32> -> vector<16x8xf32>
    %cst_252 = arith.constant dense<0.000000e+00> : vector<8x8xf32>
    %712 = tpu.matmul %708, %711, %cst_252 {dimension_numbers = #tpu.dot_dimension_numbers<[1], [0], [0], [1], [0, 0, 1, 1], [], []>} : vector<8x16xf32>, vector<16x8xf32>, vector<8x8xf32> -> vector<8x8xf32>
    %cst_253 = arith.constant 1.250000e-01 : f32
    %713 = vector.broadcast %cst_253 : f32 to vector<8x8xf32>
    %714 = arith.mulf %712, %713 : vector<8x8xf32>
    %cst_254 = arith.constant -1.000000e+30 : f32
    %715 = vector.broadcast %cst_254 : f32 to vector<8x8xf32>
    %716 = arith.select %3, %714, %715 : vector<8x8xi1>, vector<8x8xf32>
    %cst_255 = arith.constant dense<0xFF800000> : vector<8xf32>
    %717 = vector.multi_reduction <maximumf>, %716, %cst_255 [1] : vector<8x8xf32> to vector<8xf32>
    %cst_256 = arith.constant 0xFF800000 : f32
    %718 = vector.broadcast %cst_256 : f32 to vector<8xf32>
    %719 = arith.maximumf %718, %717 : vector<8xf32>
    %720 = vector.shape_cast %719 : vector<8xf32> to vector<8x1xf32>
    %721 = vector.broadcast %720 : vector<8x1xf32> to vector<8x8xf32>
    %722 = arith.subf %716, %721 : vector<8x8xf32>
    %723 = math.exp %722 : vector<8x8xf32>
    %cst_257 = arith.constant dense<0.000000e+00> : vector<8xf32>
    %724 = vector.multi_reduction <add>, %723, %cst_257 [1] : vector<8x8xf32> to vector<8xf32>
    %725 = vector.shape_cast %724 : vector<8xf32> to vector<8x1xf32>
    %726 = vector.broadcast %725 : vector<8x1xf32> to vector<8x8xf32>
    %727 = arith.divf %723, %726 : vector<8x8xf32>
    %728 = arith.truncf %727 : vector<8x8xf32> to vector<8x8xbf16>
    %cst_258 = arith.constant dense<0.000000e+00> : vector<8x16xf32>
    %729 = tpu.matmul %728, %710, %cst_258 {dimension_numbers = #tpu.dot_dimension_numbers<[1], [0], [0], [1], [0, 0, 1, 1], [], []>} : vector<8x8xbf16>, vector<8x16xbf16>, vector<8x16xf32> -> vector<8x16xf32>
    %730 = arith.truncf %729 : vector<8x16xf32> to vector<8x16xbf16>
    %731 = vector.extract_strided_slice %628 {offsets = [48, 0], sizes = [16, 64], strides = [1, 1]} : vector<64x64xbf16> to vector<16x64xbf16>
    %cst_259 = arith.constant dense<0.000000e+00> : vector<8x64xf32>
    %732 = tpu.matmul %730, %731, %cst_259 {dimension_numbers = #tpu.dot_dimension_numbers<[1], [0], [0], [1], [0, 0, 1, 1], [], []>} : vector<8x16xbf16>, vector<16x64xbf16>, vector<8x64xf32> -> vector<8x64xf32>
    %733 = arith.addf %707, %732 : vector<8x64xf32>
    %cst_260 = arith.constant 0.000000e+00 : f32
    %734 = vector.broadcast %cst_260 : f32 to vector<8x64xf32>
    %735 = vector.extract_strided_slice %623 {offsets = [8, 0], sizes = [8, 16], strides = [1, 1]} : vector<16x64xf32> to vector<8x16xf32>
    %736 = vector.extract_strided_slice %624 {offsets = [8, 0], sizes = [8, 16], strides = [1, 1]} : vector<16x64xf32> to vector<8x16xf32>
    %737 = vector.extract_strided_slice %626 {offsets = [8, 0], sizes = [8, 16], strides = [1, 1]} : vector<16x64xbf16> to vector<8x16xbf16>
    %738 = tpu.transpose %736, [1, 0] : vector<8x16xf32> -> vector<16x8xf32>
    %cst_261 = arith.constant dense<0.000000e+00> : vector<8x8xf32>
    %739 = tpu.matmul %735, %738, %cst_261 {dimension_numbers = #tpu.dot_dimension_numbers<[1], [0], [0], [1], [0, 0, 1, 1], [], []>} : vector<8x16xf32>, vector<16x8xf32>, vector<8x8xf32> -> vector<8x8xf32>
    %cst_262 = arith.constant 1.250000e-01 : f32
    %740 = vector.broadcast %cst_262 : f32 to vector<8x8xf32>
    %741 = arith.mulf %739, %740 : vector<8x8xf32>
    %cst_263 = arith.constant -1.000000e+30 : f32
    %742 = vector.broadcast %cst_263 : f32 to vector<8x8xf32>
    %743 = arith.select %3, %741, %742 : vector<8x8xi1>, vector<8x8xf32>
    %cst_264 = arith.constant dense<0xFF800000> : vector<8xf32>
    %744 = vector.multi_reduction <maximumf>, %743, %cst_264 [1] : vector<8x8xf32> to vector<8xf32>
    %cst_265 = arith.constant 0xFF800000 : f32
    %745 = vector.broadcast %cst_265 : f32 to vector<8xf32>
    %746 = arith.maximumf %745, %744 : vector<8xf32>
    %747 = vector.shape_cast %746 : vector<8xf32> to vector<8x1xf32>
    %748 = vector.broadcast %747 : vector<8x1xf32> to vector<8x8xf32>
    %749 = arith.subf %743, %748 : vector<8x8xf32>
    %750 = math.exp %749 : vector<8x8xf32>
    %cst_266 = arith.constant dense<0.000000e+00> : vector<8xf32>
    %751 = vector.multi_reduction <add>, %750, %cst_266 [1] : vector<8x8xf32> to vector<8xf32>
    %752 = vector.shape_cast %751 : vector<8xf32> to vector<8x1xf32>
    %753 = vector.broadcast %752 : vector<8x1xf32> to vector<8x8xf32>
    %754 = arith.divf %750, %753 : vector<8x8xf32>
    %755 = arith.truncf %754 : vector<8x8xf32> to vector<8x8xbf16>
    %cst_267 = arith.constant dense<0.000000e+00> : vector<8x16xf32>
    %756 = tpu.matmul %755, %737, %cst_267 {dimension_numbers = #tpu.dot_dimension_numbers<[1], [0], [0], [1], [0, 0, 1, 1], [], []>} : vector<8x8xbf16>, vector<8x16xbf16>, vector<8x16xf32> -> vector<8x16xf32>
    %757 = arith.truncf %756 : vector<8x16xf32> to vector<8x16xbf16>
    %758 = vector.extract_strided_slice %628 {offsets = [0, 0], sizes = [16, 64], strides = [1, 1]} : vector<64x64xbf16> to vector<16x64xbf16>
    %cst_268 = arith.constant dense<0.000000e+00> : vector<8x64xf32>
    %759 = tpu.matmul %757, %758, %cst_268 {dimension_numbers = #tpu.dot_dimension_numbers<[1], [0], [0], [1], [0, 0, 1, 1], [], []>} : vector<8x16xbf16>, vector<16x64xbf16>, vector<8x64xf32> -> vector<8x64xf32>
    %760 = arith.addf %734, %759 : vector<8x64xf32>
    %761 = vector.extract_strided_slice %623 {offsets = [8, 16], sizes = [8, 16], strides = [1, 1]} : vector<16x64xf32> to vector<8x16xf32>
    %762 = vector.extract_strided_slice %624 {offsets = [8, 16], sizes = [8, 16], strides = [1, 1]} : vector<16x64xf32> to vector<8x16xf32>
    %763 = vector.extract_strided_slice %626 {offsets = [8, 16], sizes = [8, 16], strides = [1, 1]} : vector<16x64xbf16> to vector<8x16xbf16>
    %764 = tpu.transpose %762, [1, 0] : vector<8x16xf32> -> vector<16x8xf32>
    %cst_269 = arith.constant dense<0.000000e+00> : vector<8x8xf32>
    %765 = tpu.matmul %761, %764, %cst_269 {dimension_numbers = #tpu.dot_dimension_numbers<[1], [0], [0], [1], [0, 0, 1, 1], [], []>} : vector<8x16xf32>, vector<16x8xf32>, vector<8x8xf32> -> vector<8x8xf32>
    %cst_270 = arith.constant 1.250000e-01 : f32
    %766 = vector.broadcast %cst_270 : f32 to vector<8x8xf32>
    %767 = arith.mulf %765, %766 : vector<8x8xf32>
    %cst_271 = arith.constant -1.000000e+30 : f32
    %768 = vector.broadcast %cst_271 : f32 to vector<8x8xf32>
    %769 = arith.select %3, %767, %768 : vector<8x8xi1>, vector<8x8xf32>
    %cst_272 = arith.constant dense<0xFF800000> : vector<8xf32>
    %770 = vector.multi_reduction <maximumf>, %769, %cst_272 [1] : vector<8x8xf32> to vector<8xf32>
    %cst_273 = arith.constant 0xFF800000 : f32
    %771 = vector.broadcast %cst_273 : f32 to vector<8xf32>
    %772 = arith.maximumf %771, %770 : vector<8xf32>
    %773 = vector.shape_cast %772 : vector<8xf32> to vector<8x1xf32>
    %774 = vector.broadcast %773 : vector<8x1xf32> to vector<8x8xf32>
    %775 = arith.subf %769, %774 : vector<8x8xf32>
    %776 = math.exp %775 : vector<8x8xf32>
    %cst_274 = arith.constant dense<0.000000e+00> : vector<8xf32>
    %777 = vector.multi_reduction <add>, %776, %cst_274 [1] : vector<8x8xf32> to vector<8xf32>
    %778 = vector.shape_cast %777 : vector<8xf32> to vector<8x1xf32>
    %779 = vector.broadcast %778 : vector<8x1xf32> to vector<8x8xf32>
    %780 = arith.divf %776, %779 : vector<8x8xf32>
    %781 = arith.truncf %780 : vector<8x8xf32> to vector<8x8xbf16>
    %cst_275 = arith.constant dense<0.000000e+00> : vector<8x16xf32>
    %782 = tpu.matmul %781, %763, %cst_275 {dimension_numbers = #tpu.dot_dimension_numbers<[1], [0], [0], [1], [0, 0, 1, 1], [], []>} : vector<8x8xbf16>, vector<8x16xbf16>, vector<8x16xf32> -> vector<8x16xf32>
    %783 = arith.truncf %782 : vector<8x16xf32> to vector<8x16xbf16>
    %784 = vector.extract_strided_slice %628 {offsets = [16, 0], sizes = [16, 64], strides = [1, 1]} : vector<64x64xbf16> to vector<16x64xbf16>
    %cst_276 = arith.constant dense<0.000000e+00> : vector<8x64xf32>
    %785 = tpu.matmul %783, %784, %cst_276 {dimension_numbers = #tpu.dot_dimension_numbers<[1], [0], [0], [1], [0, 0, 1, 1], [], []>} : vector<8x16xbf16>, vector<16x64xbf16>, vector<8x64xf32> -> vector<8x64xf32>
    %786 = arith.addf %760, %785 : vector<8x64xf32>
    %787 = vector.extract_strided_slice %623 {offsets = [8, 32], sizes = [8, 16], strides = [1, 1]} : vector<16x64xf32> to vector<8x16xf32>
    %788 = vector.extract_strided_slice %624 {offsets = [8, 32], sizes = [8, 16], strides = [1, 1]} : vector<16x64xf32> to vector<8x16xf32>
    %789 = vector.extract_strided_slice %626 {offsets = [8, 32], sizes = [8, 16], strides = [1, 1]} : vector<16x64xbf16> to vector<8x16xbf16>
    %790 = tpu.transpose %788, [1, 0] : vector<8x16xf32> -> vector<16x8xf32>
    %cst_277 = arith.constant dense<0.000000e+00> : vector<8x8xf32>
    %791 = tpu.matmul %787, %790, %cst_277 {dimension_numbers = #tpu.dot_dimension_numbers<[1], [0], [0], [1], [0, 0, 1, 1], [], []>} : vector<8x16xf32>, vector<16x8xf32>, vector<8x8xf32> -> vector<8x8xf32>
    %cst_278 = arith.constant 1.250000e-01 : f32
    %792 = vector.broadcast %cst_278 : f32 to vector<8x8xf32>
    %793 = arith.mulf %791, %792 : vector<8x8xf32>
    %cst_279 = arith.constant -1.000000e+30 : f32
    %794 = vector.broadcast %cst_279 : f32 to vector<8x8xf32>
    %795 = arith.select %3, %793, %794 : vector<8x8xi1>, vector<8x8xf32>
    %cst_280 = arith.constant dense<0xFF800000> : vector<8xf32>
    %796 = vector.multi_reduction <maximumf>, %795, %cst_280 [1] : vector<8x8xf32> to vector<8xf32>
    %cst_281 = arith.constant 0xFF800000 : f32
    %797 = vector.broadcast %cst_281 : f32 to vector<8xf32>
    %798 = arith.maximumf %797, %796 : vector<8xf32>
    %799 = vector.shape_cast %798 : vector<8xf32> to vector<8x1xf32>
    %800 = vector.broadcast %799 : vector<8x1xf32> to vector<8x8xf32>
    %801 = arith.subf %795, %800 : vector<8x8xf32>
    %802 = math.exp %801 : vector<8x8xf32>
    %cst_282 = arith.constant dense<0.000000e+00> : vector<8xf32>
    %803 = vector.multi_reduction <add>, %802, %cst_282 [1] : vector<8x8xf32> to vector<8xf32>
    %804 = vector.shape_cast %803 : vector<8xf32> to vector<8x1xf32>
    %805 = vector.broadcast %804 : vector<8x1xf32> to vector<8x8xf32>
    %806 = arith.divf %802, %805 : vector<8x8xf32>
    %807 = arith.truncf %806 : vector<8x8xf32> to vector<8x8xbf16>
    %cst_283 = arith.constant dense<0.000000e+00> : vector<8x16xf32>
    %808 = tpu.matmul %807, %789, %cst_283 {dimension_numbers = #tpu.dot_dimension_numbers<[1], [0], [0], [1], [0, 0, 1, 1], [], []>} : vector<8x8xbf16>, vector<8x16xbf16>, vector<8x16xf32> -> vector<8x16xf32>
    %809 = arith.truncf %808 : vector<8x16xf32> to vector<8x16xbf16>
    %810 = vector.extract_strided_slice %628 {offsets = [32, 0], sizes = [16, 64], strides = [1, 1]} : vector<64x64xbf16> to vector<16x64xbf16>
    %cst_284 = arith.constant dense<0.000000e+00> : vector<8x64xf32>
    %811 = tpu.matmul %809, %810, %cst_284 {dimension_numbers = #tpu.dot_dimension_numbers<[1], [0], [0], [1], [0, 0, 1, 1], [], []>} : vector<8x16xbf16>, vector<16x64xbf16>, vector<8x64xf32> -> vector<8x64xf32>
    %812 = arith.addf %786, %811 : vector<8x64xf32>
    %813 = vector.extract_strided_slice %623 {offsets = [8, 48], sizes = [8, 16], strides = [1, 1]} : vector<16x64xf32> to vector<8x16xf32>
    %814 = vector.extract_strided_slice %624 {offsets = [8, 48], sizes = [8, 16], strides = [1, 1]} : vector<16x64xf32> to vector<8x16xf32>
    %815 = vector.extract_strided_slice %626 {offsets = [8, 48], sizes = [8, 16], strides = [1, 1]} : vector<16x64xbf16> to vector<8x16xbf16>
    %816 = tpu.transpose %814, [1, 0] : vector<8x16xf32> -> vector<16x8xf32>
    %cst_285 = arith.constant dense<0.000000e+00> : vector<8x8xf32>
    %817 = tpu.matmul %813, %816, %cst_285 {dimension_numbers = #tpu.dot_dimension_numbers<[1], [0], [0], [1], [0, 0, 1, 1], [], []>} : vector<8x16xf32>, vector<16x8xf32>, vector<8x8xf32> -> vector<8x8xf32>
    %cst_286 = arith.constant 1.250000e-01 : f32
    %818 = vector.broadcast %cst_286 : f32 to vector<8x8xf32>
    %819 = arith.mulf %817, %818 : vector<8x8xf32>
    %cst_287 = arith.constant -1.000000e+30 : f32
    %820 = vector.broadcast %cst_287 : f32 to vector<8x8xf32>
    %821 = arith.select %3, %819, %820 : vector<8x8xi1>, vector<8x8xf32>
    %cst_288 = arith.constant dense<0xFF800000> : vector<8xf32>
    %822 = vector.multi_reduction <maximumf>, %821, %cst_288 [1] : vector<8x8xf32> to vector<8xf32>
    %cst_289 = arith.constant 0xFF800000 : f32
    %823 = vector.broadcast %cst_289 : f32 to vector<8xf32>
    %824 = arith.maximumf %823, %822 : vector<8xf32>
    %825 = vector.shape_cast %824 : vector<8xf32> to vector<8x1xf32>
    %826 = vector.broadcast %825 : vector<8x1xf32> to vector<8x8xf32>
    %827 = arith.subf %821, %826 : vector<8x8xf32>
    %828 = math.exp %827 : vector<8x8xf32>
    %cst_290 = arith.constant dense<0.000000e+00> : vector<8xf32>
    %829 = vector.multi_reduction <add>, %828, %cst_290 [1] : vector<8x8xf32> to vector<8xf32>
    %830 = vector.shape_cast %829 : vector<8xf32> to vector<8x1xf32>
    %831 = vector.broadcast %830 : vector<8x1xf32> to vector<8x8xf32>
    %832 = arith.divf %828, %831 : vector<8x8xf32>
    %833 = arith.truncf %832 : vector<8x8xf32> to vector<8x8xbf16>
    %cst_291 = arith.constant dense<0.000000e+00> : vector<8x16xf32>
    %834 = tpu.matmul %833, %815, %cst_291 {dimension_numbers = #tpu.dot_dimension_numbers<[1], [0], [0], [1], [0, 0, 1, 1], [], []>} : vector<8x8xbf16>, vector<8x16xbf16>, vector<8x16xf32> -> vector<8x16xf32>
    %835 = arith.truncf %834 : vector<8x16xf32> to vector<8x16xbf16>
    %836 = vector.extract_strided_slice %628 {offsets = [48, 0], sizes = [16, 64], strides = [1, 1]} : vector<64x64xbf16> to vector<16x64xbf16>
    %cst_292 = arith.constant dense<0.000000e+00> : vector<8x64xf32>
    %837 = tpu.matmul %835, %836, %cst_292 {dimension_numbers = #tpu.dot_dimension_numbers<[1], [0], [0], [1], [0, 0, 1, 1], [], []>} : vector<8x16xbf16>, vector<16x64xbf16>, vector<8x64xf32> -> vector<8x64xf32>
    %838 = arith.addf %812, %837 : vector<8x64xf32>
    %839 = tpu.concatenate %733, %838 in 0 : vector<8x64xf32>, vector<8x64xf32> -> vector<16x64xf32>
    %840 = arith.addf %589, %839 : vector<16x64xf32>
    %c2_293 = arith.constant 2 : index
    %c0_294 = arith.constant 0 : index
    %841 = vector.load %arg5[%c2_293, %c0_294] : memref<4x64xf32, #tpu.memory_space<vmem>>, vector<1x64xf32>
    %842 = vector.broadcast %841 : vector<1x64xf32> to vector<16x64xf32>
    %843 = arith.addf %840, %842 : vector<16x64xf32>
    %cst_295 = arith.constant dense<0.000000e+00> : vector<16xf32>
    %844 = vector.multi_reduction <add>, %843, %cst_295 [1] : vector<16x64xf32> to vector<16xf32>
    %845 = vector.shape_cast %844 : vector<16xf32> to vector<16x1xf32>
    %cst_296 = arith.constant 6.400000e+01 : f32
    %846 = vector.broadcast %cst_296 : f32 to vector<16x1xf32>
    %847 = arith.divf %845, %846 : vector<16x1xf32>
    %848 = vector.broadcast %847 : vector<16x1xf32> to vector<16x64xf32>
    %849 = arith.subf %843, %848 : vector<16x64xf32>
    %850 = arith.mulf %849, %849 : vector<16x64xf32>
    %cst_297 = arith.constant dense<0.000000e+00> : vector<16xf32>
    %851 = vector.multi_reduction <add>, %850, %cst_297 [1] : vector<16x64xf32> to vector<16xf32>
    %852 = vector.shape_cast %851 : vector<16xf32> to vector<16x1xf32>
    %cst_298 = arith.constant 6.400000e+01 : f32
    %853 = vector.broadcast %cst_298 : f32 to vector<16x1xf32>
    %854 = arith.divf %852, %853 : vector<16x1xf32>
    %855 = vector.broadcast %847 : vector<16x1xf32> to vector<16x64xf32>
    %856 = arith.subf %843, %855 : vector<16x64xf32>
    %cst_299 = arith.constant 9.99999974E-6 : f32
    %857 = vector.broadcast %cst_299 : f32 to vector<16x1xf32>
    %858 = arith.addf %854, %857 : vector<16x1xf32>
    %859 = math.rsqrt %858 : vector<16x1xf32>
    %860 = vector.broadcast %859 : vector<16x1xf32> to vector<16x64xf32>
    %861 = arith.mulf %856, %860 : vector<16x64xf32>
    %862 = vector.broadcast %592 : vector<1x64xf32> to vector<16x64xf32>
    %863 = arith.mulf %861, %862 : vector<16x64xf32>
    %864 = vector.broadcast %593 : vector<1x64xf32> to vector<16x64xf32>
    %865 = arith.addf %863, %864 : vector<16x64xf32>
    %866 = arith.truncf %865 : vector<16x64xf32> to vector<16x64xbf16>
    %c2_300 = arith.constant 2 : index
    %c0_301 = arith.constant 0 : index
    %c0_302 = arith.constant 0 : index
    %867 = vector.load %arg6[%c2_300, %c0_301, %c0_302] : memref<4x64x256xbf16, #tpu.memory_space<vmem>>, vector<1x64x256xbf16>
    %868 = vector.shape_cast %867 : vector<1x64x256xbf16> to vector<64x256xbf16>
    %cst_303 = arith.constant dense<0.000000e+00> : vector<16x256xf32>
    %869 = tpu.matmul %866, %868, %cst_303 {dimension_numbers = #tpu.dot_dimension_numbers<[1], [0], [0], [1], [0, 0, 1, 1], [], []>} : vector<16x64xbf16>, vector<64x256xbf16>, vector<16x256xf32> -> vector<16x256xf32>
    %c2_304 = arith.constant 2 : index
    %c0_305 = arith.constant 0 : index
    %870 = vector.load %arg7[%c2_304, %c0_305] : memref<4x256xf32, #tpu.memory_space<vmem>>, vector<1x256xf32>
    %871 = vector.broadcast %870 : vector<1x256xf32> to vector<16x256xf32>
    %872 = arith.addf %869, %871 : vector<16x256xf32>
    %cst_306 = arith.constant 0.000000e+00 : f32
    %873 = vector.broadcast %cst_306 : f32 to vector<16x256xf32>
    %874 = arith.maximumf %872, %873 : vector<16x256xf32>
    %875 = arith.truncf %874 : vector<16x256xf32> to vector<16x256xbf16>
    %c2_307 = arith.constant 2 : index
    %c0_308 = arith.constant 0 : index
    %c0_309 = arith.constant 0 : index
    %876 = vector.load %arg8[%c2_307, %c0_308, %c0_309] : memref<4x256x64xbf16, #tpu.memory_space<vmem>>, vector<1x256x64xbf16>
    %877 = vector.shape_cast %876 : vector<1x256x64xbf16> to vector<256x64xbf16>
    %cst_310 = arith.constant dense<0.000000e+00> : vector<16x64xf32>
    %878 = tpu.matmul %875, %877, %cst_310 {dimension_numbers = #tpu.dot_dimension_numbers<[1], [0], [0], [1], [0, 0, 1, 1], [], []>} : vector<16x256xbf16>, vector<256x64xbf16>, vector<16x64xf32> -> vector<16x64xf32>
    %c2_311 = arith.constant 2 : index
    %c0_312 = arith.constant 0 : index
    %879 = vector.load %arg9[%c2_311, %c0_312] : memref<4x64xf32, #tpu.memory_space<vmem>>, vector<1x64xf32>
    %880 = vector.broadcast %879 : vector<1x64xf32> to vector<16x64xf32>
    %881 = arith.addf %878, %880 : vector<16x64xf32>
    %882 = arith.addf %843, %881 : vector<16x64xf32>
    %c12 = arith.constant 12 : index
    %c0_313 = arith.constant 0 : index
    %883 = vector.load %arg1[%c12, %c0_313] : memref<16x64xf32, #tpu.memory_space<vmem>>, vector<1x64xf32>
    %c13 = arith.constant 13 : index
    %c0_314 = arith.constant 0 : index
    %884 = vector.load %arg1[%c13, %c0_314] : memref<16x64xf32, #tpu.memory_space<vmem>>, vector<1x64xf32>
    %c14 = arith.constant 14 : index
    %c0_315 = arith.constant 0 : index
    %885 = vector.load %arg1[%c14, %c0_315] : memref<16x64xf32, #tpu.memory_space<vmem>>, vector<1x64xf32>
    %c15 = arith.constant 15 : index
    %c0_316 = arith.constant 0 : index
    %886 = vector.load %arg1[%c15, %c0_316] : memref<16x64xf32, #tpu.memory_space<vmem>>, vector<1x64xf32>
    %cst_317 = arith.constant dense<0.000000e+00> : vector<16xf32>
    %887 = vector.multi_reduction <add>, %882, %cst_317 [1] : vector<16x64xf32> to vector<16xf32>
    %888 = vector.shape_cast %887 : vector<16xf32> to vector<16x1xf32>
    %cst_318 = arith.constant 6.400000e+01 : f32
    %889 = vector.broadcast %cst_318 : f32 to vector<16x1xf32>
    %890 = arith.divf %888, %889 : vector<16x1xf32>
    %891 = vector.broadcast %890 : vector<16x1xf32> to vector<16x64xf32>
    %892 = arith.subf %882, %891 : vector<16x64xf32>
    %893 = arith.mulf %892, %892 : vector<16x64xf32>
    %cst_319 = arith.constant dense<0.000000e+00> : vector<16xf32>
    %894 = vector.multi_reduction <add>, %893, %cst_319 [1] : vector<16x64xf32> to vector<16xf32>
    %895 = vector.shape_cast %894 : vector<16xf32> to vector<16x1xf32>
    %cst_320 = arith.constant 6.400000e+01 : f32
    %896 = vector.broadcast %cst_320 : f32 to vector<16x1xf32>
    %897 = arith.divf %895, %896 : vector<16x1xf32>
    %898 = vector.broadcast %890 : vector<16x1xf32> to vector<16x64xf32>
    %899 = arith.subf %882, %898 : vector<16x64xf32>
    %cst_321 = arith.constant 9.99999974E-6 : f32
    %900 = vector.broadcast %cst_321 : f32 to vector<16x1xf32>
    %901 = arith.addf %897, %900 : vector<16x1xf32>
    %902 = math.rsqrt %901 : vector<16x1xf32>
    %903 = vector.broadcast %902 : vector<16x1xf32> to vector<16x64xf32>
    %904 = arith.mulf %899, %903 : vector<16x64xf32>
    %905 = vector.broadcast %883 : vector<1x64xf32> to vector<16x64xf32>
    %906 = arith.mulf %904, %905 : vector<16x64xf32>
    %907 = vector.broadcast %884 : vector<1x64xf32> to vector<16x64xf32>
    %908 = arith.addf %906, %907 : vector<16x64xf32>
    %909 = arith.truncf %908 : vector<16x64xf32> to vector<16x64xbf16>
    %c3_322 = arith.constant 3 : index
    %c0_323 = arith.constant 0 : index
    %c0_324 = arith.constant 0 : index
    %910 = vector.load %arg2[%c3_322, %c0_323, %c0_324] : memref<4x64x192xbf16, #tpu.memory_space<vmem>>, vector<1x64x192xbf16>
    %911 = vector.shape_cast %910 : vector<1x64x192xbf16> to vector<64x192xbf16>
    %cst_325 = arith.constant dense<0.000000e+00> : vector<16x192xf32>
    %912 = tpu.matmul %909, %911, %cst_325 {dimension_numbers = #tpu.dot_dimension_numbers<[1], [0], [0], [1], [0, 0, 1, 1], [], []>} : vector<16x64xbf16>, vector<64x192xbf16>, vector<16x192xf32> -> vector<16x192xf32>
    %c3_326 = arith.constant 3 : index
    %c0_327 = arith.constant 0 : index
    %913 = vector.load %arg3[%c3_326, %c0_327] : memref<4x192xf32, #tpu.memory_space<vmem>>, vector<1x192xf32>
    %914 = vector.broadcast %913 : vector<1x192xf32> to vector<16x192xf32>
    %915 = arith.addf %912, %914 : vector<16x192xf32>
    %916 = vector.extract_strided_slice %915 {offsets = [0, 0], sizes = [16, 64], strides = [1, 1]} : vector<16x192xf32> to vector<16x64xf32>
    %917 = vector.extract_strided_slice %915 {offsets = [0, 64], sizes = [16, 64], strides = [1, 1]} : vector<16x192xf32> to vector<16x64xf32>
    %918 = vector.extract_strided_slice %915 {offsets = [0, 128], sizes = [16, 64], strides = [1, 1]} : vector<16x192xf32> to vector<16x64xf32>
    %919 = arith.truncf %918 : vector<16x64xf32> to vector<16x64xbf16>
    %c3_328 = arith.constant 3 : index
    %c0_329 = arith.constant 0 : index
    %c0_330 = arith.constant 0 : index
    %920 = vector.load %arg4[%c3_328, %c0_329, %c0_330] : memref<4x64x64xbf16, #tpu.memory_space<vmem>>, vector<1x64x64xbf16>
    %921 = vector.shape_cast %920 : vector<1x64x64xbf16> to vector<64x64xbf16>
    %cst_331 = arith.constant 0.000000e+00 : f32
    %922 = vector.broadcast %cst_331 : f32 to vector<8x64xf32>
    %923 = vector.extract_strided_slice %916 {offsets = [0, 0], sizes = [8, 16], strides = [1, 1]} : vector<16x64xf32> to vector<8x16xf32>
    %924 = vector.extract_strided_slice %917 {offsets = [0, 0], sizes = [8, 16], strides = [1, 1]} : vector<16x64xf32> to vector<8x16xf32>
    %925 = vector.extract_strided_slice %919 {offsets = [0, 0], sizes = [8, 16], strides = [1, 1]} : vector<16x64xbf16> to vector<8x16xbf16>
    %926 = tpu.transpose %924, [1, 0] : vector<8x16xf32> -> vector<16x8xf32>
    %cst_332 = arith.constant dense<0.000000e+00> : vector<8x8xf32>
    %927 = tpu.matmul %923, %926, %cst_332 {dimension_numbers = #tpu.dot_dimension_numbers<[1], [0], [0], [1], [0, 0, 1, 1], [], []>} : vector<8x16xf32>, vector<16x8xf32>, vector<8x8xf32> -> vector<8x8xf32>
    %cst_333 = arith.constant 1.250000e-01 : f32
    %928 = vector.broadcast %cst_333 : f32 to vector<8x8xf32>
    %929 = arith.mulf %927, %928 : vector<8x8xf32>
    %cst_334 = arith.constant -1.000000e+30 : f32
    %930 = vector.broadcast %cst_334 : f32 to vector<8x8xf32>
    %931 = arith.select %3, %929, %930 : vector<8x8xi1>, vector<8x8xf32>
    %cst_335 = arith.constant dense<0xFF800000> : vector<8xf32>
    %932 = vector.multi_reduction <maximumf>, %931, %cst_335 [1] : vector<8x8xf32> to vector<8xf32>
    %cst_336 = arith.constant 0xFF800000 : f32
    %933 = vector.broadcast %cst_336 : f32 to vector<8xf32>
    %934 = arith.maximumf %933, %932 : vector<8xf32>
    %935 = vector.shape_cast %934 : vector<8xf32> to vector<8x1xf32>
    %936 = vector.broadcast %935 : vector<8x1xf32> to vector<8x8xf32>
    %937 = arith.subf %931, %936 : vector<8x8xf32>
    %938 = math.exp %937 : vector<8x8xf32>
    %cst_337 = arith.constant dense<0.000000e+00> : vector<8xf32>
    %939 = vector.multi_reduction <add>, %938, %cst_337 [1] : vector<8x8xf32> to vector<8xf32>
    %940 = vector.shape_cast %939 : vector<8xf32> to vector<8x1xf32>
    %941 = vector.broadcast %940 : vector<8x1xf32> to vector<8x8xf32>
    %942 = arith.divf %938, %941 : vector<8x8xf32>
    %943 = arith.truncf %942 : vector<8x8xf32> to vector<8x8xbf16>
    %cst_338 = arith.constant dense<0.000000e+00> : vector<8x16xf32>
    %944 = tpu.matmul %943, %925, %cst_338 {dimension_numbers = #tpu.dot_dimension_numbers<[1], [0], [0], [1], [0, 0, 1, 1], [], []>} : vector<8x8xbf16>, vector<8x16xbf16>, vector<8x16xf32> -> vector<8x16xf32>
    %945 = arith.truncf %944 : vector<8x16xf32> to vector<8x16xbf16>
    %946 = vector.extract_strided_slice %921 {offsets = [0, 0], sizes = [16, 64], strides = [1, 1]} : vector<64x64xbf16> to vector<16x64xbf16>
    %cst_339 = arith.constant dense<0.000000e+00> : vector<8x64xf32>
    %947 = tpu.matmul %945, %946, %cst_339 {dimension_numbers = #tpu.dot_dimension_numbers<[1], [0], [0], [1], [0, 0, 1, 1], [], []>} : vector<8x16xbf16>, vector<16x64xbf16>, vector<8x64xf32> -> vector<8x64xf32>
    %948 = arith.addf %922, %947 : vector<8x64xf32>
    %949 = vector.extract_strided_slice %916 {offsets = [0, 16], sizes = [8, 16], strides = [1, 1]} : vector<16x64xf32> to vector<8x16xf32>
    %950 = vector.extract_strided_slice %917 {offsets = [0, 16], sizes = [8, 16], strides = [1, 1]} : vector<16x64xf32> to vector<8x16xf32>
    %951 = vector.extract_strided_slice %919 {offsets = [0, 16], sizes = [8, 16], strides = [1, 1]} : vector<16x64xbf16> to vector<8x16xbf16>
    %952 = tpu.transpose %950, [1, 0] : vector<8x16xf32> -> vector<16x8xf32>
    %cst_340 = arith.constant dense<0.000000e+00> : vector<8x8xf32>
    %953 = tpu.matmul %949, %952, %cst_340 {dimension_numbers = #tpu.dot_dimension_numbers<[1], [0], [0], [1], [0, 0, 1, 1], [], []>} : vector<8x16xf32>, vector<16x8xf32>, vector<8x8xf32> -> vector<8x8xf32>
    %cst_341 = arith.constant 1.250000e-01 : f32
    %954 = vector.broadcast %cst_341 : f32 to vector<8x8xf32>
    %955 = arith.mulf %953, %954 : vector<8x8xf32>
    %cst_342 = arith.constant -1.000000e+30 : f32
    %956 = vector.broadcast %cst_342 : f32 to vector<8x8xf32>
    %957 = arith.select %3, %955, %956 : vector<8x8xi1>, vector<8x8xf32>
    %cst_343 = arith.constant dense<0xFF800000> : vector<8xf32>
    %958 = vector.multi_reduction <maximumf>, %957, %cst_343 [1] : vector<8x8xf32> to vector<8xf32>
    %cst_344 = arith.constant 0xFF800000 : f32
    %959 = vector.broadcast %cst_344 : f32 to vector<8xf32>
    %960 = arith.maximumf %959, %958 : vector<8xf32>
    %961 = vector.shape_cast %960 : vector<8xf32> to vector<8x1xf32>
    %962 = vector.broadcast %961 : vector<8x1xf32> to vector<8x8xf32>
    %963 = arith.subf %957, %962 : vector<8x8xf32>
    %964 = math.exp %963 : vector<8x8xf32>
    %cst_345 = arith.constant dense<0.000000e+00> : vector<8xf32>
    %965 = vector.multi_reduction <add>, %964, %cst_345 [1] : vector<8x8xf32> to vector<8xf32>
    %966 = vector.shape_cast %965 : vector<8xf32> to vector<8x1xf32>
    %967 = vector.broadcast %966 : vector<8x1xf32> to vector<8x8xf32>
    %968 = arith.divf %964, %967 : vector<8x8xf32>
    %969 = arith.truncf %968 : vector<8x8xf32> to vector<8x8xbf16>
    %cst_346 = arith.constant dense<0.000000e+00> : vector<8x16xf32>
    %970 = tpu.matmul %969, %951, %cst_346 {dimension_numbers = #tpu.dot_dimension_numbers<[1], [0], [0], [1], [0, 0, 1, 1], [], []>} : vector<8x8xbf16>, vector<8x16xbf16>, vector<8x16xf32> -> vector<8x16xf32>
    %971 = arith.truncf %970 : vector<8x16xf32> to vector<8x16xbf16>
    %972 = vector.extract_strided_slice %921 {offsets = [16, 0], sizes = [16, 64], strides = [1, 1]} : vector<64x64xbf16> to vector<16x64xbf16>
    %cst_347 = arith.constant dense<0.000000e+00> : vector<8x64xf32>
    %973 = tpu.matmul %971, %972, %cst_347 {dimension_numbers = #tpu.dot_dimension_numbers<[1], [0], [0], [1], [0, 0, 1, 1], [], []>} : vector<8x16xbf16>, vector<16x64xbf16>, vector<8x64xf32> -> vector<8x64xf32>
    %974 = arith.addf %948, %973 : vector<8x64xf32>
    %975 = vector.extract_strided_slice %916 {offsets = [0, 32], sizes = [8, 16], strides = [1, 1]} : vector<16x64xf32> to vector<8x16xf32>
    %976 = vector.extract_strided_slice %917 {offsets = [0, 32], sizes = [8, 16], strides = [1, 1]} : vector<16x64xf32> to vector<8x16xf32>
    %977 = vector.extract_strided_slice %919 {offsets = [0, 32], sizes = [8, 16], strides = [1, 1]} : vector<16x64xbf16> to vector<8x16xbf16>
    %978 = tpu.transpose %976, [1, 0] : vector<8x16xf32> -> vector<16x8xf32>
    %cst_348 = arith.constant dense<0.000000e+00> : vector<8x8xf32>
    %979 = tpu.matmul %975, %978, %cst_348 {dimension_numbers = #tpu.dot_dimension_numbers<[1], [0], [0], [1], [0, 0, 1, 1], [], []>} : vector<8x16xf32>, vector<16x8xf32>, vector<8x8xf32> -> vector<8x8xf32>
    %cst_349 = arith.constant 1.250000e-01 : f32
    %980 = vector.broadcast %cst_349 : f32 to vector<8x8xf32>
    %981 = arith.mulf %979, %980 : vector<8x8xf32>
    %cst_350 = arith.constant -1.000000e+30 : f32
    %982 = vector.broadcast %cst_350 : f32 to vector<8x8xf32>
    %983 = arith.select %3, %981, %982 : vector<8x8xi1>, vector<8x8xf32>
    %cst_351 = arith.constant dense<0xFF800000> : vector<8xf32>
    %984 = vector.multi_reduction <maximumf>, %983, %cst_351 [1] : vector<8x8xf32> to vector<8xf32>
    %cst_352 = arith.constant 0xFF800000 : f32
    %985 = vector.broadcast %cst_352 : f32 to vector<8xf32>
    %986 = arith.maximumf %985, %984 : vector<8xf32>
    %987 = vector.shape_cast %986 : vector<8xf32> to vector<8x1xf32>
    %988 = vector.broadcast %987 : vector<8x1xf32> to vector<8x8xf32>
    %989 = arith.subf %983, %988 : vector<8x8xf32>
    %990 = math.exp %989 : vector<8x8xf32>
    %cst_353 = arith.constant dense<0.000000e+00> : vector<8xf32>
    %991 = vector.multi_reduction <add>, %990, %cst_353 [1] : vector<8x8xf32> to vector<8xf32>
    %992 = vector.shape_cast %991 : vector<8xf32> to vector<8x1xf32>
    %993 = vector.broadcast %992 : vector<8x1xf32> to vector<8x8xf32>
    %994 = arith.divf %990, %993 : vector<8x8xf32>
    %995 = arith.truncf %994 : vector<8x8xf32> to vector<8x8xbf16>
    %cst_354 = arith.constant dense<0.000000e+00> : vector<8x16xf32>
    %996 = tpu.matmul %995, %977, %cst_354 {dimension_numbers = #tpu.dot_dimension_numbers<[1], [0], [0], [1], [0, 0, 1, 1], [], []>} : vector<8x8xbf16>, vector<8x16xbf16>, vector<8x16xf32> -> vector<8x16xf32>
    %997 = arith.truncf %996 : vector<8x16xf32> to vector<8x16xbf16>
    %998 = vector.extract_strided_slice %921 {offsets = [32, 0], sizes = [16, 64], strides = [1, 1]} : vector<64x64xbf16> to vector<16x64xbf16>
    %cst_355 = arith.constant dense<0.000000e+00> : vector<8x64xf32>
    %999 = tpu.matmul %997, %998, %cst_355 {dimension_numbers = #tpu.dot_dimension_numbers<[1], [0], [0], [1], [0, 0, 1, 1], [], []>} : vector<8x16xbf16>, vector<16x64xbf16>, vector<8x64xf32> -> vector<8x64xf32>
    %1000 = arith.addf %974, %999 : vector<8x64xf32>
    %1001 = vector.extract_strided_slice %916 {offsets = [0, 48], sizes = [8, 16], strides = [1, 1]} : vector<16x64xf32> to vector<8x16xf32>
    %1002 = vector.extract_strided_slice %917 {offsets = [0, 48], sizes = [8, 16], strides = [1, 1]} : vector<16x64xf32> to vector<8x16xf32>
    %1003 = vector.extract_strided_slice %919 {offsets = [0, 48], sizes = [8, 16], strides = [1, 1]} : vector<16x64xbf16> to vector<8x16xbf16>
    %1004 = tpu.transpose %1002, [1, 0] : vector<8x16xf32> -> vector<16x8xf32>
    %cst_356 = arith.constant dense<0.000000e+00> : vector<8x8xf32>
    %1005 = tpu.matmul %1001, %1004, %cst_356 {dimension_numbers = #tpu.dot_dimension_numbers<[1], [0], [0], [1], [0, 0, 1, 1], [], []>} : vector<8x16xf32>, vector<16x8xf32>, vector<8x8xf32> -> vector<8x8xf32>
    %cst_357 = arith.constant 1.250000e-01 : f32
    %1006 = vector.broadcast %cst_357 : f32 to vector<8x8xf32>
    %1007 = arith.mulf %1005, %1006 : vector<8x8xf32>
    %cst_358 = arith.constant -1.000000e+30 : f32
    %1008 = vector.broadcast %cst_358 : f32 to vector<8x8xf32>
    %1009 = arith.select %3, %1007, %1008 : vector<8x8xi1>, vector<8x8xf32>
    %cst_359 = arith.constant dense<0xFF800000> : vector<8xf32>
    %1010 = vector.multi_reduction <maximumf>, %1009, %cst_359 [1] : vector<8x8xf32> to vector<8xf32>
    %cst_360 = arith.constant 0xFF800000 : f32
    %1011 = vector.broadcast %cst_360 : f32 to vector<8xf32>
    %1012 = arith.maximumf %1011, %1010 : vector<8xf32>
    %1013 = vector.shape_cast %1012 : vector<8xf32> to vector<8x1xf32>
    %1014 = vector.broadcast %1013 : vector<8x1xf32> to vector<8x8xf32>
    %1015 = arith.subf %1009, %1014 : vector<8x8xf32>
    %1016 = math.exp %1015 : vector<8x8xf32>
    %cst_361 = arith.constant dense<0.000000e+00> : vector<8xf32>
    %1017 = vector.multi_reduction <add>, %1016, %cst_361 [1] : vector<8x8xf32> to vector<8xf32>
    %1018 = vector.shape_cast %1017 : vector<8xf32> to vector<8x1xf32>
    %1019 = vector.broadcast %1018 : vector<8x1xf32> to vector<8x8xf32>
    %1020 = arith.divf %1016, %1019 : vector<8x8xf32>
    %1021 = arith.truncf %1020 : vector<8x8xf32> to vector<8x8xbf16>
    %cst_362 = arith.constant dense<0.000000e+00> : vector<8x16xf32>
    %1022 = tpu.matmul %1021, %1003, %cst_362 {dimension_numbers = #tpu.dot_dimension_numbers<[1], [0], [0], [1], [0, 0, 1, 1], [], []>} : vector<8x8xbf16>, vector<8x16xbf16>, vector<8x16xf32> -> vector<8x16xf32>
    %1023 = arith.truncf %1022 : vector<8x16xf32> to vector<8x16xbf16>
    %1024 = vector.extract_strided_slice %921 {offsets = [48, 0], sizes = [16, 64], strides = [1, 1]} : vector<64x64xbf16> to vector<16x64xbf16>
    %cst_363 = arith.constant dense<0.000000e+00> : vector<8x64xf32>
    %1025 = tpu.matmul %1023, %1024, %cst_363 {dimension_numbers = #tpu.dot_dimension_numbers<[1], [0], [0], [1], [0, 0, 1, 1], [], []>} : vector<8x16xbf16>, vector<16x64xbf16>, vector<8x64xf32> -> vector<8x64xf32>
    %1026 = arith.addf %1000, %1025 : vector<8x64xf32>
    %cst_364 = arith.constant 0.000000e+00 : f32
    %1027 = vector.broadcast %cst_364 : f32 to vector<8x64xf32>
    %1028 = vector.extract_strided_slice %916 {offsets = [8, 0], sizes = [8, 16], strides = [1, 1]} : vector<16x64xf32> to vector<8x16xf32>
    %1029 = vector.extract_strided_slice %917 {offsets = [8, 0], sizes = [8, 16], strides = [1, 1]} : vector<16x64xf32> to vector<8x16xf32>
    %1030 = vector.extract_strided_slice %919 {offsets = [8, 0], sizes = [8, 16], strides = [1, 1]} : vector<16x64xbf16> to vector<8x16xbf16>
    %1031 = tpu.transpose %1029, [1, 0] : vector<8x16xf32> -> vector<16x8xf32>
    %cst_365 = arith.constant dense<0.000000e+00> : vector<8x8xf32>
    %1032 = tpu.matmul %1028, %1031, %cst_365 {dimension_numbers = #tpu.dot_dimension_numbers<[1], [0], [0], [1], [0, 0, 1, 1], [], []>} : vector<8x16xf32>, vector<16x8xf32>, vector<8x8xf32> -> vector<8x8xf32>
    %cst_366 = arith.constant 1.250000e-01 : f32
    %1033 = vector.broadcast %cst_366 : f32 to vector<8x8xf32>
    %1034 = arith.mulf %1032, %1033 : vector<8x8xf32>
    %cst_367 = arith.constant -1.000000e+30 : f32
    %1035 = vector.broadcast %cst_367 : f32 to vector<8x8xf32>
    %1036 = arith.select %3, %1034, %1035 : vector<8x8xi1>, vector<8x8xf32>
    %cst_368 = arith.constant dense<0xFF800000> : vector<8xf32>
    %1037 = vector.multi_reduction <maximumf>, %1036, %cst_368 [1] : vector<8x8xf32> to vector<8xf32>
    %cst_369 = arith.constant 0xFF800000 : f32
    %1038 = vector.broadcast %cst_369 : f32 to vector<8xf32>
    %1039 = arith.maximumf %1038, %1037 : vector<8xf32>
    %1040 = vector.shape_cast %1039 : vector<8xf32> to vector<8x1xf32>
    %1041 = vector.broadcast %1040 : vector<8x1xf32> to vector<8x8xf32>
    %1042 = arith.subf %1036, %1041 : vector<8x8xf32>
    %1043 = math.exp %1042 : vector<8x8xf32>
    %cst_370 = arith.constant dense<0.000000e+00> : vector<8xf32>
    %1044 = vector.multi_reduction <add>, %1043, %cst_370 [1] : vector<8x8xf32> to vector<8xf32>
    %1045 = vector.shape_cast %1044 : vector<8xf32> to vector<8x1xf32>
    %1046 = vector.broadcast %1045 : vector<8x1xf32> to vector<8x8xf32>
    %1047 = arith.divf %1043, %1046 : vector<8x8xf32>
    %1048 = arith.truncf %1047 : vector<8x8xf32> to vector<8x8xbf16>
    %cst_371 = arith.constant dense<0.000000e+00> : vector<8x16xf32>
    %1049 = tpu.matmul %1048, %1030, %cst_371 {dimension_numbers = #tpu.dot_dimension_numbers<[1], [0], [0], [1], [0, 0, 1, 1], [], []>} : vector<8x8xbf16>, vector<8x16xbf16>, vector<8x16xf32> -> vector<8x16xf32>
    %1050 = arith.truncf %1049 : vector<8x16xf32> to vector<8x16xbf16>
    %1051 = vector.extract_strided_slice %921 {offsets = [0, 0], sizes = [16, 64], strides = [1, 1]} : vector<64x64xbf16> to vector<16x64xbf16>
    %cst_372 = arith.constant dense<0.000000e+00> : vector<8x64xf32>
    %1052 = tpu.matmul %1050, %1051, %cst_372 {dimension_numbers = #tpu.dot_dimension_numbers<[1], [0], [0], [1], [0, 0, 1, 1], [], []>} : vector<8x16xbf16>, vector<16x64xbf16>, vector<8x64xf32> -> vector<8x64xf32>
    %1053 = arith.addf %1027, %1052 : vector<8x64xf32>
    %1054 = vector.extract_strided_slice %916 {offsets = [8, 16], sizes = [8, 16], strides = [1, 1]} : vector<16x64xf32> to vector<8x16xf32>
    %1055 = vector.extract_strided_slice %917 {offsets = [8, 16], sizes = [8, 16], strides = [1, 1]} : vector<16x64xf32> to vector<8x16xf32>
    %1056 = vector.extract_strided_slice %919 {offsets = [8, 16], sizes = [8, 16], strides = [1, 1]} : vector<16x64xbf16> to vector<8x16xbf16>
    %1057 = tpu.transpose %1055, [1, 0] : vector<8x16xf32> -> vector<16x8xf32>
    %cst_373 = arith.constant dense<0.000000e+00> : vector<8x8xf32>
    %1058 = tpu.matmul %1054, %1057, %cst_373 {dimension_numbers = #tpu.dot_dimension_numbers<[1], [0], [0], [1], [0, 0, 1, 1], [], []>} : vector<8x16xf32>, vector<16x8xf32>, vector<8x8xf32> -> vector<8x8xf32>
    %cst_374 = arith.constant 1.250000e-01 : f32
    %1059 = vector.broadcast %cst_374 : f32 to vector<8x8xf32>
    %1060 = arith.mulf %1058, %1059 : vector<8x8xf32>
    %cst_375 = arith.constant -1.000000e+30 : f32
    %1061 = vector.broadcast %cst_375 : f32 to vector<8x8xf32>
    %1062 = arith.select %3, %1060, %1061 : vector<8x8xi1>, vector<8x8xf32>
    %cst_376 = arith.constant dense<0xFF800000> : vector<8xf32>
    %1063 = vector.multi_reduction <maximumf>, %1062, %cst_376 [1] : vector<8x8xf32> to vector<8xf32>
    %cst_377 = arith.constant 0xFF800000 : f32
    %1064 = vector.broadcast %cst_377 : f32 to vector<8xf32>
    %1065 = arith.maximumf %1064, %1063 : vector<8xf32>
    %1066 = vector.shape_cast %1065 : vector<8xf32> to vector<8x1xf32>
    %1067 = vector.broadcast %1066 : vector<8x1xf32> to vector<8x8xf32>
    %1068 = arith.subf %1062, %1067 : vector<8x8xf32>
    %1069 = math.exp %1068 : vector<8x8xf32>
    %cst_378 = arith.constant dense<0.000000e+00> : vector<8xf32>
    %1070 = vector.multi_reduction <add>, %1069, %cst_378 [1] : vector<8x8xf32> to vector<8xf32>
    %1071 = vector.shape_cast %1070 : vector<8xf32> to vector<8x1xf32>
    %1072 = vector.broadcast %1071 : vector<8x1xf32> to vector<8x8xf32>
    %1073 = arith.divf %1069, %1072 : vector<8x8xf32>
    %1074 = arith.truncf %1073 : vector<8x8xf32> to vector<8x8xbf16>
    %cst_379 = arith.constant dense<0.000000e+00> : vector<8x16xf32>
    %1075 = tpu.matmul %1074, %1056, %cst_379 {dimension_numbers = #tpu.dot_dimension_numbers<[1], [0], [0], [1], [0, 0, 1, 1], [], []>} : vector<8x8xbf16>, vector<8x16xbf16>, vector<8x16xf32> -> vector<8x16xf32>
    %1076 = arith.truncf %1075 : vector<8x16xf32> to vector<8x16xbf16>
    %1077 = vector.extract_strided_slice %921 {offsets = [16, 0], sizes = [16, 64], strides = [1, 1]} : vector<64x64xbf16> to vector<16x64xbf16>
    %cst_380 = arith.constant dense<0.000000e+00> : vector<8x64xf32>
    %1078 = tpu.matmul %1076, %1077, %cst_380 {dimension_numbers = #tpu.dot_dimension_numbers<[1], [0], [0], [1], [0, 0, 1, 1], [], []>} : vector<8x16xbf16>, vector<16x64xbf16>, vector<8x64xf32> -> vector<8x64xf32>
    %1079 = arith.addf %1053, %1078 : vector<8x64xf32>
    %1080 = vector.extract_strided_slice %916 {offsets = [8, 32], sizes = [8, 16], strides = [1, 1]} : vector<16x64xf32> to vector<8x16xf32>
    %1081 = vector.extract_strided_slice %917 {offsets = [8, 32], sizes = [8, 16], strides = [1, 1]} : vector<16x64xf32> to vector<8x16xf32>
    %1082 = vector.extract_strided_slice %919 {offsets = [8, 32], sizes = [8, 16], strides = [1, 1]} : vector<16x64xbf16> to vector<8x16xbf16>
    %1083 = tpu.transpose %1081, [1, 0] : vector<8x16xf32> -> vector<16x8xf32>
    %cst_381 = arith.constant dense<0.000000e+00> : vector<8x8xf32>
    %1084 = tpu.matmul %1080, %1083, %cst_381 {dimension_numbers = #tpu.dot_dimension_numbers<[1], [0], [0], [1], [0, 0, 1, 1], [], []>} : vector<8x16xf32>, vector<16x8xf32>, vector<8x8xf32> -> vector<8x8xf32>
    %cst_382 = arith.constant 1.250000e-01 : f32
    %1085 = vector.broadcast %cst_382 : f32 to vector<8x8xf32>
    %1086 = arith.mulf %1084, %1085 : vector<8x8xf32>
    %cst_383 = arith.constant -1.000000e+30 : f32
    %1087 = vector.broadcast %cst_383 : f32 to vector<8x8xf32>
    %1088 = arith.select %3, %1086, %1087 : vector<8x8xi1>, vector<8x8xf32>
    %cst_384 = arith.constant dense<0xFF800000> : vector<8xf32>
    %1089 = vector.multi_reduction <maximumf>, %1088, %cst_384 [1] : vector<8x8xf32> to vector<8xf32>
    %cst_385 = arith.constant 0xFF800000 : f32
    %1090 = vector.broadcast %cst_385 : f32 to vector<8xf32>
    %1091 = arith.maximumf %1090, %1089 : vector<8xf32>
    %1092 = vector.shape_cast %1091 : vector<8xf32> to vector<8x1xf32>
    %1093 = vector.broadcast %1092 : vector<8x1xf32> to vector<8x8xf32>
    %1094 = arith.subf %1088, %1093 : vector<8x8xf32>
    %1095 = math.exp %1094 : vector<8x8xf32>
    %cst_386 = arith.constant dense<0.000000e+00> : vector<8xf32>
    %1096 = vector.multi_reduction <add>, %1095, %cst_386 [1] : vector<8x8xf32> to vector<8xf32>
    %1097 = vector.shape_cast %1096 : vector<8xf32> to vector<8x1xf32>
    %1098 = vector.broadcast %1097 : vector<8x1xf32> to vector<8x8xf32>
    %1099 = arith.divf %1095, %1098 : vector<8x8xf32>
    %1100 = arith.truncf %1099 : vector<8x8xf32> to vector<8x8xbf16>
    %cst_387 = arith.constant dense<0.000000e+00> : vector<8x16xf32>
    %1101 = tpu.matmul %1100, %1082, %cst_387 {dimension_numbers = #tpu.dot_dimension_numbers<[1], [0], [0], [1], [0, 0, 1, 1], [], []>} : vector<8x8xbf16>, vector<8x16xbf16>, vector<8x16xf32> -> vector<8x16xf32>
    %1102 = arith.truncf %1101 : vector<8x16xf32> to vector<8x16xbf16>
    %1103 = vector.extract_strided_slice %921 {offsets = [32, 0], sizes = [16, 64], strides = [1, 1]} : vector<64x64xbf16> to vector<16x64xbf16>
    %cst_388 = arith.constant dense<0.000000e+00> : vector<8x64xf32>
    %1104 = tpu.matmul %1102, %1103, %cst_388 {dimension_numbers = #tpu.dot_dimension_numbers<[1], [0], [0], [1], [0, 0, 1, 1], [], []>} : vector<8x16xbf16>, vector<16x64xbf16>, vector<8x64xf32> -> vector<8x64xf32>
    %1105 = arith.addf %1079, %1104 : vector<8x64xf32>
    %1106 = vector.extract_strided_slice %916 {offsets = [8, 48], sizes = [8, 16], strides = [1, 1]} : vector<16x64xf32> to vector<8x16xf32>
    %1107 = vector.extract_strided_slice %917 {offsets = [8, 48], sizes = [8, 16], strides = [1, 1]} : vector<16x64xf32> to vector<8x16xf32>
    %1108 = vector.extract_strided_slice %919 {offsets = [8, 48], sizes = [8, 16], strides = [1, 1]} : vector<16x64xbf16> to vector<8x16xbf16>
    %1109 = tpu.transpose %1107, [1, 0] : vector<8x16xf32> -> vector<16x8xf32>
    %cst_389 = arith.constant dense<0.000000e+00> : vector<8x8xf32>
    %1110 = tpu.matmul %1106, %1109, %cst_389 {dimension_numbers = #tpu.dot_dimension_numbers<[1], [0], [0], [1], [0, 0, 1, 1], [], []>} : vector<8x16xf32>, vector<16x8xf32>, vector<8x8xf32> -> vector<8x8xf32>
    %cst_390 = arith.constant 1.250000e-01 : f32
    %1111 = vector.broadcast %cst_390 : f32 to vector<8x8xf32>
    %1112 = arith.mulf %1110, %1111 : vector<8x8xf32>
    %cst_391 = arith.constant -1.000000e+30 : f32
    %1113 = vector.broadcast %cst_391 : f32 to vector<8x8xf32>
    %1114 = arith.select %3, %1112, %1113 : vector<8x8xi1>, vector<8x8xf32>
    %cst_392 = arith.constant dense<0xFF800000> : vector<8xf32>
    %1115 = vector.multi_reduction <maximumf>, %1114, %cst_392 [1] : vector<8x8xf32> to vector<8xf32>
    %cst_393 = arith.constant 0xFF800000 : f32
    %1116 = vector.broadcast %cst_393 : f32 to vector<8xf32>
    %1117 = arith.maximumf %1116, %1115 : vector<8xf32>
    %1118 = vector.shape_cast %1117 : vector<8xf32> to vector<8x1xf32>
    %1119 = vector.broadcast %1118 : vector<8x1xf32> to vector<8x8xf32>
    %1120 = arith.subf %1114, %1119 : vector<8x8xf32>
    %1121 = math.exp %1120 : vector<8x8xf32>
    %cst_394 = arith.constant dense<0.000000e+00> : vector<8xf32>
    %1122 = vector.multi_reduction <add>, %1121, %cst_394 [1] : vector<8x8xf32> to vector<8xf32>
    %1123 = vector.shape_cast %1122 : vector<8xf32> to vector<8x1xf32>
    %1124 = vector.broadcast %1123 : vector<8x1xf32> to vector<8x8xf32>
    %1125 = arith.divf %1121, %1124 : vector<8x8xf32>
    %1126 = arith.truncf %1125 : vector<8x8xf32> to vector<8x8xbf16>
    %cst_395 = arith.constant dense<0.000000e+00> : vector<8x16xf32>
    %1127 = tpu.matmul %1126, %1108, %cst_395 {dimension_numbers = #tpu.dot_dimension_numbers<[1], [0], [0], [1], [0, 0, 1, 1], [], []>} : vector<8x8xbf16>, vector<8x16xbf16>, vector<8x16xf32> -> vector<8x16xf32>
    %1128 = arith.truncf %1127 : vector<8x16xf32> to vector<8x16xbf16>
    %1129 = vector.extract_strided_slice %921 {offsets = [48, 0], sizes = [16, 64], strides = [1, 1]} : vector<64x64xbf16> to vector<16x64xbf16>
    %cst_396 = arith.constant dense<0.000000e+00> : vector<8x64xf32>
    %1130 = tpu.matmul %1128, %1129, %cst_396 {dimension_numbers = #tpu.dot_dimension_numbers<[1], [0], [0], [1], [0, 0, 1, 1], [], []>} : vector<8x16xbf16>, vector<16x64xbf16>, vector<8x64xf32> -> vector<8x64xf32>
    %1131 = arith.addf %1105, %1130 : vector<8x64xf32>
    %1132 = tpu.concatenate %1026, %1131 in 0 : vector<8x64xf32>, vector<8x64xf32> -> vector<16x64xf32>
    %1133 = arith.addf %882, %1132 : vector<16x64xf32>
    %c3_397 = arith.constant 3 : index
    %c0_398 = arith.constant 0 : index
    %1134 = vector.load %arg5[%c3_397, %c0_398] : memref<4x64xf32, #tpu.memory_space<vmem>>, vector<1x64xf32>
    %1135 = vector.broadcast %1134 : vector<1x64xf32> to vector<16x64xf32>
    %1136 = arith.addf %1133, %1135 : vector<16x64xf32>
    %cst_399 = arith.constant dense<0.000000e+00> : vector<16xf32>
    %1137 = vector.multi_reduction <add>, %1136, %cst_399 [1] : vector<16x64xf32> to vector<16xf32>
    %1138 = vector.shape_cast %1137 : vector<16xf32> to vector<16x1xf32>
    %cst_400 = arith.constant 6.400000e+01 : f32
    %1139 = vector.broadcast %cst_400 : f32 to vector<16x1xf32>
    %1140 = arith.divf %1138, %1139 : vector<16x1xf32>
    %1141 = vector.broadcast %1140 : vector<16x1xf32> to vector<16x64xf32>
    %1142 = arith.subf %1136, %1141 : vector<16x64xf32>
    %1143 = arith.mulf %1142, %1142 : vector<16x64xf32>
    %cst_401 = arith.constant dense<0.000000e+00> : vector<16xf32>
    %1144 = vector.multi_reduction <add>, %1143, %cst_401 [1] : vector<16x64xf32> to vector<16xf32>
    %1145 = vector.shape_cast %1144 : vector<16xf32> to vector<16x1xf32>
    %cst_402 = arith.constant 6.400000e+01 : f32
    %1146 = vector.broadcast %cst_402 : f32 to vector<16x1xf32>
    %1147 = arith.divf %1145, %1146 : vector<16x1xf32>
    %1148 = vector.broadcast %1140 : vector<16x1xf32> to vector<16x64xf32>
    %1149 = arith.subf %1136, %1148 : vector<16x64xf32>
    %cst_403 = arith.constant 9.99999974E-6 : f32
    %1150 = vector.broadcast %cst_403 : f32 to vector<16x1xf32>
    %1151 = arith.addf %1147, %1150 : vector<16x1xf32>
    %1152 = math.rsqrt %1151 : vector<16x1xf32>
    %1153 = vector.broadcast %1152 : vector<16x1xf32> to vector<16x64xf32>
    %1154 = arith.mulf %1149, %1153 : vector<16x64xf32>
    %1155 = vector.broadcast %885 : vector<1x64xf32> to vector<16x64xf32>
    %1156 = arith.mulf %1154, %1155 : vector<16x64xf32>
    %1157 = vector.broadcast %886 : vector<1x64xf32> to vector<16x64xf32>
    %1158 = arith.addf %1156, %1157 : vector<16x64xf32>
    %1159 = arith.truncf %1158 : vector<16x64xf32> to vector<16x64xbf16>
    %c3_404 = arith.constant 3 : index
    %c0_405 = arith.constant 0 : index
    %c0_406 = arith.constant 0 : index
    %1160 = vector.load %arg6[%c3_404, %c0_405, %c0_406] : memref<4x64x256xbf16, #tpu.memory_space<vmem>>, vector<1x64x256xbf16>
    %1161 = vector.shape_cast %1160 : vector<1x64x256xbf16> to vector<64x256xbf16>
    %cst_407 = arith.constant dense<0.000000e+00> : vector<16x256xf32>
    %1162 = tpu.matmul %1159, %1161, %cst_407 {dimension_numbers = #tpu.dot_dimension_numbers<[1], [0], [0], [1], [0, 0, 1, 1], [], []>} : vector<16x64xbf16>, vector<64x256xbf16>, vector<16x256xf32> -> vector<16x256xf32>
    %c3_408 = arith.constant 3 : index
    %c0_409 = arith.constant 0 : index
    %1163 = vector.load %arg7[%c3_408, %c0_409] : memref<4x256xf32, #tpu.memory_space<vmem>>, vector<1x256xf32>
    %1164 = vector.broadcast %1163 : vector<1x256xf32> to vector<16x256xf32>
    %1165 = arith.addf %1162, %1164 : vector<16x256xf32>
    %cst_410 = arith.constant 0.000000e+00 : f32
    %1166 = vector.broadcast %cst_410 : f32 to vector<16x256xf32>
    %1167 = arith.maximumf %1165, %1166 : vector<16x256xf32>
    %1168 = arith.truncf %1167 : vector<16x256xf32> to vector<16x256xbf16>
    %c3_411 = arith.constant 3 : index
    %c0_412 = arith.constant 0 : index
    %c0_413 = arith.constant 0 : index
    %1169 = vector.load %arg8[%c3_411, %c0_412, %c0_413] : memref<4x256x64xbf16, #tpu.memory_space<vmem>>, vector<1x256x64xbf16>
    %1170 = vector.shape_cast %1169 : vector<1x256x64xbf16> to vector<256x64xbf16>
    %cst_414 = arith.constant dense<0.000000e+00> : vector<16x64xf32>
    %1171 = tpu.matmul %1168, %1170, %cst_414 {dimension_numbers = #tpu.dot_dimension_numbers<[1], [0], [0], [1], [0, 0, 1, 1], [], []>} : vector<16x256xbf16>, vector<256x64xbf16>, vector<16x64xf32> -> vector<16x64xf32>
    %c3_415 = arith.constant 3 : index
    %c0_416 = arith.constant 0 : index
    %1172 = vector.load %arg9[%c3_415, %c0_416] : memref<4x64xf32, #tpu.memory_space<vmem>>, vector<1x64xf32>
    %1173 = vector.broadcast %1172 : vector<1x64xf32> to vector<16x64xf32>
    %1174 = arith.addf %1171, %1173 : vector<16x64xf32>
    %1175 = arith.addf %1136, %1174 : vector<16x64xf32>
    %c0_417 = arith.constant 0 : index
    %c0_418 = arith.constant 0 : index
    %1176 = vector.load %arg10[%c0_417, %c0_418] : memref<2x64xf32, #tpu.memory_space<vmem>>, vector<1x64xf32>
    %c1_419 = arith.constant 1 : index
    %c0_420 = arith.constant 0 : index
    %1177 = vector.load %arg10[%c1_419, %c0_420] : memref<2x64xf32, #tpu.memory_space<vmem>>, vector<1x64xf32>
    %cst_421 = arith.constant dense<0.000000e+00> : vector<16xf32>
    %1178 = vector.multi_reduction <add>, %1175, %cst_421 [1] : vector<16x64xf32> to vector<16xf32>
    %1179 = vector.shape_cast %1178 : vector<16xf32> to vector<16x1xf32>
    %cst_422 = arith.constant 6.400000e+01 : f32
    %1180 = vector.broadcast %cst_422 : f32 to vector<16x1xf32>
    %1181 = arith.divf %1179, %1180 : vector<16x1xf32>
    %1182 = vector.broadcast %1181 : vector<16x1xf32> to vector<16x64xf32>
    %1183 = arith.subf %1175, %1182 : vector<16x64xf32>
    %1184 = arith.mulf %1183, %1183 : vector<16x64xf32>
    %cst_423 = arith.constant dense<0.000000e+00> : vector<16xf32>
    %1185 = vector.multi_reduction <add>, %1184, %cst_423 [1] : vector<16x64xf32> to vector<16xf32>
    %1186 = vector.shape_cast %1185 : vector<16xf32> to vector<16x1xf32>
    %cst_424 = arith.constant 6.400000e+01 : f32
    %1187 = vector.broadcast %cst_424 : f32 to vector<16x1xf32>
    %1188 = arith.divf %1186, %1187 : vector<16x1xf32>
    %1189 = vector.broadcast %1181 : vector<16x1xf32> to vector<16x64xf32>
    %1190 = arith.subf %1175, %1189 : vector<16x64xf32>
    %cst_425 = arith.constant 9.99999974E-6 : f32
    %1191 = vector.broadcast %cst_425 : f32 to vector<16x1xf32>
    %1192 = arith.addf %1188, %1191 : vector<16x1xf32>
    %1193 = math.rsqrt %1192 : vector<16x1xf32>
    %1194 = vector.broadcast %1193 : vector<16x1xf32> to vector<16x64xf32>
    %1195 = arith.mulf %1190, %1194 : vector<16x64xf32>
    %1196 = vector.broadcast %1176 : vector<1x64xf32> to vector<16x64xf32>
    %1197 = arith.mulf %1195, %1196 : vector<16x64xf32>
    %1198 = vector.broadcast %1177 : vector<1x64xf32> to vector<16x64xf32>
    %1199 = arith.addf %1197, %1198 : vector<16x64xf32>
    %1200 = arith.truncf %1199 : vector<16x64xf32> to vector<16x64xbf16>
    %c0_426 = arith.constant 0 : index
    %c0_427 = arith.constant 0 : index
    %1201 = vector.load %arg11[%c0_426, %c0_427] : memref<64x128xbf16, #tpu.memory_space<vmem>>, vector<64x128xbf16>
    %cst_428 = arith.constant dense<0.000000e+00> : vector<16x128xf32>
    %1202 = tpu.matmul %1200, %1201, %cst_428 {dimension_numbers = #tpu.dot_dimension_numbers<[1], [0], [0], [1], [0, 0, 1, 1], [], []>} : vector<16x64xbf16>, vector<64x128xbf16>, vector<16x128xf32> -> vector<16x128xf32>
    %c0_429 = arith.constant 0 : index
    %c0_430 = arith.constant 0 : index
    %1203 = vector.load %arg12[%c0_429, %c0_430] : memref<16x128xf32, #tpu.memory_space<vmem>>, vector<16x128xf32>
    tpu.vector_store %arg12[%c0_429, %c0_430], %1202 {strides = array<i32>} : memref<16x128xf32, #tpu.memory_space<vmem>>, vector<16x128xf32>,
    return
  }
}

</mosaic_0001>

<bundles_post_ra>
// kernel: tpu_custom_call.1
= control target key start
LH: loop header
LB: loop body
LE: loop exit
PB: predicated region body
PF: predicated region fallthrough
CT: control target
= control target key end

     0   :  { %vm54_vm0 = vcmask 523264   ;;  %s11564_s0 = inlined_call_operand.vmem [shape: f32[16,64], index: 0, kind: input, shape index: {}]   ;;  %s11565_s1 = inlined_call_operand.vmem [shape: f32[16,64], index: 1, kind: input, shape index: {}]   ;;  %s11566_s2 = inlined_call_operand.vmem [shape: bf16[4,64,192], index: 2, kind: input, shape index: {}]   ;;  %s11567_s3 = inlined_call_operand.vmem [shape: f32[4,192], index: 3, kind: input, shape index: {}]   ;;  %s11568_s4 = inlined_call_operand.vmem [shape: bf16[4,64,64], index: 4, kind: input, shape index: {}]   ;;  %s11569_s5 = inlined_call_operand.vmem [shape: f32[4,64], index: 5, kind: input, shape index: {}]   ;;  %s11570_s6 = inlined_call_operand.vmem [shape: bf16[4,64,256], index: 6, kind: input, shape index: {}]   ;;  %s11571_s7 = inlined_call_operand.vmem [shape: f32[4,256], index: 7, kind: input, shape index: {}]   ;;  %s11572_s8 = inlined_call_operand.vmem [shape: bf16[4,256,64], index: 8, kind: input, shape index: {}]   ;;  %s11573_s9 = inlined_call_operand.vmem [shape: f32[4,64], index: 9, kind: input, shape index: {}]   ;;  %s11574_s10 = inlined_call_operand.vmem [shape: f32[2,64], index: 10, kind: input, shape index: {}]   ;;  %s11575_s11 = inlined_call_operand.vmem [shape: bf16[64,128], index: 11, kind: input, shape index: {}]   ;;  %s11576_s12 = inlined_call_operand.hbm [shape: f32[16,128], index: 12, kind: output, shape index: {}]  }
   0x1   :  { %v43_v0 = vld [vmem:[%s11564_s0] sm:$0xff]  ;;  %v44_v1 = vld [vmem:[%s11564_s0 + $0x8] sm:$0xff] }
   0x2   :  { %v55_v2 = vsel %vm54_vm0, %v43_v0, 0.0  ;;  %v58_v3 = vsel %vm54_vm0, %v44_v1, 0.0 }
   0x3   :  { %56 = vadd.xlane.f32.xlu0 %v55_v2 }
   0x7   :  { %59 = vadd.xlane.f32.xlu0 %v58_v3 }
   0x8   :  { %17 = vsyncpa [#allocation3], 0  ;;  %v9507_v14 = vld [vmem:[%s11566_s2 + $0x34] ss:$8 sps:$4 sm:$0xff]   ;;  %v9509_v15 = vld [vmem:[%s11566_s2 + $0x30] ss:$8 sps:$4 sm:$0xff]   ;;  %v45_v41 = vlaneseq }
   0x9   :  { %v9510_v16 = vld [vmem:[%s11566_s2 + $0x24] ss:$8 sps:$4 sm:$0xff]   ;;  %166 = vmatprep.subr.bf16.mxu0 %v9507_v14  ;;  %v9512_v17 = vld [vmem:[%s11566_s2 + $0x20] ss:$8 sps:$4 sm:$0xff]   ;;  %v9875_v18 = vmov 0   ;;  %v9876_v40 = vmov 0.0  }
   0xa   :  { %167 = vmatpush1.bf16.msra.mxu0 %v9509_v15  ;;  %190 = vmatprep.mubr.bf16.mxu0 %v9875_v18  ;;  %v9513_v19 = vld [vmem:[%s11566_s2 + $0x14] ss:$8 sps:$4 sm:$0xff]   ;;  %v9515_v20 = vld [vmem:[%s11566_s2 + $0x10] ss:$8 sps:$4 sm:$0xff]   ;;  %v9516_v21 = vld [vmem:[%s11566_s2 + $0x4] ss:$8 sps:$4 sm:$0xff]  }
   0xb   :  { %168 = vmatprep.subr.bf16.mxu0 %v9510_v16  ;;  %v9518_v22 = vld [vmem:[%s11566_s2] ss:$8 sps:$4 sm:$0xff]   ;;  %8938 = vmatprep.subr.mxu1 %v9876_v40  ;;  %v46_v42 = vshrl.u32 %v45_v41, 7  ;;  %vm9877_vm1 = vmmov 0   ;;  %s9878_s29 = smov 64   ;;  %s9879_s30 = smov 112  }
   0xc   :  { %v8168_v31 = vld [vmem:[%s11565_s1] ss:$0 sm:$0xff]  ;;  %v8169_v35 = vld [vmem:[%s11565_s1 + $0x1] ss:$0 sm:$0xff]  ;;  %8940 = vmatprep.mubr.msk.f32.mxu1 %vm9877_vm1, %v9876_v40  ;;  %vm213_vm2 = vcmask 130048   ;;  %vm306_vm3 = vcmask 1043456  }
   0xd   :  { %v10001_v43 = vsub.s32 0, %v46_v42  ;;  %v103_v44 = vld [vmem:[%s11567_s3] ss:$4 sm:$0x3]  ;;  %v10015_v51 = vsub.s32 1, %v46_v42  ;;  %v48_v59 = vand.u32 127, %v45_v41 }
   0xe   :  { %169 = vmatpush1.bf16.msra.mxu0 %v9512_v17  ;;  %vm290_vm5 = vcmask 64512   ;;  %s9880_s13 = smov 48   ;;  %s9881_s14 = smov 32   ;;  %v8576_v60 = vld [vmem:[%s11569_s5 + $0x3] ss:$0 sm:$0xff] }
   0xf   :  { %170 = vmatprep.subr.bf16.mxu0 %v9513_v19  ;;  %v108_v45 = vrot.slane %v103_v44, %v10001_v43  ;;  %v112_v53 = vrot.slane %v103_v44, %v10015_v51  ;;  %vm10029_vm4 = vcmp.le.s32.totalorder %v48_v59, %v46_v42  ;;  %s9882_s15 = smov 96   ;;  %s9883_s20 = smov 80  }
  0x10   :  { %s9884_s21 = smov 16   ;;  %s9885_s22 = smov [#allocation2]  }
  0x11   :  { %s8157_s23 = sshll.u32 %s9885_s22, 4  ;;  %s8158_s23 = int_to_ptr.vmem [resolvable:$true] %s8157_s23 }
  0x12   :  { %171 = vmatpush1.bf16.msra.mxu0 %v9515_v20  ;;  %s9853_s24 = scalar_lea.vmem %s8158_s23, 256  ;;  %p9858_p1 = scmp.lt.s32.totalorder %s8158_s23, %s8158_s23 }
  0x13   :  { %172 = vmatprep.subr.bf16.mxu0 %v9516_v21  ;;  %p9854_p0 = scmp.ne.s32.totalorder %s8158_s23, %s9853_s24  ;;  %p9859_p2 = scmp.lt.s32.totalorder %s9853_s24, %s9853_s24 }
  0x15   :  { %p9860_p3 = por %p9859_p2, %p9858_p1 }
  0x16   :  { %173 = vmatpush1.bf16.msra.mxu0 %v9518_v22 }
  0x17   :  { %8960 = vmatprep.subr.bf16.mxu0 %v9876_v40  ;;  %p9861_p4 = pnand %p9860_p3, %p9854_p0 }
  0x8c   :  { %v57_v4 = vpop.xlane.xlu0 %56 }
  0x8d   :  { %v62_v5 = vmul.f32 0.015625, %v57_v4 }
  0x8f   :  { %v64_v6 = vsub.f32 %v43_v0, %v62_v5 }
  0x90   :  { %v60_v7 = vpop.xlane.xlu0 %59 }
  0x91   :  { %v63_v8 = vmul.f32 0.015625, %v60_v7  ;;  %v66_v9 = vmul.f32 %v64_v6, %v64_v6 }
  0x93   :  { %v65_v10 = vsub.f32 %v44_v1, %v63_v8  ;;  %v68_v11 = vsel %vm54_vm0, %v66_v9, 0.0 }
  0x94   :  { %69 = vadd.xlane.f32.xlu1 %v68_v11 }
  0x95   :  { %v67_v12 = vmul.f32 %v65_v10, %v65_v10 }
  0x97   :  { %v71_v13 = vsel %vm54_vm0, %v67_v12, 0.0 }
  0x98   :  { %72 = vadd.xlane.f32.xlu1 %v71_v13 }
 0x11d   :  { %v70_v23 = vpop.xlane.xlu1 %69 }
 0x11e   :  { %v74_v24 = vmul.f32 0.015625, %v70_v23 }
 0x120   :  { %v76_v25 = vadd.f32 1e-05, %v74_v24 }
 0x121   :  { %v73_v26 = vpop.xlane.xlu1 %72 }
 0x122   :  { %9687 = vrsqrt.f32 %v76_v25  ;;  %v75_v27 = vmul.f32 0.015625, %v73_v26 }
 0x124   :  { %v77_v28 = vadd.f32 1e-05, %v75_v27 }
 0x126   :  { %9689 = vrsqrt.f32 %v77_v28  ;;  %v10060_v28 = vld [vmem:[%s11568_s4 + $0x8] sm:$0xff]  }
 0x12f   :  { %v9688_v29 = vpop.eup %9687 }
 0x130   :  { %v80_v30 = vmul.f32 %v9688_v29, %v64_v6 }
 0x132   :  { %v86_v34 = vmul.f32 %v8168_v31, %v80_v30 }
 0x133   :  { %v9690_v32 = vpop.eup %9689 }
 0x134   :  { %v81_v33 = vmul.f32 %v9690_v32, %v65_v10  ;;  %v92_v37 = vadd.f32 %v8169_v35, %v86_v34  ;;  %v10069_v34 = vld [vmem:[%s11568_s4] sm:$0xff]  }
 0x136   :  { %v87_v36 = vmul.f32 %v8168_v31, %v81_v33 }
 0x138   :  { %v93_v38 = vadd.f32 %v8169_v35, %v87_v36 }
 0x13a   :  { %v94_v39 = vpack.c.bf16 %v93_v38, %v92_v37 }
 0x13c   :  { %8178 = vmatmul.mubr.msk.bf16.vlgmr.msra.gmra.mxu0 %vm54_vm0, %v94_v39 }
 0x13d   :  { %8962 = vmatprep.mubr.msk.bf16.mxu0 %vm9877_vm1, %v9876_v40  ;;  %8961 = vmatpush3.bf16.msra.mxu0 %v10060_v28 }
 0x13e   :  { %8972 = vmatprep.subr.mxu0 %v9876_v40 }
 0x1fc   :  { %v192_v46 = vpop.f32.mrf.mxu0 }
 0x1fd   :  { %v10007_v47 = vadd.f32 %v192_v46, %v108_v45 }
 0x1fe   :  { %v194_v48 = vpop.f32.mrf.mxu0 }
 0x1ff   :  { %211 = vrot.lane.b32.xlu0 %v10007_v47, %s9878_s29  ;;  %v195_v55 = vadd.f32 %v194_v48, %v112_v53 }
 0x200   :  { %v196_v49 = vpop.f32.mrf.mxu0 }
 0x201   :  { %v10011_v50 = vadd.f32 %v196_v49, %v108_v45 }
 0x202   :  { %v198_v52 = vpop.f32.mrf.mxu0 }
 0x203   :  { %351 = vrot.lane.b32.xlu0 %v10007_v47, %s9879_s30  ;;  %v199_v54 = vadd.f32 %v198_v52, %v112_v53 }
 0x205   :  { %v10018_v56 = vpack.c.bf16 %v199_v54, %v195_v55 }
 0x207   :  { %v308_v58 = vsel %vm306_vm3, %v10018_v56, 0 }
 0x271   :  { %v212_v57 = vpop.permute.xlu0 %211 }
 0x272   :  { %8939 = vmatpush3.xpose.msk.msra.mxu1 %vm213_vm2, %v212_v57 }
 0x273   :  { %8943 = vmatprep.subr.bf16.mxu1 %v9876_v40 }
 0x275   :  { %8941 = vmatmul.mubr.msk.f32.vlgmr.msra.gmra.mxu1 %vm213_vm2, %v10007_v47  ;;  %v352_v12 = vpop.permute.xlu0 %351 }
 0x276   :  { %8944 = vmatpush3.bf16.msra.mxu1 %v308_v58  ;;  %8945 = vmatprep.mubr.msk.bf16.mxu1 %vm9877_vm1, %v9876_v40 }
 0x277   :  { %8949 = vmatprep.subr.mxu1 %v9876_v40 }
 0x335   :  { %v284_v61 = vpop.f32.mrf.mxu1 }
 0x336   :  { %v288_v62 = vmul.f32 0.125, %v284_v61 }
 0x337   :  { %v8942_v63 = vpop.f32.mrf.mxu1 }
 0x338   :  { %v289_v0 = vsel %vm10029_vm4, %v288_v62, -1e+30 }
 0x339   :  { %v291_v1 = vsel %vm290_vm5, %v289_v0, -inf }
 0x33a   :  { %292 = vmax.xlane.f32.xlu1 %v291_v1 }
 0x3c3   :  { %v293_v2 = vpop.xlane.xlu1 %292 }
 0x3c4   :  { %v294_v3 = vsub.f32 %v289_v0, %v293_v2 }
 0x3c6   :  { %v295_v4 = vmul.f32 1.442695, %v294_v3 }
 0x3c8   :  { %9691 = vpow2.f32 %v295_v4 }
 0x3d5   :  { %v9692_v5 = vpop.eup %9691 }
 0x3d6   :  { %v297_v6 = vsel %vm290_vm5, %v9692_v5, 0.0 }
 0x3d7   :  { %298 = vadd.xlane.f32.xlu1 %v297_v6 }
 0x3e8   :  { %353 = vrot.lane.b32.xlu1 %v10007_v47, %s9880_s13 }
 0x460   :  { %v299_v7 = vpop.xlane.xlu1 %298 }
 0x461   :  { %9693 = vrcp.f32 %v299_v7 }
 0x464   :  { %v354_v11 = vpop.permute.xlu1 %353 }
 0x46e   :  { %v9694_v8 = vpop.eup %9693 }
 0x46f   :  { %v301_v9 = vmul.f32 %v9694_v8, %v9692_v5 }
 0x471   :  { %v302_v10 = vpack.c.bf16 %v301_v9, %v301_v9 }
 0x473   :  { %8946 = vmatmul.mubr.msk.bf16.vlgmr.msra.gmra.mxu1 %vm290_vm5, %v302_v10 }
 0x474   :  { %8950 = vmatpush3.xpose.msk.msra.mxu1 %vm213_vm2, %v354_v11  ;;  %8951 = vmatprep.mubr.msk.f32.mxu1 %vm9877_vm1, %v9876_v40 }
 0x475   :  { %8954 = vmatprep.subr.bf16.mxu1 %v9876_v40 }
 0x47b   :  { %8952 = vmatmul.mubr.msk.f32.vlgmr.msra.gmra.mxu1 %vm213_vm2, %v352_v12 }
 0x47c   :  { %8956 = vmatprep.mubr.msk.bf16.mxu1 %vm9877_vm1, %v9876_v40 }
 0x533   :  { %v344_v13 = vpop.f32.mrf.mxu1 }
 0x534   :  { %v350_v36 = vpack.c.bf16 %v344_v13, %v344_v13 }
 0x535   :  { %v8947_v14 = vpop.f32.mrf.mxu1 }
 0x537   :  { %v347_v15 = vpop.f32.mrf.mxu1 }
 0x539   :  { %v8948_v16 = vpop.f32.mrf.mxu1 }
 0x53b   :  { %v425_v17 = vpop.f32.mrf.mxu1 }
 0x53c   :  { %v429_v19 = vmul.f32 0.125, %v425_v17 }
 0x53d   :  { %v8953_v20 = vpop.f32.mrf.mxu1 }
 0x53e   :  { %v430_v21 = vsel %vm10029_vm4, %v429_v19, -1e+30 }
 0x53f   :  { %v431_v22 = vsel %vm290_vm5, %v430_v21, -inf }
 0x540   :  { %432 = vmax.xlane.f32.xlu1 %v431_v22 }
 0x551   :  { %593 = vrot.lane.b32.xlu1 %v10007_v47, %s9881_s14 }
 0x555   :  { %591 = vrot.lane.b32.xlu1 %v10007_v47, %s9882_s15 }
 0x5c9   :  { %v433_v23 = vpop.xlane.xlu1 %432 }
 0x5ca   :  { %v434_v24 = vsub.f32 %v430_v21, %v433_v23 }
 0x5cc   :  { %v435_v25 = vmul.f32 1.442695, %v434_v24 }
 0x5cd   :  { %v594_v41 = vpop.permute.xlu1 %593 }
 0x5ce   :  { %9695 = vpow2.f32 %v435_v25 }
 0x5d1   :  { %v592_v46 = vpop.permute.xlu1 %591 }
 0x5db   :  { %v9696_v26 = vpop.eup %9695 }
 0x5dc   :  { %v437_v27 = vsel %vm290_vm5, %v9696_v26, 0.0 }
 0x5dd   :  { %438 = vadd.xlane.f32.xlu0 %v437_v27 }
 0x5f3   :  { %444 = vrot.lane.b32.xlu0 %v10018_v56, %s9879_s30 }
 0x666   :  { %v439_v29 = vpop.xlane.xlu0 %438 }
 0x667   :  { %9697 = vrcp.f32 %v439_v29 }
 0x66a   :  { %v445_v30 = vpop.permute.xlu0 %444 }
 0x66b   :  { %v450_v31 = vsel %vm306_vm3, %v445_v30, 0 }
 0x66c   :  { %8955 = vmatpush3.bf16.msra.mxu1 %v450_v31 }
 0x66d   :  { %8966 = vmatprep.subr.bf16.mxu1 %v9876_v40 }
 0x674   :  { %v9698_v32 = vpop.eup %9697 }
 0x675   :  { %v441_v33 = vmul.f32 %v9698_v32, %v9696_v26 }
 0x677   :  { %v442_v35 = vpack.c.bf16 %v441_v33, %v441_v33 }
 0x679   :  { %8957 = vmatmul.mubr.msk.bf16.vlgmr.msra.gmra.mxu1 %vm290_vm5, %v442_v35 }
 0x67a   :  { %8967 = vmatpush3.bf16.msra.mxu1 %v10069_v34  ;;  %8968 = vmatprep.mubr.msk.bf16.mxu1 %vm9877_vm1, %v9876_v40 }
 0x67b   :  { %8983 = vmatprep.subr.bf16.mxu1 %v9876_v40 }
 0x681   :  { %8969 = vmatmul.mubr.msk.bf16.vlgmr.msra.gmra.mxu1 %vm213_vm2, %v350_v36 }
 0x682   :  { %8985 = vmatprep.mubr.msk.bf16.mxu1 %vm9877_vm1, %v9876_v40 }
 0x739   :  { %v486_v37 = vpop.f32.mrf.mxu1 }
 0x73a   :  { %v492_v38 = vpack.c.bf16 %v486_v37, %v486_v37  ;;  %v10140_v37 = vld [vmem:[%s11568_s4 + $0x18] sm:$0xff]  }
 0x73b   :  { %v8958_v39 = vpop.f32.mrf.mxu1 }
 0x73c   :  { %8963 = vmatmul.mubr.msk.bf16.vlgmr.msra.gmra.mxu0 %vm213_vm2, %v492_v38 }
 0x73d   :  { %8973 = vmatpush3.xpose.msk.msra.mxu0 %vm213_vm2, %v594_v41  ;;  %v489_v42 = vpop.f32.mrf.mxu1  ;;  %8974 = vmatprep.mubr.msk.f32.mxu0 %vm9877_vm1, %v9876_v40 }
 0x73e   :  { %8977 = vmatprep.subr.bf16.mxu0 %v9876_v40 }
 0x73f   :  { %v8959_v44 = vpop.f32.mrf.mxu1 }
 0x741   :  { %v10084_v45 = vpop.f32.mrf.mxu1 }
 0x743   :  { %v8970_v48 = vpop.f32.mrf.mxu1 }
 0x744   :  { %8975 = vmatmul.mubr.msk.f32.vlgmr.msra.gmra.mxu0 %vm213_vm2, %v592_v46 }
 0x745   :  { %v588_v49 = vpop.f32.mrf.mxu1  ;;  %8979 = vmatprep.mubr.msk.bf16.mxu0 %vm9877_vm1, %v9876_v40 }
 0x747   :  { %v8971_v52 = vpop.f32.mrf.mxu1 }
 0x748   :  { %v10161_v52 = vrot.slane %v10018_v56, 4 }
 0x7fc   :  { %v10089_v53 = vpop.f32.mrf.mxu0 }
 0x7fd   :  { %v586_v30 = vadd.f32 %v10084_v45, %v10089_v53 }
 0x7fe   :  { %v8964_v54 = vpop.f32.mrf.mxu0 }
 0x800   :  { %v539_v55 = vpop.f32.mrf.mxu0 }
 0x802   :  { %v8965_v57 = vpop.f32.mrf.mxu0 }
 0x803   :  { %v1069_v57 = vsel %vm306_vm3, %v10161_v52, 0 }
 0x804   :  { %v665_v58 = vpop.f32.mrf.mxu0 }
 0x805   :  { %v669_v59 = vmul.f32 0.125, %v665_v58 }
 0x806   :  { %v8976_v61 = vpop.f32.mrf.mxu0 }
 0x807   :  { %v670_v62 = vsel %vm10029_vm4, %v669_v59, -1e+30 }
 0x808   :  { %v671_v63 = vsel %vm290_vm5, %v670_v62, -inf }
 0x809   :  { %672 = vmax.xlane.f32.xlu0 %v671_v63 }
 0x81f   :  { %683 = vrot.lane.b32.xlu0 %v10018_v56, %s9882_s15 }
 0x823   :  { %782 = vrot.lane.b32.xlu0 %v10007_v47, %s9883_s20 }
 0x892   :  { %v673_v0 = vpop.xlane.xlu0 %672 }
 0x893   :  { %v674_v1 = vsub.f32 %v670_v62, %v673_v0 }
 0x895   :  { %v675_v2 = vmul.f32 1.442695, %v674_v1 }
 0x896   :  { %v684_v3 = vpop.permute.xlu0 %683 }
 0x897   :  { %9699 = vpow2.f32 %v675_v2  ;;  %v689_v4 = vsel %vm306_vm3, %v684_v3, 0 }
 0x898   :  { %8978 = vmatpush3.bf16.msra.mxu0 %v689_v4 }
 0x899   :  { %8989 = vmatprep.subr.mxu0 %v9876_v40 }
 0x89a   :  { %v783_v12 = vpop.permute.xlu0 %782 }
 0x8a4   :  { %v9700_v5 = vpop.eup %9699 }
 0x8a5   :  { %v677_v6 = vsel %vm290_vm5, %v9700_v5, 0.0 }
 0x8a6   :  { %678 = vadd.xlane.f32.xlu1 %v677_v6 }
 0x8b7   :  { %784 = vrot.lane.b32.xlu1 %v10007_v47, %s9884_s21  ;;  %v10114_v47 = vld [vmem:[%s11568_s4 + $0x10] sm:$0xff]  }
 0x8b8   :  { %8984 = vmatpush3.bf16.msra.mxu1 %v10114_v47 }
 0x8b9   :  { %8994 = vmatprep.subr.bf16.mxu1 %v9876_v40 }
 0x92f   :  { %v679_v7 = vpop.xlane.xlu1 %678 }
 0x930   :  { %9701 = vrcp.f32 %v679_v7 }
 0x933   :  { %v785_v11 = vpop.permute.xlu1 %784 }
 0x93d   :  { %v9702_v8 = vpop.eup %9701 }
 0x93e   :  { %v681_v9 = vmul.f32 %v9702_v8, %v9700_v5 }
 0x940   :  { %v682_v10 = vpack.c.bf16 %v681_v9, %v681_v9 }
 0x942   :  { %8980 = vmatmul.mubr.msk.bf16.vlgmr.msra.gmra.mxu0 %vm290_vm5, %v682_v10 }
 0x943   :  { %8990 = vmatpush3.xpose.msk.msra.mxu0 %vm213_vm2, %v785_v11  ;;  %8991 = vmatprep.mubr.msk.f32.mxu0 %vm9877_vm1, %v9876_v40 }
 0x944   :  { %9000 = vmatprep.subr.bf16.mxu0 %v9876_v40 }
 0x94a   :  { %8992 = vmatmul.mubr.msk.f32.vlgmr.msra.gmra.mxu0 %vm213_vm2, %v783_v12 }
 0x94b   :  { %9002 = vmatprep.mubr.msk.bf16.mxu0 %vm9877_vm1, %v9876_v40  ;;  %9001 = vmatpush3.bf16.msra.mxu0 %v10140_v37 }
 0x94c   :  { %9011 = vmatprep.subr.bf16.mxu0 %v9876_v40 }
 0xa02   :  { %v725_v13 = vpop.f32.mrf.mxu0 }
 0xa03   :  { %v731_v14 = vpack.c.bf16 %v725_v13, %v725_v13 }
 0xa04   :  { %v8981_v15 = vpop.f32.mrf.mxu0 }
 0xa05   :  { %8986 = vmatmul.mubr.msk.bf16.vlgmr.msra.gmra.mxu1 %vm213_vm2, %v731_v14 }
 0xa06   :  { %v728_v16 = vpop.f32.mrf.mxu0  ;;  %8996 = vmatprep.mubr.msk.bf16.mxu1 %vm9877_vm1, %v9876_v40 }
 0xa08   :  { %v8982_v17 = vpop.f32.mrf.mxu0 }
 0xa0a   :  { %v856_v19 = vpop.f32.mrf.mxu0 }
 0xa0b   :  { %v860_v20 = vmul.f32 0.125, %v856_v19 }
 0xa0c   :  { %v8993_v21 = vpop.f32.mrf.mxu0 }
 0xa0d   :  { %v861_v22 = vsel %vm10029_vm4, %v860_v20, -1e+30 }
 0xa0e   :  { %v862_v23 = vsel %vm290_vm5, %v861_v22, -inf }
 0xa0f   :  { %863 = vmax.xlane.f32.xlu1 %v862_v23 }
 0xa20   :  { %974 = vrot.lane.b32.xlu1 %v10011_v50, %s9878_s29 }
 0xa24   :  { %1114 = vrot.lane.b32.xlu1 %v10011_v50, %s9880_s13 }
 0xa98   :  { %v864_v24 = vpop.xlane.xlu1 %863 }
 0xa99   :  { %v865_v25 = vsub.f32 %v861_v22, %v864_v24 }
 0xa9b   :  { %v866_v26 = vmul.f32 1.442695, %v865_v25 }
 0xa9c   :  { %v975_v46 = vpop.permute.xlu1 %974 }
 0xa9d   :  { %9703 = vpow2.f32 %v866_v26 }
 0xaa0   :  { %v1115_v48 = vpop.permute.xlu1 %1114 }
 0xaaa   :  { %v9704_v27 = vpop.eup %9703 }
 0xaab   :  { %v868_v29 = vsel %vm290_vm5, %v9704_v27, 0.0 }
 0xaac   :  { %869 = vadd.xlane.f32.xlu0 %v868_v29 }
 0xac2   :  { %874 = vrot.lane.b32.xlu0 %v10018_v56, %s9883_s20 }
 0xac5   :  { %v775_v31 = vpop.f32.mrf.mxu1 }
 0xac6   :  { %v10133_v32 = vadd.f32 %v775_v31, %v586_v30  ;;  %1112 = vrot.lane.b32.xlu0 %v10011_v50, %s9879_s30 }
 0xac7   :  { %v8987_v33 = vpop.f32.mrf.mxu1 }
 0xac9   :  { %v778_v35 = vpop.f32.mrf.mxu1 }
 0xacb   :  { %v8988_v36 = vpop.f32.mrf.mxu1 }
 0xb35   :  { %v870_v38 = vpop.xlane.xlu0 %869 }
 0xb36   :  { %9705 = vrcp.f32 %v870_v38 }
 0xb39   :  { %v875_v39 = vpop.permute.xlu0 %874 }
 0xb3a   :  { %v880_v41 = vsel %vm306_vm3, %v875_v39, 0 }
 0xb3b   :  { %8995 = vmatpush3.bf16.msra.mxu1 %v880_v41 }
 0xb3c   :  { %9006 = vmatprep.subr.mxu1 %v9876_v40 }
 0xb3d   :  { %v1113_v49 = vpop.permute.xlu0 %1112 }
 0xb43   :  { %v9706_v42 = vpop.eup %9705 }
 0xb44   :  { %v872_v44 = vmul.f32 %v9706_v42, %v9704_v27 }
 0xb46   :  { %v873_v45 = vpack.c.bf16 %v872_v44, %v872_v44 }
 0xb48   :  { %8997 = vmatmul.mubr.msk.bf16.vlgmr.msra.gmra.mxu1 %vm290_vm5, %v873_v45 }
 0xb49   :  { %9007 = vmatpush3.xpose.msk.msra.mxu1 %vm213_vm2, %v975_v46  ;;  %9008 = vmatprep.mubr.msk.f32.mxu1 %vm9877_vm1, %v9876_v40 }
 0xb4a   :  { %9017 = vmatprep.subr.mxu1 %v9876_v40 }
 0xb50   :  { %9009 = vmatmul.mubr.msk.f32.vlgmr.msra.gmra.mxu1 %vm213_vm2, %v10011_v50 }
 0xb51   :  { %9018 = vmatpush3.xpose.msk.msra.mxu1 %vm213_vm2, %v1115_v48  ;;  %9019 = vmatprep.mubr.msk.f32.mxu1 %vm9877_vm1, %v9876_v40 }
 0xb52   :  { %9022 = vmatprep.subr.bf16.mxu1 %v9876_v40 }
 0xb54   :  { %9020 = vmatmul.mubr.msk.f32.vlgmr.msra.gmra.mxu1 %vm213_vm2, %v1113_v49 }
 0xb55   :  { %9024 = vmatprep.mubr.msk.bf16.mxu1 %vm9877_vm1, %v9876_v40 }
 0xc08   :  { %v916_v53 = vpop.f32.mrf.mxu1 }
 0xc09   :  { %v922_v54 = vpack.c.bf16 %v916_v53, %v916_v53 }
 0xc0a   :  { %v8998_v55 = vpop.f32.mrf.mxu1 }
 0xc0b   :  { %9003 = vmatmul.mubr.msk.bf16.vlgmr.msra.gmra.mxu0 %vm213_vm2, %v922_v54 }
 0xc0c   :  { %9012 = vmatpush3.bf16.msra.mxu0 %v1069_v57  ;;  %v919_v58 = vpop.f32.mrf.mxu1  ;;  %9013 = vmatprep.mubr.msk.bf16.mxu0 %vm9877_vm1, %v9876_v40 }
 0xc0d   :  { %9028 = vmatprep.subr.bf16.mxu0 %v9876_v40 }
 0xc0e   :  { %v8999_v59 = vpop.f32.mrf.mxu1 }
 0xc10   :  { %v1046_v61 = vpop.f32.mrf.mxu1 }
 0xc11   :  { %v1050_v63 = vmul.f32 0.125, %v1046_v61 }
 0xc12   :  { %v9010_v62 = vpop.f32.mrf.mxu1 }
 0xc13   :  { %v1051_v4 = vsel %vm10029_vm4, %v1050_v63, -1e+30 }
 0xc14   :  { %v1186_v56 = vpop.f32.mrf.mxu1  ;;  %v1052_v5 = vsel %vm290_vm5, %v1051_v4, -inf }
 0xc15   :  { %v1190_v0 = vmul.f32 0.125, %v1186_v56 }
 0xc16   :  { %v9021_v1 = vpop.f32.mrf.mxu1 }
 0xc17   :  { %v1191_v2 = vsel %vm10029_vm4, %v1190_v0, -1e+30 }
 0xc18   :  { %v1192_v3 = vsel %vm290_vm5, %v1191_v2, -inf }
 0xc19   :  { %1193 = vmax.xlane.f32.xlu1 %v1192_v3 }
 0xc1d   :  { %1053 = vmax.xlane.f32.xlu1 %v1052_v5 }
 0xca2   :  { %v1194_v6 = vpop.xlane.xlu1 %1193 }
 0xca3   :  { %v1195_v7 = vsub.f32 %v1191_v2, %v1194_v6 }
 0xca5   :  { %v1196_v8 = vmul.f32 1.442695, %v1195_v7 }
 0xca6   :  { %v1054_v9 = vpop.xlane.xlu1 %1053 }
 0xca7   :  { %9707 = vpow2.f32 %v1196_v8  ;;  %v1055_v10 = vsub.f32 %v1051_v4, %v1054_v9 }
 0xca9   :  { %v1056_v11 = vmul.f32 1.442695, %v1055_v10 }
 0xcab   :  { %9709 = vpow2.f32 %v1056_v11 }
 0xcb4   :  { %v9708_v12 = vpop.eup %9707 }
 0xcb5   :  { %v1198_v13 = vsel %vm290_vm5, %v9708_v12, 0.0 }
 0xcb6   :  { %1199 = vadd.xlane.f32.xlu0 %v1198_v13 }
 0xcb8   :  { %v9710_v14 = vpop.eup %9709 }
 0xcb9   :  { %v1058_v15 = vsel %vm290_vm5, %v9710_v14, 0.0 }
 0xcba   :  { %1059 = vadd.xlane.f32.xlu1 %v1058_v15 }
 0xccb   :  { %v966_v16 = vpop.f32.mrf.mxu0  ;;  %1341 = vrot.lane.b32.xlu1 %v10011_v50, %s9881_s14 }
 0xccc   :  { %v10180_v17 = vadd.f32 %v966_v16, %v10133_v32  ;;  %1204 = vrot.lane.b32.xlu0 %v10161_v52, %s9879_s30 }
 0xccd   :  { %v9004_v19 = vpop.f32.mrf.mxu0 }
 0xccf   :  { %v969_v20 = vpop.f32.mrf.mxu0 }
 0xcd0   :  { %1339 = vrot.lane.b32.xlu0 %v10011_v50, %s9882_s15  ;;  %v9851_v20 = vld [vmem:[%s11564_s0] sm:$0xff] }
 0xcd1   :  { %v9005_v21 = vpop.f32.mrf.mxu0 }
 0xcd2   :  { %v1709_v21 = vadd.f32 %v9851_v20, %v10180_v17  ;;  %v9536_v20 = vld [vmem:[%s11572_s8 + $0x38] sm:$0xff]  }
 0xd3f   :  { %v1200_v22 = vpop.xlane.xlu0 %1199 }
 0xd40   :  { %9711 = vrcp.f32 %v1200_v22  ;;  %v8215_v22 = vld [vmem:[%s11569_s5] ss:$0 sm:$0xff] }
 0xd43   :  { %v1205_v23 = vpop.permute.xlu0 %1204  ;;  %v1060_v24 = vpop.xlane.xlu1 %1059 }
 0xd44   :  { %v1210_v25 = vsel %vm306_vm3, %v1205_v23, 0  ;;  %9713 = vrcp.f32 %v1060_v24 }
 0xd45   :  { %9023 = vmatpush3.bf16.msra.mxu1 %v1210_v25 }
 0xd46   :  { %9034 = vmatprep.subr.bf16.mxu1 %v9876_v40 }
 0xd47   :  { %v1342_v38 = vpop.permute.xlu1 %1341  ;;  %v1340_v45 = vpop.permute.xlu0 %1339 }
 0xd4d   :  { %v9712_v26 = vpop.eup %9711 }
 0xd4e   :  { %v1202_v27 = vmul.f32 %v9712_v26, %v9708_v12  ;;  %v10246_v26 = vadd.f32 %v8215_v22, %v1709_v21  ;;  %v9537_v21 = vld [vmem:[%s11572_s8 + $0x70] sm:$0xff]  }
 0xd50   :  { %v1203_v29 = vpack.c.bf16 %v1202_v27, %v1202_v27 }
 0xd51   :  { %v9714_v30 = vpop.eup %9713 }
 0xd52   :  { %9025 = vmatmul.mubr.msk.bf16.vlgmr.msra.gmra.mxu1 %vm290_vm5, %v1203_v29  ;;  %v1062_v31 = vmul.f32 %v9714_v30, %v9710_v14  ;;  %v1718_v29 = vsel %vm54_vm0, %v10246_v26, 0.0 }
 0xd53   :  { %9035 = vmatpush3.bf16.msra.mxu1 %v10069_v34  ;;  %9036 = vmatprep.mubr.msk.bf16.mxu1 %vm9877_vm1, %v9876_v40 }
 0xd54   :  { %v1063_v32 = vpack.c.bf16 %v1062_v31, %v1062_v31  ;;  %9051 = vmatprep.subr.bf16.mxu1 %v9876_v40 }
 0xd56   :  { %9014 = vmatmul.mubr.msk.bf16.vlgmr.msra.gmra.mxu0 %vm290_vm5, %v1063_v32 }
 0xd57   :  { %9029 = vmatpush3.bf16.msra.mxu0 %v10060_v28  ;;  %9030 = vmatprep.mubr.msk.bf16.mxu0 %vm9877_vm1, %v9876_v40 }
 0xd58   :  { %9040 = vmatprep.subr.mxu0 %v9876_v40 }
 0xe12   :  { %v1246_v33 = vpop.f32.mrf.mxu1 }
 0xe13   :  { %v1252_v35 = vpack.c.bf16 %v1246_v33, %v1246_v33 }
 0xe14   :  { %v9026_v36 = vpop.f32.mrf.mxu1 }
 0xe15   :  { %9031 = vmatmul.mubr.msk.bf16.vlgmr.msra.gmra.mxu0 %vm213_vm2, %v1252_v35 }
 0xe16   :  { %9041 = vmatpush3.xpose.msk.msra.mxu0 %vm213_vm2, %v1342_v38  ;;  %v1105_v34 = vpop.f32.mrf.mxu0  ;;  %v1249_v39 = vpop.f32.mrf.mxu1  ;;  %9042 = vmatprep.mubr.msk.f32.mxu0 %vm9877_vm1, %v9876_v40 }
 0xe17   :  { %v1111_v41 = vpack.c.bf16 %v1105_v34, %v1105_v34  ;;  %9045 = vmatprep.subr.bf16.mxu0 %v9876_v40 }
 0xe18   :  { %v9015_v28 = vpop.f32.mrf.mxu0  ;;  %v9027_v42 = vpop.f32.mrf.mxu1 }
 0xe19   :  { %9037 = vmatmul.mubr.msk.bf16.vlgmr.msra.gmra.mxu1 %vm213_vm2, %v1111_v41 }
 0xe1a   :  { %v1108_v44 = vpop.f32.mrf.mxu0  ;;  %9052 = vmatpush3.bf16.msra.mxu1 %v10114_v47  ;;  %9053 = vmatprep.mubr.msk.bf16.mxu1 %vm9877_vm1, %v9876_v40 }
 0xe1b   :  { %9062 = vmatprep.subr.bf16.mxu1 %v9876_v40 }
 0xe1c   :  { %v9016_v46 = vpop.f32.mrf.mxu0 }
 0xe1d   :  { %9043 = vmatmul.mubr.msk.f32.vlgmr.msra.gmra.mxu0 %vm213_vm2, %v1340_v45 }
 0xe1e   :  { %9047 = vmatprep.mubr.msk.bf16.mxu0 %vm9877_vm1, %v9876_v40 }
 0xed5   :  { %v1290_v48 = vpop.f32.mrf.mxu0 }
 0xed7   :  { %v9032_v49 = vpop.f32.mrf.mxu0 }
 0xed9   :  { %v1293_v53 = vpop.f32.mrf.mxu0  ;;  %v1333_v54 = vpop.f32.mrf.mxu1 }
 0xeda   :  { %v10211_v55 = vadd.f32 %v1333_v54, %v1290_v48 }
 0xedb   :  { %v9033_v57 = vpop.f32.mrf.mxu0  ;;  %v9038_v47 = vpop.f32.mrf.mxu1 }
 0xedd   :  { %v1336_v58 = vpop.f32.mrf.mxu1  ;;  %v1413_v59 = vpop.f32.mrf.mxu0 }
 0xede   :  { %v1417_v61 = vmul.f32 0.125, %v1413_v59 }
 0xedf   :  { %v9039_v62 = vpop.f32.mrf.mxu1  ;;  %v9044_v56 = vpop.f32.mrf.mxu0 }
 0xee0   :  { %v1418_v63 = vsel %vm10029_vm4, %v1417_v61, -1e+30  ;;  %v9852_v62 = vld [vmem:[%s11564_s0 + $0x8] sm:$0xff] }
 0xee1   :  { %v1419_v0 = vsel %vm290_vm5, %v1418_v63, -inf }
 0xee2   :  { %1420 = vmax.xlane.f32.xlu0 %v1419_v0 }
 0xef8   :  { %1431 = vrot.lane.b32.xlu0 %v10161_v52, %s9882_s15 }
 0xefc   :  { %1524 = vrot.lane.b32.xlu0 %v10011_v50, %s9883_s20 }
 0xf6b   :  { %v1421_v1 = vpop.xlane.xlu0 %1420 }
 0xf6c   :  { %v1422_v2 = vsub.f32 %v1418_v63, %v1421_v1 }
 0xf6e   :  { %v1423_v3 = vmul.f32 1.442695, %v1422_v2 }
 0xf6f   :  { %v1432_v4 = vpop.permute.xlu0 %1431 }
 0xf70   :  { %9715 = vpow2.f32 %v1423_v3  ;;  %v1437_v5 = vsel %vm306_vm3, %v1432_v4, 0 }
 0xf71   :  { %9046 = vmatpush3.bf16.msra.mxu0 %v1437_v5 }
 0xf72   :  { %9057 = vmatprep.subr.mxu0 %v9876_v40 }
 0xf73   :  { %v1525_v13 = vpop.permute.xlu0 %1524 }
 0xf7d   :  { %v9716_v6 = vpop.eup %9715 }
 0xf7e   :  { %v1425_v7 = vsel %vm290_vm5, %v9716_v6, 0.0 }
 0xf7f   :  { %1426 = vadd.xlane.f32.xlu1 %v1425_v7 }
 0xf90   :  { %1526 = vrot.lane.b32.xlu1 %v10011_v50, %s9884_s21 }
0x1008   :  { %v1427_v8 = vpop.xlane.xlu1 %1426 }
0x1009   :  { %9717 = vrcp.f32 %v1427_v8 }
0x100c   :  { %v1527_v12 = vpop.permute.xlu1 %1526 }
0x1016   :  { %v9718_v9 = vpop.eup %9717 }
0x1017   :  { %v1429_v10 = vmul.f32 %v9718_v9, %v9716_v6 }
0x1019   :  { %v1430_v11 = vpack.c.bf16 %v1429_v10, %v1429_v10  ;;  %v9525_v10 = vld [vmem:[%s11570_s6 + $0x34] ss:$8 sps:$4 sm:$0xff]  }
0x101b   :  { %9048 = vmatmul.mubr.msk.bf16.vlgmr.msra.gmra.mxu0 %vm290_vm5, %v1430_v11  ;;  %v9523_v11 = vld [vmem:[%s11570_s6 + $0x30] ss:$8 sps:$4 sm:$0xff]  }
0x101c   :  { %9058 = vmatpush3.xpose.msk.msra.mxu0 %vm213_vm2, %v1527_v12  ;;  %9059 = vmatprep.mubr.msk.f32.mxu0 %vm9877_vm1, %v9876_v40  ;;  %v9528_v12 = vld [vmem:[%s11570_s6 + $0x24] ss:$8 sps:$4 sm:$0xff]  }
0x101d   :  { %9068 = vmatprep.subr.bf16.mxu0 %v9876_v40 }
0x1023   :  { %9060 = vmatmul.mubr.msk.f32.vlgmr.msra.gmra.mxu0 %vm213_vm2, %v1525_v13  ;;  %v9526_v13 = vld [vmem:[%s11570_s6 + $0x20] ss:$8 sps:$4 sm:$0xff]  }
0x1024   :  { %9069 = vmatpush3.bf16.msra.mxu0 %v10140_v37  ;;  %9070 = vmatprep.mubr.msk.bf16.mxu0 %vm9877_vm1, %v9876_v40 }
0x10db   :  { %v1473_v50 = vpop.f32.mrf.mxu0 }
0x10dc   :  { %v1479_v14 = vpack.c.bf16 %v1473_v50, %v1473_v50  ;;  %v9531_v50 = vld [vmem:[%s11570_s6 + $0x14] ss:$8 sps:$4 sm:$0xff]  }
0x10dd   :  { %v9049_v15 = vpop.f32.mrf.mxu0 }
0x10de   :  { %9054 = vmatmul.mubr.msk.bf16.vlgmr.msra.gmra.mxu1 %vm213_vm2, %v1479_v14  ;;  %v9529_v14 = vld [vmem:[%s11570_s6 + $0x10] ss:$8 sps:$4 sm:$0xff]   ;;  %v9534_v15 = vld [vmem:[%s11570_s6 + $0x4] ss:$8 sps:$4 sm:$0xff]  }
0x10df   :  { %v1476_v16 = vpop.f32.mrf.mxu0  ;;  %9064 = vmatprep.mubr.msk.bf16.mxu1 %vm9877_vm1, %v9876_v40 }
0x10e0   :  { %v9532_v16 = vld [vmem:[%s11570_s6] ss:$8 sps:$4 sm:$0xff]  }
0x10e1   :  { %v9050_v19 = vpop.f32.mrf.mxu0 }
0x10e2   :  { %v9535_v19 = vld [vmem:[%s11572_s8 + $0x78] sm:$0xff]  }
0x10e3   :  { %v1598_v37 = vpop.f32.mrf.mxu0  ;;  %8701 = vmatprep.subr.bf16.mxu0 %v9535_v19 }
0x10e4   :  { %v1602_v23 = vmul.f32 0.125, %v1598_v37  ;;  %v9538_v37 = vld [vmem:[%s11572_s8 + $0x30] sm:$0xff]  }
0x10e5   :  { %v9061_v24 = vpop.f32.mrf.mxu0 }
0x10e6   :  { %v1603_v25 = vsel %vm10029_vm4, %v1602_v23, -1e+30  ;;  %v9540_v23 = vld [vmem:[%s11572_s8 + $0x28] sm:$0xff]   ;;  %v9541_v24 = vld [vmem:[%s11572_s8 + $0x60] sm:$0xff]  }
0x10e7   :  { %v1604_v27 = vsel %vm290_vm5, %v1603_v25, -inf }
0x10e8   :  { %1605 = vmax.xlane.f32.xlu1 %v1604_v27  ;;  %v9543_v27 = vld [vmem:[%s11572_s8 + $0x58] sm:$0xff]  }
0x10ec   :  { %1719 = vadd.xlane.f32.xlu1 %v1718_v29  ;;  %v9544_v29 = vld [vmem:[%s11572_s8 + $0x18] sm:$0xff]  }
0x1171   :  { %v1606_v17 = vpop.xlane.xlu1 %1605 }
0x1172   :  { %v1607_v30 = vsub.f32 %v1603_v25, %v1606_v17  ;;  %v9542_v25 = vld [vmem:[%s11572_s8 + $0x20] sm:$0xff]  }
0x1174   :  { %v1608_v31 = vmul.f32 1.442695, %v1607_v30 }
0x1176   :  { %9719 = vpow2.f32 %v1608_v31 }
0x1183   :  { %v9720_v32 = vpop.eup %9719 }
0x1184   :  { %v1610_v33 = vsel %vm290_vm5, %v9720_v32, 0.0 }
0x1185   :  { %1611 = vadd.xlane.f32.xlu0 %v1610_v33 }
0x119b   :  { %1616 = vrot.lane.b32.xlu0 %v10161_v52, %s9883_s20 }
0x119e   :  { %v1517_v35 = vpop.f32.mrf.mxu1 }
0x119f   :  { %v1523_v36 = vadd.f32 %v1517_v35, %v10211_v55  ;;  %v1720_v55 = vpop.xlane.xlu1 %1719 }
0x11a0   :  { %v9055_v38 = vpop.f32.mrf.mxu1  ;;  %v1724_v57 = vmul.f32 0.015625, %v1720_v55  ;;  %v9549_v55 = vld [vmem:[%s11572_s8 + $0x40] sm:$0xff]  }
0x11a2   :  { %v1520_v34 = vpop.f32.mrf.mxu1  ;;  %v1726_v61 = vsub.f32 %v10246_v26, %v1724_v57  ;;  %v9550_v57 = vld [vmem:[%s11572_s8] sm:$0xff]  }
0x11a3   :  { %v8216_v34 = vld [vmem:[%s11565_s1 + $0x2] ss:$0 sm:$0xff] }
0x11a4   :  { %v9056_v39 = vpop.f32.mrf.mxu1  ;;  %v1728_v3 = vmul.f32 %v1726_v61, %v1726_v61 }
0x11a6   :  { %v1730_v4 = vsel %vm54_vm0, %v1728_v3, 0.0 }
0x120e   :  { %v1612_v41 = vpop.xlane.xlu0 %1611 }
0x120f   :  { %9721 = vrcp.f32 %v1612_v41 }
0x1212   :  { %v1617_v28 = vpop.permute.xlu0 %1616 }
0x1213   :  { %v1622_v42 = vsel %vm306_vm3, %v1617_v28, 0 }
0x1214   :  { %9063 = vmatpush3.bf16.msra.mxu1 %v1622_v42  ;;  %v8217_v42 = vld [vmem:[%s11565_s1 + $0x3] ss:$0 sm:$0xff] }
0x1215   :  { %1828 = vmatprep.subr.bf16.mxu1 %v9525_v10 }
0x121c   :  { %v9722_v44 = vpop.eup %9721 }
0x121d   :  { %v1614_v45 = vmul.f32 %v9722_v44, %v9720_v32 }
0x121f   :  { %v1615_v46 = vpack.c.bf16 %v1614_v45, %v1614_v45 }
0x1221   :  { %9065 = vmatmul.mubr.msk.bf16.vlgmr.msra.gmra.mxu1 %vm290_vm5, %v1615_v46 }
0x1222   :  { %1852 = vmatprep.mubr.bf16.mxu1 %v9875_v18  ;;  %1829 = vmatpush1.bf16.msra.mxu1 %v9523_v11 }
0x1223   :  { %1830 = vmatprep.subr.bf16.mxu1 %v9528_v12  ;;  %v8227_v12 = vld [vmem:[%s11573_s9] ss:$0 sm:$0xff] }
0x1226   :  { %1831 = vmatpush1.bf16.msra.mxu1 %v9526_v13 }
0x1227   :  { %1832 = vmatprep.subr.bf16.mxu1 %v9531_v50 }
0x122a   :  { %1833 = vmatpush1.bf16.msra.mxu1 %v9529_v14 }
0x122b   :  { %1834 = vmatprep.subr.bf16.mxu1 %v9534_v15 }
0x122e   :  { %1835 = vmatpush1.bf16.msra.mxu1 %v9532_v16 }
0x12e1   :  { %v1658_v52 = vpop.f32.mrf.mxu1 }
0x12e2   :  { %v1664_v48 = vpack.c.bf16 %v1658_v52, %v1658_v52 }
0x12e3   :  { %v9066_v49 = vpop.f32.mrf.mxu1 }
0x12e4   :  { %9071 = vmatmul.mubr.msk.bf16.vlgmr.msra.gmra.mxu0 %vm213_vm2, %v1664_v48  ;;  %v9545_v48 = vld [vmem:[%s11572_s8 + $0x50] sm:$0xff]  }
0x12e5   :  { %v1661_v53 = vpop.f32.mrf.mxu1  ;;  %8702 = vmatpush3.bf16.msra.mxu0 %v9536_v20  ;;  %v9546_v49 = vld [vmem:[%s11572_s8 + $0x10] sm:$0xff]  }
0x12e6   :  { %8703 = vmatprep.subr.bf16.mxu0 %v9537_v21  ;;  %v9547_v53 = vld [vmem:[%s11572_s8 + $0x48] sm:$0xff]  }
0x12e7   :  { %v9067_v54 = vpop.f32.mrf.mxu1 }
0x12e8   :  { %v9548_v54 = vld [vmem:[%s11572_s8 + $0x8] sm:$0xff]  }
0x12e9   :  { %8704 = vmatpush3.bf16.msra.mxu0 %v9538_v37 }
0x13a4   :  { %v1702_v47 = vpop.f32.mrf.mxu0 }
0x13a5   :  { %v1708_v58 = vadd.f32 %v1702_v47, %v1523_v36  ;;  %v1765_v47 = vld [vmem:[%s11571_s7] ss:$4 sm:$0x3] }
0x13a6   :  { %v9072_v59 = vpop.f32.mrf.mxu0 }
0x13a7   :  { %v1710_v56 = vadd.f32 %v9852_v62, %v1708_v58  ;;  %v1774_v59 = vrot.slane %v1765_v47, %v10015_v51 }
0x13a8   :  { %v1705_v63 = vpop.f32.mrf.mxu0 }
0x13a9   :  { %v10263_v0 = vadd.f32 %v8215_v22, %v1710_v56  ;;  %v9539_v22 = vld [vmem:[%s11572_s8 + $0x68] sm:$0xff]  }
0x13aa   :  { %v9073_v1 = vpop.f32.mrf.mxu0  ;;  %8705 = vmatprep.subr.bf16.mxu0 %v9539_v22 }
0x13ab   :  { %v1721_v2 = vsel %vm54_vm0, %v10263_v0, 0.0  ;;  %8706 = vmatpush3.bf16.msra.mxu0 %v9540_v23 }
0x13ac   :  { %1722 = vadd.xlane.f32.xlu1 %v1721_v2  ;;  %8707 = vmatprep.subr.bf16.mxu0 %v9541_v24 }
0x13af   :  { %8708 = vmatpush3.bf16.msra.mxu0 %v9542_v25 }
0x13b0   :  { %1731 = vadd.xlane.f32.xlu1 %v1730_v4  ;;  %8709 = vmatprep.subr.bf16.mxu0 %v9543_v27 }
0x13b3   :  { %8710 = vmatpush3.bf16.msra.mxu0 %v9544_v29 }
0x13b4   :  { %8711 = vmatprep.subr.bf16.mxu0 %v9545_v48 }
0x13b7   :  { %8712 = vmatpush3.bf16.msra.mxu0 %v9546_v49 }
0x13b8   :  { %8713 = vmatprep.subr.bf16.mxu0 %v9547_v53 }
0x13bb   :  { %8714 = vmatpush3.bf16.msra.mxu0 %v9548_v54  ;;  %v8244_v54 = vld [vmem:[%s11565_s1 + $0x4] ss:$0 sm:$0xff] }
0x13bc   :  { %8715 = vmatprep.subr.bf16.mxu0 %v9549_v55 }
0x13bf   :  { %8716 = vmatpush3.bf16.msra.mxu0 %v9550_v57 }
0x13c0   :  { %9079 = vmatprep.subr.bf16.mxu0 %v9876_v40 }
0x1435   :  { %v1723_v5 = vpop.xlane.xlu1 %1722 }
0x1436   :  { %v1725_v6 = vmul.f32 0.015625, %v1723_v5 }
0x1438   :  { %v1727_v7 = vsub.f32 %v10263_v0, %v1725_v6 }
0x1439   :  { %v1732_v17 = vpop.xlane.xlu1 %1731 }
0x143a   :  { %v1729_v8 = vmul.f32 %v1727_v7, %v1727_v7  ;;  %v1736_v30 = vmul.f32 0.015625, %v1732_v17 }
0x143c   :  { %v1733_v9 = vsel %vm54_vm0, %v1729_v8, 0.0  ;;  %v1738_v31 = vadd.f32 1e-05, %v1736_v30 }
0x143d   :  { %1734 = vadd.xlane.f32.xlu1 %v1733_v9 }
0x143e   :  { %9723 = vrsqrt.f32 %v1738_v31 }
0x144b   :  { %v9724_v36 = vpop.eup %9723 }
0x144c   :  { %v1742_v38 = vmul.f32 %v9724_v36, %v1726_v61  ;;  %v1770_v61 = vrot.slane %v1765_v47, %v10001_v43  ;;  %v9556_v36 = vld [vmem:[%s11566_s2 + $0x64] ss:$8 sps:$4 sm:$0xff]  }
0x144e   :  { %v1748_v28 = vmul.f32 %v8216_v34, %v1742_v38  ;;  %v9554_v38 = vld [vmem:[%s11566_s2 + $0x60] ss:$8 sps:$4 sm:$0xff]  }
0x1450   :  { %v1754_v45 = vadd.f32 %v8217_v42, %v1748_v28  ;;  %v9560_v28 = vld [vmem:[%s11566_s2 + $0x40] ss:$8 sps:$4 sm:$0xff]  }
0x14c6   :  { %v1735_v32 = vpop.xlane.xlu1 %1734 }
0x14c7   :  { %v1737_v33 = vmul.f32 0.015625, %v1735_v32 }
0x14c9   :  { %v1739_v35 = vadd.f32 1e-05, %v1737_v33  ;;  %v9553_v33 = vld [vmem:[%s11566_s2 + $0x74] ss:$8 sps:$4 sm:$0xff]  }
0x14ca   :  { %2161 = vmatprep.subr.bf16.mxu1 %v9553_v33 }
0x14cb   :  { %9725 = vrsqrt.f32 %v1739_v35  ;;  %v9551_v35 = vld [vmem:[%s11566_s2 + $0x70] ss:$8 sps:$4 sm:$0xff]  }
0x14d8   :  { %v9726_v39 = vpop.eup %9725 }
0x14d9   :  { %v1743_v41 = vmul.f32 %v9726_v39, %v1727_v7  ;;  %v9557_v39 = vld [vmem:[%s11566_s2 + $0x50] ss:$8 sps:$4 sm:$0xff]  }
0x14db   :  { %v1749_v44 = vmul.f32 %v8216_v34, %v1743_v41  ;;  %v9559_v34 = vld [vmem:[%s11566_s2 + $0x54] ss:$8 sps:$4 sm:$0xff]   ;;  %v9562_v41 = vld [vmem:[%s11566_s2 + $0x44] ss:$8 sps:$4 sm:$0xff]  }
0x14dd   :  { %v1755_v46 = vadd.f32 %v8217_v42, %v1749_v44 }
0x14df   :  { %v1756_v52 = vpack.c.bf16 %v1755_v46, %v1754_v45 }
0x14e1   :  { %8226 = vmatmul.mubr.msk.bf16.vlgmr.msra.gmra.mxu1 %vm54_vm0, %v1756_v52 }
0x14e2   :  { %2185 = vmatprep.mubr.bf16.mxu1 %v9875_v18  ;;  %2162 = vmatpush1.bf16.msra.mxu1 %v9551_v35 }
0x14e3   :  { %2163 = vmatprep.subr.bf16.mxu1 %v9556_v36 }
0x14e6   :  { %2164 = vmatpush1.bf16.msra.mxu1 %v9554_v38 }
0x14e7   :  { %2165 = vmatprep.subr.bf16.mxu1 %v9559_v34 }
0x14ea   :  { %2166 = vmatpush1.bf16.msra.mxu1 %v9557_v39 }
0x14eb   :  { %2167 = vmatprep.subr.bf16.mxu1 %v9562_v41 }
0x14ee   :  { %2168 = vmatpush1.bf16.msra.mxu1 %v9560_v28 }
0x14ef   :  { %9074 = vmatprep.subr.mxu1 %v9876_v40 }
0x15a1   :  { %v1854_v58 = vpop.f32.mrf.mxu1 }
0x15a2   :  { %v1855_v2 = vadd.f32 %v1854_v58, %v1770_v61  ;;  %v8245_v58 = vld [vmem:[%s11565_s1 + $0x5] ss:$0 sm:$0xff] }
0x15a3   :  { %v1856_v62 = vpop.f32.mrf.mxu1 }
0x15a4   :  { %v1857_v63 = vadd.f32 %v1856_v62, %v1774_v59  ;;  %v1863_v8 = vmax.f32 %v1855_v2, 0.0 }
0x15a5   :  { %v1858_v56 = vpop.f32.mrf.mxu1 }
0x15a6   :  { %v1859_v1 = vadd.f32 %v1858_v56, %v1770_v61  ;;  %v1864_v6 = vmax.f32 %v1857_v63, 0.0  ;;  %v8254_v63 = vld [vmem:[%s11567_s3 + $0x1] ss:$4 sm:$0x3] }
0x15a7   :  { %v1860_v3 = vpop.f32.mrf.mxu1 }
0x15a8   :  { %v1861_v4 = vadd.f32 %v1860_v3, %v1774_v59  ;;  %v1865_v5 = vmax.f32 %v1859_v1, 0.0  ;;  %v2103_v1 = vrot.slane %v8254_v63, %v10001_v43 }
0x15aa   :  { %v1866_v7 = vmax.f32 %v1861_v4, 0.0  ;;  %v1867_v10 = vpack.c.bf16 %v1865_v5, %v1863_v8  ;;  %v2107_v5 = vrot.slane %v8254_v63, %v10015_v51 }
0x15ac   :  { %v1868_v9 = vpack.c.bf16 %v1866_v7, %v1864_v6 }
0x15ae   :  { %2034 = vmatprep.mubr.bf16.mxu0 %v1868_v9 }
0x15af   :  { %2035 = vmatmul.mubr.bf16.vlgmr.msra.gmra.mxu0 %v1867_v10 }
0x15b0   :  { %9081 = vmatprep.mubr.msk.bf16.mxu0 %vm9877_vm1, %v9876_v40 }
0x166f   :  { %v8717_v11 = vpop.f32.mrf.mxu0 }
0x1671   :  { %v8718_v13 = vpop.f32.mrf.mxu0 }
0x1672   :  { %v8719_v50 = vadd.f32 %v8718_v13, %v8717_v11 }
0x1673   :  { %v8720_v14 = vpop.f32.mrf.mxu0 }
0x1674   :  { %v2037_v15 = vadd.f32 %v8719_v50, %v8227_v12 }
0x1675   :  { %v8721_v16 = vpop.f32.mrf.mxu0 }
0x1676   :  { %v10362_v19 = vadd.f32 %v2037_v15, %v10246_v26  ;;  %v8722_v20 = vadd.f32 %v8721_v16, %v8720_v14 }
0x1678   :  { %v2040_v21 = vadd.f32 %v8722_v20, %v8227_v12  ;;  %v2049_v37 = vsel %vm54_vm0, %v10362_v19, 0.0 }
0x1679   :  { %2050 = vadd.xlane.f32.xlu1 %v2049_v37 }
0x167a   :  { %v10367_v22 = vadd.f32 %v2040_v21, %v10263_v0 }
0x167c   :  { %v2052_v23 = vsel %vm54_vm0, %v10367_v22, 0.0 }
0x167d   :  { %2053 = vadd.xlane.f32.xlu0 %v2052_v23 }
0x1702   :  { %v2051_v24 = vpop.xlane.xlu1 %2050 }
0x1703   :  { %v2055_v25 = vmul.f32 0.015625, %v2051_v24 }
0x1705   :  { %v2057_v27 = vsub.f32 %v10362_v19, %v2055_v25 }
0x1706   :  { %v2054_v29 = vpop.xlane.xlu0 %2053 }
0x1707   :  { %v2056_v26 = vmul.f32 0.015625, %v2054_v29  ;;  %v2059_v17 = vmul.f32 %v2057_v27, %v2057_v27 }
0x1709   :  { %v2058_v30 = vsub.f32 %v10367_v22, %v2056_v26  ;;  %v2061_v31 = vsel %vm54_vm0, %v2059_v17, 0.0 }
0x170a   :  { %2062 = vadd.xlane.f32.xlu1 %v2061_v31 }
0x170b   :  { %v2060_v32 = vmul.f32 %v2058_v30, %v2058_v30 }
0x170d   :  { %v2064_v0 = vsel %vm54_vm0, %v2060_v32, 0.0 }
0x170e   :  { %2065 = vadd.xlane.f32.xlu1 %v2064_v0 }
0x1793   :  { %v2063_v42 = vpop.xlane.xlu1 %2062 }
0x1794   :  { %v2067_v44 = vmul.f32 0.015625, %v2063_v42 }
0x1796   :  { %v2069_v45 = vadd.f32 1e-05, %v2067_v44 }
0x1797   :  { %v2066_v46 = vpop.xlane.xlu1 %2065 }
0x1798   :  { %9727 = vrsqrt.f32 %v2069_v45  ;;  %v2068_v52 = vmul.f32 0.015625, %v2066_v46 }
0x179a   :  { %v2070_v48 = vadd.f32 1e-05, %v2068_v52 }
0x179c   :  { %9729 = vrsqrt.f32 %v2070_v48  ;;  %v10464_v48 = vld [vmem:[%s11568_s4 + $0x28] sm:$0xff]  }
0x17a5   :  { %v9728_v49 = vpop.eup %9727 }
0x17a6   :  { %v2073_v53 = vmul.f32 %v9728_v49, %v2057_v27 }
0x17a8   :  { %v2079_v47 = vmul.f32 %v8244_v54, %v2073_v53 }
0x17a9   :  { %v9730_v55 = vpop.eup %9729 }
0x17aa   :  { %v2074_v57 = vmul.f32 %v9730_v55, %v2058_v30  ;;  %v2085_v61 = vadd.f32 %v8245_v58, %v2079_v47 }
0x17ac   :  { %v2080_v59 = vmul.f32 %v8244_v54, %v2074_v57 }
0x17ae   :  { %v2086_v62 = vadd.f32 %v8245_v58, %v2080_v59 }
0x17b0   :  { %v2087_v56 = vpack.c.bf16 %v2086_v62, %v2085_v61 }
0x17b2   :  { %8263 = vmatmul.mubr.msk.bf16.vlgmr.msra.gmra.mxu1 %vm54_vm0, %v2087_v56  ;;  %v10484_v56 = vld [vmem:[%s11568_s4 + $0x20] sm:$0xff]  }
0x17b3   :  { %9076 = vmatprep.mubr.msk.f32.mxu1 %vm9877_vm1, %v9876_v40 }
0x1872   :  { %v2187_v2 = vpop.f32.mrf.mxu1 }
0x1873   :  { %v10413_v3 = vadd.f32 %v2187_v2, %v2103_v1 }
0x1874   :  { %v2189_v4 = vpop.f32.mrf.mxu1 }
0x1875   :  { %2344 = vrot.lane.b32.xlu0 %v10413_v3, %s9879_s30  ;;  %2207 = vrot.lane.b32.xlu1 %v10413_v3, %s9878_s29  ;;  %v2190_v9 = vadd.f32 %v2189_v4, %v2107_v5 }
0x1876   :  { %v2191_v6 = vpop.f32.mrf.mxu1 }
0x1877   :  { %v10420_v7 = vadd.f32 %v2191_v6, %v2103_v1 }
0x1878   :  { %v2193_v8 = vpop.f32.mrf.mxu1 }
0x1879   :  { %v2194_v10 = vadd.f32 %v2193_v8, %v2107_v5  ;;  %2346 = vrot.lane.b32.xlu1 %v10413_v3, %s9880_s13 }
0x187b   :  { %v10424_v11 = vpack.c.bf16 %v2194_v10, %v2190_v9 }
0x187d   :  { %v2301_v12 = vsel %vm306_vm3, %v10424_v11, 0 }
0x187e   :  { %9080 = vmatpush3.bf16.msra.mxu0 %v2301_v12 }
0x187f   :  { %9096 = vmatprep.subr.bf16.mxu0 %v9876_v40 }
0x18e7   :  { %v2208_v13 = vpop.permute.xlu1 %2207  ;;  %v2345_v14 = vpop.permute.xlu0 %2344 }
0x18e8   :  { %9075 = vmatpush3.xpose.msk.msra.mxu1 %vm213_vm2, %v2208_v13 }
0x18e9   :  { %9085 = vmatprep.subr.mxu1 %v9876_v40 }
0x18eb   :  { %9077 = vmatmul.mubr.msk.f32.vlgmr.msra.gmra.mxu1 %vm213_vm2, %v10413_v3  ;;  %v2347_v50 = vpop.permute.xlu1 %2346 }
0x18ec   :  { %9086 = vmatpush3.xpose.msk.msra.mxu1 %vm213_vm2, %v2347_v50  ;;  %9087 = vmatprep.mubr.msk.f32.mxu1 %vm9877_vm1, %v9876_v40 }
0x18ed   :  { %9090 = vmatprep.subr.bf16.mxu1 %v9876_v40 }
0x18ef   :  { %9088 = vmatmul.mubr.msk.f32.vlgmr.msra.gmra.mxu1 %vm213_vm2, %v2345_v14 }
0x18f0   :  { %9092 = vmatprep.mubr.msk.bf16.mxu1 %vm9877_vm1, %v9876_v40 }
0x19ab   :  { %v2279_v15 = vpop.f32.mrf.mxu1 }
0x19ac   :  { %v2283_v30 = vmul.f32 0.125, %v2279_v15 }
0x19ad   :  { %v9078_v16 = vpop.f32.mrf.mxu1 }
0x19ae   :  { %v2284_v0 = vsel %vm10029_vm4, %v2283_v30, -1e+30 }
0x19af   :  { %v2418_v20 = vpop.f32.mrf.mxu1  ;;  %v2285_v33 = vsel %vm290_vm5, %v2284_v0, -inf }
0x19b0   :  { %v2422_v21 = vmul.f32 0.125, %v2418_v20 }
0x19b1   :  { %v9089_v37 = vpop.f32.mrf.mxu1 }
0x19b2   :  { %v2423_v23 = vsel %vm10029_vm4, %v2422_v21, -1e+30 }
0x19b3   :  { %v2424_v24 = vsel %vm290_vm5, %v2423_v23, -inf }
0x19b4   :  { %2425 = vmax.xlane.f32.xlu1 %v2424_v24 }
0x19c5   :  { %2437 = vrot.lane.b32.xlu1 %v10424_v11, %s9879_s30 }
0x1a3d   :  { %v2426_v25 = vpop.xlane.xlu1 %2425 }
0x1a3e   :  { %v2427_v27 = vsub.f32 %v2423_v23, %v2426_v25 }
0x1a40   :  { %v2428_v29 = vmul.f32 1.442695, %v2427_v27 }
0x1a41   :  { %v2438_v26 = vpop.permute.xlu1 %2437 }
0x1a42   :  { %9731 = vpow2.f32 %v2428_v29  ;;  %v2443_v17 = vsel %vm306_vm3, %v2438_v26, 0 }
0x1a43   :  { %9091 = vmatpush3.bf16.msra.mxu1 %v2443_v17 }
0x1a44   :  { %9102 = vmatprep.subr.bf16.mxu1 %v9876_v40 }
0x1a4f   :  { %v9732_v31 = vpop.eup %9731 }
0x1a50   :  { %v2430_v32 = vsel %vm290_vm5, %v9732_v31, 0.0 }
0x1a51   :  { %2431 = vadd.xlane.f32.xlu0 %v2430_v32 }
0x1a55   :  { %2286 = vmax.xlane.f32.xlu0 %v2285_v33 }
0x1a6b   :  { %2586 = vrot.lane.b32.xlu0 %v10413_v3, %s9881_s14 }
0x1a6f   :  { %2584 = vrot.lane.b32.xlu0 %v10413_v3, %s9882_s15 }
0x1ada   :  { %v2432_v35 = vpop.xlane.xlu0 %2431 }
0x1adb   :  { %9733 = vrcp.f32 %v2432_v35 }
0x1ade   :  { %v2287_v36 = vpop.xlane.xlu0 %2286 }
0x1adf   :  { %v2288_v38 = vsub.f32 %v2284_v0, %v2287_v36 }
0x1ae1   :  { %v2289_v34 = vmul.f32 1.442695, %v2288_v38 }
0x1ae2   :  { %v2587_v57 = vpop.permute.xlu0 %2586 }
0x1ae3   :  { %9735 = vpow2.f32 %v2289_v34 }
0x1ae6   :  { %v2585_v61 = vpop.permute.xlu0 %2584 }
0x1ae8   :  { %v9734_v39 = vpop.eup %9733 }
0x1ae9   :  { %v2434_v41 = vmul.f32 %v9734_v39, %v9732_v31 }
0x1aeb   :  { %v2435_v28 = vpack.c.bf16 %v2434_v41, %v2434_v41 }
0x1aed   :  { %9093 = vmatmul.mubr.msk.bf16.vlgmr.msra.gmra.mxu1 %vm290_vm5, %v2435_v28 }
0x1aee   :  { %9104 = vmatprep.mubr.msk.bf16.mxu1 %vm9877_vm1, %v9876_v40  ;;  %9103 = vmatpush3.bf16.msra.mxu1 %v10484_v56 }
0x1aef   :  { %9119 = vmatprep.subr.bf16.mxu1 %v9876_v40 }
0x1af0   :  { %v9736_v42 = vpop.eup %9735 }
0x1af1   :  { %v2291_v44 = vsel %vm290_vm5, %v9736_v42, 0.0 }
0x1af2   :  { %2292 = vadd.xlane.f32.xlu1 %v2291_v44 }
0x1b03   :  { %2676 = vrot.lane.b32.xlu1 %v10424_v11, %s9882_s15 }
0x1b7b   :  { %v2293_v45 = vpop.xlane.xlu1 %2292 }
0x1b7c   :  { %9737 = vrcp.f32 %v2293_v45 }
0x1b7f   :  { %v2677_v59 = vpop.permute.xlu1 %2676 }
0x1b80   :  { %v2682_v62 = vsel %vm306_vm3, %v2677_v59, 0 }
0x1b89   :  { %v9738_v46 = vpop.eup %9737 }
0x1b8a   :  { %v2295_v52 = vmul.f32 %v9738_v46, %v9736_v42 }
0x1b8c   :  { %v2296_v49 = vpack.c.bf16 %v2295_v52, %v2295_v52 }
0x1b8e   :  { %9082 = vmatmul.mubr.msk.bf16.vlgmr.msra.gmra.mxu0 %vm290_vm5, %v2296_v49 }
0x1b8f   :  { %9097 = vmatpush3.bf16.msra.mxu0 %v10464_v48  ;;  %9098 = vmatprep.mubr.msk.bf16.mxu0 %vm9877_vm1, %v9876_v40 }
0x1b90   :  { %9108 = vmatprep.subr.mxu0 %v9876_v40 }
0x1bad   :  { %v2479_v53 = vpop.f32.mrf.mxu1 }
0x1bae   :  { %v2485_v54 = vpack.c.bf16 %v2479_v53, %v2479_v53 }
0x1baf   :  { %v9094_v55 = vpop.f32.mrf.mxu1 }
0x1bb0   :  { %9099 = vmatmul.mubr.msk.bf16.vlgmr.msra.gmra.mxu0 %vm213_vm2, %v2485_v54 }
0x1bb1   :  { %9109 = vmatpush3.xpose.msk.msra.mxu0 %vm213_vm2, %v2587_v57  ;;  %v2482_v47 = vpop.f32.mrf.mxu1  ;;  %9110 = vmatprep.mubr.msk.f32.mxu0 %vm9877_vm1, %v9876_v40 }
0x1bb2   :  { %9113 = vmatprep.subr.bf16.mxu0 %v9876_v40 }
0x1bb3   :  { %v9095_v58 = vpop.f32.mrf.mxu1 }
0x1bb8   :  { %9111 = vmatmul.mubr.msk.f32.vlgmr.msra.gmra.mxu0 %vm213_vm2, %v2585_v61 }
0x1bb9   :  { %9114 = vmatpush3.bf16.msra.mxu0 %v2682_v62  ;;  %9115 = vmatprep.mubr.msk.bf16.mxu0 %vm9877_vm1, %v9876_v40 }
0x1bba   :  { %9125 = vmatprep.subr.mxu0 %v9876_v40 }
0x1c4e   :  { %v2337_v63 = vpop.f32.mrf.mxu0 }
0x1c4f   :  { %v2343_v1 = vpack.c.bf16 %v2337_v63, %v2337_v63  ;;  %v10537_v63 = vld [vmem:[%s11568_s4 + $0x38] sm:$0xff]  }
0x1c50   :  { %v9083_v2 = vpop.f32.mrf.mxu0 }
0x1c51   :  { %9105 = vmatmul.mubr.msk.bf16.vlgmr.msra.gmra.mxu1 %vm213_vm2, %v2343_v1 }
0x1c52   :  { %v2340_v4 = vpop.f32.mrf.mxu0  ;;  %9121 = vmatprep.mubr.msk.bf16.mxu1 %vm9877_vm1, %v9876_v40 }
0x1c54   :  { %v9084_v5 = vpop.f32.mrf.mxu0 }
0x1c70   :  { %v10491_v6 = vpop.f32.mrf.mxu0 }
0x1c72   :  { %v9100_v8 = vpop.f32.mrf.mxu0 }
0x1c74   :  { %v2532_v9 = vpop.f32.mrf.mxu0 }
0x1c76   :  { %v9101_v10 = vpop.f32.mrf.mxu0 }
0x1c77   :  { %v10556_v10 = vrot.slane %v10424_v11, 4 }
0x1c78   :  { %v2658_v12 = vpop.f32.mrf.mxu0 }
0x1c79   :  { %v2662_v13 = vmul.f32 0.125, %v2658_v12 }
0x1c7a   :  { %v9112_v50 = vpop.f32.mrf.mxu0 }
0x1c7b   :  { %v2663_v14 = vsel %vm10029_vm4, %v2662_v13, -1e+30 }
0x1c7c   :  { %v2664_v15 = vsel %vm290_vm5, %v2663_v14, -inf }
0x1c7d   :  { %2665 = vmax.xlane.f32.xlu0 %v2664_v15 }
0x1c93   :  { %2775 = vrot.lane.b32.xlu0 %v10413_v3, %s9883_s20 }
0x1d06   :  { %v2666_v16 = vpop.xlane.xlu0 %2665 }
0x1d07   :  { %v2667_v20 = vsub.f32 %v2663_v14, %v2666_v16  ;;  %v3062_v14 = vsel %vm306_vm3, %v10556_v10, 0 }
0x1d09   :  { %v2668_v21 = vmul.f32 1.442695, %v2667_v20 }
0x1d0a   :  { %v2776_v0 = vpop.permute.xlu0 %2775 }
0x1d0b   :  { %9739 = vpow2.f32 %v2668_v21 }
0x1d11   :  { %v2578_v37 = vpop.f32.mrf.mxu1 }
0x1d12   :  { %v2579_v57 = vadd.f32 %v2578_v37, %v10491_v6 }
0x1d13   :  { %v9106_v23 = vpop.f32.mrf.mxu1 }
0x1d15   :  { %v2581_v24 = vpop.f32.mrf.mxu1 }
0x1d17   :  { %v9107_v25 = vpop.f32.mrf.mxu1 }
0x1d18   :  { %v9740_v27 = vpop.eup %9739 }
0x1d19   :  { %v2670_v29 = vsel %vm290_vm5, %v9740_v27, 0.0 }
0x1d1a   :  { %2671 = vadd.xlane.f32.xlu1 %v2670_v29 }
0x1d2b   :  { %2777 = vrot.lane.b32.xlu1 %v10413_v3, %s9884_s21  ;;  %v10512_v3 = vld [vmem:[%s11568_s4 + $0x30] sm:$0xff]  }
0x1d2c   :  { %9120 = vmatpush3.bf16.msra.mxu1 %v10512_v3 }
0x1d2d   :  { %9130 = vmatprep.subr.bf16.mxu1 %v9876_v40 }
0x1da3   :  { %v2672_v26 = vpop.xlane.xlu1 %2671 }
0x1da4   :  { %9741 = vrcp.f32 %v2672_v26 }
0x1da7   :  { %v2778_v32 = vpop.permute.xlu1 %2777 }
0x1db1   :  { %v9742_v17 = vpop.eup %9741 }
0x1db2   :  { %v2674_v30 = vmul.f32 %v9742_v17, %v9740_v27 }
0x1db4   :  { %v2675_v31 = vpack.c.bf16 %v2674_v30, %v2674_v30 }
0x1db6   :  { %9116 = vmatmul.mubr.msk.bf16.vlgmr.msra.gmra.mxu0 %vm290_vm5, %v2675_v31 }
0x1db7   :  { %9126 = vmatpush3.xpose.msk.msra.mxu0 %vm213_vm2, %v2778_v32  ;;  %9127 = vmatprep.mubr.msk.f32.mxu0 %vm9877_vm1, %v9876_v40 }
0x1db8   :  { %9136 = vmatprep.subr.bf16.mxu0 %v9876_v40 }
0x1dbe   :  { %9128 = vmatmul.mubr.msk.f32.vlgmr.msra.gmra.mxu0 %vm213_vm2, %v2776_v0 }
0x1dbf   :  { %9138 = vmatprep.mubr.msk.bf16.mxu0 %vm9877_vm1, %v9876_v40  ;;  %9137 = vmatpush3.bf16.msra.mxu0 %v10537_v63 }
0x1dc0   :  { %9147 = vmatprep.subr.bf16.mxu0 %v9876_v40 }
0x1e76   :  { %v2718_v33 = vpop.f32.mrf.mxu0 }
0x1e77   :  { %v2724_v35 = vpack.c.bf16 %v2718_v33, %v2718_v33 }
0x1e78   :  { %v9117_v36 = vpop.f32.mrf.mxu0 }
0x1e79   :  { %9122 = vmatmul.mubr.msk.bf16.vlgmr.msra.gmra.mxu1 %vm213_vm2, %v2724_v35 }
0x1e7a   :  { %v2721_v38 = vpop.f32.mrf.mxu0  ;;  %9132 = vmatprep.mubr.msk.bf16.mxu1 %vm9877_vm1, %v9876_v40 }
0x1e7c   :  { %v9118_v34 = vpop.f32.mrf.mxu0 }
0x1e7e   :  { %v2849_v39 = vpop.f32.mrf.mxu0 }
0x1e7f   :  { %v2853_v41 = vmul.f32 0.125, %v2849_v39 }
0x1e80   :  { %v9129_v28 = vpop.f32.mrf.mxu0 }
0x1e81   :  { %v2854_v42 = vsel %vm10029_vm4, %v2853_v41, -1e+30 }
0x1e82   :  { %v2855_v44 = vsel %vm290_vm5, %v2854_v42, -inf }
0x1e83   :  { %2856 = vmax.xlane.f32.xlu1 %v2855_v44 }
0x1e94   :  { %2867 = vrot.lane.b32.xlu1 %v10424_v11, %s9883_s20 }
0x1e98   :  { %3107 = vrot.lane.b32.xlu1 %v10420_v7, %s9880_s13 }
0x1e9c   :  { %3105 = vrot.lane.b32.xlu1 %v10420_v7, %s9879_s30 }
0x1f0c   :  { %v2857_v45 = vpop.xlane.xlu1 %2856 }
0x1f0d   :  { %v2858_v46 = vsub.f32 %v2854_v42, %v2857_v45 }
0x1f0f   :  { %v2859_v52 = vmul.f32 1.442695, %v2858_v46 }
0x1f10   :  { %v2868_v49 = vpop.permute.xlu1 %2867 }
0x1f11   :  { %9743 = vpow2.f32 %v2859_v52  ;;  %v2873_v53 = vsel %vm306_vm3, %v2868_v49, 0 }
0x1f12   :  { %9131 = vmatpush3.bf16.msra.mxu1 %v2873_v53 }
0x1f13   :  { %9142 = vmatprep.subr.mxu1 %v9876_v40 }
0x1f14   :  { %v3108_v8 = vpop.permute.xlu1 %3107 }
0x1f18   :  { %v3106_v9 = vpop.permute.xlu1 %3105 }
0x1f1e   :  { %v9744_v54 = vpop.eup %9743 }
0x1f1f   :  { %v2861_v55 = vsel %vm290_vm5, %v9744_v54, 0.0 }
0x1f20   :  { %2862 = vadd.xlane.f32.xlu0 %v2861_v55 }
0x1f36   :  { %2967 = vrot.lane.b32.xlu0 %v10420_v7, %s9878_s29 }
0x1f39   :  { %v2768_v47 = vpop.f32.mrf.mxu1 }
0x1f3a   :  { %v2774_v58 = vadd.f32 %v2768_v47, %v2579_v57 }
0x1f3b   :  { %v9123_v59 = vpop.f32.mrf.mxu1 }
0x1f3d   :  { %v2771_v61 = vpop.f32.mrf.mxu1 }
0x1f3f   :  { %v9124_v62 = vpop.f32.mrf.mxu1 }
0x1fa9   :  { %v2863_v1 = vpop.xlane.xlu0 %2862 }
0x1faa   :  { %9745 = vrcp.f32 %v2863_v1 }
0x1fad   :  { %v2968_v6 = vpop.permute.xlu0 %2967 }
0x1fb7   :  { %v9746_v2 = vpop.eup %9745 }
0x1fb8   :  { %v2865_v4 = vmul.f32 %v9746_v2, %v9744_v54 }
0x1fba   :  { %v2866_v5 = vpack.c.bf16 %v2865_v4, %v2865_v4 }
0x1fbc   :  { %9133 = vmatmul.mubr.msk.bf16.vlgmr.msra.gmra.mxu1 %vm290_vm5, %v2866_v5 }
0x1fbd   :  { %9143 = vmatpush3.xpose.msk.msra.mxu1 %vm213_vm2, %v2968_v6  ;;  %9144 = vmatprep.mubr.msk.f32.mxu1 %vm9877_vm1, %v9876_v40 }
0x1fbe   :  { %9153 = vmatprep.subr.mxu1 %v9876_v40 }
0x1fc4   :  { %9145 = vmatmul.mubr.msk.f32.vlgmr.msra.gmra.mxu1 %vm213_vm2, %v10420_v7 }
0x1fc5   :  { %9154 = vmatpush3.xpose.msk.msra.mxu1 %vm213_vm2, %v3108_v8  ;;  %9155 = vmatprep.mubr.msk.f32.mxu1 %vm9877_vm1, %v9876_v40 }
0x1fc6   :  { %9158 = vmatprep.subr.bf16.mxu1 %v9876_v40 }
0x1fc8   :  { %9156 = vmatmul.mubr.msk.f32.vlgmr.msra.gmra.mxu1 %vm213_vm2, %v3106_v9 }
0x1fc9   :  { %9160 = vmatprep.mubr.msk.bf16.mxu1 %vm9877_vm1, %v9876_v40 }
0x207c   :  { %v2909_v12 = vpop.f32.mrf.mxu1 }
0x207d   :  { %v2915_v13 = vpack.c.bf16 %v2909_v12, %v2909_v12 }
0x207e   :  { %v9134_v50 = vpop.f32.mrf.mxu1 }
0x207f   :  { %9139 = vmatmul.mubr.msk.bf16.vlgmr.msra.gmra.mxu0 %vm213_vm2, %v2915_v13 }
0x2080   :  { %9148 = vmatpush3.bf16.msra.mxu0 %v3062_v14  ;;  %v2912_v15 = vpop.f32.mrf.mxu1  ;;  %9149 = vmatprep.mubr.msk.bf16.mxu0 %vm9877_vm1, %v9876_v40 }
0x2081   :  { %9164 = vmatprep.subr.bf16.mxu0 %v9876_v40 }
0x2082   :  { %v9135_v16 = vpop.f32.mrf.mxu1 }
0x2084   :  { %v3039_v20 = vpop.f32.mrf.mxu1 }
0x2085   :  { %v3043_v31 = vmul.f32 0.125, %v3039_v20 }
0x2086   :  { %v9146_v21 = vpop.f32.mrf.mxu1 }
0x2087   :  { %v3044_v33 = vsel %vm10029_vm4, %v3043_v31, -1e+30 }
0x2088   :  { %v3179_v11 = vpop.f32.mrf.mxu1  ;;  %v3045_v35 = vsel %vm290_vm5, %v3044_v33, -inf }
0x2089   :  { %v3183_v37 = vmul.f32 0.125, %v3179_v11 }
0x208a   :  { %v9157_v23 = vpop.f32.mrf.mxu1 }
0x208b   :  { %v3184_v24 = vsel %vm10029_vm4, %v3183_v37, -1e+30 }
0x208c   :  { %v3185_v25 = vsel %vm290_vm5, %v3184_v24, -inf }
0x208d   :  { %3186 = vmax.xlane.f32.xlu1 %v3185_v25 }
0x209e   :  { %3197 = vrot.lane.b32.xlu1 %v10556_v10, %s9879_s30 }
0x20a2   :  { %3332 = vrot.lane.b32.xlu1 %v10420_v7, %s9882_s15 }
0x2116   :  { %v3187_v27 = vpop.xlane.xlu1 %3186 }
0x2117   :  { %v3188_v29 = vsub.f32 %v3184_v24, %v3187_v27 }
0x2119   :  { %v3189_v26 = vmul.f32 1.442695, %v3188_v29 }
0x211a   :  { %v3198_v17 = vpop.permute.xlu1 %3197 }
0x211b   :  { %9747 = vpow2.f32 %v3189_v26  ;;  %v3203_v30 = vsel %vm306_vm3, %v3198_v17, 0 }
0x211c   :  { %9159 = vmatpush3.bf16.msra.mxu1 %v3203_v30 }
0x211d   :  { %9170 = vmatprep.subr.bf16.mxu1 %v9876_v40 }
0x211e   :  { %v3333_v2 = vpop.permute.xlu1 %3332 }
0x2128   :  { %v9748_v32 = vpop.eup %9747 }
0x2129   :  { %v3191_v0 = vsel %vm290_vm5, %v9748_v32, 0.0 }
0x212a   :  { %3192 = vadd.xlane.f32.xlu0 %v3191_v0 }
0x212e   :  { %3046 = vmax.xlane.f32.xlu0 %v3045_v35 }
0x213f   :  { %v2959_v36 = vpop.f32.mrf.mxu0 }
0x2140   :  { %v10577_v38 = vadd.f32 %v2959_v36, %v2774_v58 }
0x2141   :  { %v9140_v34 = vpop.f32.mrf.mxu0 }
0x2143   :  { %v2962_v39 = vpop.f32.mrf.mxu0 }
0x2145   :  { %v9141_v41 = vpop.f32.mrf.mxu0 }
0x21b3   :  { %v3193_v28 = vpop.xlane.xlu0 %3192 }
0x21b4   :  { %9749 = vrcp.f32 %v3193_v28 }
0x21b7   :  { %v3047_v42 = vpop.xlane.xlu0 %3046 }
0x21b8   :  { %v3048_v44 = vsub.f32 %v3044_v33, %v3047_v42 }
0x21ba   :  { %v3049_v45 = vmul.f32 1.442695, %v3048_v44 }
0x21bc   :  { %9751 = vpow2.f32 %v3049_v45 }
0x21c1   :  { %v9750_v46 = vpop.eup %9749 }
0x21c2   :  { %v3195_v52 = vmul.f32 %v9750_v46, %v9748_v32 }
0x21c4   :  { %v3196_v49 = vpack.c.bf16 %v3195_v52, %v3195_v52 }
0x21c6   :  { %9161 = vmatmul.mubr.msk.bf16.vlgmr.msra.gmra.mxu1 %vm290_vm5, %v3196_v49 }
0x21c7   :  { %9171 = vmatpush3.bf16.msra.mxu1 %v10484_v56  ;;  %9172 = vmatprep.mubr.msk.bf16.mxu1 %vm9877_vm1, %v9876_v40 }
0x21c8   :  { %9187 = vmatprep.subr.bf16.mxu1 %v9876_v40 }
0x21c9   :  { %v9752_v53 = vpop.eup %9751 }
0x21ca   :  { %v3051_v54 = vsel %vm290_vm5, %v9752_v53, 0.0 }
0x21cb   :  { %3052 = vadd.xlane.f32.xlu0 %v3051_v54 }
0x21e1   :  { %3334 = vrot.lane.b32.xlu0 %v10420_v7, %s9881_s14 }
0x2254   :  { %v3053_v55 = vpop.xlane.xlu0 %3052 }
0x2255   :  { %9753 = vrcp.f32 %v3053_v55 }
0x2258   :  { %v3335_v62 = vpop.permute.xlu0 %3334 }
0x2262   :  { %v9754_v57 = vpop.eup %9753 }
0x2263   :  { %v3055_v47 = vmul.f32 %v9754_v57, %v9752_v53 }
0x2265   :  { %v3056_v58 = vpack.c.bf16 %v3055_v47, %v3055_v47  ;;  %v3702_v47 = vadd.f32 %v10577_v38, %v10362_v19 }
0x2267   :  { %9150 = vmatmul.mubr.msk.bf16.vlgmr.msra.gmra.mxu0 %vm290_vm5, %v3056_v58  ;;  %v8308_v58 = vld [vmem:[%s11569_s5 + $0x1] ss:$0 sm:$0xff] }
0x2268   :  { %9165 = vmatpush3.bf16.msra.mxu0 %v10464_v48  ;;  %9166 = vmatprep.mubr.msk.bf16.mxu0 %vm9877_vm1, %v9876_v40 }
0x2269   :  { %9176 = vmatprep.subr.mxu0 %v9876_v40 }
0x2286   :  { %v3239_v56 = vpop.f32.mrf.mxu1 }
0x2287   :  { %v3245_v59 = vpack.c.bf16 %v3239_v56, %v3239_v56 }
0x2288   :  { %v9162_v61 = vpop.f32.mrf.mxu1 }
0x2289   :  { %9167 = vmatmul.mubr.msk.bf16.vlgmr.msra.gmra.mxu0 %vm213_vm2, %v3245_v59  ;;  %v10642_v59 = vadd.f32 %v8308_v58, %v3702_v47 }
0x228a   :  { %9177 = vmatpush3.xpose.msk.msra.mxu0 %vm213_vm2, %v3335_v62  ;;  %v3242_v1 = vpop.f32.mrf.mxu1  ;;  %9178 = vmatprep.mubr.msk.f32.mxu0 %vm9877_vm1, %v9876_v40 }
0x228b   :  { %9181 = vmatprep.subr.bf16.mxu0 %v9876_v40  ;;  %v3711_v61 = vsel %vm54_vm0, %v10642_v59, 0.0 }
0x228c   :  { %v9163_v48 = vpop.f32.mrf.mxu1 }
0x2291   :  { %9179 = vmatmul.mubr.msk.f32.vlgmr.msra.gmra.mxu0 %vm213_vm2, %v3333_v2 }
0x2292   :  { %9183 = vmatprep.mubr.msk.bf16.mxu0 %vm9877_vm1, %v9876_v40 }
0x2327   :  { %v3098_v4 = vpop.f32.mrf.mxu0 }
0x2328   :  { %v3104_v5 = vpack.c.bf16 %v3098_v4, %v3098_v4 }
0x2329   :  { %v9151_v6 = vpop.f32.mrf.mxu0 }
0x232a   :  { %9173 = vmatmul.mubr.msk.bf16.vlgmr.msra.gmra.mxu1 %vm213_vm2, %v3104_v5 }
0x232b   :  { %v3101_v8 = vpop.f32.mrf.mxu0  ;;  %9188 = vmatpush3.bf16.msra.mxu1 %v10512_v3  ;;  %9189 = vmatprep.mubr.msk.bf16.mxu1 %vm9877_vm1, %v9876_v40 }
0x232c   :  { %9198 = vmatprep.subr.bf16.mxu1 %v9876_v40 }
0x232d   :  { %v9152_v9 = vpop.f32.mrf.mxu0 }
0x2349   :  { %v10605_v12 = vpop.f32.mrf.mxu0 }
0x234b   :  { %v9168_v13 = vpop.f32.mrf.mxu0 }
0x234d   :  { %v3286_v50 = vpop.f32.mrf.mxu0 }
0x234f   :  { %v9169_v14 = vpop.f32.mrf.mxu0 }
0x2351   :  { %v3406_v15 = vpop.f32.mrf.mxu0 }
0x2352   :  { %v3410_v16 = vmul.f32 0.125, %v3406_v15 }
0x2353   :  { %v9180_v20 = vpop.f32.mrf.mxu0 }
0x2354   :  { %v3411_v21 = vsel %vm10029_vm4, %v3410_v16, -1e+30 }
0x2355   :  { %v3412_v11 = vsel %vm290_vm5, %v3411_v21, -inf }
0x2356   :  { %3413 = vmax.xlane.f32.xlu1 %v3412_v11 }
0x2367   :  { %3424 = vrot.lane.b32.xlu1 %v10556_v10, %s9882_s15 }
0x236b   :  { %3517 = vrot.lane.b32.xlu1 %v10420_v7, %s9883_s20 }
0x23df   :  { %v3414_v3 = vpop.xlane.xlu1 %3413 }
0x23e0   :  { %v3415_v37 = vsub.f32 %v3411_v21, %v3414_v3 }
0x23e2   :  { %v3416_v23 = vmul.f32 1.442695, %v3415_v37 }
0x23e3   :  { %v3425_v24 = vpop.permute.xlu1 %3424 }
0x23e4   :  { %9755 = vpow2.f32 %v3416_v23  ;;  %v3430_v25 = vsel %vm306_vm3, %v3425_v24, 0 }
0x23e5   :  { %9182 = vmatpush3.bf16.msra.mxu0 %v3430_v25 }
0x23e6   :  { %9193 = vmatprep.subr.mxu0 %v9876_v40 }
0x23e7   :  { %v3518_v34 = vpop.permute.xlu1 %3517 }
0x23ea   :  { %v3326_v27 = vpop.f32.mrf.mxu1 }
0x23eb   :  { %v3327_v62 = vadd.f32 %v3326_v27, %v10605_v12 }
0x23ec   :  { %v9174_v29 = vpop.f32.mrf.mxu1 }
0x23ee   :  { %v3329_v26 = vpop.f32.mrf.mxu1 }
0x23f0   :  { %v9175_v17 = vpop.f32.mrf.mxu1 }
0x23f1   :  { %v9756_v30 = vpop.eup %9755 }
0x23f2   :  { %v3418_v31 = vsel %vm290_vm5, %v9756_v30, 0.0 }
0x23f3   :  { %3419 = vadd.xlane.f32.xlu0 %v3418_v31 }
0x2409   :  { %3519 = vrot.lane.b32.xlu0 %v10420_v7, %s9884_s21 }
0x247c   :  { %v3420_v32 = vpop.xlane.xlu0 %3419 }
0x247d   :  { %9757 = vrcp.f32 %v3420_v32 }
0x2480   :  { %v3520_v36 = vpop.permute.xlu0 %3519 }
0x248a   :  { %v9758_v0 = vpop.eup %9757 }
0x248b   :  { %v3422_v33 = vmul.f32 %v9758_v0, %v9756_v30 }
0x248d   :  { %v3423_v35 = vpack.c.bf16 %v3422_v33, %v3422_v33  ;;  %v9567_v33 = vld [vmem:[%s11570_s6 + $0x70] ss:$8 sps:$4 sm:$0xff]  }
0x248f   :  { %9184 = vmatmul.mubr.msk.bf16.vlgmr.msra.gmra.mxu0 %vm290_vm5, %v3423_v35  ;;  %v9572_v35 = vld [vmem:[%s11570_s6 + $0x64] ss:$8 sps:$4 sm:$0xff]  }
0x2490   :  { %9194 = vmatpush3.xpose.msk.msra.mxu0 %vm213_vm2, %v3520_v36  ;;  %9195 = vmatprep.mubr.msk.f32.mxu0 %vm9877_vm1, %v9876_v40  ;;  %v9570_v36 = vld [vmem:[%s11570_s6 + $0x60] ss:$8 sps:$4 sm:$0xff]  }
0x2491   :  { %9204 = vmatprep.subr.bf16.mxu0 %v9876_v40 }
0x2497   :  { %9196 = vmatmul.mubr.msk.f32.vlgmr.msra.gmra.mxu0 %vm213_vm2, %v3518_v34  ;;  %v9575_v34 = vld [vmem:[%s11570_s6 + $0x54] ss:$8 sps:$4 sm:$0xff]  }
0x2498   :  { %9205 = vmatpush3.bf16.msra.mxu0 %v10537_v63  ;;  %9206 = vmatprep.mubr.msk.bf16.mxu0 %vm9877_vm1, %v9876_v40 }
0x254f   :  { %v3466_v7 = vpop.f32.mrf.mxu0 }
0x2550   :  { %v3472_v39 = vpack.c.bf16 %v3466_v7, %v3466_v7  ;;  %v9573_v7 = vld [vmem:[%s11570_s6 + $0x50] ss:$8 sps:$4 sm:$0xff]  }
0x2551   :  { %v9185_v41 = vpop.f32.mrf.mxu0 }
0x2552   :  { %9190 = vmatmul.mubr.msk.bf16.vlgmr.msra.gmra.mxu1 %vm213_vm2, %v3472_v39  ;;  %v9578_v39 = vld [vmem:[%s11570_s6 + $0x44] ss:$8 sps:$4 sm:$0xff]   ;;  %v9576_v41 = vld [vmem:[%s11570_s6 + $0x40] ss:$8 sps:$4 sm:$0xff]  }
0x2553   :  { %v3469_v28 = vpop.f32.mrf.mxu0  ;;  %9200 = vmatprep.mubr.msk.bf16.mxu1 %vm9877_vm1, %v9876_v40 }
0x2554   :  { %v9579_v28 = vld [vmem:[%s11572_s8 + $0xf8] sm:$0xff]  }
0x2555   :  { %v9186_v42 = vpop.f32.mrf.mxu0  ;;  %8771 = vmatprep.subr.bf16.mxu0 %v9579_v28 }
0x2556   :  { %v9580_v42 = vld [vmem:[%s11572_s8 + $0xb8] sm:$0xff]  }
0x2557   :  { %v3591_v44 = vpop.f32.mrf.mxu0 }
0x2558   :  { %v3595_v45 = vmul.f32 0.125, %v3591_v44  ;;  %v9581_v44 = vld [vmem:[%s11572_s8 + $0xf0] sm:$0xff]  }
0x2559   :  { %v9197_v46 = vpop.f32.mrf.mxu0 }
0x255a   :  { %v3596_v52 = vsel %vm10029_vm4, %v3595_v45, -1e+30  ;;  %v9582_v45 = vld [vmem:[%s11572_s8 + $0xb0] sm:$0xff]   ;;  %v9583_v46 = vld [vmem:[%s11572_s8 + $0xe8] sm:$0xff]  }
0x255b   :  { %v3597_v63 = vsel %vm290_vm5, %v3596_v52, -inf }
0x255c   :  { %3598 = vmax.xlane.f32.xlu1 %v3597_v63  ;;  %v9585_v63 = vld [vmem:[%s11572_s8 + $0xe0] sm:$0xff]  }
0x256d   :  { %3609 = vrot.lane.b32.xlu1 %v10556_v10, %s9883_s20 }
0x25e5   :  { %v3599_v49 = vpop.xlane.xlu1 %3598 }
0x25e6   :  { %v3600_v53 = vsub.f32 %v3596_v52, %v3599_v49  ;;  %v9584_v52 = vld [vmem:[%s11572_s8 + $0xa8] sm:$0xff]   ;;  %v9586_v49 = vld [vmem:[%s11572_s8 + $0xa0] sm:$0xff]  }
0x25e8   :  { %v3601_v54 = vmul.f32 1.442695, %v3600_v53  ;;  %v9587_v53 = vld [vmem:[%s11572_s8 + $0xd8] sm:$0xff]  }
0x25e9   :  { %v3610_v55 = vpop.permute.xlu1 %3609 }
0x25ea   :  { %9759 = vpow2.f32 %v3601_v54  ;;  %v3615_v57 = vsel %vm306_vm3, %v3610_v55, 0  ;;  %v9588_v54 = vld [vmem:[%s11572_s8 + $0x98] sm:$0xff]  }
0x25eb   :  { %9199 = vmatpush3.bf16.msra.mxu1 %v3615_v57 }
0x25f7   :  { %v9760_v56 = vpop.eup %9759 }
0x25f8   :  { %v3603_v10 = vsel %vm290_vm5, %v9760_v56, 0.0 }
0x25f9   :  { %3604 = vadd.xlane.f32.xlu0 %v3603_v10 }
0x25fd   :  { %3712 = vadd.xlane.f32.xlu0 %v3711_v61 }
0x2612   :  { %v3510_v1 = vpop.f32.mrf.mxu1 }
0x2613   :  { %v3516_v48 = vadd.f32 %v3510_v1, %v3327_v62  ;;  %v8309_v1 = vld [vmem:[%s11565_s1 + $0x6] ss:$0 sm:$0xff] }
0x2614   :  { %v9191_v2 = vpop.f32.mrf.mxu1 }
0x2616   :  { %v3513_v19 = vpop.f32.mrf.mxu1 }
0x2618   :  { %v9192_v38 = vpop.f32.mrf.mxu1 }
0x2619   :  { %v8310_v38 = vld [vmem:[%s11565_s1 + $0x7] ss:$0 sm:$0xff] }
0x2682   :  { %v3605_v4 = vpop.xlane.xlu0 %3604 }
0x2683   :  { %9761 = vrcp.f32 %v3605_v4 }
0x2686   :  { %v3713_v15 = vpop.xlane.xlu0 %3712 }
0x2687   :  { %v3717_v16 = vmul.f32 0.015625, %v3713_v15  ;;  %v9594_v15 = vld [vmem:[%s11572_s8 + $0x80] sm:$0xff]  }
0x2689   :  { %v3719_v3 = vsub.f32 %v10642_v59, %v3717_v16  ;;  %v8319_v16 = vld [vmem:[%s11571_s7 + $0x1] ss:$4 sm:$0x3] }
0x268b   :  { %v3721_v29 = vmul.f32 %v3719_v3, %v3719_v3 }
0x268d   :  { %v3723_v26 = vsel %vm54_vm0, %v3721_v29, 0.0 }
0x2690   :  { %v9762_v5 = vpop.eup %9761 }
0x2691   :  { %v3607_v6 = vmul.f32 %v9762_v5, %v9760_v56 }
0x2693   :  { %v3608_v8 = vpack.c.bf16 %v3607_v6, %v3607_v6 }
0x2695   :  { %9201 = vmatmul.mubr.msk.bf16.vlgmr.msra.gmra.mxu1 %vm290_vm5, %v3608_v8 }
0x2696   :  { %3847 = vmatprep.mubr.bf16.mxu1 %v9875_v18 }
0x2755   :  { %v3651_v9 = vpop.f32.mrf.mxu1 }
0x2756   :  { %v3657_v13 = vpack.c.bf16 %v3651_v9, %v3651_v9  ;;  %v9589_v9 = vld [vmem:[%s11572_s8 + $0xd0] sm:$0xff]  }
0x2757   :  { %v9202_v50 = vpop.f32.mrf.mxu1 }
0x2758   :  { %9207 = vmatmul.mubr.msk.bf16.vlgmr.msra.gmra.mxu0 %vm213_vm2, %v3657_v13  ;;  %v9590_v13 = vld [vmem:[%s11572_s8 + $0x90] sm:$0xff]   ;;  %v9591_v50 = vld [vmem:[%s11572_s8 + $0xc8] sm:$0xff]  }
0x2759   :  { %v3654_v12 = vpop.f32.mrf.mxu1  ;;  %8772 = vmatpush3.bf16.msra.mxu0 %v9580_v42 }
0x275a   :  { %8773 = vmatprep.subr.bf16.mxu0 %v9581_v44  ;;  %v9592_v12 = vld [vmem:[%s11572_s8 + $0x88] sm:$0xff]  }
0x275b   :  { %v9203_v14 = vpop.f32.mrf.mxu1 }
0x275c   :  { %v9593_v14 = vld [vmem:[%s11572_s8 + $0xc0] sm:$0xff]  }
0x275d   :  { %8774 = vmatpush3.bf16.msra.mxu0 %v9582_v45 }
0x275e   :  { %8775 = vmatprep.subr.bf16.mxu0 %v9583_v46 }
0x2761   :  { %8776 = vmatpush3.bf16.msra.mxu0 %v9584_v52 }
0x2762   :  { %8777 = vmatprep.subr.bf16.mxu0 %v9585_v63 }
0x2765   :  { %8778 = vmatpush3.bf16.msra.mxu0 %v9586_v49 }
0x2766   :  { %8779 = vmatprep.subr.bf16.mxu0 %v9587_v53 }
0x2769   :  { %8780 = vmatpush3.bf16.msra.mxu0 %v9588_v54 }
0x276a   :  { %8781 = vmatprep.subr.bf16.mxu0 %v9589_v9 }
0x276d   :  { %8782 = vmatpush3.bf16.msra.mxu0 %v9590_v13 }
0x276e   :  { %8783 = vmatprep.subr.bf16.mxu0 %v9591_v50 }
0x2771   :  { %8784 = vmatpush3.bf16.msra.mxu0 %v9592_v12  ;;  %v8378_v12 = vld [vmem:[%s11565_s1 + $0x8] ss:$0 sm:$0xff] }
0x2772   :  { %8785 = vmatprep.subr.bf16.mxu0 %v9593_v14 }
0x2775   :  { %8786 = vmatpush3.bf16.msra.mxu0 %v9594_v15 }
0x2776   :  { %9215 = vmatprep.subr.bf16.mxu0 %v9876_v40 }
0x2818   :  { %v3695_v20 = vpop.f32.mrf.mxu0 }
0x2819   :  { %v3701_v21 = vadd.f32 %v3695_v20, %v3516_v48 }
0x281a   :  { %v9208_v11 = vpop.f32.mrf.mxu0 }
0x281b   :  { %v3703_v37 = vadd.f32 %v3701_v21, %v10367_v22  ;;  %v9569_v22 = vld [vmem:[%s11570_s6 + $0x74] ss:$8 sps:$4 sm:$0xff]   ;;  %v3769_v21 = vrot.slane %v8319_v16, %v10015_v51  ;;  %v3765_v11 = vrot.slane %v8319_v16, %v10001_v43 }
0x281c   :  { %v3698_v23 = vpop.f32.mrf.mxu0  ;;  %3823 = vmatprep.subr.bf16.mxu1 %v9569_v22 }
0x281d   :  { %v10653_v24 = vadd.f32 %v8308_v58, %v3703_v37  ;;  %3824 = vmatpush1.bf16.msra.mxu1 %v9567_v33 }
0x281e   :  { %v9209_v25 = vpop.f32.mrf.mxu0  ;;  %3825 = vmatprep.subr.bf16.mxu1 %v9572_v35  ;;  %v8361_v35 = vld [vmem:[%s11573_s9 + $0x1] ss:$0 sm:$0xff] }
0x281f   :  { %v3714_v27 = vsel %vm54_vm0, %v10653_v24, 0.0 }
0x2820   :  { %3715 = vadd.xlane.f32.xlu0 %v3714_v27 }
0x2821   :  { %3826 = vmatpush1.bf16.msra.mxu1 %v9570_v36 }
0x2822   :  { %3827 = vmatprep.subr.bf16.mxu1 %v9575_v34 }
0x2824   :  { %3724 = vadd.xlane.f32.xlu0 %v3723_v26 }
0x2825   :  { %3828 = vmatpush1.bf16.msra.mxu1 %v9573_v7 }
0x2826   :  { %3829 = vmatprep.subr.bf16.mxu1 %v9578_v39 }
0x2829   :  { %3830 = vmatpush1.bf16.msra.mxu1 %v9576_v41 }
0x28a9   :  { %v3716_v17 = vpop.xlane.xlu0 %3715 }
0x28aa   :  { %v3718_v30 = vmul.f32 0.015625, %v3716_v17 }
0x28ac   :  { %v3720_v31 = vsub.f32 %v10653_v24, %v3718_v30 }
0x28ad   :  { %v3725_v55 = vpop.xlane.xlu0 %3724 }
0x28ae   :  { %v3722_v32 = vmul.f32 %v3720_v31, %v3720_v31  ;;  %v3729_v57 = vmul.f32 0.015625, %v3725_v55 }
0x28b0   :  { %v3726_v0 = vsel %vm54_vm0, %v3722_v32, 0.0  ;;  %v3731_v47 = vadd.f32 1e-05, %v3729_v57 }
0x28b1   :  { %3727 = vadd.xlane.f32.xlu1 %v3726_v0 }
0x28b2   :  { %9763 = vrsqrt.f32 %v3731_v47 }
0x28bf   :  { %v9764_v61 = vpop.eup %9763 }
0x28c0   :  { %v3735_v62 = vmul.f32 %v9764_v61, %v3719_v3  ;;  %v9600_v61 = vld [vmem:[%s11566_s2 + $0xa4] ss:$8 sps:$4 sm:$0xff]  }
0x28c2   :  { %v3741_v19 = vmul.f32 %v8309_v1, %v3735_v62  ;;  %v9598_v62 = vld [vmem:[%s11566_s2 + $0xa0] ss:$8 sps:$4 sm:$0xff]  }
0x28c4   :  { %v3747_v5 = vadd.f32 %v8310_v38, %v3741_v19  ;;  %v9604_v19 = vld [vmem:[%s11566_s2 + $0x80] ss:$8 sps:$4 sm:$0xff]  }
0x293a   :  { %v3728_v58 = vpop.xlane.xlu1 %3727 }
0x293b   :  { %v3730_v56 = vmul.f32 0.015625, %v3728_v58 }
0x293d   :  { %v3732_v10 = vadd.f32 1e-05, %v3730_v56  ;;  %v9597_v56 = vld [vmem:[%s11566_s2 + $0xb4] ss:$8 sps:$4 sm:$0xff]  }
0x293e   :  { %4157 = vmatprep.subr.bf16.mxu1 %v9597_v56 }
0x293f   :  { %9765 = vrsqrt.f32 %v3732_v10  ;;  %v9595_v10 = vld [vmem:[%s11566_s2 + $0xb0] ss:$8 sps:$4 sm:$0xff]  }
0x294c   :  { %v9766_v48 = vpop.eup %9765 }
0x294d   :  { %v3736_v2 = vmul.f32 %v9766_v48, %v3720_v31  ;;  %v9601_v48 = vld [vmem:[%s11566_s2 + $0x90] ss:$8 sps:$4 sm:$0xff]  }
0x294f   :  { %v3742_v4 = vmul.f32 %v8309_v1, %v3736_v2  ;;  %v9603_v1 = vld [vmem:[%s11566_s2 + $0x94] ss:$8 sps:$4 sm:$0xff]   ;;  %v9606_v2 = vld [vmem:[%s11566_s2 + $0x84] ss:$8 sps:$4 sm:$0xff]  }
0x2951   :  { %v3748_v6 = vadd.f32 %v8310_v38, %v3742_v4 }
0x2953   :  { %v3749_v8 = vpack.c.bf16 %v3748_v6, %v3747_v5 }
0x2955   :  { %8328 = vmatmul.mubr.msk.bf16.vlgmr.msra.gmra.mxu1 %vm54_vm0, %v3749_v8 }
0x2956   :  { %4181 = vmatprep.mubr.bf16.mxu1 %v9875_v18  ;;  %4158 = vmatpush1.bf16.msra.mxu1 %v9595_v10 }
0x2957   :  { %4159 = vmatprep.subr.bf16.mxu1 %v9600_v61 }
0x295a   :  { %4160 = vmatpush1.bf16.msra.mxu1 %v9598_v62 }
0x295b   :  { %4161 = vmatprep.subr.bf16.mxu1 %v9603_v1 }
0x295e   :  { %4162 = vmatpush1.bf16.msra.mxu1 %v9601_v48 }
0x295f   :  { %4163 = vmatprep.subr.bf16.mxu1 %v9606_v2 }
0x2962   :  { %4164 = vmatpush1.bf16.msra.mxu1 %v9604_v19 }
0x2963   :  { %9210 = vmatprep.subr.mxu1 %v9876_v40 }
0x2a15   :  { %v3849_v20 = vpop.f32.mrf.mxu1 }
0x2a16   :  { %v3850_v27 = vadd.f32 %v3849_v20, %v3765_v11  ;;  %v8379_v20 = vld [vmem:[%s11565_s1 + $0x9] ss:$0 sm:$0xff] }
0x2a17   :  { %v3851_v3 = vpop.f32.mrf.mxu1 }
0x2a18   :  { %v3852_v23 = vadd.f32 %v3851_v3, %v3769_v21  ;;  %v3858_v32 = vmax.f32 %v3850_v27, 0.0 }
0x2a19   :  { %v3853_v37 = vpop.f32.mrf.mxu1 }
0x2a1a   :  { %v3854_v25 = vadd.f32 %v3853_v37, %v3765_v11  ;;  %v3859_v30 = vmax.f32 %v3852_v23, 0.0  ;;  %v8388_v23 = vld [vmem:[%s11567_s3 + $0x2] ss:$4 sm:$0x3] }
0x2a1b   :  { %v3855_v29 = vpop.f32.mrf.mxu1 }
0x2a1c   :  { %v3856_v26 = vadd.f32 %v3855_v29, %v3769_v21  ;;  %v3860_v17 = vmax.f32 %v3854_v25, 0.0  ;;  %v4099_v25 = vrot.slane %v8388_v23, %v10001_v43 }
0x2a1e   :  { %v3861_v31 = vmax.f32 %v3856_v26, 0.0  ;;  %v3862_v22 = vpack.c.bf16 %v3860_v17, %v3858_v32  ;;  %v4103_v17 = vrot.slane %v8388_v23, %v10015_v51 }
0x2a20   :  { %v3863_v0 = vpack.c.bf16 %v3861_v31, %v3859_v30 }
0x2a22   :  { %4030 = vmatprep.mubr.bf16.mxu0 %v3863_v0 }
0x2a23   :  { %4031 = vmatmul.mubr.bf16.vlgmr.msra.gmra.mxu0 %v3862_v22 }
0x2a24   :  { %9217 = vmatprep.mubr.msk.bf16.mxu0 %vm9877_vm1, %v9876_v40 }
0x2ae3   :  { %v8787_v33 = vpop.f32.mrf.mxu0 }
0x2ae5   :  { %v8788_v36 = vpop.f32.mrf.mxu0 }
0x2ae6   :  { %v8789_v34 = vadd.f32 %v8788_v36, %v8787_v33 }
0x2ae7   :  { %v8790_v7 = vpop.f32.mrf.mxu0 }
0x2ae8   :  { %v4033_v39 = vadd.f32 %v8789_v34, %v8361_v35 }
0x2ae9   :  { %v8791_v41 = vpop.f32.mrf.mxu0 }
0x2aea   :  { %v10752_v28 = vadd.f32 %v4033_v39, %v10642_v59  ;;  %v8792_v42 = vadd.f32 %v8791_v41, %v8790_v7 }
0x2aec   :  { %v4036_v44 = vadd.f32 %v8792_v42, %v8361_v35  ;;  %v4045_v45 = vsel %vm54_vm0, %v10752_v28, 0.0 }
0x2aed   :  { %4046 = vadd.xlane.f32.xlu0 %v4045_v45 }
0x2aee   :  { %v10757_v46 = vadd.f32 %v4036_v44, %v10653_v24 }
0x2af0   :  { %v4048_v52 = vsel %vm54_vm0, %v10757_v46, 0.0 }
0x2af1   :  { %4049 = vadd.xlane.f32.xlu0 %v4048_v52 }
0x2b76   :  { %v4047_v63 = vpop.xlane.xlu0 %4046 }
0x2b77   :  { %v4051_v49 = vmul.f32 0.015625, %v4047_v63 }
0x2b79   :  { %v4053_v53 = vsub.f32 %v10752_v28, %v4051_v49 }
0x2b7a   :  { %v4050_v54 = vpop.xlane.xlu0 %4049 }
0x2b7b   :  { %v4052_v59 = vmul.f32 0.015625, %v4050_v54  ;;  %v4055_v55 = vmul.f32 %v4053_v53, %v4053_v53 }
0x2b7d   :  { %v4054_v57 = vsub.f32 %v10757_v46, %v4052_v59  ;;  %v4057_v47 = vsel %vm54_vm0, %v4055_v55, 0.0 }
0x2b7e   :  { %4058 = vadd.xlane.f32.xlu0 %v4057_v47 }
0x2b7f   :  { %v4056_v58 = vmul.f32 %v4054_v57, %v4054_v57 }
0x2b81   :  { %v4060_v24 = vsel %vm54_vm0, %v4056_v58, 0.0 }
0x2b82   :  { %4061 = vadd.xlane.f32.xlu0 %v4060_v24 }
0x2c07   :  { %v4059_v38 = vpop.xlane.xlu0 %4058 }
0x2c08   :  { %v4063_v4 = vmul.f32 0.015625, %v4059_v38 }
0x2c0a   :  { %v4065_v5 = vadd.f32 1e-05, %v4063_v4 }
0x2c0b   :  { %v4062_v6 = vpop.xlane.xlu0 %4061 }
0x2c0c   :  { %9767 = vrsqrt.f32 %v4065_v5  ;;  %v4064_v8 = vmul.f32 0.015625, %v4062_v6 }
0x2c0e   :  { %v4066_v9 = vadd.f32 1e-05, %v4064_v8 }
0x2c10   :  { %9769 = vrsqrt.f32 %v4066_v9  ;;  %v10852_v9 = vld [vmem:[%s11568_s4 + $0x48] sm:$0xff]  }
0x2c19   :  { %v9768_v13 = vpop.eup %9767 }
0x2c1a   :  { %v4069_v50 = vmul.f32 %v9768_v13, %v4053_v53 }
0x2c1c   :  { %v4075_v16 = vmul.f32 %v8378_v12, %v4069_v50 }
0x2c1d   :  { %v9770_v14 = vpop.eup %9769 }
0x2c1e   :  { %v4070_v15 = vmul.f32 %v9770_v14, %v4054_v57  ;;  %v4081_v11 = vadd.f32 %v8379_v20, %v4075_v16 }
0x2c20   :  { %v4076_v21 = vmul.f32 %v8378_v12, %v4070_v15 }
0x2c22   :  { %v4082_v3 = vadd.f32 %v8379_v20, %v4076_v21 }
0x2c24   :  { %v4083_v37 = vpack.c.bf16 %v4082_v3, %v4081_v11  ;;  %v10870_v11 = vld [vmem:[%s11568_s4 + $0x40] sm:$0xff]  }
0x2c26   :  { %8397 = vmatmul.mubr.msk.bf16.vlgmr.msra.gmra.mxu1 %vm54_vm0, %v4083_v37 }
0x2c27   :  { %9212 = vmatprep.mubr.msk.f32.mxu1 %vm9877_vm1, %v9876_v40 }
0x2ce6   :  { %v4183_v27 = vpop.f32.mrf.mxu1 }
0x2ce7   :  { %v10803_v29 = vadd.f32 %v4183_v27, %v4099_v25 }
0x2ce8   :  { %v4185_v26 = vpop.f32.mrf.mxu1 }
0x2ce9   :  { %4342 = vrot.lane.b32.xlu1 %v10803_v29, %s9880_s13  ;;  %4203 = vrot.lane.b32.xlu0 %v10803_v29, %s9878_s29  ;;  %v4186_v0 = vadd.f32 %v4185_v26, %v4103_v17 }
0x2cea   :  { %v4187_v30 = vpop.f32.mrf.mxu1 }
0x2ceb   :  { %v10810_v31 = vadd.f32 %v4187_v30, %v4099_v25 }
0x2cec   :  { %v4189_v32 = vpop.f32.mrf.mxu1 }
0x2ced   :  { %v4190_v22 = vadd.f32 %v4189_v32, %v4103_v17  ;;  %4340 = vrot.lane.b32.xlu0 %v10803_v29, %s9879_s30 }
0x2cef   :  { %v10814_v33 = vpack.c.bf16 %v4190_v22, %v4186_v0 }
0x2cf1   :  { %v4297_v35 = vsel %vm306_vm3, %v10814_v33, 0 }
0x2cf2   :  { %9216 = vmatpush3.bf16.msra.mxu0 %v4297_v35 }
0x2cf3   :  { %9232 = vmatprep.subr.bf16.mxu0 %v9876_v40 }
0x2d5b   :  { %v4204_v36 = vpop.permute.xlu0 %4203  ;;  %v4343_v34 = vpop.permute.xlu1 %4342 }
0x2d5c   :  { %9211 = vmatpush3.xpose.msk.msra.mxu1 %vm213_vm2, %v4204_v36 }
0x2d5d   :  { %9221 = vmatprep.subr.mxu1 %v9876_v40 }
0x2d5f   :  { %9213 = vmatmul.mubr.msk.f32.vlgmr.msra.gmra.mxu1 %vm213_vm2, %v10803_v29  ;;  %v4341_v7 = vpop.permute.xlu0 %4340 }
0x2d60   :  { %9222 = vmatpush3.xpose.msk.msra.mxu1 %vm213_vm2, %v4343_v34  ;;  %9223 = vmatprep.mubr.msk.f32.mxu1 %vm9877_vm1, %v9876_v40 }
0x2d61   :  { %9226 = vmatprep.subr.bf16.mxu1 %v9876_v40 }
0x2d63   :  { %9224 = vmatmul.mubr.msk.f32.vlgmr.msra.gmra.mxu1 %vm213_vm2, %v4341_v7 }
0x2d64   :  { %9228 = vmatprep.mubr.msk.bf16.mxu1 %vm9877_vm1, %v9876_v40 }
0x2e1f   :  { %v4275_v39 = vpop.f32.mrf.mxu1 }
0x2e20   :  { %v4279_v57 = vmul.f32 0.125, %v4275_v39 }
0x2e21   :  { %v9214_v41 = vpop.f32.mrf.mxu1 }
0x2e22   :  { %v4280_v24 = vsel %vm10029_vm4, %v4279_v57, -1e+30 }
0x2e23   :  { %v4414_v42 = vpop.f32.mrf.mxu1  ;;  %v4281_v56 = vsel %vm290_vm5, %v4280_v24, -inf }
0x2e24   :  { %v4418_v44 = vmul.f32 0.125, %v4414_v42 }
0x2e25   :  { %v9225_v45 = vpop.f32.mrf.mxu1 }
0x2e26   :  { %v4419_v52 = vsel %vm10029_vm4, %v4418_v44, -1e+30 }
0x2e27   :  { %v4420_v63 = vsel %vm290_vm5, %v4419_v52, -inf }
0x2e28   :  { %4421 = vmax.xlane.f32.xlu0 %v4420_v63 }
0x2e3e   :  { %4433 = vrot.lane.b32.xlu0 %v10814_v33, %s9879_s30 }
0x2e42   :  { %4580 = vrot.lane.b32.xlu0 %v10803_v29, %s9882_s15 }
0x2eb1   :  { %v4422_v49 = vpop.xlane.xlu0 %4421 }
0x2eb2   :  { %v4423_v53 = vsub.f32 %v4419_v52, %v4422_v49 }
0x2eb4   :  { %v4424_v54 = vmul.f32 1.442695, %v4423_v53 }
0x2eb5   :  { %v4434_v59 = vpop.permute.xlu0 %4433 }
0x2eb6   :  { %9771 = vpow2.f32 %v4424_v54  ;;  %v4439_v55 = vsel %vm306_vm3, %v4434_v59, 0 }
0x2eb7   :  { %9227 = vmatpush3.bf16.msra.mxu1 %v4439_v55 }
0x2eb8   :  { %9238 = vmatprep.subr.bf16.mxu1 %v9876_v40 }
0x2eb9   :  { %v4581_v21 = vpop.permute.xlu0 %4580 }
0x2ec3   :  { %v9772_v47 = vpop.eup %9771 }
0x2ec4   :  { %v4426_v58 = vsel %vm290_vm5, %v9772_v47, 0.0 }
0x2ec5   :  { %4427 = vadd.xlane.f32.xlu1 %v4426_v58 }
0x2ec9   :  { %4282 = vmax.xlane.f32.xlu1 %v4281_v56 }
0x2f4e   :  { %v4428_v10 = vpop.xlane.xlu1 %4427 }
0x2f4f   :  { %9773 = vrcp.f32 %v4428_v10 }
0x2f52   :  { %v4283_v61 = vpop.xlane.xlu1 %4282 }
0x2f53   :  { %v4284_v62 = vsub.f32 %v4280_v24, %v4283_v61 }
0x2f55   :  { %v4285_v1 = vmul.f32 1.442695, %v4284_v62 }
0x2f57   :  { %9775 = vpow2.f32 %v4285_v1 }
0x2f5c   :  { %v9774_v48 = vpop.eup %9773 }
0x2f5d   :  { %v4430_v2 = vmul.f32 %v9774_v48, %v9772_v47 }
0x2f5f   :  { %v4431_v19 = vpack.c.bf16 %v4430_v2, %v4430_v2 }
0x2f61   :  { %9229 = vmatmul.mubr.msk.bf16.vlgmr.msra.gmra.mxu1 %vm290_vm5, %v4431_v19 }
0x2f62   :  { %9240 = vmatprep.mubr.msk.bf16.mxu1 %vm9877_vm1, %v9876_v40  ;;  %9239 = vmatpush3.bf16.msra.mxu1 %v10870_v11 }
0x2f63   :  { %9255 = vmatprep.subr.bf16.mxu1 %v9876_v40 }
0x2f64   :  { %v9776_v38 = vpop.eup %9775 }
0x2f65   :  { %v4287_v4 = vsel %vm290_vm5, %v9776_v38, 0.0 }
0x2f66   :  { %4288 = vadd.xlane.f32.xlu1 %v4287_v4 }
0x2f77   :  { %4582 = vrot.lane.b32.xlu1 %v10803_v29, %s9881_s14 }
0x2fef   :  { %v4289_v5 = vpop.xlane.xlu1 %4288 }
0x2ff0   :  { %9777 = vrcp.f32 %v4289_v5 }
0x2ff3   :  { %v4583_v15 = vpop.permute.xlu1 %4582 }
0x2ffd   :  { %v9778_v6 = vpop.eup %9777 }
0x2ffe   :  { %v4291_v8 = vmul.f32 %v9778_v6, %v9776_v38 }
0x3000   :  { %v4292_v13 = vpack.c.bf16 %v4291_v8, %v4291_v8 }
0x3002   :  { %9218 = vmatmul.mubr.msk.bf16.vlgmr.msra.gmra.mxu0 %vm290_vm5, %v4292_v13 }
0x3003   :  { %9233 = vmatpush3.bf16.msra.mxu0 %v10852_v9  ;;  %9234 = vmatprep.mubr.msk.bf16.mxu0 %vm9877_vm1, %v9876_v40 }
0x3004   :  { %9244 = vmatprep.subr.mxu0 %v9876_v40 }
0x3021   :  { %v4475_v50 = vpop.f32.mrf.mxu1 }
0x3022   :  { %v4481_v12 = vpack.c.bf16 %v4475_v50, %v4475_v50 }
0x3023   :  { %v9230_v14 = vpop.f32.mrf.mxu1 }
0x3024   :  { %9235 = vmatmul.mubr.msk.bf16.vlgmr.msra.gmra.mxu0 %vm213_vm2, %v4481_v12 }
0x3025   :  { %9245 = vmatpush3.xpose.msk.msra.mxu0 %vm213_vm2, %v4583_v15  ;;  %v4478_v16 = vpop.f32.mrf.mxu1  ;;  %9246 = vmatprep.mubr.msk.f32.mxu0 %vm9877_vm1, %v9876_v40 }
0x3026   :  { %9249 = vmatprep.subr.bf16.mxu0 %v9876_v40 }
0x3027   :  { %v9231_v20 = vpop.f32.mrf.mxu1 }
0x302c   :  { %9247 = vmatmul.mubr.msk.f32.vlgmr.msra.gmra.mxu0 %vm213_vm2, %v4581_v21 }
0x302d   :  { %9251 = vmatprep.mubr.msk.bf16.mxu0 %vm9877_vm1, %v9876_v40 }
0x30c2   :  { %v4333_v3 = vpop.f32.mrf.mxu0 }
0x30c3   :  { %v4339_v37 = vpack.c.bf16 %v4333_v3, %v4333_v3 }
0x30c4   :  { %v9219_v23 = vpop.f32.mrf.mxu0 }
0x30c5   :  { %9241 = vmatmul.mubr.msk.bf16.vlgmr.msra.gmra.mxu1 %vm213_vm2, %v4339_v37  ;;  %v10929_v23 = vld [vmem:[%s11568_s4 + $0x58] sm:$0xff]  }
0x30c6   :  { %v4336_v25 = vpop.f32.mrf.mxu0  ;;  %9257 = vmatprep.mubr.msk.bf16.mxu1 %vm9877_vm1, %v9876_v40 }
0x30c8   :  { %v9220_v27 = vpop.f32.mrf.mxu0 }
0x30e4   :  { %v10877_v26 = vpop.f32.mrf.mxu0 }
0x30e6   :  { %v9236_v17 = vpop.f32.mrf.mxu0 }
0x30e8   :  { %v4528_v30 = vpop.f32.mrf.mxu0 }
0x30ea   :  { %v9237_v32 = vpop.f32.mrf.mxu0 }
0x30ec   :  { %v4654_v0 = vpop.f32.mrf.mxu0 }
0x30ed   :  { %v4658_v22 = vmul.f32 0.125, %v4654_v0 }
0x30ee   :  { %v9248_v35 = vpop.f32.mrf.mxu0 }
0x30ef   :  { %v4659_v36 = vsel %vm10029_vm4, %v4658_v22, -1e+30  ;;  %v10948_v22 = vrot.slane %v10814_v33, 4 }
0x30f0   :  { %v4660_v34 = vsel %vm290_vm5, %v4659_v36, -inf }
0x30f1   :  { %4661 = vmax.xlane.f32.xlu0 %v4660_v34 }
0x3107   :  { %4672 = vrot.lane.b32.xlu0 %v10814_v33, %s9882_s15 }
0x310b   :  { %4771 = vrot.lane.b32.xlu0 %v10803_v29, %s9883_s20 }
0x317a   :  { %v4662_v7 = vpop.xlane.xlu0 %4661 }
0x317b   :  { %v4663_v39 = vsub.f32 %v4659_v36, %v4662_v7  ;;  %v5058_v7 = vsel %vm306_vm3, %v10948_v22, 0 }
0x317d   :  { %v4664_v41 = vmul.f32 1.442695, %v4663_v39 }
0x317e   :  { %v4673_v42 = vpop.permute.xlu0 %4672 }
0x317f   :  { %9779 = vpow2.f32 %v4664_v41  ;;  %v4678_v44 = vsel %vm306_vm3, %v4673_v42, 0 }
0x3180   :  { %9250 = vmatpush3.bf16.msra.mxu0 %v4678_v44 }
0x3181   :  { %9261 = vmatprep.subr.mxu0 %v9876_v40 }
0x3182   :  { %v4772_v24 = vpop.permute.xlu0 %4771 }
0x3185   :  { %v4574_v45 = vpop.f32.mrf.mxu1 }
0x3186   :  { %v4575_v15 = vadd.f32 %v4574_v45, %v10877_v26 }
0x3187   :  { %v9242_v52 = vpop.f32.mrf.mxu1 }
0x3189   :  { %v4577_v63 = vpop.f32.mrf.mxu1 }
0x318b   :  { %v9243_v49 = vpop.f32.mrf.mxu1 }
0x318c   :  { %v9780_v53 = vpop.eup %9779 }
0x318d   :  { %v4666_v54 = vsel %vm290_vm5, %v9780_v53, 0.0 }
0x318e   :  { %4667 = vadd.xlane.f32.xlu1 %v4666_v54 }
0x319f   :  { %4773 = vrot.lane.b32.xlu1 %v10803_v29, %s9884_s21  ;;  %v10902_v29 = vld [vmem:[%s11568_s4 + $0x50] sm:$0xff]  }
0x31a0   :  { %9256 = vmatpush3.bf16.msra.mxu1 %v10902_v29 }
0x31a1   :  { %9266 = vmatprep.subr.bf16.mxu1 %v9876_v40 }
0x3217   :  { %v4668_v59 = vpop.xlane.xlu1 %4667 }
0x3218   :  { %9781 = vrcp.f32 %v4668_v59 }
0x321b   :  { %v4774_v58 = vpop.permute.xlu1 %4773 }
0x3225   :  { %v9782_v55 = vpop.eup %9781 }
0x3226   :  { %v4670_v57 = vmul.f32 %v9782_v55, %v9780_v53 }
0x3228   :  { %v4671_v47 = vpack.c.bf16 %v4670_v57, %v4670_v57 }
0x322a   :  { %9252 = vmatmul.mubr.msk.bf16.vlgmr.msra.gmra.mxu0 %vm290_vm5, %v4671_v47 }
0x322b   :  { %9262 = vmatpush3.xpose.msk.msra.mxu0 %vm213_vm2, %v4774_v58  ;;  %9263 = vmatprep.mubr.msk.f32.mxu0 %vm9877_vm1, %v9876_v40 }
0x322c   :  { %9272 = vmatprep.subr.bf16.mxu0 %v9876_v40 }
0x3232   :  { %9264 = vmatmul.mubr.msk.f32.vlgmr.msra.gmra.mxu0 %vm213_vm2, %v4772_v24 }
0x3233   :  { %9274 = vmatprep.mubr.msk.bf16.mxu0 %vm9877_vm1, %v9876_v40  ;;  %9273 = vmatpush3.bf16.msra.mxu0 %v10929_v23 }
0x3234   :  { %9283 = vmatprep.subr.bf16.mxu0 %v9876_v40 }
0x32ea   :  { %v4714_v56 = vpop.f32.mrf.mxu0 }
0x32eb   :  { %v4720_v10 = vpack.c.bf16 %v4714_v56, %v4714_v56 }
0x32ec   :  { %v9253_v61 = vpop.f32.mrf.mxu0 }
0x32ed   :  { %9258 = vmatmul.mubr.msk.bf16.vlgmr.msra.gmra.mxu1 %vm213_vm2, %v4720_v10 }
0x32ee   :  { %v4717_v62 = vpop.f32.mrf.mxu0  ;;  %9268 = vmatprep.mubr.msk.bf16.mxu1 %vm9877_vm1, %v9876_v40 }
0x32f0   :  { %v9254_v1 = vpop.f32.mrf.mxu0 }
0x32f2   :  { %v4845_v48 = vpop.f32.mrf.mxu0 }
0x32f3   :  { %v4849_v2 = vmul.f32 0.125, %v4845_v48 }
0x32f4   :  { %v9265_v19 = vpop.f32.mrf.mxu0 }
0x32f5   :  { %v4850_v38 = vsel %vm10029_vm4, %v4849_v2, -1e+30 }
0x32f6   :  { %v4851_v4 = vsel %vm290_vm5, %v4850_v38, -inf }
0x32f7   :  { %4852 = vmax.xlane.f32.xlu0 %v4851_v4 }
0x330d   :  { %4863 = vrot.lane.b32.xlu0 %v10814_v33, %s9883_s20 }
0x3311   :  { %5103 = vrot.lane.b32.xlu0 %v10810_v31, %s9880_s13 }
0x3315   :  { %5101 = vrot.lane.b32.xlu0 %v10810_v31, %s9879_s30 }
0x3380   :  { %v4853_v5 = vpop.xlane.xlu0 %4852 }
0x3381   :  { %v4854_v6 = vsub.f32 %v4850_v38, %v4853_v5 }
0x3383   :  { %v4855_v8 = vmul.f32 1.442695, %v4854_v6 }
0x3384   :  { %v4864_v13 = vpop.permute.xlu0 %4863 }
0x3385   :  { %9783 = vpow2.f32 %v4855_v8  ;;  %v4869_v50 = vsel %vm306_vm3, %v4864_v13, 0 }
0x3386   :  { %9267 = vmatpush3.bf16.msra.mxu1 %v4869_v50 }
0x3387   :  { %9278 = vmatprep.subr.mxu1 %v9876_v40 }
0x3388   :  { %v5104_v32 = vpop.permute.xlu0 %5103 }
0x338c   :  { %v5102_v0 = vpop.permute.xlu0 %5101 }
0x3392   :  { %v9784_v12 = vpop.eup %9783 }
0x3393   :  { %v4857_v14 = vsel %vm290_vm5, %v9784_v12, 0.0 }
0x3394   :  { %4858 = vadd.xlane.f32.xlu1 %v4857_v14 }
0x33a5   :  { %4963 = vrot.lane.b32.xlu1 %v10810_v31, %s9878_s29 }
0x33ad   :  { %v4764_v16 = vpop.f32.mrf.mxu1 }
0x33ae   :  { %v10924_v20 = vadd.f32 %v4764_v16, %v4575_v15 }
0x33af   :  { %v9259_v21 = vpop.f32.mrf.mxu1 }
0x33b1   :  { %v4767_v3 = vpop.f32.mrf.mxu1 }
0x33b3   :  { %v9260_v37 = vpop.f32.mrf.mxu1 }
0x341d   :  { %v4859_v25 = vpop.xlane.xlu1 %4858 }
0x341e   :  { %9785 = vrcp.f32 %v4859_v25 }
0x3421   :  { %v4964_v30 = vpop.permute.xlu1 %4963 }
0x342b   :  { %v9786_v27 = vpop.eup %9785 }
0x342c   :  { %v4861_v17 = vmul.f32 %v9786_v27, %v9784_v12 }
0x342e   :  { %v4862_v26 = vpack.c.bf16 %v4861_v17, %v4861_v17 }
0x3430   :  { %9269 = vmatmul.mubr.msk.bf16.vlgmr.msra.gmra.mxu1 %vm290_vm5, %v4862_v26 }
0x3431   :  { %9279 = vmatpush3.xpose.msk.msra.mxu1 %vm213_vm2, %v4964_v30  ;;  %9280 = vmatprep.mubr.msk.f32.mxu1 %vm9877_vm1, %v9876_v40 }
0x3432   :  { %9289 = vmatprep.subr.mxu1 %v9876_v40 }
0x3438   :  { %9281 = vmatmul.mubr.msk.f32.vlgmr.msra.gmra.mxu1 %vm213_vm2, %v10810_v31 }
0x3439   :  { %9290 = vmatpush3.xpose.msk.msra.mxu1 %vm213_vm2, %v5104_v32  ;;  %9291 = vmatprep.mubr.msk.f32.mxu1 %vm9877_vm1, %v9876_v40 }
0x343a   :  { %9294 = vmatprep.subr.bf16.mxu1 %v9876_v40 }
0x343c   :  { %9292 = vmatmul.mubr.msk.f32.vlgmr.msra.gmra.mxu1 %vm213_vm2, %v5102_v0 }
0x343d   :  { %9296 = vmatprep.mubr.msk.bf16.mxu1 %vm9877_vm1, %v9876_v40 }
0x34f0   :  { %v4905_v35 = vpop.f32.mrf.mxu1 }
0x34f1   :  { %v4911_v36 = vpack.c.bf16 %v4905_v35, %v4905_v35 }
0x34f2   :  { %v9270_v34 = vpop.f32.mrf.mxu1 }
0x34f3   :  { %9275 = vmatmul.mubr.msk.bf16.vlgmr.msra.gmra.mxu0 %vm213_vm2, %v4911_v36 }
0x34f4   :  { %9284 = vmatpush3.bf16.msra.mxu0 %v5058_v7  ;;  %v4908_v39 = vpop.f32.mrf.mxu1  ;;  %9285 = vmatprep.mubr.msk.bf16.mxu0 %vm9877_vm1, %v9876_v40 }
0x34f5   :  { %9300 = vmatprep.subr.bf16.mxu0 %v9876_v40 }
0x34f6   :  { %v9271_v41 = vpop.f32.mrf.mxu1 }
0x34f8   :  { %v5035_v42 = vpop.f32.mrf.mxu1 }
0x34f9   :  { %v5039_v45 = vmul.f32 0.125, %v5035_v42 }
0x34fa   :  { %v9282_v44 = vpop.f32.mrf.mxu1 }
0x34fb   :  { %v5040_v54 = vsel %vm10029_vm4, %v5039_v45, -1e+30 }
0x34fc   :  { %v5175_v33 = vpop.f32.mrf.mxu1  ;;  %v5041_v59 = vsel %vm290_vm5, %v5040_v54, -inf }
0x34fd   :  { %v5179_v52 = vmul.f32 0.125, %v5175_v33 }
0x34fe   :  { %v9293_v63 = vpop.f32.mrf.mxu1 }
0x34ff   :  { %v5180_v49 = vsel %vm10029_vm4, %v5179_v52, -1e+30 }
0x3500   :  { %v5181_v53 = vsel %vm290_vm5, %v5180_v49, -inf }
0x3501   :  { %5182 = vmax.xlane.f32.xlu1 %v5181_v53 }
0x3505   :  { %5042 = vmax.xlane.f32.xlu1 %v5041_v59 }
0x358a   :  { %v5183_v55 = vpop.xlane.xlu1 %5182 }
0x358b   :  { %v5184_v57 = vsub.f32 %v5180_v49, %v5183_v55 }
0x358d   :  { %v5185_v47 = vmul.f32 1.442695, %v5184_v57 }
0x358e   :  { %v5043_v58 = vpop.xlane.xlu1 %5042 }
0x358f   :  { %9787 = vpow2.f32 %v5185_v47  ;;  %v5044_v24 = vsub.f32 %v5040_v54, %v5043_v58 }
0x3591   :  { %v5045_v56 = vmul.f32 1.442695, %v5044_v24 }
0x3593   :  { %9789 = vpow2.f32 %v5045_v56 }
0x359c   :  { %v9788_v10 = vpop.eup %9787 }
0x359d   :  { %v5187_v61 = vsel %vm290_vm5, %v9788_v10, 0.0 }
0x359e   :  { %5188 = vadd.xlane.f32.xlu0 %v5187_v61 }
0x35a0   :  { %v9790_v62 = vpop.eup %9789 }
0x35a1   :  { %v5047_v1 = vsel %vm290_vm5, %v9790_v62, 0.0 }
0x35a2   :  { %5048 = vadd.xlane.f32.xlu1 %v5047_v1 }
0x35b3   :  { %v4955_v48 = vpop.f32.mrf.mxu0  ;;  %5330 = vrot.lane.b32.xlu1 %v10810_v31, %s9881_s14 }
0x35b4   :  { %v10967_v2 = vadd.f32 %v4955_v48, %v10924_v20  ;;  %5193 = vrot.lane.b32.xlu0 %v10948_v22, %s9879_s30 }
0x35b5   :  { %v9276_v19 = vpop.f32.mrf.mxu0 }
0x35b7   :  { %v4958_v38 = vpop.f32.mrf.mxu0 }
0x35b8   :  { %5328 = vrot.lane.b32.xlu0 %v10810_v31, %s9882_s15 }
0x35b9   :  { %v9277_v4 = vpop.f32.mrf.mxu0 }
0x3627   :  { %v5189_v5 = vpop.xlane.xlu0 %5188 }
0x3628   :  { %9791 = vrcp.f32 %v5189_v5  ;;  %v5698_v5 = vadd.f32 %v10967_v2, %v10752_v28 }
0x362b   :  { %v5194_v6 = vpop.permute.xlu0 %5193  ;;  %v5049_v8 = vpop.xlane.xlu1 %5048 }
0x362c   :  { %v5199_v13 = vsel %vm306_vm3, %v5194_v6, 0  ;;  %9793 = vrcp.f32 %v5049_v8 }
0x362d   :  { %9295 = vmatpush3.bf16.msra.mxu1 %v5199_v13 }
0x362e   :  { %9306 = vmatprep.subr.bf16.mxu1 %v9876_v40 }
0x362f   :  { %v5331_v25 = vpop.permute.xlu1 %5330  ;;  %v5329_v32 = vpop.permute.xlu0 %5328 }
0x3635   :  { %v9792_v50 = vpop.eup %9791 }
0x3636   :  { %v5191_v12 = vmul.f32 %v9792_v50, %v9788_v10 }
0x3638   :  { %v5192_v14 = vpack.c.bf16 %v5191_v12, %v5191_v12 }
0x3639   :  { %v9794_v15 = vpop.eup %9793 }
0x363a   :  { %9297 = vmatmul.mubr.msk.bf16.vlgmr.msra.gmra.mxu1 %vm290_vm5, %v5192_v14  ;;  %v5051_v16 = vmul.f32 %v9794_v15, %v9790_v62 }
0x363b   :  { %9307 = vmatpush3.bf16.msra.mxu1 %v10870_v11  ;;  %9308 = vmatprep.mubr.msk.bf16.mxu1 %vm9877_vm1, %v9876_v40 }
0x363c   :  { %v5052_v20 = vpack.c.bf16 %v5051_v16, %v5051_v16  ;;  %9323 = vmatprep.subr.bf16.mxu1 %v9876_v40 }
0x363e   :  { %9286 = vmatmul.mubr.msk.bf16.vlgmr.msra.gmra.mxu0 %vm290_vm5, %v5052_v20 }
0x363f   :  { %9301 = vmatpush3.bf16.msra.mxu0 %v10852_v9  ;;  %9302 = vmatprep.mubr.msk.bf16.mxu0 %vm9877_vm1, %v9876_v40 }
0x3640   :  { %9312 = vmatprep.subr.mxu0 %v9876_v40 }
0x36fa   :  { %v5235_v21 = vpop.f32.mrf.mxu1 }
0x36fb   :  { %v5241_v3 = vpack.c.bf16 %v5235_v21, %v5235_v21 }
0x36fc   :  { %v9298_v37 = vpop.f32.mrf.mxu1 }
0x36fd   :  { %9303 = vmatmul.mubr.msk.bf16.vlgmr.msra.gmra.mxu0 %vm213_vm2, %v5241_v3 }
0x36fe   :  { %9313 = vmatpush3.xpose.msk.msra.mxu0 %vm213_vm2, %v5331_v25  ;;  %v5094_v11 = vpop.f32.mrf.mxu0  ;;  %v5238_v27 = vpop.f32.mrf.mxu1  ;;  %9314 = vmatprep.mubr.msk.f32.mxu0 %vm9877_vm1, %v9876_v40 }
0x36ff   :  { %v5100_v17 = vpack.c.bf16 %v5094_v11, %v5094_v11  ;;  %9317 = vmatprep.subr.bf16.mxu0 %v9876_v40 }
0x3700   :  { %v9287_v9 = vpop.f32.mrf.mxu0  ;;  %v9299_v26 = vpop.f32.mrf.mxu1 }
0x3701   :  { %9309 = vmatmul.mubr.msk.bf16.vlgmr.msra.gmra.mxu1 %vm213_vm2, %v5100_v17 }
0x3702   :  { %v5097_v30 = vpop.f32.mrf.mxu0  ;;  %9324 = vmatpush3.bf16.msra.mxu1 %v10902_v29  ;;  %9325 = vmatprep.mubr.msk.bf16.mxu1 %vm9877_vm1, %v9876_v40 }
0x3703   :  { %9334 = vmatprep.subr.bf16.mxu1 %v9876_v40 }
0x3704   :  { %v9288_v0 = vpop.f32.mrf.mxu0 }
0x3705   :  { %9315 = vmatmul.mubr.msk.f32.vlgmr.msra.gmra.mxu0 %vm213_vm2, %v5329_v32 }
0x3706   :  { %9319 = vmatprep.mubr.msk.bf16.mxu0 %vm9877_vm1, %v9876_v40 }
0x37bd   :  { %v5279_v35 = vpop.f32.mrf.mxu0 }
0x37bf   :  { %v9304_v36 = vpop.f32.mrf.mxu0 }
0x37c1   :  { %v5282_v34 = vpop.f32.mrf.mxu0  ;;  %v5322_v7 = vpop.f32.mrf.mxu1 }
0x37c2   :  { %v10998_v39 = vadd.f32 %v5322_v7, %v5279_v35 }
0x37c3   :  { %v9305_v41 = vpop.f32.mrf.mxu0  ;;  %v9310_v29 = vpop.f32.mrf.mxu1 }
0x37c5   :  { %v5325_v42 = vpop.f32.mrf.mxu1  ;;  %v5402_v44 = vpop.f32.mrf.mxu0 }
0x37c6   :  { %v5406_v33 = vmul.f32 0.125, %v5402_v44 }
0x37c7   :  { %v9311_v45 = vpop.f32.mrf.mxu1  ;;  %v9316_v52 = vpop.f32.mrf.mxu0 }
0x37c8   :  { %v5407_v63 = vsel %vm10029_vm4, %v5406_v33, -1e+30 }
0x37c9   :  { %v5408_v49 = vsel %vm290_vm5, %v5407_v63, -inf }
0x37ca   :  { %5409 = vmax.xlane.f32.xlu0 %v5408_v49 }
0x37e0   :  { %5420 = vrot.lane.b32.xlu0 %v10948_v22, %s9882_s15 }
0x37e4   :  { %5513 = vrot.lane.b32.xlu0 %v10810_v31, %s9883_s20 }
0x3853   :  { %v5410_v53 = vpop.xlane.xlu0 %5409 }
0x3854   :  { %v5411_v54 = vsub.f32 %v5407_v63, %v5410_v53 }
0x3856   :  { %v5412_v59 = vmul.f32 1.442695, %v5411_v54 }
0x3857   :  { %v5421_v55 = vpop.permute.xlu0 %5420 }
0x3858   :  { %9795 = vpow2.f32 %v5412_v59  ;;  %v5426_v57 = vsel %vm306_vm3, %v5421_v55, 0 }
0x3859   :  { %9318 = vmatpush3.bf16.msra.mxu0 %v5426_v57 }
0x385a   :  { %9329 = vmatprep.subr.mxu0 %v9876_v40 }
0x385b   :  { %v5514_v1 = vpop.permute.xlu0 %5513 }
0x3865   :  { %v9796_v47 = vpop.eup %9795 }
0x3866   :  { %v5414_v58 = vsel %vm290_vm5, %v9796_v47, 0.0 }
0x3867   :  { %5415 = vadd.xlane.f32.xlu1 %v5414_v58 }
0x3878   :  { %5515 = vrot.lane.b32.xlu1 %v10810_v31, %s9884_s21 }
0x38f0   :  { %v5416_v24 = vpop.xlane.xlu1 %5415 }
0x38f1   :  { %9797 = vrcp.f32 %v5416_v24 }
0x38f4   :  { %v5516_v62 = vpop.permute.xlu1 %5515 }
0x38fe   :  { %v9798_v56 = vpop.eup %9797 }
0x38ff   :  { %v5418_v10 = vmul.f32 %v9798_v56, %v9796_v47  ;;  %v9611_v56 = vld [vmem:[%s11570_s6 + $0xb0] ss:$8 sps:$4 sm:$0xff]  }
0x3901   :  { %v5419_v61 = vpack.c.bf16 %v5418_v10, %v5418_v10  ;;  %v9616_v10 = vld [vmem:[%s11570_s6 + $0xa4] ss:$8 sps:$4 sm:$0xff]  }
0x3903   :  { %9320 = vmatmul.mubr.msk.bf16.vlgmr.msra.gmra.mxu0 %vm290_vm5, %v5419_v61  ;;  %v9614_v61 = vld [vmem:[%s11570_s6 + $0xa0] ss:$8 sps:$4 sm:$0xff]  }
0x3904   :  { %9330 = vmatpush3.xpose.msk.msra.mxu0 %vm213_vm2, %v5516_v62  ;;  %9331 = vmatprep.mubr.msk.f32.mxu0 %vm9877_vm1, %v9876_v40  ;;  %v9619_v62 = vld [vmem:[%s11570_s6 + $0x94] ss:$8 sps:$4 sm:$0xff]  }
0x3905   :  { %9340 = vmatprep.subr.bf16.mxu0 %v9876_v40 }
0x390b   :  { %9332 = vmatmul.mubr.msk.f32.vlgmr.msra.gmra.mxu0 %vm213_vm2, %v5514_v1  ;;  %v9617_v1 = vld [vmem:[%s11570_s6 + $0x90] ss:$8 sps:$4 sm:$0xff]  }
0x390c   :  { %9341 = vmatpush3.bf16.msra.mxu0 %v10929_v23  ;;  %9342 = vmatprep.mubr.msk.bf16.mxu0 %vm9877_vm1, %v9876_v40  ;;  %v8442_v23 = vld [vmem:[%s11569_s5 + $0x2] ss:$0 sm:$0xff] }
0x390d   :  { %v11031_v12 = vadd.f32 %v8442_v23, %v5698_v5  ;;  %v9626_v5 = vld [vmem:[%s11572_s8 + $0x130] sm:$0xff]  }
0x390f   :  { %v5707_v15 = vsel %vm54_vm0, %v11031_v12, 0.0 }
0x39c3   :  { %v5462_v31 = vpop.f32.mrf.mxu0 }
0x39c4   :  { %v5468_v48 = vpack.c.bf16 %v5462_v31, %v5462_v31  ;;  %v9620_v31 = vld [vmem:[%s11570_s6 + $0x80] ss:$8 sps:$4 sm:$0xff]  }
0x39c5   :  { %v9321_v19 = vpop.f32.mrf.mxu0 }
0x39c6   :  { %9326 = vmatmul.mubr.msk.bf16.vlgmr.msra.gmra.mxu1 %vm213_vm2, %v5468_v48  ;;  %v9622_v48 = vld [vmem:[%s11570_s6 + $0x84] ss:$8 sps:$4 sm:$0xff]   ;;  %v9623_v19 = vld [vmem:[%s11572_s8 + $0x178] sm:$0xff]  }
0x39c7   :  { %v5465_v38 = vpop.f32.mrf.mxu0  ;;  %9336 = vmatprep.mubr.msk.bf16.mxu1 %vm9877_vm1, %v9876_v40  ;;  %8841 = vmatprep.subr.bf16.mxu0 %v9623_v19 }
0x39c8   :  { %v9624_v38 = vld [vmem:[%s11572_s8 + $0x138] sm:$0xff]  }
0x39c9   :  { %v9322_v4 = vpop.f32.mrf.mxu0 }
0x39ca   :  { %v9625_v4 = vld [vmem:[%s11572_s8 + $0x170] sm:$0xff]  }
0x39cb   :  { %v5587_v6 = vpop.f32.mrf.mxu0 }
0x39cc   :  { %v5591_v8 = vmul.f32 0.125, %v5587_v6  ;;  %v9627_v6 = vld [vmem:[%s11572_s8 + $0x168] sm:$0xff]  }
0x39cd   :  { %v9333_v13 = vpop.f32.mrf.mxu0 }
0x39ce   :  { %v5592_v50 = vsel %vm10029_vm4, %v5591_v8, -1e+30  ;;  %v9629_v8 = vld [vmem:[%s11572_s8 + $0x160] sm:$0xff]  }
0x39cf   :  { %v5593_v14 = vsel %vm290_vm5, %v5592_v50, -inf  ;;  %v9630_v13 = vld [vmem:[%s11572_s8 + $0x120] sm:$0xff]  }
0x39d0   :  { %5594 = vmax.xlane.f32.xlu1 %v5593_v14  ;;  %v9632_v14 = vld [vmem:[%s11572_s8 + $0x118] sm:$0xff]  }
0x39d4   :  { %5708 = vadd.xlane.f32.xlu1 %v5707_v15 }
0x3a59   :  { %v5595_v28 = vpop.xlane.xlu1 %5594 }
0x3a5a   :  { %v5596_v2 = vsub.f32 %v5592_v50, %v5595_v28  ;;  %v9631_v50 = vld [vmem:[%s11572_s8 + $0x158] sm:$0xff]  }
0x3a5c   :  { %v5597_v16 = vmul.f32 1.442695, %v5596_v2 }
0x3a5e   :  { %9799 = vpow2.f32 %v5597_v16 }
0x3a6b   :  { %v9800_v20 = vpop.eup %9799 }
0x3a6c   :  { %v5599_v21 = vsel %vm290_vm5, %v9800_v20, 0.0 }
0x3a6d   :  { %5600 = vadd.xlane.f32.xlu0 %v5599_v21 }
0x3a83   :  { %5605 = vrot.lane.b32.xlu0 %v10948_v22, %s9883_s20 }
0x3a86   :  { %v5506_v3 = vpop.f32.mrf.mxu1 }
0x3a87   :  { %v5512_v37 = vadd.f32 %v5506_v3, %v10998_v39  ;;  %v5709_v39 = vpop.xlane.xlu1 %5708 }
0x3a88   :  { %v9327_v25 = vpop.f32.mrf.mxu1  ;;  %v5713_v41 = vmul.f32 0.015625, %v5709_v39  ;;  %v9638_v39 = vld [vmem:[%s11572_s8 + $0x100] sm:$0xff]  }
0x3a89   :  { %v8443_v25 = vld [vmem:[%s11565_s1 + $0xa] ss:$0 sm:$0xff] }
0x3a8a   :  { %v5509_v11 = vpop.f32.mrf.mxu1  ;;  %v5715_v33 = vsub.f32 %v11031_v12, %v5713_v41  ;;  %v8453_v41 = vld [vmem:[%s11571_s7 + $0x2] ss:$4 sm:$0x3] }
0x3a8c   :  { %v9328_v27 = vpop.f32.mrf.mxu1  ;;  %v5717_v54 = vmul.f32 %v5715_v33, %v5715_v33 }
0x3a8e   :  { %v5719_v59 = vsel %vm54_vm0, %v5717_v54, 0.0 }
0x3af6   :  { %v5601_v17 = vpop.xlane.xlu0 %5600 }
0x3af7   :  { %9801 = vrcp.f32 %v5601_v17 }
0x3afa   :  { %v5606_v9 = vpop.permute.xlu0 %5605 }
0x3afb   :  { %v5611_v26 = vsel %vm306_vm3, %v5606_v9, 0  ;;  %v8444_v9 = vld [vmem:[%s11565_s1 + $0xb] ss:$0 sm:$0xff] }
0x3afc   :  { %9335 = vmatpush3.bf16.msra.mxu1 %v5611_v26 }
0x3b04   :  { %v9802_v30 = vpop.eup %9801 }
0x3b05   :  { %v5603_v32 = vmul.f32 %v9802_v30, %v9800_v20 }
0x3b07   :  { %v5604_v0 = vpack.c.bf16 %v5603_v32, %v5603_v32 }
0x3b09   :  { %9337 = vmatmul.mubr.msk.bf16.vlgmr.msra.gmra.mxu1 %vm290_vm5, %v5604_v0 }
0x3b0a   :  { %5843 = vmatprep.mubr.bf16.mxu1 %v9875_v18 }
0x3bc9   :  { %v5647_v22 = vpop.f32.mrf.mxu1 }
0x3bca   :  { %v5653_v35 = vpack.c.bf16 %v5647_v22, %v5647_v22  ;;  %v9633_v22 = vld [vmem:[%s11572_s8 + $0x150] sm:$0xff]  }
0x3bcb   :  { %v9338_v36 = vpop.f32.mrf.mxu1 }
0x3bcc   :  { %9343 = vmatmul.mubr.msk.bf16.vlgmr.msra.gmra.mxu0 %vm213_vm2, %v5653_v35  ;;  %v9634_v35 = vld [vmem:[%s11572_s8 + $0x110] sm:$0xff]   ;;  %v9635_v36 = vld [vmem:[%s11572_s8 + $0x148] sm:$0xff]  }
0x3bcd   :  { %v5650_v34 = vpop.f32.mrf.mxu1  ;;  %8842 = vmatpush3.bf16.msra.mxu0 %v9624_v38 }
0x3bce   :  { %8843 = vmatprep.subr.bf16.mxu0 %v9625_v4  ;;  %v9636_v34 = vld [vmem:[%s11572_s8 + $0x108] sm:$0xff]  }
0x3bcf   :  { %v9339_v7 = vpop.f32.mrf.mxu1 }
0x3bd0   :  { %v9637_v7 = vld [vmem:[%s11572_s8 + $0x140] sm:$0xff]  }
0x3bd1   :  { %8844 = vmatpush3.bf16.msra.mxu0 %v9626_v5 }
0x3bd2   :  { %8845 = vmatprep.subr.bf16.mxu0 %v9627_v6 }
0x3c8c   :  { %v5691_v29 = vpop.f32.mrf.mxu0 }
0x3c8d   :  { %v5697_v42 = vadd.f32 %v5691_v29, %v5512_v37 }
0x3c8e   :  { %v9344_v44 = vpop.f32.mrf.mxu0 }
0x3c8f   :  { %v5699_v45 = vadd.f32 %v5697_v42, %v10757_v46  ;;  %v9613_v46 = vld [vmem:[%s11570_s6 + $0xb4] ss:$8 sps:$4 sm:$0xff]   ;;  %v5765_v42 = vrot.slane %v8453_v41, %v10015_v51  ;;  %v5761_v44 = vrot.slane %v8453_v41, %v10001_v43 }
0x3c90   :  { %v5694_v52 = vpop.f32.mrf.mxu0  ;;  %5819 = vmatprep.subr.bf16.mxu1 %v9613_v46 }
0x3c91   :  { %v11046_v63 = vadd.f32 %v8442_v23, %v5699_v45  ;;  %5820 = vmatpush1.bf16.msra.mxu1 %v9611_v56  ;;  %v9628_v23 = vld [vmem:[%s11572_s8 + $0x128] sm:$0xff]  }
0x3c92   :  { %v9345_v49 = vpop.f32.mrf.mxu0  ;;  %5821 = vmatprep.subr.bf16.mxu1 %v9616_v10  ;;  %8846 = vmatpush3.bf16.msra.mxu0 %v9628_v23  ;;  %v8495_v10 = vld [vmem:[%s11573_s9 + $0x2] ss:$0 sm:$0xff] }
0x3c93   :  { %v5710_v53 = vsel %vm54_vm0, %v11046_v63, 0.0  ;;  %8847 = vmatprep.subr.bf16.mxu0 %v9629_v8 }
0x3c94   :  { %5711 = vadd.xlane.f32.xlu1 %v5710_v53 }
0x3c95   :  { %5822 = vmatpush1.bf16.msra.mxu1 %v9614_v61 }
0x3c96   :  { %5823 = vmatprep.subr.bf16.mxu1 %v9619_v62  ;;  %8848 = vmatpush3.bf16.msra.mxu0 %v9630_v13 }
0x3c97   :  { %8849 = vmatprep.subr.bf16.mxu0 %v9631_v50 }
0x3c98   :  { %5720 = vadd.xlane.f32.xlu1 %v5719_v59 }
0x3c99   :  { %5824 = vmatpush1.bf16.msra.mxu1 %v9617_v1 }
0x3c9a   :  { %5825 = vmatprep.subr.bf16.mxu1 %v9622_v48  ;;  %8850 = vmatpush3.bf16.msra.mxu0 %v9632_v14 }
0x3c9b   :  { %8851 = vmatprep.subr.bf16.mxu0 %v9633_v22 }
0x3c9d   :  { %5826 = vmatpush1.bf16.msra.mxu1 %v9620_v31 }
0x3c9e   :  { %8852 = vmatpush3.bf16.msra.mxu0 %v9634_v35 }
0x3c9f   :  { %8853 = vmatprep.subr.bf16.mxu0 %v9635_v36 }
0x3ca2   :  { %8854 = vmatpush3.bf16.msra.mxu0 %v9636_v34  ;;  %v8512_v34 = vld [vmem:[%s11565_s1 + $0xc] ss:$0 sm:$0xff] }
0x3ca3   :  { %8855 = vmatprep.subr.bf16.mxu0 %v9637_v7 }
0x3ca6   :  { %8856 = vmatpush3.bf16.msra.mxu0 %v9638_v39 }
0x3ca7   :  { %9351 = vmatprep.subr.bf16.mxu0 %v9876_v40 }
0x3d1d   :  { %v5712_v55 = vpop.xlane.xlu1 %5711 }
0x3d1e   :  { %v5714_v57 = vmul.f32 0.015625, %v5712_v55 }
0x3d20   :  { %v5716_v47 = vsub.f32 %v11046_v63, %v5714_v57 }
0x3d21   :  { %v5721_v15 = vpop.xlane.xlu1 %5720 }
0x3d22   :  { %v5718_v58 = vmul.f32 %v5716_v47, %v5716_v47  ;;  %v5725_v28 = vmul.f32 0.015625, %v5721_v15 }
0x3d24   :  { %v5722_v24 = vsel %vm54_vm0, %v5718_v58, 0.0  ;;  %v5727_v2 = vadd.f32 1e-05, %v5725_v28 }
0x3d25   :  { %5723 = vadd.xlane.f32.xlu1 %v5722_v24 }
0x3d26   :  { %9803 = vrsqrt.f32 %v5727_v2 }
0x3d33   :  { %v9804_v3 = vpop.eup %9803 }
0x3d34   :  { %v5731_v37 = vmul.f32 %v9804_v3, %v5715_v33  ;;  %v9644_v3 = vld [vmem:[%s11566_s2 + $0xe4] ss:$8 sps:$4 sm:$0xff]  }
0x3d36   :  { %v5737_v27 = vmul.f32 %v8443_v25, %v5731_v37  ;;  %v9642_v37 = vld [vmem:[%s11566_s2 + $0xe0] ss:$8 sps:$4 sm:$0xff]  }
0x3d38   :  { %v5743_v30 = vadd.f32 %v8444_v9, %v5737_v27  ;;  %v9648_v27 = vld [vmem:[%s11566_s2 + $0xc0] ss:$8 sps:$4 sm:$0xff]  }
0x3dae   :  { %v5724_v16 = vpop.xlane.xlu1 %5723 }
0x3daf   :  { %v5726_v20 = vmul.f32 0.015625, %v5724_v16 }
0x3db1   :  { %v5728_v21 = vadd.f32 1e-05, %v5726_v20  ;;  %v9641_v20 = vld [vmem:[%s11566_s2 + $0xf4] ss:$8 sps:$4 sm:$0xff]  }
0x3db2   :  { %6153 = vmatprep.subr.bf16.mxu1 %v9641_v20 }
0x3db3   :  { %9805 = vrsqrt.f32 %v5728_v21  ;;  %v9639_v21 = vld [vmem:[%s11566_s2 + $0xf0] ss:$8 sps:$4 sm:$0xff]  }
0x3dc0   :  { %v9806_v11 = vpop.eup %9805 }
0x3dc1   :  { %v5732_v17 = vmul.f32 %v9806_v11, %v5716_v47  ;;  %v9645_v11 = vld [vmem:[%s11566_s2 + $0xd0] ss:$8 sps:$4 sm:$0xff]  }
0x3dc3   :  { %v5738_v26 = vmul.f32 %v8443_v25, %v5732_v17  ;;  %v9647_v25 = vld [vmem:[%s11566_s2 + $0xd4] ss:$8 sps:$4 sm:$0xff]   ;;  %v9650_v17 = vld [vmem:[%s11566_s2 + $0xc4] ss:$8 sps:$4 sm:$0xff]  }
0x3dc5   :  { %v5744_v32 = vadd.f32 %v8444_v9, %v5738_v26 }
0x3dc7   :  { %v5745_v0 = vpack.c.bf16 %v5744_v32, %v5743_v30 }
0x3dc9   :  { %8462 = vmatmul.mubr.msk.bf16.vlgmr.msra.gmra.mxu1 %vm54_vm0, %v5745_v0 }
0x3dca   :  { %6177 = vmatprep.mubr.bf16.mxu1 %v9875_v18  ;;  %6154 = vmatpush1.bf16.msra.mxu1 %v9639_v21 }
0x3dcb   :  { %6155 = vmatprep.subr.bf16.mxu1 %v9644_v3 }
0x3dce   :  { %6156 = vmatpush1.bf16.msra.mxu1 %v9642_v37 }
0x3dcf   :  { %6157 = vmatprep.subr.bf16.mxu1 %v9647_v25 }
0x3dd2   :  { %6158 = vmatpush1.bf16.msra.mxu1 %v9645_v11 }
0x3dd3   :  { %6159 = vmatprep.subr.bf16.mxu1 %v9650_v17 }
0x3dd6   :  { %6160 = vmatpush1.bf16.msra.mxu1 %v9648_v27 }
0x3dd7   :  { %9346 = vmatprep.subr.mxu1 %v9876_v40 }
0x3e89   :  { %v5845_v29 = vpop.f32.mrf.mxu1 }
0x3e8a   :  { %v5846_v53 = vadd.f32 %v5845_v29, %v5761_v44  ;;  %v8513_v29 = vld [vmem:[%s11565_s1 + $0xd] ss:$0 sm:$0xff] }
0x3e8b   :  { %v5847_v33 = vpop.f32.mrf.mxu1 }
0x3e8c   :  { %v5848_v52 = vadd.f32 %v5847_v33, %v5765_v42  ;;  %v5854_v58 = vmax.f32 %v5846_v53, 0.0 }
0x3e8d   :  { %v5849_v45 = vpop.f32.mrf.mxu1 }
0x3e8e   :  { %v5850_v49 = vadd.f32 %v5849_v45, %v5761_v44  ;;  %v5855_v57 = vmax.f32 %v5848_v52, 0.0  ;;  %v8522_v52 = vld [vmem:[%s11567_s3 + $0x3] ss:$4 sm:$0x3] }
0x3e8f   :  { %v5851_v54 = vpop.f32.mrf.mxu1 }
0x3e90   :  { %v5852_v59 = vadd.f32 %v5851_v54, %v5765_v42  ;;  %v5856_v55 = vmax.f32 %v5850_v49, 0.0  ;;  %v6095_v49 = vrot.slane %v8522_v52, %v10001_v43 }
0x3e92   :  { %v5857_v47 = vmax.f32 %v5852_v59, 0.0  ;;  %v5858_v46 = vpack.c.bf16 %v5856_v55, %v5854_v58  ;;  %v6099_v55 = vrot.slane %v8522_v52, %v10015_v51 }
0x3e94   :  { %v5859_v24 = vpack.c.bf16 %v5857_v47, %v5855_v57 }
0x3e96   :  { %6026 = vmatprep.mubr.bf16.mxu0 %v5859_v24 }
0x3e97   :  { %6027 = vmatmul.mubr.bf16.vlgmr.msra.gmra.mxu0 %v5858_v46 }
0x3e98   :  { %9353 = vmatprep.mubr.msk.bf16.mxu0 %vm9877_vm1, %v9876_v40 }
0x3f57   :  { %v8857_v56 = vpop.f32.mrf.mxu0 }
0x3f59   :  { %v8858_v61 = vpop.f32.mrf.mxu0 }
0x3f5a   :  { %v8859_v62 = vadd.f32 %v8858_v61, %v8857_v56 }
0x3f5b   :  { %v8860_v1 = vpop.f32.mrf.mxu0 }
0x3f5c   :  { %v6029_v31 = vadd.f32 %v8859_v62, %v8495_v10 }
0x3f5d   :  { %v8861_v48 = vpop.f32.mrf.mxu0 }
0x3f5e   :  { %v11145_v19 = vadd.f32 %v6029_v31, %v11031_v12  ;;  %v8862_v38 = vadd.f32 %v8861_v48, %v8860_v1 }
0x3f60   :  { %v6032_v4 = vadd.f32 %v8862_v38, %v8495_v10  ;;  %v6041_v5 = vsel %vm54_vm0, %v11145_v19, 0.0 }
0x3f61   :  { %6042 = vadd.xlane.f32.xlu1 %v6041_v5 }
0x3f62   :  { %v11150_v6 = vadd.f32 %v6032_v4, %v11046_v63 }
0x3f64   :  { %v6044_v23 = vsel %vm54_vm0, %v11150_v6, 0.0 }
0x3f65   :  { %6045 = vadd.xlane.f32.xlu0 %v6044_v23 }
0x3fea   :  { %v6043_v8 = vpop.xlane.xlu1 %6042 }
0x3feb   :  { %v6047_v13 = vmul.f32 0.015625, %v6043_v8 }
0x3fed   :  { %v6049_v50 = vsub.f32 %v11145_v19, %v6047_v13 }
0x3fee   :  { %v6046_v14 = vpop.xlane.xlu0 %6045 }
0x3fef   :  { %v6048_v12 = vmul.f32 0.015625, %v6046_v14  ;;  %v6051_v15 = vmul.f32 %v6049_v50, %v6049_v50 }
0x3ff1   :  { %v6050_v28 = vsub.f32 %v11150_v6, %v6048_v12  ;;  %v6053_v2 = vsel %vm54_vm0, %v6051_v15, 0.0 }
0x3ff2   :  { %6054 = vadd.xlane.f32.xlu1 %v6053_v2 }
0x3ff3   :  { %v6052_v16 = vmul.f32 %v6050_v28, %v6050_v28 }
0x3ff5   :  { %v6056_v63 = vsel %vm54_vm0, %v6052_v16, 0.0 }
0x3ff6   :  { %6057 = vadd.xlane.f32.xlu1 %v6056_v63 }
0x407b   :  { %v6055_v9 = vpop.xlane.xlu1 %6054 }
0x407c   :  { %v6059_v26 = vmul.f32 0.015625, %v6055_v9 }
0x407e   :  { %v6061_v30 = vadd.f32 1e-05, %v6059_v26 }
0x407f   :  { %v6058_v32 = vpop.xlane.xlu1 %6057 }
0x4080   :  { %9807 = vrsqrt.f32 %v6061_v30  ;;  %v6060_v0 = vmul.f32 0.015625, %v6058_v32 }
0x4082   :  { %v6062_v22 = vadd.f32 1e-05, %v6060_v0 }
0x4084   :  { %9809 = vrsqrt.f32 %v6062_v22  ;;  %v11247_v22 = vld [vmem:[%s11568_s4 + $0x68] sm:$0xff]  }
0x408d   :  { %v9808_v35 = vpop.eup %9807 }
0x408e   :  { %v6065_v36 = vmul.f32 %v9808_v35, %v6049_v50 }
0x4090   :  { %v6071_v39 = vmul.f32 %v8512_v34, %v6065_v36 }
0x4091   :  { %v9810_v7 = vpop.eup %9809 }
0x4092   :  { %v6066_v41 = vmul.f32 %v9810_v7, %v6050_v28  ;;  %v6077_v44 = vadd.f32 %v8513_v29, %v6071_v39 }
0x4094   :  { %v6072_v42 = vmul.f32 %v8512_v34, %v6066_v41 }
0x4096   :  { %v6078_v33 = vadd.f32 %v8513_v29, %v6072_v42 }
0x4098   :  { %v6079_v45 = vpack.c.bf16 %v6078_v33, %v6077_v44 }
0x409a   :  { %8531 = vmatmul.mubr.msk.bf16.vlgmr.msra.gmra.mxu1 %vm54_vm0, %v6079_v45  ;;  %v11267_v45 = vld [vmem:[%s11568_s4 + $0x60] sm:$0xff]  }
0x409b   :  { %9348 = vmatprep.mubr.msk.f32.mxu1 %vm9877_vm1, %v9876_v40 }
0x415a   :  { %v6179_v53 = vpop.f32.mrf.mxu1 }
0x415b   :  { %v11196_v54 = vadd.f32 %v6179_v53, %v6095_v49 }
0x415c   :  { %v6181_v59 = vpop.f32.mrf.mxu1 }
0x415d   :  { %6336 = vrot.lane.b32.xlu0 %v11196_v54, %s9879_s30  ;;  %6199 = vrot.lane.b32.xlu1 %v11196_v54, %s9878_s29  ;;  %v6182_v24 = vadd.f32 %v6181_v59, %v6099_v55 }
0x415e   :  { %v6183_v57 = vpop.f32.mrf.mxu1 }
0x415f   :  { %v11203_v47 = vadd.f32 %v6183_v57, %v6095_v49 }
0x4160   :  { %v6185_v58 = vpop.f32.mrf.mxu1 }
0x4161   :  { %v6186_v46 = vadd.f32 %v6185_v58, %v6099_v55  ;;  %6338 = vrot.lane.b32.xlu1 %v11196_v54, %s9880_s13 }
0x4163   :  { %v11207_v56 = vpack.c.bf16 %v6186_v46, %v6182_v24 }
0x4165   :  { %v6293_v10 = vsel %vm306_vm3, %v11207_v56, 0 }
0x4166   :  { %9352 = vmatpush3.bf16.msra.mxu0 %v6293_v10 }
0x4167   :  { %9368 = vmatprep.subr.bf16.mxu0 %v9876_v40 }
0x41cf   :  { %v6200_v61 = vpop.permute.xlu1 %6199  ;;  %v6337_v1 = vpop.permute.xlu0 %6336 }
0x41d0   :  { %9347 = vmatpush3.xpose.msk.msra.mxu1 %vm213_vm2, %v6200_v61 }
0x41d1   :  { %9357 = vmatprep.subr.mxu1 %v9876_v40 }
0x41d3   :  { %9349 = vmatmul.mubr.msk.f32.vlgmr.msra.gmra.mxu1 %vm213_vm2, %v11196_v54  ;;  %v6339_v62 = vpop.permute.xlu1 %6338 }
0x41d4   :  { %9358 = vmatpush3.xpose.msk.msra.mxu1 %vm213_vm2, %v6339_v62  ;;  %9359 = vmatprep.mubr.msk.f32.mxu1 %vm9877_vm1, %v9876_v40 }
0x41d5   :  { %9362 = vmatprep.subr.bf16.mxu1 %v9876_v40 }
0x41d7   :  { %9360 = vmatmul.mubr.msk.f32.vlgmr.msra.gmra.mxu1 %vm213_vm2, %v6337_v1 }
0x41d8   :  { %9364 = vmatprep.mubr.msk.bf16.mxu1 %vm9877_vm1, %v9876_v40 }
0x4293   :  { %v6271_v31 = vpop.f32.mrf.mxu1 }
0x4294   :  { %v6275_v28 = vmul.f32 0.125, %v6271_v31 }
0x4295   :  { %v9350_v48 = vpop.f32.mrf.mxu1 }
0x4296   :  { %v6276_v63 = vsel %vm10029_vm4, %v6275_v28, -1e+30 }
0x4297   :  { %v6410_v38 = vpop.f32.mrf.mxu1  ;;  %v6277_v20 = vsel %vm290_vm5, %v6276_v63, -inf }
0x4298   :  { %v6414_v4 = vmul.f32 0.125, %v6410_v38 }
0x4299   :  { %v9361_v5 = vpop.f32.mrf.mxu1 }
0x429a   :  { %v6415_v23 = vsel %vm10029_vm4, %v6414_v4, -1e+30 }
0x429b   :  { %v6416_v8 = vsel %vm290_vm5, %v6415_v23, -inf }
0x429c   :  { %6417 = vmax.xlane.f32.xlu1 %v6416_v8 }
0x42ad   :  { %6429 = vrot.lane.b32.xlu1 %v11207_v56, %s9879_s30 }
0x4325   :  { %v6418_v13 = vpop.xlane.xlu1 %6417 }
0x4326   :  { %v6419_v50 = vsub.f32 %v6415_v23, %v6418_v13 }
0x4328   :  { %v6420_v14 = vmul.f32 1.442695, %v6419_v50 }
0x4329   :  { %v6430_v12 = vpop.permute.xlu1 %6429 }
0x432a   :  { %9811 = vpow2.f32 %v6420_v14  ;;  %v6435_v15 = vsel %vm306_vm3, %v6430_v12, 0 }
0x432b   :  { %9363 = vmatpush3.bf16.msra.mxu1 %v6435_v15 }
0x432c   :  { %9374 = vmatprep.subr.bf16.mxu1 %v9876_v40 }
0x4337   :  { %v9812_v2 = vpop.eup %9811 }
0x4338   :  { %v6422_v16 = vsel %vm290_vm5, %v9812_v2, 0.0 }
0x4339   :  { %6423 = vadd.xlane.f32.xlu0 %v6422_v16 }
0x433d   :  { %6278 = vmax.xlane.f32.xlu0 %v6277_v20 }
0x4353   :  { %6578 = vrot.lane.b32.xlu0 %v11196_v54, %s9881_s14 }
0x4357   :  { %6576 = vrot.lane.b32.xlu0 %v11196_v54, %s9882_s15 }
0x43c2   :  { %v6424_v21 = vpop.xlane.xlu0 %6423 }
0x43c3   :  { %9813 = vrcp.f32 %v6424_v21 }
0x43c6   :  { %v6279_v3 = vpop.xlane.xlu0 %6278 }
0x43c7   :  { %v6280_v37 = vsub.f32 %v6276_v63, %v6279_v3 }
0x43c9   :  { %v6281_v25 = vmul.f32 1.442695, %v6280_v37 }
0x43ca   :  { %v6579_v39 = vpop.permute.xlu0 %6578 }
0x43cb   :  { %9815 = vpow2.f32 %v6281_v25 }
0x43ce   :  { %v6577_v44 = vpop.permute.xlu0 %6576 }
0x43d0   :  { %v9814_v11 = vpop.eup %9813 }
0x43d1   :  { %v6426_v27 = vmul.f32 %v9814_v11, %v9812_v2 }
0x43d3   :  { %v6427_v17 = vpack.c.bf16 %v6426_v27, %v6426_v27 }
0x43d5   :  { %9365 = vmatmul.mubr.msk.bf16.vlgmr.msra.gmra.mxu1 %vm290_vm5, %v6427_v17 }
0x43d6   :  { %9376 = vmatprep.mubr.msk.bf16.mxu1 %vm9877_vm1, %v9876_v40  ;;  %9375 = vmatpush3.bf16.msra.mxu1 %v11267_v45 }
0x43d7   :  { %9391 = vmatprep.subr.bf16.mxu1 %v9876_v40 }
0x43d8   :  { %v9816_v9 = vpop.eup %9815 }
0x43d9   :  { %v6283_v26 = vsel %vm290_vm5, %v9816_v9, 0.0 }
0x43da   :  { %6284 = vadd.xlane.f32.xlu1 %v6283_v26 }
0x43eb   :  { %6668 = vrot.lane.b32.xlu1 %v11207_v56, %s9882_s15 }
0x4463   :  { %v6285_v30 = vpop.xlane.xlu1 %6284 }
0x4464   :  { %9817 = vrcp.f32 %v6285_v30 }
0x4467   :  { %v6669_v42 = vpop.permute.xlu1 %6668 }
0x4468   :  { %v6674_v33 = vsel %vm306_vm3, %v6669_v42, 0 }
0x4471   :  { %v9818_v32 = vpop.eup %9817 }
0x4472   :  { %v6287_v0 = vmul.f32 %v9818_v32, %v9816_v9 }
0x4474   :  { %v6288_v35 = vpack.c.bf16 %v6287_v0, %v6287_v0 }
0x4476   :  { %9354 = vmatmul.mubr.msk.bf16.vlgmr.msra.gmra.mxu0 %vm290_vm5, %v6288_v35 }
0x4477   :  { %9369 = vmatpush3.bf16.msra.mxu0 %v11247_v22  ;;  %9370 = vmatprep.mubr.msk.bf16.mxu0 %vm9877_vm1, %v9876_v40 }
0x4478   :  { %9380 = vmatprep.subr.mxu0 %v9876_v40 }
0x4495   :  { %v6471_v36 = vpop.f32.mrf.mxu1 }
0x4496   :  { %v6477_v34 = vpack.c.bf16 %v6471_v36, %v6471_v36 }
0x4497   :  { %v9366_v7 = vpop.f32.mrf.mxu1 }
0x4498   :  { %9371 = vmatmul.mubr.msk.bf16.vlgmr.msra.gmra.mxu0 %vm213_vm2, %v6477_v34 }
0x4499   :  { %9381 = vmatpush3.xpose.msk.msra.mxu0 %vm213_vm2, %v6579_v39  ;;  %v6474_v41 = vpop.f32.mrf.mxu1  ;;  %9382 = vmatprep.mubr.msk.f32.mxu0 %vm9877_vm1, %v9876_v40 }
0x449a   :  { %9385 = vmatprep.subr.bf16.mxu0 %v9876_v40 }
0x449b   :  { %v9367_v29 = vpop.f32.mrf.mxu1 }
0x44a0   :  { %9383 = vmatmul.mubr.msk.f32.vlgmr.msra.gmra.mxu0 %vm213_vm2, %v6577_v44 }
0x44a1   :  { %9386 = vmatpush3.bf16.msra.mxu0 %v6674_v33  ;;  %9387 = vmatprep.mubr.msk.bf16.mxu0 %vm9877_vm1, %v9876_v40 }
0x44a2   :  { %9397 = vmatprep.subr.mxu0 %v9876_v40 }
0x4536   :  { %v6329_v52 = vpop.f32.mrf.mxu0 }
0x4537   :  { %v6335_v49 = vpack.c.bf16 %v6329_v52, %v6329_v52  ;;  %v11320_v52 = vld [vmem:[%s11568_s4 + $0x78] sm:$0xff]  }
0x4538   :  { %v9355_v53 = vpop.f32.mrf.mxu0 }
0x4539   :  { %9377 = vmatmul.mubr.msk.bf16.vlgmr.msra.gmra.mxu1 %vm213_vm2, %v6335_v49 }
0x453a   :  { %v6332_v59 = vpop.f32.mrf.mxu0  ;;  %9393 = vmatprep.mubr.msk.bf16.mxu1 %vm9877_vm1, %v9876_v40 }
0x453c   :  { %v9356_v55 = vpop.f32.mrf.mxu0 }
0x4558   :  { %v11274_v57 = vpop.f32.mrf.mxu0 }
0x455a   :  { %v9372_v58 = vpop.f32.mrf.mxu0 }
0x455c   :  { %v6524_v24 = vpop.f32.mrf.mxu0 }
0x455e   :  { %v9373_v46 = vpop.f32.mrf.mxu0 }
0x455f   :  { %v11339_v46 = vrot.slane %v11207_v56, 4 }
0x4560   :  { %v6650_v10 = vpop.f32.mrf.mxu0 }
0x4561   :  { %v6654_v61 = vmul.f32 0.125, %v6650_v10 }
0x4562   :  { %v9384_v62 = vpop.f32.mrf.mxu0 }
0x4563   :  { %v6655_v1 = vsel %vm10029_vm4, %v6654_v61, -1e+30 }
0x4564   :  { %v6656_v31 = vsel %vm290_vm5, %v6655_v1, -inf }
0x4565   :  { %6657 = vmax.xlane.f32.xlu0 %v6656_v31 }
0x457b   :  { %6767 = vrot.lane.b32.xlu0 %v11196_v54, %s9883_s20 }
0x45ee   :  { %v6658_v48 = vpop.xlane.xlu0 %6657 }
0x45ef   :  { %v6659_v38 = vsub.f32 %v6655_v1, %v6658_v48  ;;  %v7054_v1 = vsel %vm306_vm3, %v11339_v46, 0 }
0x45f1   :  { %v6660_v4 = vmul.f32 1.442695, %v6659_v38 }
0x45f2   :  { %v6768_v63 = vpop.permute.xlu0 %6767 }
0x45f3   :  { %9819 = vpow2.f32 %v6660_v4 }
0x45f9   :  { %v6570_v5 = vpop.f32.mrf.mxu1 }
0x45fa   :  { %v6571_v39 = vadd.f32 %v6570_v5, %v11274_v57 }
0x45fb   :  { %v9378_v23 = vpop.f32.mrf.mxu1 }
0x45fd   :  { %v6573_v8 = vpop.f32.mrf.mxu1 }
0x45ff   :  { %v9379_v13 = vpop.f32.mrf.mxu1 }
0x4600   :  { %v9820_v50 = vpop.eup %9819 }
0x4601   :  { %v6662_v14 = vsel %vm290_vm5, %v9820_v50, 0.0 }
0x4602   :  { %6663 = vadd.xlane.f32.xlu1 %v6662_v14 }
0x4613   :  { %6769 = vrot.lane.b32.xlu1 %v11196_v54, %s9884_s21  ;;  %v11295_v54 = vld [vmem:[%s11568_s4 + $0x70] sm:$0xff]  }
0x4614   :  { %9392 = vmatpush3.bf16.msra.mxu1 %v11295_v54 }
0x4615   :  { %9402 = vmatprep.subr.bf16.mxu1 %v9876_v40 }
0x468b   :  { %v6664_v12 = vpop.xlane.xlu1 %6663 }
0x468c   :  { %9821 = vrcp.f32 %v6664_v12 }
0x468f   :  { %v6770_v16 = vpop.permute.xlu1 %6769 }
0x4699   :  { %v9822_v15 = vpop.eup %9821 }
0x469a   :  { %v6666_v28 = vmul.f32 %v9822_v15, %v9820_v50 }
0x469c   :  { %v6667_v2 = vpack.c.bf16 %v6666_v28, %v6666_v28 }
0x469e   :  { %9388 = vmatmul.mubr.msk.bf16.vlgmr.msra.gmra.mxu0 %vm290_vm5, %v6667_v2 }
0x469f   :  { %9398 = vmatpush3.xpose.msk.msra.mxu0 %vm213_vm2, %v6770_v16  ;;  %9399 = vmatprep.mubr.msk.f32.mxu0 %vm9877_vm1, %v9876_v40 }
0x46a0   :  { %9408 = vmatprep.subr.bf16.mxu0 %v9876_v40 }
0x46a6   :  { %9400 = vmatmul.mubr.msk.f32.vlgmr.msra.gmra.mxu0 %vm213_vm2, %v6768_v63 }
0x46a7   :  { %9410 = vmatprep.mubr.msk.bf16.mxu0 %vm9877_vm1, %v9876_v40  ;;  %9409 = vmatpush3.bf16.msra.mxu0 %v11320_v52 }
0x46a8   :  { %9419 = vmatprep.subr.bf16.mxu0 %v9876_v40 }
0x475e   :  { %v6710_v20 = vpop.f32.mrf.mxu0 }
0x475f   :  { %v6716_v21 = vpack.c.bf16 %v6710_v20, %v6710_v20 }
0x4760   :  { %v9389_v3 = vpop.f32.mrf.mxu0 }
0x4761   :  { %9394 = vmatmul.mubr.msk.bf16.vlgmr.msra.gmra.mxu1 %vm213_vm2, %v6716_v21 }
0x4762   :  { %v6713_v37 = vpop.f32.mrf.mxu0  ;;  %9404 = vmatprep.mubr.msk.bf16.mxu1 %vm9877_vm1, %v9876_v40 }
0x4764   :  { %v9390_v25 = vpop.f32.mrf.mxu0 }
0x4766   :  { %v6841_v11 = vpop.f32.mrf.mxu0 }
0x4767   :  { %v6845_v27 = vmul.f32 0.125, %v6841_v11 }
0x4768   :  { %v9401_v17 = vpop.f32.mrf.mxu0 }
0x4769   :  { %v6846_v9 = vsel %vm10029_vm4, %v6845_v27, -1e+30 }
0x476a   :  { %v6847_v26 = vsel %vm290_vm5, %v6846_v9, -inf }
0x476b   :  { %6848 = vmax.xlane.f32.xlu1 %v6847_v26 }
0x477c   :  { %6859 = vrot.lane.b32.xlu1 %v11207_v56, %s9883_s20 }
0x4780   :  { %7099 = vrot.lane.b32.xlu1 %v11203_v47, %s9880_s13 }
0x4784   :  { %7097 = vrot.lane.b32.xlu1 %v11203_v47, %s9879_s30 }
0x47f4   :  { %v6849_v30 = vpop.xlane.xlu1 %6848 }
0x47f5   :  { %v6850_v32 = vsub.f32 %v6846_v9, %v6849_v30 }
0x47f7   :  { %v6851_v0 = vmul.f32 1.442695, %v6850_v32 }
0x47f8   :  { %v6860_v35 = vpop.permute.xlu1 %6859 }
0x47f9   :  { %9823 = vpow2.f32 %v6851_v0  ;;  %v6865_v36 = vsel %vm306_vm3, %v6860_v35, 0 }
0x47fa   :  { %9403 = vmatpush3.bf16.msra.mxu1 %v6865_v36 }
0x47fb   :  { %9414 = vmatprep.subr.mxu1 %v9876_v40 }
0x47fc   :  { %v7100_v58 = vpop.permute.xlu1 %7099 }
0x4800   :  { %v7098_v24 = vpop.permute.xlu1 %7097 }
0x4806   :  { %v9824_v34 = vpop.eup %9823 }
0x4807   :  { %v6853_v7 = vsel %vm290_vm5, %v9824_v34, 0.0 }
0x4808   :  { %6854 = vadd.xlane.f32.xlu0 %v6853_v7 }
0x481e   :  { %6959 = vrot.lane.b32.xlu0 %v11203_v47, %s9878_s29 }
0x4821   :  { %v6760_v41 = vpop.f32.mrf.mxu1 }
0x4822   :  { %v6766_v29 = vadd.f32 %v6760_v41, %v6571_v39 }
0x4823   :  { %v9395_v42 = vpop.f32.mrf.mxu1 }
0x4825   :  { %v6763_v44 = vpop.f32.mrf.mxu1 }
0x4827   :  { %v9396_v33 = vpop.f32.mrf.mxu1 }
0x4891   :  { %v6855_v49 = vpop.xlane.xlu0 %6854 }
0x4892   :  { %9825 = vrcp.f32 %v6855_v49 }
0x4895   :  { %v6960_v57 = vpop.permute.xlu0 %6959 }
0x489f   :  { %v9826_v53 = vpop.eup %9825 }
0x48a0   :  { %v6857_v59 = vmul.f32 %v9826_v53, %v9824_v34 }
0x48a2   :  { %v6858_v55 = vpack.c.bf16 %v6857_v59, %v6857_v59 }
0x48a4   :  { %9405 = vmatmul.mubr.msk.bf16.vlgmr.msra.gmra.mxu1 %vm290_vm5, %v6858_v55 }
0x48a5   :  { %9415 = vmatpush3.xpose.msk.msra.mxu1 %vm213_vm2, %v6960_v57  ;;  %9416 = vmatprep.mubr.msk.f32.mxu1 %vm9877_vm1, %v9876_v40 }
0x48a6   :  { %9425 = vmatprep.subr.mxu1 %v9876_v40 }
0x48ac   :  { %9417 = vmatmul.mubr.msk.f32.vlgmr.msra.gmra.mxu1 %vm213_vm2, %v11203_v47 }
0x48ad   :  { %9426 = vmatpush3.xpose.msk.msra.mxu1 %vm213_vm2, %v7100_v58  ;;  %9427 = vmatprep.mubr.msk.f32.mxu1 %vm9877_vm1, %v9876_v40 }
0x48ae   :  { %9430 = vmatprep.subr.bf16.mxu1 %v9876_v40 }
0x48b0   :  { %9428 = vmatmul.mubr.msk.f32.vlgmr.msra.gmra.mxu1 %vm213_vm2, %v7098_v24 }
0x48b1   :  { %9432 = vmatprep.mubr.msk.bf16.mxu1 %vm9877_vm1, %v9876_v40 }
0x4964   :  { %v6901_v10 = vpop.f32.mrf.mxu1 }
0x4965   :  { %v6907_v61 = vpack.c.bf16 %v6901_v10, %v6901_v10 }
0x4966   :  { %v9406_v62 = vpop.f32.mrf.mxu1 }
0x4967   :  { %9411 = vmatmul.mubr.msk.bf16.vlgmr.msra.gmra.mxu0 %vm213_vm2, %v6907_v61 }
0x4968   :  { %9420 = vmatpush3.bf16.msra.mxu0 %v7054_v1  ;;  %v6904_v31 = vpop.f32.mrf.mxu1  ;;  %9421 = vmatprep.mubr.msk.bf16.mxu0 %vm9877_vm1, %v9876_v40 }
0x4969   :  { %9436 = vmatprep.subr.bf16.mxu0 %v9876_v40 }
0x496a   :  { %v9407_v48 = vpop.f32.mrf.mxu1 }
0x496c   :  { %v7031_v38 = vpop.f32.mrf.mxu1 }
0x496d   :  { %v7035_v2 = vmul.f32 0.125, %v7031_v38 }
0x496e   :  { %v9418_v4 = vpop.f32.mrf.mxu1 }
0x496f   :  { %v7036_v20 = vsel %vm10029_vm4, %v7035_v2, -1e+30 }
0x4970   :  { %v7171_v56 = vpop.f32.mrf.mxu1  ;;  %v7037_v21 = vsel %vm290_vm5, %v7036_v20, -inf }
0x4971   :  { %v7175_v5 = vmul.f32 0.125, %v7171_v56 }
0x4972   :  { %v9429_v23 = vpop.f32.mrf.mxu1 }
0x4973   :  { %v7176_v8 = vsel %vm10029_vm4, %v7175_v5, -1e+30 }
0x4974   :  { %v7177_v13 = vsel %vm290_vm5, %v7176_v8, -inf }
0x4975   :  { %7178 = vmax.xlane.f32.xlu1 %v7177_v13 }
0x4986   :  { %7189 = vrot.lane.b32.xlu1 %v11339_v46, %s9879_s30 }
0x498a   :  { %7324 = vrot.lane.b32.xlu1 %v11203_v47, %s9882_s15 }
0x49fe   :  { %v7179_v50 = vpop.xlane.xlu1 %7178 }
0x49ff   :  { %v7180_v14 = vsub.f32 %v7176_v8, %v7179_v50 }
0x4a01   :  { %v7181_v12 = vmul.f32 1.442695, %v7180_v14 }
0x4a02   :  { %v7190_v15 = vpop.permute.xlu1 %7189 }
0x4a03   :  { %9827 = vpow2.f32 %v7181_v12  ;;  %v7195_v28 = vsel %vm306_vm3, %v7190_v15, 0 }
0x4a04   :  { %9431 = vmatpush3.bf16.msra.mxu1 %v7195_v28 }
0x4a05   :  { %9442 = vmatprep.subr.bf16.mxu1 %v9876_v40 }
0x4a06   :  { %v7325_v53 = vpop.permute.xlu1 %7324 }
0x4a10   :  { %v9828_v16 = vpop.eup %9827 }
0x4a11   :  { %v7183_v63 = vsel %vm290_vm5, %v9828_v16, 0.0 }
0x4a12   :  { %7184 = vadd.xlane.f32.xlu0 %v7183_v63 }
0x4a16   :  { %7038 = vmax.xlane.f32.xlu0 %v7037_v21 }
0x4a27   :  { %v6951_v3 = vpop.f32.mrf.mxu0 }
0x4a28   :  { %v11360_v37 = vadd.f32 %v6951_v3, %v6766_v29 }
0x4a29   :  { %v9412_v25 = vpop.f32.mrf.mxu0 }
0x4a2b   :  { %v6954_v11 = vpop.f32.mrf.mxu0 }
0x4a2d   :  { %v9413_v27 = vpop.f32.mrf.mxu0 }
0x4a9b   :  { %v7185_v17 = vpop.xlane.xlu0 %7184 }
0x4a9c   :  { %9829 = vrcp.f32 %v7185_v17 }
0x4a9f   :  { %v7039_v9 = vpop.xlane.xlu0 %7038 }
0x4aa0   :  { %v7040_v26 = vsub.f32 %v7036_v20, %v7039_v9 }
0x4aa2   :  { %v7041_v30 = vmul.f32 1.442695, %v7040_v26 }
0x4aa4   :  { %9831 = vpow2.f32 %v7041_v30 }
0x4aa9   :  { %v9830_v32 = vpop.eup %9829 }
0x4aaa   :  { %v7187_v0 = vmul.f32 %v9830_v32, %v9828_v16 }
0x4aac   :  { %v7188_v35 = vpack.c.bf16 %v7187_v0, %v7187_v0 }
0x4aae   :  { %9433 = vmatmul.mubr.msk.bf16.vlgmr.msra.gmra.mxu1 %vm290_vm5, %v7188_v35 }
0x4aaf   :  { %9443 = vmatpush3.bf16.msra.mxu1 %v11267_v45  ;;  %9444 = vmatprep.mubr.msk.bf16.mxu1 %vm9877_vm1, %v9876_v40 }
0x4ab0   :  { %9459 = vmatprep.subr.bf16.mxu1 %v9876_v40 }
0x4ab1   :  { %v9832_v36 = vpop.eup %9831 }
0x4ab2   :  { %v7043_v34 = vsel %vm290_vm5, %v9832_v36, 0.0 }
0x4ab3   :  { %7044 = vadd.xlane.f32.xlu0 %v7043_v34 }
0x4ac9   :  { %7326 = vrot.lane.b32.xlu0 %v11203_v47, %s9881_s14 }
0x4b3c   :  { %v7045_v7 = vpop.xlane.xlu0 %7044 }
0x4b3d   :  { %9833 = vrcp.f32 %v7045_v7 }
0x4b40   :  { %v7327_v33 = vpop.permute.xlu0 %7326 }
0x4b4a   :  { %v9834_v39 = vpop.eup %9833 }
0x4b4b   :  { %v7047_v41 = vmul.f32 %v9834_v39, %v9832_v36 }
0x4b4d   :  { %v7048_v29 = vpack.c.bf16 %v7047_v41, %v7047_v41  ;;  %v7694_v41 = vadd.f32 %v11360_v37, %v11145_v19 }
0x4b4f   :  { %9422 = vmatmul.mubr.msk.bf16.vlgmr.msra.gmra.mxu0 %vm290_vm5, %v7048_v29 }
0x4b50   :  { %9437 = vmatpush3.bf16.msra.mxu0 %v11247_v22  ;;  %9438 = vmatprep.mubr.msk.bf16.mxu0 %vm9877_vm1, %v9876_v40 }
0x4b51   :  { %9448 = vmatprep.subr.mxu0 %v9876_v40 }
0x4b6e   :  { %v7231_v45 = vpop.f32.mrf.mxu1 }
0x4b6f   :  { %v7237_v42 = vpack.c.bf16 %v7231_v45, %v7231_v45  ;;  %v11425_v45 = vadd.f32 %v8576_v60, %v7694_v41 }
0x4b70   :  { %v9434_v44 = vpop.f32.mrf.mxu1 }
0x4b71   :  { %9439 = vmatmul.mubr.msk.bf16.vlgmr.msra.gmra.mxu0 %vm213_vm2, %v7237_v42  ;;  %v7703_v42 = vsel %vm54_vm0, %v11425_v45, 0.0 }
0x4b72   :  { %9449 = vmatpush3.xpose.msk.msra.mxu0 %vm213_vm2, %v7327_v33  ;;  %v7234_v49 = vpop.f32.mrf.mxu1  ;;  %9450 = vmatprep.mubr.msk.f32.mxu0 %vm9877_vm1, %v9876_v40 }
0x4b73   :  { %9453 = vmatprep.subr.bf16.mxu0 %v9876_v40 }
0x4b74   :  { %v9435_v22 = vpop.f32.mrf.mxu1 }
0x4b79   :  { %9451 = vmatmul.mubr.msk.f32.vlgmr.msra.gmra.mxu0 %vm213_vm2, %v7325_v53 }
0x4b7a   :  { %9455 = vmatprep.mubr.msk.bf16.mxu0 %vm9877_vm1, %v9876_v40 }
0x4c0f   :  { %v7090_v59 = vpop.f32.mrf.mxu0 }
0x4c10   :  { %v7096_v55 = vpack.c.bf16 %v7090_v59, %v7090_v59 }
0x4c11   :  { %v9423_v57 = vpop.f32.mrf.mxu0 }
0x4c12   :  { %9445 = vmatmul.mubr.msk.bf16.vlgmr.msra.gmra.mxu1 %vm213_vm2, %v7096_v55 }
0x4c13   :  { %v7093_v58 = vpop.f32.mrf.mxu0  ;;  %9460 = vmatpush3.bf16.msra.mxu1 %v11295_v54  ;;  %9461 = vmatprep.mubr.msk.bf16.mxu1 %vm9877_vm1, %v9876_v40 }
0x4c14   :  { %9470 = vmatprep.subr.bf16.mxu1 %v9876_v40 }
0x4c15   :  { %v9424_v24 = vpop.f32.mrf.mxu0 }
0x4c31   :  { %v11388_v10 = vpop.f32.mrf.mxu0 }
0x4c33   :  { %v9440_v61 = vpop.f32.mrf.mxu0 }
0x4c35   :  { %v7278_v62 = vpop.f32.mrf.mxu0 }
0x4c37   :  { %v9441_v1 = vpop.f32.mrf.mxu0 }
0x4c39   :  { %v7398_v31 = vpop.f32.mrf.mxu0 }
0x4c3a   :  { %v7402_v48 = vmul.f32 0.125, %v7398_v31 }
0x4c3b   :  { %v9452_v38 = vpop.f32.mrf.mxu0 }
0x4c3c   :  { %v7403_v4 = vsel %vm10029_vm4, %v7402_v48, -1e+30 }
0x4c3d   :  { %v7404_v56 = vsel %vm290_vm5, %v7403_v4, -inf }
0x4c3e   :  { %7405 = vmax.xlane.f32.xlu1 %v7404_v56 }
0x4c4f   :  { %7416 = vrot.lane.b32.xlu1 %v11339_v46, %s9882_s15 }
0x4c53   :  { %7509 = vrot.lane.b32.xlu1 %v11203_v47, %s9883_s20 }
0x4cc7   :  { %v7406_v54 = vpop.xlane.xlu1 %7405 }
0x4cc8   :  { %v7407_v5 = vsub.f32 %v7403_v4, %v7406_v54 }
0x4cca   :  { %v7408_v23 = vmul.f32 1.442695, %v7407_v5 }
0x4ccb   :  { %v7417_v8 = vpop.permute.xlu1 %7416 }
0x4ccc   :  { %9835 = vpow2.f32 %v7408_v23  ;;  %v7422_v13 = vsel %vm306_vm3, %v7417_v8, 0 }
0x4ccd   :  { %9454 = vmatpush3.bf16.msra.mxu0 %v7422_v13 }
0x4cce   :  { %9465 = vmatprep.subr.mxu0 %v9876_v40 }
0x4ccf   :  { %v7510_v25 = vpop.permute.xlu1 %7509 }
0x4cd2   :  { %v7318_v50 = vpop.f32.mrf.mxu1 }
0x4cd3   :  { %v7319_v44 = vadd.f32 %v7318_v50, %v11388_v10 }
0x4cd4   :  { %v9446_v14 = vpop.f32.mrf.mxu1 }
0x4cd6   :  { %v7321_v12 = vpop.f32.mrf.mxu1 }
0x4cd8   :  { %v9447_v15 = vpop.f32.mrf.mxu1 }
0x4cd9   :  { %v9836_v28 = vpop.eup %9835 }
0x4cda   :  { %v7410_v2 = vsel %vm290_vm5, %v9836_v28, 0.0 }
0x4cdb   :  { %7411 = vadd.xlane.f32.xlu0 %v7410_v2 }
0x4cf1   :  { %7511 = vrot.lane.b32.xlu0 %v11203_v47, %s9884_s21 }
0x4d64   :  { %v7412_v16 = vpop.xlane.xlu0 %7411 }
0x4d65   :  { %9837 = vrcp.f32 %v7412_v16  ;;  %v9655_v16 = vld [vmem:[%s11570_s6 + $0xf0] ss:$8 sps:$4 sm:$0xff]  }
0x4d68   :  { %v7512_v3 = vpop.permute.xlu0 %7511 }
0x4d72   :  { %v9838_v63 = vpop.eup %9837 }
0x4d73   :  { %v7414_v20 = vmul.f32 %v9838_v63, %v9836_v28  ;;  %v9660_v63 = vld [vmem:[%s11570_s6 + $0xe4] ss:$8 sps:$4 sm:$0xff]  }
0x4d75   :  { %v7415_v21 = vpack.c.bf16 %v7414_v20, %v7414_v20  ;;  %v9658_v20 = vld [vmem:[%s11570_s6 + $0xe0] ss:$8 sps:$4 sm:$0xff]  }
0x4d77   :  { %9456 = vmatmul.mubr.msk.bf16.vlgmr.msra.gmra.mxu0 %vm290_vm5, %v7415_v21  ;;  %v9663_v21 = vld [vmem:[%s11570_s6 + $0xd4] ss:$8 sps:$4 sm:$0xff]  }
0x4d78   :  { %9466 = vmatpush3.xpose.msk.msra.mxu0 %vm213_vm2, %v7512_v3  ;;  %9467 = vmatprep.mubr.msk.f32.mxu0 %vm9877_vm1, %v9876_v40  ;;  %v9661_v3 = vld [vmem:[%s11570_s6 + $0xd0] ss:$8 sps:$4 sm:$0xff]  }
0x4d79   :  { %9476 = vmatprep.subr.bf16.mxu0 %v9876_v40 }
0x4d7f   :  { %9468 = vmatmul.mubr.msk.f32.vlgmr.msra.gmra.mxu0 %vm213_vm2, %v7510_v25  ;;  %v9666_v25 = vld [vmem:[%s11570_s6 + $0xc4] ss:$8 sps:$4 sm:$0xff]  }
0x4d80   :  { %9477 = vmatpush3.bf16.msra.mxu0 %v11320_v52  ;;  %9478 = vmatprep.mubr.msk.bf16.mxu0 %vm9877_vm1, %v9876_v40 }
0x4e37   :  { %v7458_v47 = vpop.f32.mrf.mxu0 }
0x4e38   :  { %v7464_v11 = vpack.c.bf16 %v7458_v47, %v7458_v47  ;;  %v9664_v47 = vld [vmem:[%s11570_s6 + $0xc0] ss:$8 sps:$4 sm:$0xff]  }
0x4e39   :  { %v9457_v27 = vpop.f32.mrf.mxu0 }
0x4e3a   :  { %9462 = vmatmul.mubr.msk.bf16.vlgmr.msra.gmra.mxu1 %vm213_vm2, %v7464_v11  ;;  %v9667_v11 = vld [vmem:[%s11572_s8 + $0x1f8] sm:$0xff]  }
0x4e3b   :  { %v7461_v17 = vpop.f32.mrf.mxu0  ;;  %9472 = vmatprep.mubr.msk.bf16.mxu1 %vm9877_vm1, %v9876_v40  ;;  %v9668_v27 = vld [vmem:[%s11572_s8 + $0x1b8] sm:$0xff]   ;;  %8911 = vmatprep.subr.bf16.mxu0 %v9667_v11 }
0x4e3c   :  { %v9669_v17 = vld [vmem:[%s11572_s8 + $0x1f0] sm:$0xff]  }
0x4e3d   :  { %v9458_v9 = vpop.f32.mrf.mxu0 }
0x4e3e   :  { %v9670_v9 = vld [vmem:[%s11572_s8 + $0x1b0] sm:$0xff]  }
0x4e3f   :  { %v7583_v26 = vpop.f32.mrf.mxu0 }
0x4e40   :  { %v7587_v30 = vmul.f32 0.125, %v7583_v26  ;;  %v9671_v26 = vld [vmem:[%s11572_s8 + $0x1e8] sm:$0xff]  }
0x4e41   :  { %v9469_v32 = vpop.f32.mrf.mxu0 }
0x4e42   :  { %v7588_v0 = vsel %vm10029_vm4, %v7587_v30, -1e+30  ;;  %v9672_v30 = vld [vmem:[%s11572_s8 + $0x1a8] sm:$0xff]   ;;  %v9673_v32 = vld [vmem:[%s11572_s8 + $0x1e0] sm:$0xff]  }
0x4e43   :  { %v7589_v52 = vsel %vm290_vm5, %v7588_v0, -inf }
0x4e44   :  { %7590 = vmax.xlane.f32.xlu1 %v7589_v52  ;;  %v9675_v52 = vld [vmem:[%s11572_s8 + $0x1d8] sm:$0xff]  }
0x4e55   :  { %7601 = vrot.lane.b32.xlu1 %v11339_v46, %s9883_s20 }
0x4ecd   :  { %v7591_v35 = vpop.xlane.xlu1 %7590 }
0x4ece   :  { %v7592_v36 = vsub.f32 %v7588_v0, %v7591_v35  ;;  %v9674_v0 = vld [vmem:[%s11572_s8 + $0x1a0] sm:$0xff]   ;;  %v9676_v35 = vld [vmem:[%s11572_s8 + $0x198] sm:$0xff]  }
0x4ed0   :  { %v7593_v34 = vmul.f32 1.442695, %v7592_v36 }
0x4ed1   :  { %v7602_v7 = vpop.permute.xlu1 %7601 }
0x4ed2   :  { %9839 = vpow2.f32 %v7593_v34  ;;  %v7607_v39 = vsel %vm306_vm3, %v7602_v7, 0 }
0x4ed3   :  { %9471 = vmatpush3.bf16.msra.mxu1 %v7607_v39 }
0x4edf   :  { %v9840_v29 = vpop.eup %9839 }
0x4ee0   :  { %v7595_v46 = vsel %vm290_vm5, %v9840_v29, 0.0 }
0x4ee1   :  { %7596 = vadd.xlane.f32.xlu0 %v7595_v46 }
0x4ee5   :  { %7704 = vadd.xlane.f32.xlu0 %v7703_v42  ;;  %v8577_v42 = vld [vmem:[%s11565_s1 + $0xe] ss:$0 sm:$0xff] }
0x4efa   :  { %v7502_v33 = vpop.f32.mrf.mxu1 }
0x4efb   :  { %v7508_v49 = vadd.f32 %v7502_v33, %v7319_v44 }
0x4efc   :  { %v9463_v22 = vpop.f32.mrf.mxu1 }
0x4efd   :  { %v8578_v22 = vld [vmem:[%s11565_s1 + $0xf] ss:$0 sm:$0xff] }
0x4efe   :  { %v7505_v19 = vpop.f32.mrf.mxu1 }
0x4f00   :  { %v9464_v37 = vpop.f32.mrf.mxu1 }
0x4f6a   :  { %v7597_v53 = vpop.xlane.xlu0 %7596 }
0x4f6b   :  { %9841 = vrcp.f32 %v7597_v53 }
0x4f6e   :  { %v7705_v1 = vpop.xlane.xlu0 %7704 }
0x4f6f   :  { %v7709_v31 = vmul.f32 0.015625, %v7705_v1 }
0x4f71   :  { %v7711_v56 = vsub.f32 %v11425_v45, %v7709_v31 }
0x4f73   :  { %v7713_v13 = vmul.f32 %v7711_v56, %v7711_v56 }
0x4f75   :  { %v7715_v50 = vsel %vm54_vm0, %v7713_v13, 0.0 }
0x4f78   :  { %v9842_v59 = vpop.eup %9841 }
0x4f79   :  { %v7599_v55 = vmul.f32 %v9842_v59, %v9840_v29 }
0x4f7b   :  { %v7600_v57 = vpack.c.bf16 %v7599_v55, %v7599_v55  ;;  %v9677_v55 = vld [vmem:[%s11572_s8 + $0x1d0] sm:$0xff]  }
0x4f7d   :  { %9473 = vmatmul.mubr.msk.bf16.vlgmr.msra.gmra.mxu1 %vm290_vm5, %v7600_v57  ;;  %v9678_v57 = vld [vmem:[%s11572_s8 + $0x190] sm:$0xff]  }
0x4f7e   :  { %7839 = vmatprep.mubr.bf16.mxu1 %v9875_v18 }
0x503d   :  { %v7643_v58 = vpop.f32.mrf.mxu1 }
0x503e   :  { %v7649_v24 = vpack.c.bf16 %v7643_v58, %v7643_v58  ;;  %v9679_v58 = vld [vmem:[%s11572_s8 + $0x1c8] sm:$0xff]  }
0x503f   :  { %v9474_v61 = vpop.f32.mrf.mxu1 }
0x5040   :  { %9479 = vmatmul.mubr.msk.bf16.vlgmr.msra.gmra.mxu0 %vm213_vm2, %v7649_v24  ;;  %v9680_v24 = vld [vmem:[%s11572_s8 + $0x188] sm:$0xff]   ;;  %v9681_v61 = vld [vmem:[%s11572_s8 + $0x1c0] sm:$0xff]  }
0x5041   :  { %v7646_v10 = vpop.f32.mrf.mxu1  ;;  %8912 = vmatpush3.bf16.msra.mxu0 %v9668_v27 }
0x5042   :  { %8913 = vmatprep.subr.bf16.mxu0 %v9669_v17  ;;  %v9682_v10 = vld [vmem:[%s11572_s8 + $0x180] sm:$0xff]  }
0x5043   :  { %v9475_v62 = vpop.f32.mrf.mxu1 }
0x5044   :  { %v8587_v62 = vld [vmem:[%s11571_s7 + $0x3] ss:$4 sm:$0x3] }
0x5045   :  { %8914 = vmatpush3.bf16.msra.mxu0 %v9670_v9  ;;  %v7761_v31 = vrot.slane %v8587_v62, %v10015_v51 }
0x5046   :  { %8915 = vmatprep.subr.bf16.mxu0 %v9671_v26 }
0x5049   :  { %8916 = vmatpush3.bf16.msra.mxu0 %v9672_v30 }
0x504a   :  { %8917 = vmatprep.subr.bf16.mxu0 %v9673_v32 }
0x504d   :  { %8918 = vmatpush3.bf16.msra.mxu0 %v9674_v0 }
0x504e   :  { %8919 = vmatprep.subr.bf16.mxu0 %v9675_v52 }
0x5051   :  { %8920 = vmatpush3.bf16.msra.mxu0 %v9676_v35 }
0x5052   :  { %8921 = vmatprep.subr.bf16.mxu0 %v9677_v55 }
0x5055   :  { %8922 = vmatpush3.bf16.msra.mxu0 %v9678_v57 }
0x5056   :  { %8923 = vmatprep.subr.bf16.mxu0 %v9679_v58 }
0x5059   :  { %8924 = vmatpush3.bf16.msra.mxu0 %v9680_v24 }
0x505a   :  { %8925 = vmatprep.subr.bf16.mxu0 %v9681_v61 }
0x505d   :  { %8926 = vmatpush3.bf16.msra.mxu0 %v9682_v10 }
0x5100   :  { %v7687_v48 = vpop.f32.mrf.mxu0 }
0x5101   :  { %v7693_v38 = vadd.f32 %v7687_v48, %v7508_v49  ;;  %v7757_v48 = vrot.slane %v8587_v62, %v10001_v43  ;;  %v8629_v43 = vld [vmem:[%s11573_s9 + $0x3] ss:$0 sm:$0xff] }
0x5102   :  { %v9480_v4 = vpop.f32.mrf.mxu0 }
0x5103   :  { %v7695_v54 = vadd.f32 %v7693_v38, %v11150_v6  ;;  %v9657_v6 = vld [vmem:[%s11570_s6 + $0xf4] ss:$8 sps:$4 sm:$0xff]  }
0x5104   :  { %v7690_v5 = vpop.f32.mrf.mxu0  ;;  %7815 = vmatprep.subr.bf16.mxu1 %v9657_v6 }
0x5105   :  { %v11436_v23 = vadd.f32 %v8576_v60, %v7695_v54  ;;  %7816 = vmatpush1.bf16.msra.mxu1 %v9655_v16 }
0x5106   :  { %v9481_v18 = vpop.f32.mrf.mxu0  ;;  %7817 = vmatprep.subr.bf16.mxu1 %v9660_v63 }
0x5107   :  { %v7706_v8 = vsel %vm54_vm0, %v11436_v23, 0.0 }
0x5108   :  { %7707 = vadd.xlane.f32.xlu0 %v7706_v8 }
0x5109   :  { %7818 = vmatpush1.bf16.msra.mxu1 %v9658_v20 }
0x510a   :  { %7819 = vmatprep.subr.bf16.mxu1 %v9663_v21 }
0x510c   :  { %7716 = vadd.xlane.f32.xlu0 %v7715_v50 }
0x510d   :  { %7820 = vmatpush1.bf16.msra.mxu1 %v9661_v3 }
0x510e   :  { %7821 = vmatprep.subr.bf16.mxu1 %v9666_v25 }
0x5111   :  { %7822 = vmatpush1.bf16.msra.mxu1 %v9664_v47 }
0x5112   :  { %9482 = vmatprep.subr.bf16.mxu1 %v9876_v40 }
0x5191   :  { %v7708_v14 = vpop.xlane.xlu0 %7707 }
0x5192   :  { %v7710_v12 = vmul.f32 0.015625, %v7708_v14 }
0x5194   :  { %v7712_v15 = vsub.f32 %v11436_v23, %v7710_v12 }
0x5195   :  { %v7717_v36 = vpop.xlane.xlu0 %7716 }
0x5196   :  { %v7714_v28 = vmul.f32 %v7712_v15, %v7712_v15  ;;  %v7721_v34 = vmul.f32 0.015625, %v7717_v36 }
0x5198   :  { %v7718_v2 = vsel %vm54_vm0, %v7714_v28, 0.0  ;;  %v7723_v7 = vadd.f32 1e-05, %v7721_v34  ;;  %v9684_v34 = vld [vmem:[%s11575_s11 + $0x10] sm:$0xff]  }
0x5199   :  { %7719 = vadd.xlane.f32.xlu1 %v7718_v2 }
0x519a   :  { %9843 = vrsqrt.f32 %v7723_v7  ;;  %v9685_v7 = vld [vmem:[%s11575_s11 + $0x8] sm:$0xff]  }
0x51a7   :  { %v9844_v29 = vpop.eup %9843 }
0x51a8   :  { %v7727_v46 = vmul.f32 %v9844_v29, %v7711_v56 }
0x51aa   :  { %v7733_v33 = vmul.f32 %v8577_v42, %v7727_v46 }
0x51ac   :  { %v7739_v53 = vadd.f32 %v8578_v22, %v7733_v33 }
0x5222   :  { %v7720_v39 = vpop.xlane.xlu1 %7719 }
0x5223   :  { %v7722_v41 = vmul.f32 0.015625, %v7720_v39  ;;  %v9686_v39 = vld [vmem:[%s11575_s11] sm:$0xff]  }
0x5225   :  { %v7724_v60 = vadd.f32 1e-05, %v7722_v41 }
0x5227   :  { %9845 = vrsqrt.f32 %v7724_v60 }
0x5234   :  { %v9846_v44 = vpop.eup %9845 }
0x5235   :  { %v7728_v49 = vmul.f32 %v9846_v44, %v7712_v15 }
0x5237   :  { %v7734_v19 = vmul.f32 %v8577_v42, %v7728_v49 }
0x5239   :  { %v7740_v37 = vadd.f32 %v8578_v22, %v7734_v19  ;;  %v8646_v22 = vld [vmem:[%s11574_s10] ss:$0 sm:$0xff] }
0x523b   :  { %v7741_v59 = vpack.c.bf16 %v7740_v37, %v7739_v53  ;;  %v8647_v53 = vld [vmem:[%s11574_s10 + $0x1] ss:$0 sm:$0xff] }
0x523d   :  { %8596 = vmatmul.mubr.msk.bf16.vlgmr.msra.gmra.mxu1 %vm54_vm0, %v7741_v59 }
0x523e   :  { %9490 = vmatprep.mubr.msk.bf16.mxu1 %vm9877_vm1, %v9876_v40 }
0x52fd   :  { %v7841_v1 = vpop.f32.mrf.mxu1 }
0x52fe   :  { %v7842_v5 = vadd.f32 %v7841_v1, %v7757_v48 }
0x52ff   :  { %v7843_v38 = vpop.f32.mrf.mxu1 }
0x5300   :  { %v7844_v56 = vadd.f32 %v7843_v38, %v7761_v31  ;;  %v7850_v12 = vmax.f32 %v7842_v5, 0.0 }
0x5301   :  { %v7845_v4 = vpop.f32.mrf.mxu1 }
0x5302   :  { %v7846_v54 = vadd.f32 %v7845_v4, %v7757_v48  ;;  %v7851_v50 = vmax.f32 %v7844_v56, 0.0 }
0x5303   :  { %v7847_v18 = vpop.f32.mrf.mxu1 }
0x5304   :  { %v7848_v8 = vadd.f32 %v7847_v18, %v7761_v31  ;;  %v7852_v13 = vmax.f32 %v7846_v54, 0.0 }
0x5306   :  { %v7853_v14 = vmax.f32 %v7848_v8, 0.0  ;;  %v7854_v28 = vpack.c.bf16 %v7852_v13, %v7850_v12 }
0x5308   :  { %v7855_v15 = vpack.c.bf16 %v7853_v14, %v7851_v50 }
0x530a   :  { %8022 = vmatprep.mubr.bf16.mxu0 %v7855_v15 }
0x530b   :  { %8023 = vmatmul.mubr.bf16.vlgmr.msra.gmra.mxu0 %v7854_v28 }
0x53cb   :  { %v8927_v2 = vpop.f32.mrf.mxu0 }
0x53cd   :  { %v8928_v51 = vpop.f32.mrf.mxu0 }
0x53ce   :  { %v8929_v6 = vadd.f32 %v8928_v51, %v8927_v2 }
0x53cf   :  { %v8930_v16 = vpop.f32.mrf.mxu0 }
0x53d0   :  { %v8025_v63 = vadd.f32 %v8929_v6, %v8629_v43 }
0x53d1   :  { %v8931_v20 = vpop.f32.mrf.mxu0 }
0x53d2   :  { %v8932_v21 = vadd.f32 %v8931_v20, %v8930_v16  ;;  %v8031_v3 = vadd.f32 %v8025_v63, %v11425_v45 }
0x53d4   :  { %v8028_v25 = vadd.f32 %v8932_v21, %v8629_v43  ;;  %v8035_v47 = vsel %vm54_vm0, %v8031_v3, 0.0 }
0x53d5   :  { %8036 = vadd.xlane.f32.xlu0 %v8035_v47 }
0x53d6   :  { %v8032_v11 = vadd.f32 %v8028_v25, %v11436_v23  ;;  %v9683_v23 = vld [vmem:[%s11575_s11 + $0x18] sm:$0xff]  }
0x53d7   :  { %9483 = vmatpush3.bf16.msra.mxu1 %v9683_v23 }
0x53d8   :  { %v8038_v27 = vsel %vm54_vm0, %v8032_v11, 0.0  ;;  %9484 = vmatprep.subr.bf16.mxu1 %v9876_v40 }
0x53d9   :  { %8039 = vadd.xlane.f32.xlu0 %v8038_v27 }
0x53db   :  { %9485 = vmatpush3.bf16.msra.mxu1 %v9684_v34 }
0x53dc   :  { %9486 = vmatprep.subr.bf16.mxu1 %v9876_v40 }
0x53df   :  { %9487 = vmatpush3.bf16.msra.mxu1 %v9685_v7 }
0x53e0   :  { %9488 = vmatprep.subr.bf16.mxu1 %v9876_v40 }
0x53e3   :  { %9489 = vmatpush3.bf16.msra.mxu1 %v9686_v39 }
0x545e   :  { %v8037_v17 = vpop.xlane.xlu0 %8036 }
0x545f   :  { %v8041_v9 = vmul.f32 0.015625, %v8037_v17 }
0x5461   :  { %v8043_v26 = vsub.f32 %v8031_v3, %v8041_v9 }
0x5462   :  { %v8040_v30 = vpop.xlane.xlu0 %8039 }
0x5463   :  { %v8042_v32 = vmul.f32 0.015625, %v8040_v30  ;;  %v8045_v0 = vmul.f32 %v8043_v26, %v8043_v26 }
0x5465   :  { %v8044_v52 = vsub.f32 %v8032_v11, %v8042_v32  ;;  %v8047_v35 = vsel %vm54_vm0, %v8045_v0, 0.0 }
0x5466   :  { %8048 = vadd.xlane.f32.xlu0 %v8047_v35 }
0x5467   :  { %v8046_v45 = vmul.f32 %v8044_v52, %v8044_v52 }
0x5469   :  { %v8050_v36 = vsel %vm54_vm0, %v8046_v45, 0.0 }
0x546a   :  { %8051 = vadd.xlane.f32.xlu0 %v8050_v36 }
0x54ef   :  { %v8049_v41 = vpop.xlane.xlu0 %8048 }
0x54f0   :  { %v8053_v60 = vmul.f32 0.015625, %v8049_v41 }
0x54f2   :  { %v8055_v29 = vadd.f32 1e-05, %v8053_v60 }
0x54f3   :  { %v8052_v46 = vpop.xlane.xlu0 %8051 }
0x54f4   :  { %9847 = vrsqrt.f32 %v8055_v29  ;;  %v8054_v42 = vmul.f32 0.015625, %v8052_v46 }
0x54f6   :  { %v8056_v44 = vadd.f32 1e-05, %v8054_v42 }
0x54f8   :  { %9849 = vrsqrt.f32 %v8056_v44 }
0x5501   :  { %v9848_v33 = vpop.eup %9847 }
0x5502   :  { %v8059_v49 = vmul.f32 %v9848_v33, %v8043_v26 }
0x5504   :  { %v8065_v19 = vmul.f32 %v8646_v22, %v8059_v49 }
0x5505   :  { %v9850_v40 = vpop.eup %9849 }
0x5506   :  { %v8060_v37 = vmul.f32 %v9850_v40, %v8044_v52  ;;  %v8071_v57 = vadd.f32 %v8647_v53, %v8065_v19 }
0x5508   :  { %v8066_v59 = vmul.f32 %v8646_v22, %v8060_v37 }
0x550a   :  { %v8072_v55 = vadd.f32 %v8647_v53, %v8066_v59 }
0x550c   :  { %v8073_v58 = vpack.c.bf16 %v8072_v55, %v8071_v57 }
0x550e   :  { %9491 = vmatmul.mubr.msk.bf16.vlgmr.msra.gmra.mxu1 %vm54_vm0, %v8073_v58 }
0x55ce   :  { %v8143_v24 = vpop.f32.mrf.mxu1 }
0x55cf   :  { %8150 = vst [vmem:[#allocation2] sm:$0xff] %v8143_v24 }
0x55d0   :  { %v9492_v61 = vpop.f32.mrf.mxu1 }
0x55d2   :  { %v8146_v10 = vpop.f32.mrf.mxu1 }
0x55d3   :  { %8151 = vst [vmem:[#allocation2 + $0x8] sm:$0xff] %v8146_v10 }
0x55d4   :  { %v9493_v62 = vpop.f32.mrf.mxu1 }
0x55d5   :  { %9864 = shalt.err (!%p9861_p4)
}
0x55d6   :  { %s9886_s10 = smov 128   ;;  %s9887_s25 = smov 8  }
0x55d7   :  { %8163 = dma.vmem_to_hbm [thread:$0]  %s8158_s23, 256, %s11576_s12, [#allocation3], %s9886_s10, %s9886_s10, %s9887_s25  }
0x55d8   :  { %9873 = dma.done.wait [#allocation3], 256  }
0x55d9   :  { %9874 = vsyncadd [#allocation3], 4294967040 }
0x55da   :  { %8167 = vsyncpa [#allocation3], 1 }

</bundles_post_ra>
